<compile_context>
chip_gen: v6e
topology: v6e:2x2x1
jax: 0.10.0
libtpu: 0.0.40
codegen_flags: <defaults>
</compile_context>

<pallas_src>
import functools

import jax
import jax.numpy as jnp
import numpy as np
from jax.experimental import pallas as pl
from jax.experimental.pallas import tpu as pltpu

LANE = 128
W_L = 8   # left halo width inside the padded scratch (aligned interior store)


def _round_up(v, m):
    return (v + m - 1) // m * m


# ---------------------------------------------------------------------------
# In-kernel helpers
# ---------------------------------------------------------------------------
def _conv3x3_rows(pad_ref, w_ref, H, W, C):
    """3x3 conv (stride 1) over a zero-halo (H+2, Wtot, C) bf16 VMEM scratch.

    Image interior lives at rows 1..H, cols W_L..W_L+W-1; the halo ring around
    it is zero.  Three MXU matmuls (one per dy), contraction K = 3*C: the three
    dx-shifted windows are concatenated along the channel (lane) axis in bf16
    and multiplied by w_ref[dy] of shape (3*C, Cout) (dx blocks stacked on K).
    Returns an f32 (H*W, Cout) accumulator.
    """
    Cout = w_ref.shape[-1]
    acc = jnp.zeros((H * W, Cout), jnp.float32)
    for dy in range(3):                                              # static unroll
        rows = pad_ref[pl.ds(dy, H), pl.ds(W_L - 1, W + 2), :]       # (H, W+2, C) bf16
        band = jnp.concatenate(
            [rows[:, 0:W, :], rows[:, 1:W + 1, :], rows[:, 2:W + 2, :]],
            axis=-1)                                                 # (H, W, 3C) bf16
        acc = acc + jnp.dot(band.reshape(H * W, 3 * C), w_ref[dy],
                            preferred_element_type=jnp.float32)      # bf16 MXU, f32 acc
    return acc


def basic_block_kernel(x_ref, w1_ref, w2_ref, s1_ref, b1_ref, s2_ref, b2_ref,
                       out_ref, pad, *, H, W, C):
    Wtot = pad.shape[1]

    # Zero only the halo ring (interior is fully overwritten each step, halo is
    # never written by any other path).  Cheap: 2 rows + 2 thin column bands.
    zrow = jnp.zeros((1, Wtot, C), pad.dtype)
    pad[0:1, :, :] = zrow
    pad[H + 1:H + 2, :, :] = zrow
    pad[:, 0:W_L, :] = jnp.zeros((H + 2, W_L, C), pad.dtype)
    pad[:, W_L + W:Wtot, :] = jnp.zeros((H + 2, Wtot - W_L - W, C), pad.dtype)

    # ----- conv1 + bn1 + relu (intermediate never leaves VMEM) -----
    pad[1:H + 1, W_L:W_L + W, :] = x_ref[0]                          # bf16, aligned
    acc1 = _conv3x3_rows(pad, w1_ref, H, W, C)
    y1 = jnp.maximum(acc1 * s1_ref[...] + b1_ref[...], 0.0)          # f32 VPU epilogue

    # ----- conv2 + bn2 + residual add + relu (same scratch reused; halo stays 0)
    pad[1:H + 1, W_L:W_L + W, :] = y1.reshape(H, W, C).astype(jnp.bfloat16)
    acc2 = _conv3x3_rows(pad, w2_ref, H, W, C)
    y2 = acc2 * s2_ref[...] + b2_ref[...]
    y2 = y2 + x_ref[0].reshape(H * W, C).astype(jnp.float32)         # identity (VMEM)
    out_ref[...] = jnp.maximum(y2, 0.0).reshape(1, H, W, C).astype(out_ref.dtype)


# ---------------------------------------------------------------------------
# Fused forward on padded NHWC bf16 (no wrapper-side HBM passes)
# ---------------------------------------------------------------------------
def basic_block_forward_padded(xp, w1p, w2p, s1p, b1p, s2p, b2p):
    """xp: (N,H,W,Cp) bf16 channel-padded NHWC.  Returns same layout, bf16."""
    N, H, W, Cp = xp.shape
    Wtot = W_L + _round_up(W + 1, 8)

    kernel = functools.partial(basic_block_kernel, H=H, W=W, C=Cp)

    flops = 2 * 2 * 9 * N * H * W * Cp * Cp                          # two 3x3 convs
    bytes_accessed = (xp.size * 2 + w1p.size * 2 + w2p.size * 2
                      + 4 * 4 * Cp + N * H * W * Cp * 2)

    # Per-step VMEM estimate (scratch + double-buffered in/out + weights + temps).
    step_bytes = ((H + 2) * Wtot * Cp * 2
                  + 2 * 2 * H * W * Cp * 2
                  + 2 * 2 * 3 * 3 * Cp * Cp * 2
                  + 6 * H * W * Cp * 4)
    cp_kwargs = dict(dimension_semantics=("parallel",))
    if step_bytes > 24 * 1024 * 1024:
        # Only raise the scoped VMEM limit when the tile actually needs it.
        cp_kwargs["vmem_limit_bytes"] = min(int(step_bytes * 3 // 2),
                                            100 * 1024 * 1024)

    return pl.pallas_call(
        kernel,
        out_shape=jax.ShapeDtypeStruct((N, H, W, Cp), jnp.bfloat16),
        grid=(N,),
        in_specs=[
            pl.BlockSpec((1, H, W, Cp), lambda n: (n, 0, 0, 0)),     # x (also residual)
            pl.BlockSpec((3, 3 * Cp, Cp), lambda n: (0, 0, 0)),      # w1 (grid-invariant)
            pl.BlockSpec((3, 3 * Cp, Cp), lambda n: (0, 0, 0)),      # w2
            pl.BlockSpec((1, Cp), lambda n: (0, 0)),                 # scale1
            pl.BlockSpec((1, Cp), lambda n: (0, 0)),                 # bias1
            pl.BlockSpec((1, Cp), lambda n: (0, 0)),                 # scale2
            pl.BlockSpec((1, Cp), lambda n: (0, 0)),                 # bias2
        ],
        out_specs=pl.BlockSpec((1, H, W, Cp), lambda n: (n, 0, 0, 0)),
        scratch_shapes=[pltpu.VMEM((H + 2, Wtot, Cp), jnp.bfloat16)],  # single shared pad
        compiler_params=pltpu.CompilerParams(**cp_kwargs),
        cost_estimate=pl.CostEstimate(flops=flops, transcendentals=0,
                                      bytes_accessed=bytes_accessed),
    )(xp, w1p, w2p, s1p, b1p, s2p, b2p)


# ---------------------------------------------------------------------------
# BasicBlock parameter container / forward (params pre-packed in __init__)
# ---------------------------------------------------------------------------
class BasicBlockPallas:
    expansion = 1

    def __init__(self, key, inplanes, planes, num_domains=2, eps=1e-5):
        assert inplanes == planes, "stride=1, downsample=None => inplanes == planes"
        self.eps = eps
        self.C = planes
        self.Cp = _round_up(planes, LANE)
        ks = jax.random.split(key, 10)
        # conv weights stored HWIO (3, 3, Cin, Cout)
        self.w1 = 0.1 * jax.random.normal(ks[0], (3, 3, inplanes, planes), jnp.float32)
        self.w2 = 0.1 * jax.random.normal(ks[1], (3, 3, planes, planes), jnp.float32)
        # domain-specific BN params: (num_domains, C)
        self.g1 = 1.0 + 0.1 * jax.random.normal(ks[2], (num_domains, planes), jnp.float32)
        self.b1 = 0.1 * jax.random.normal(ks[3], (num_domains, planes), jnp.float32)
        self.m1 = 0.1 * jax.random.normal(ks[4], (num_domains, planes), jnp.float32)
        self.v1 = jnp.abs(jax.random.normal(ks[5], (num_domains, planes), jnp.float32)) + 0.5
        self.g2 = 1.0 + 0.1 * jax.random.normal(ks[6], (num_domains, planes), jnp.float32)
        self.b2 = 0.1 * jax.random.normal(ks[7], (num_domains, planes), jnp.float32)
        self.m2 = 0.1 * jax.random.normal(ks[8], (num_domains, planes), jnp.float32)
        self.v2 = jnp.abs(jax.random.normal(ks[9], (num_domains, planes), jnp.float32)) + 0.5

        # --- pre-packed kernel operands (hoisted out of the per-call path) ---
        self.w1_packed = self._pack_w(self.w1)                     # (3, 3Cp, Cp) bf16
        self.w2_packed = self._pack_w(self.w2)
        self.s1_all, self.b1_all = self._pack_bn(self.g1, self.b1, self.m1, self.v1)
        self.s2_all, self.b2_all = self._pack_bn(self.g2, self.b2, self.m2, self.v2)

    def _pack_w(self, w):
        pc = self.Cp - self.C
        wp = jnp.pad(w, ((0, 0), (0, 0), (0, pc), (0, pc))).astype(jnp.bfloat16)
        return wp.reshape(3, 3 * self.Cp, self.Cp)                 # dx blocks stacked on K

    def _pack_bn(self, g, b, m, v):
        pc = self.Cp - self.C
        scale = g / jnp.sqrt(v + self.eps)
        bias = b - m * scale
        scale = jnp.pad(scale, ((0, 0), (0, pc))).astype(jnp.float32)
        bias = jnp.pad(bias, ((0, 0), (0, pc))).astype(jnp.float32)
        return scale[:, None, :], bias[:, None, :]                 # (D, 1, Cp)

    def __call__(self, inp):
        # NCHW-in / NCHW-out to match the PyTorch interface; output stays bf16.
        # TODO(synk): when chaining blocks, pass the padded NHWC bf16 layout
        # straight through (skip the transpose / channel pad / slice passes).
        x, dom_id = inp
        xp = jnp.pad(jnp.transpose(x, (0, 2, 3, 1)),
                     ((0, 0), (0, 0), (0, 0), (0, self.Cp - self.C))
                     ).astype(jnp.bfloat16)
        out = basic_block_forward_padded(
            xp, self.w1_packed, self.w2_packed,
            self.s1_all[dom_id], self.b1_all[dom_id],
            self.s2_all[dom_id], self.b2_all[dom_id])
        return jnp.transpose(out[..., :self.C], (0, 3, 1, 2)), dom_id


# ---------------------------------------------------------------------------
# Pure-JAX reference (mirrors the kernel's bf16 rounding points, incl. output)
# ---------------------------------------------------------------------------
def reference_forward(blk, x, dom_id):
    f32 = jnp.float32

    def conv(x_nchw, w_hwio):
        w_oihw = jnp.transpose(w_hwio, (3, 2, 0, 1)).astype(jnp.bfloat16).astype(f32)
        return jax.lax.conv_general_dilated(
            x_nchw, w_oihw, (1, 1), ((1, 1), (1, 1)),
            dimension_numbers=("NCHW", "OIHW", "NCHW"))

    def bn(y, g, b, m, v):
        sc = g[dom_id] / jnp.sqrt(v[dom_id] + blk.eps)
        bi = b[dom_id] - m[dom_id] * sc
        return y * sc[None, :, None, None] + bi[None, :, None, None]

    xb = x.astype(jnp.bfloat16).astype(f32)                        # bf16 HBM storage of x
    y1 = jnp.maximum(bn(conv(xb, blk.w1), blk.g1, blk.b1, blk.m1, blk.v1), 0.0)
    y1 = y1.astype(jnp.bfloat16).astype(f32)                       # bf16 MXU input of conv2
    y2 = bn(conv(y1, blk.w2), blk.g2, blk.b2, blk.m2, blk.v2) + xb
    return jnp.maximum(y2, 0.0).astype(jnp.bfloat16)               # bf16 output (as kernel)


if __name__ == "__main__":
    key = jax.random.PRNGKey(0)
    k_x, k_p = jax.random.split(key)

    N, C, H, W = 2, 4, 16, 16
    x = jax.random.normal(k_x, (N, C, H, W), jnp.float32)
    dom_id = 1

    block = BasicBlockPallas(k_p, inplanes=C, planes=C, num_domains=2)

    out, dom_out = block((x, dom_id))
    out = jax.block_until_ready(out)

    ref = jax.block_until_ready(reference_forward(block, x, dom_id))
    assert out.shape == (N, C, H, W) and dom_out == dom_id
    np.testing.assert_allclose(np.asarray(out).astype(np.float32),
                               np.asarray(ref).astype(np.float32),
                               rtol=2e-2, atol=2e-2)

    print("KERNEL_OK")
</pallas_src>

<mosaic_0001>
module attributes {stable_mosaic.version = 11 : i64} {
  func.func @basic_block_kernel(%arg0: i32, %arg1: memref<1x16x16x128xbf16, #tpu.memory_space<vmem>>, %arg2: memref<3x384x128xbf16, #tpu.memory_space<vmem>>, %arg3: memref<3x384x128xbf16, #tpu.memory_space<vmem>>, %arg4: memref<1x128xf32, #tpu.memory_space<vmem>>, %arg5: memref<1x128xf32, #tpu.memory_space<vmem>>, %arg6: memref<1x128xf32, #tpu.memory_space<vmem>>, %arg7: memref<1x128xf32, #tpu.memory_space<vmem>>, %arg8: memref<1x16x16x128xbf16, #tpu.memory_space<vmem>>, %arg9: memref<18x32x128xbf16, #tpu.memory_space<vmem>>) attributes {dimension_semantics = [#tpu.dimension_semantics<parallel>], iteration_bounds = array<i64: 2>, scalar_prefetch = 0 : i64, scratch_operands = 1 : i64, tpu.core_type = #tpu.core_type<tc>, window_params = [{transform_indices = @transform_0, window_bounds = array<i64: 1, 16, 16, 128>}, {pipeline_mode = #tpu.pipeline_mode<synchronous>, transform_indices = @transform_1, window_bounds = array<i64: 3, 384, 128>}, {pipeline_mode = #tpu.pipeline_mode<synchronous>, transform_indices = @transform_2, window_bounds = array<i64: 3, 384, 128>}, {pipeline_mode = #tpu.pipeline_mode<synchronous>, transform_indices = @transform_3, window_bounds = array<i64: 1, 128>}, {pipeline_mode = #tpu.pipeline_mode<synchronous>, transform_indices = @transform_4, window_bounds = array<i64: 1, 128>}, {pipeline_mode = #tpu.pipeline_mode<synchronous>, transform_indices = @transform_5, window_bounds = array<i64: 1, 128>}, {pipeline_mode = #tpu.pipeline_mode<synchronous>, transform_indices = @transform_6, window_bounds = array<i64: 1, 128>}, {transform_indices = @transform_7, window_bounds = array<i64: 1, 16, 16, 128>}]} {
    %cst = arith.constant 0.000000e+00 : bf16
    %0 = vector.broadcast %cst : bf16 to vector<1x32x128xbf16>
    %c0 = arith.constant 0 : index
    %c0_0 = arith.constant 0 : index
    %c0_1 = arith.constant 0 : index
    %1 = vector.load %arg9[%c0, %c0_0, %c0_1] : memref<18x32x128xbf16, #tpu.memory_space<vmem>>, vector<1x32x128xbf16>
    tpu.vector_store %arg9[%c0, %c0_0, %c0_1], %0 {strides = array<i32>} : memref<18x32x128xbf16, #tpu.memory_space<vmem>>, vector<1x32x128xbf16>,
    %c17 = arith.constant 17 : index
    %c0_2 = arith.constant 0 : index
    %c0_3 = arith.constant 0 : index
    %2 = vector.load %arg9[%c17, %c0_2, %c0_3] : memref<18x32x128xbf16, #tpu.memory_space<vmem>>, vector<1x32x128xbf16>
    tpu.vector_store %arg9[%c17, %c0_2, %c0_3], %0 {strides = array<i32>} : memref<18x32x128xbf16, #tpu.memory_space<vmem>>, vector<1x32x128xbf16>,
    %cst_4 = arith.constant 0.000000e+00 : bf16
    %3 = vector.broadcast %cst_4 : bf16 to vector<18x8x128xbf16>
    %c0_5 = arith.constant 0 : index
    %c0_6 = arith.constant 0 : index
    %c0_7 = arith.constant 0 : index
    %4 = vector.load %arg9[%c0_5, %c0_6, %c0_7] : memref<18x32x128xbf16, #tpu.memory_space<vmem>>, vector<18x8x128xbf16>
    tpu.vector_store %arg9[%c0_5, %c0_6, %c0_7], %3 {strides = array<i32>} : memref<18x32x128xbf16, #tpu.memory_space<vmem>>, vector<18x8x128xbf16>,
    %cst_8 = arith.constant 0.000000e+00 : bf16
    %5 = vector.broadcast %cst_8 : bf16 to vector<18x8x128xbf16>
    %c0_9 = arith.constant 0 : index
    %c24 = arith.constant 24 : index
    %c0_10 = arith.constant 0 : index
    %6 = vector.load %arg9[%c0_9, %c24, %c0_10] : memref<18x32x128xbf16, #tpu.memory_space<vmem>>, vector<18x8x128xbf16>
    tpu.vector_store %arg9[%c0_9, %c24, %c0_10], %5 {strides = array<i32>} : memref<18x32x128xbf16, #tpu.memory_space<vmem>>, vector<18x8x128xbf16>,
    %c0_11 = arith.constant 0 : index
    %c0_12 = arith.constant 0 : index
    %c0_13 = arith.constant 0 : index
    %c0_14 = arith.constant 0 : index
    %7 = vector.load %arg1[%c0_11, %c0_12, %c0_13, %c0_14] : memref<1x16x16x128xbf16, #tpu.memory_space<vmem>>, vector<1x16x16x128xbf16>
    %8 = vector.shape_cast %7 : vector<1x16x16x128xbf16> to vector<16x16x128xbf16>
    %c1 = arith.constant 1 : index
    %c8 = arith.constant 8 : index
    %c0_15 = arith.constant 0 : index
    %9 = vector.load %arg9[%c1, %c8, %c0_15] : memref<18x32x128xbf16, #tpu.memory_space<vmem>>, vector<16x16x128xbf16>
    tpu.vector_store %arg9[%c1, %c8, %c0_15], %8 {strides = array<i32>} : memref<18x32x128xbf16, #tpu.memory_space<vmem>>, vector<16x16x128xbf16>,
    %cst_16 = arith.constant 0.000000e+00 : f32
    %10 = vector.broadcast %cst_16 : f32 to vector<256x128xf32>
    %c0_17 = arith.constant 0 : index
    %c7 = arith.constant 7 : index
    %c0_18 = arith.constant 0 : index
    %11 = vector.load %arg9[%c0_17, %c7, %c0_18] : memref<18x32x128xbf16, #tpu.memory_space<vmem>>, vector<16x18x128xbf16>
    %12 = vector.extract_strided_slice %11 {offsets = [0, 0, 0], sizes = [16, 16, 128], strides = [1, 1, 1]} : vector<16x18x128xbf16> to vector<16x16x128xbf16>
    %13 = vector.extract_strided_slice %11 {offsets = [0, 1, 0], sizes = [16, 16, 128], strides = [1, 1, 1]} : vector<16x18x128xbf16> to vector<16x16x128xbf16>
    %14 = vector.extract_strided_slice %11 {offsets = [0, 2, 0], sizes = [16, 16, 128], strides = [1, 1, 1]} : vector<16x18x128xbf16> to vector<16x16x128xbf16>
    %15 = tpu.concatenate %12, %13, %14 in 2 : vector<16x16x128xbf16>, vector<16x16x128xbf16>, vector<16x16x128xbf16> -> vector<16x16x384xbf16>
    %16 = vector.shape_cast %15 : vector<16x16x384xbf16> to vector<256x384xbf16>
    %c0_19 = arith.constant 0 : index
    %c0_20 = arith.constant 0 : index
    %c0_21 = arith.constant 0 : index
    %17 = vector.load %arg2[%c0_19, %c0_20, %c0_21] : memref<3x384x128xbf16, #tpu.memory_space<vmem>>, vector<1x384x128xbf16>
    %18 = vector.shape_cast %17 : vector<1x384x128xbf16> to vector<384x128xbf16>
    %cst_22 = arith.constant dense<0.000000e+00> : vector<256x128xf32>
    %19 = tpu.matmul %16, %18, %cst_22 {dimension_numbers = #tpu.dot_dimension_numbers<[1], [0], [0], [1], [0, 0, 1, 1], [], []>} : vector<256x384xbf16>, vector<384x128xbf16>, vector<256x128xf32> -> vector<256x128xf32>
    %20 = arith.addf %10, %19 : vector<256x128xf32>
    %c1_23 = arith.constant 1 : index
    %c7_24 = arith.constant 7 : index
    %c0_25 = arith.constant 0 : index
    %21 = vector.load %arg9[%c1_23, %c7_24, %c0_25] : memref<18x32x128xbf16, #tpu.memory_space<vmem>>, vector<16x18x128xbf16>
    %22 = vector.extract_strided_slice %21 {offsets = [0, 0, 0], sizes = [16, 16, 128], strides = [1, 1, 1]} : vector<16x18x128xbf16> to vector<16x16x128xbf16>
    %23 = vector.extract_strided_slice %21 {offsets = [0, 1, 0], sizes = [16, 16, 128], strides = [1, 1, 1]} : vector<16x18x128xbf16> to vector<16x16x128xbf16>
    %24 = vector.extract_strided_slice %21 {offsets = [0, 2, 0], sizes = [16, 16, 128], strides = [1, 1, 1]} : vector<16x18x128xbf16> to vector<16x16x128xbf16>
    %25 = tpu.concatenate %22, %23, %24 in 2 : vector<16x16x128xbf16>, vector<16x16x128xbf16>, vector<16x16x128xbf16> -> vector<16x16x384xbf16>
    %26 = vector.shape_cast %25 : vector<16x16x384xbf16> to vector<256x384xbf16>
    %c1_26 = arith.constant 1 : index
    %c0_27 = arith.constant 0 : index
    %c0_28 = arith.constant 0 : index
    %27 = vector.load %arg2[%c1_26, %c0_27, %c0_28] : memref<3x384x128xbf16, #tpu.memory_space<vmem>>, vector<1x384x128xbf16>
    %28 = vector.shape_cast %27 : vector<1x384x128xbf16> to vector<384x128xbf16>
    %cst_29 = arith.constant dense<0.000000e+00> : vector<256x128xf32>
    %29 = tpu.matmul %26, %28, %cst_29 {dimension_numbers = #tpu.dot_dimension_numbers<[1], [0], [0], [1], [0, 0, 1, 1], [], []>} : vector<256x384xbf16>, vector<384x128xbf16>, vector<256x128xf32> -> vector<256x128xf32>
    %30 = arith.addf %20, %29 : vector<256x128xf32>
    %c2 = arith.constant 2 : index
    %c7_30 = arith.constant 7 : index
    %c0_31 = arith.constant 0 : index
    %31 = vector.load %arg9[%c2, %c7_30, %c0_31] : memref<18x32x128xbf16, #tpu.memory_space<vmem>>, vector<16x18x128xbf16>
    %32 = vector.extract_strided_slice %31 {offsets = [0, 0, 0], sizes = [16, 16, 128], strides = [1, 1, 1]} : vector<16x18x128xbf16> to vector<16x16x128xbf16>
    %33 = vector.extract_strided_slice %31 {offsets = [0, 1, 0], sizes = [16, 16, 128], strides = [1, 1, 1]} : vector<16x18x128xbf16> to vector<16x16x128xbf16>
    %34 = vector.extract_strided_slice %31 {offsets = [0, 2, 0], sizes = [16, 16, 128], strides = [1, 1, 1]} : vector<16x18x128xbf16> to vector<16x16x128xbf16>
    %35 = tpu.concatenate %32, %33, %34 in 2 : vector<16x16x128xbf16>, vector<16x16x128xbf16>, vector<16x16x128xbf16> -> vector<16x16x384xbf16>
    %36 = vector.shape_cast %35 : vector<16x16x384xbf16> to vector<256x384xbf16>
    %c2_32 = arith.constant 2 : index
    %c0_33 = arith.constant 0 : index
    %c0_34 = arith.constant 0 : index
    %37 = vector.load %arg2[%c2_32, %c0_33, %c0_34] : memref<3x384x128xbf16, #tpu.memory_space<vmem>>, vector<1x384x128xbf16>
    %38 = vector.shape_cast %37 : vector<1x384x128xbf16> to vector<384x128xbf16>
    %cst_35 = arith.constant dense<0.000000e+00> : vector<256x128xf32>
    %39 = tpu.matmul %36, %38, %cst_35 {dimension_numbers = #tpu.dot_dimension_numbers<[1], [0], [0], [1], [0, 0, 1, 1], [], []>} : vector<256x384xbf16>, vector<384x128xbf16>, vector<256x128xf32> -> vector<256x128xf32>
    %40 = arith.addf %30, %39 : vector<256x128xf32>
    %c0_36 = arith.constant 0 : index
    %c0_37 = arith.constant 0 : index
    %41 = vector.load %arg4[%c0_36, %c0_37] : memref<1x128xf32, #tpu.memory_space<vmem>>, vector<1x128xf32>
    %42 = vector.broadcast %41 : vector<1x128xf32> to vector<256x128xf32>
    %43 = arith.mulf %40, %42 : vector<256x128xf32>
    %c0_38 = arith.constant 0 : index
    %c0_39 = arith.constant 0 : index
    %44 = vector.load %arg5[%c0_38, %c0_39] : memref<1x128xf32, #tpu.memory_space<vmem>>, vector<1x128xf32>
    %45 = vector.broadcast %44 : vector<1x128xf32> to vector<256x128xf32>
    %46 = arith.addf %43, %45 : vector<256x128xf32>
    %cst_40 = arith.constant 0.000000e+00 : f32
    %47 = vector.broadcast %cst_40 : f32 to vector<256x128xf32>
    %48 = arith.maximumf %46, %47 : vector<256x128xf32>
    %49 = vector.shape_cast %48 : vector<256x128xf32> to vector<16x16x128xf32>
    %50 = arith.truncf %49 : vector<16x16x128xf32> to vector<16x16x128xbf16>
    %c1_41 = arith.constant 1 : index
    %c8_42 = arith.constant 8 : index
    %c0_43 = arith.constant 0 : index
    %51 = vector.load %arg9[%c1_41, %c8_42, %c0_43] : memref<18x32x128xbf16, #tpu.memory_space<vmem>>, vector<16x16x128xbf16>
    tpu.vector_store %arg9[%c1_41, %c8_42, %c0_43], %50 {strides = array<i32>} : memref<18x32x128xbf16, #tpu.memory_space<vmem>>, vector<16x16x128xbf16>,
    %cst_44 = arith.constant 0.000000e+00 : f32
    %52 = vector.broadcast %cst_44 : f32 to vector<256x128xf32>
    %c0_45 = arith.constant 0 : index
    %c7_46 = arith.constant 7 : index
    %c0_47 = arith.constant 0 : index
    %53 = vector.load %arg9[%c0_45, %c7_46, %c0_47] : memref<18x32x128xbf16, #tpu.memory_space<vmem>>, vector<16x18x128xbf16>
    %54 = vector.extract_strided_slice %53 {offsets = [0, 0, 0], sizes = [16, 16, 128], strides = [1, 1, 1]} : vector<16x18x128xbf16> to vector<16x16x128xbf16>
    %55 = vector.extract_strided_slice %53 {offsets = [0, 1, 0], sizes = [16, 16, 128], strides = [1, 1, 1]} : vector<16x18x128xbf16> to vector<16x16x128xbf16>
    %56 = vector.extract_strided_slice %53 {offsets = [0, 2, 0], sizes = [16, 16, 128], strides = [1, 1, 1]} : vector<16x18x128xbf16> to vector<16x16x128xbf16>
    %57 = tpu.concatenate %54, %55, %56 in 2 : vector<16x16x128xbf16>, vector<16x16x128xbf16>, vector<16x16x128xbf16> -> vector<16x16x384xbf16>
    %58 = vector.shape_cast %57 : vector<16x16x384xbf16> to vector<256x384xbf16>
    %c0_48 = arith.constant 0 : index
    %c0_49 = arith.constant 0 : index
    %c0_50 = arith.constant 0 : index
    %59 = vector.load %arg3[%c0_48, %c0_49, %c0_50] : memref<3x384x128xbf16, #tpu.memory_space<vmem>>, vector<1x384x128xbf16>
    %60 = vector.shape_cast %59 : vector<1x384x128xbf16> to vector<384x128xbf16>
    %cst_51 = arith.constant dense<0.000000e+00> : vector<256x128xf32>
    %61 = tpu.matmul %58, %60, %cst_51 {dimension_numbers = #tpu.dot_dimension_numbers<[1], [0], [0], [1], [0, 0, 1, 1], [], []>} : vector<256x384xbf16>, vector<384x128xbf16>, vector<256x128xf32> -> vector<256x128xf32>
    %62 = arith.addf %52, %61 : vector<256x128xf32>
    %c1_52 = arith.constant 1 : index
    %c7_53 = arith.constant 7 : index
    %c0_54 = arith.constant 0 : index
    %63 = vector.load %arg9[%c1_52, %c7_53, %c0_54] : memref<18x32x128xbf16, #tpu.memory_space<vmem>>, vector<16x18x128xbf16>
    %64 = vector.extract_strided_slice %63 {offsets = [0, 0, 0], sizes = [16, 16, 128], strides = [1, 1, 1]} : vector<16x18x128xbf16> to vector<16x16x128xbf16>
    %65 = vector.extract_strided_slice %63 {offsets = [0, 1, 0], sizes = [16, 16, 128], strides = [1, 1, 1]} : vector<16x18x128xbf16> to vector<16x16x128xbf16>
    %66 = vector.extract_strided_slice %63 {offsets = [0, 2, 0], sizes = [16, 16, 128], strides = [1, 1, 1]} : vector<16x18x128xbf16> to vector<16x16x128xbf16>
    %67 = tpu.concatenate %64, %65, %66 in 2 : vector<16x16x128xbf16>, vector<16x16x128xbf16>, vector<16x16x128xbf16> -> vector<16x16x384xbf16>
    %68 = vector.shape_cast %67 : vector<16x16x384xbf16> to vector<256x384xbf16>
    %c1_55 = arith.constant 1 : index
    %c0_56 = arith.constant 0 : index
    %c0_57 = arith.constant 0 : index
    %69 = vector.load %arg3[%c1_55, %c0_56, %c0_57] : memref<3x384x128xbf16, #tpu.memory_space<vmem>>, vector<1x384x128xbf16>
    %70 = vector.shape_cast %69 : vector<1x384x128xbf16> to vector<384x128xbf16>
    %cst_58 = arith.constant dense<0.000000e+00> : vector<256x128xf32>
    %71 = tpu.matmul %68, %70, %cst_58 {dimension_numbers = #tpu.dot_dimension_numbers<[1], [0], [0], [1], [0, 0, 1, 1], [], []>} : vector<256x384xbf16>, vector<384x128xbf16>, vector<256x128xf32> -> vector<256x128xf32>
    %72 = arith.addf %62, %71 : vector<256x128xf32>
    %c2_59 = arith.constant 2 : index
    %c7_60 = arith.constant 7 : index
    %c0_61 = arith.constant 0 : index
    %73 = vector.load %arg9[%c2_59, %c7_60, %c0_61] : memref<18x32x128xbf16, #tpu.memory_space<vmem>>, vector<16x18x128xbf16>
    %74 = vector.extract_strided_slice %73 {offsets = [0, 0, 0], sizes = [16, 16, 128], strides = [1, 1, 1]} : vector<16x18x128xbf16> to vector<16x16x128xbf16>
    %75 = vector.extract_strided_slice %73 {offsets = [0, 1, 0], sizes = [16, 16, 128], strides = [1, 1, 1]} : vector<16x18x128xbf16> to vector<16x16x128xbf16>
    %76 = vector.extract_strided_slice %73 {offsets = [0, 2, 0], sizes = [16, 16, 128], strides = [1, 1, 1]} : vector<16x18x128xbf16> to vector<16x16x128xbf16>
    %77 = tpu.concatenate %74, %75, %76 in 2 : vector<16x16x128xbf16>, vector<16x16x128xbf16>, vector<16x16x128xbf16> -> vector<16x16x384xbf16>
    %78 = vector.shape_cast %77 : vector<16x16x384xbf16> to vector<256x384xbf16>
    %c2_62 = arith.constant 2 : index
    %c0_63 = arith.constant 0 : index
    %c0_64 = arith.constant 0 : index
    %79 = vector.load %arg3[%c2_62, %c0_63, %c0_64] : memref<3x384x128xbf16, #tpu.memory_space<vmem>>, vector<1x384x128xbf16>
    %80 = vector.shape_cast %79 : vector<1x384x128xbf16> to vector<384x128xbf16>
    %cst_65 = arith.constant dense<0.000000e+00> : vector<256x128xf32>
    %81 = tpu.matmul %78, %80, %cst_65 {dimension_numbers = #tpu.dot_dimension_numbers<[1], [0], [0], [1], [0, 0, 1, 1], [], []>} : vector<256x384xbf16>, vector<384x128xbf16>, vector<256x128xf32> -> vector<256x128xf32>
    %82 = arith.addf %72, %81 : vector<256x128xf32>
    %c0_66 = arith.constant 0 : index
    %c0_67 = arith.constant 0 : index
    %83 = vector.load %arg6[%c0_66, %c0_67] : memref<1x128xf32, #tpu.memory_space<vmem>>, vector<1x128xf32>
    %84 = vector.broadcast %83 : vector<1x128xf32> to vector<256x128xf32>
    %85 = arith.mulf %82, %84 : vector<256x128xf32>
    %c0_68 = arith.constant 0 : index
    %c0_69 = arith.constant 0 : index
    %86 = vector.load %arg7[%c0_68, %c0_69] : memref<1x128xf32, #tpu.memory_space<vmem>>, vector<1x128xf32>
    %87 = vector.broadcast %86 : vector<1x128xf32> to vector<256x128xf32>
    %88 = arith.addf %85, %87 : vector<256x128xf32>
    %c0_70 = arith.constant 0 : index
    %c0_71 = arith.constant 0 : index
    %c0_72 = arith.constant 0 : index
    %c0_73 = arith.constant 0 : index
    %89 = vector.load %arg1[%c0_70, %c0_71, %c0_72, %c0_73] : memref<1x16x16x128xbf16, #tpu.memory_space<vmem>>, vector<1x16x16x128xbf16>
    %90 = vector.shape_cast %89 : vector<1x16x16x128xbf16> to vector<16x16x128xbf16>
    %91 = vector.shape_cast %90 : vector<16x16x128xbf16> to vector<256x128xbf16>
    %92 = arith.extf %91 : vector<256x128xbf16> to vector<256x128xf32>
    %93 = arith.addf %88, %92 : vector<256x128xf32>
    %cst_74 = arith.constant 0.000000e+00 : f32
    %94 = vector.broadcast %cst_74 : f32 to vector<256x128xf32>
    %95 = arith.maximumf %93, %94 : vector<256x128xf32>
    %96 = vector.shape_cast %95 : vector<256x128xf32> to vector<1x16x16x128xf32>
    %97 = arith.truncf %96 : vector<1x16x16x128xf32> to vector<1x16x16x128xbf16>
    %c0_75 = arith.constant 0 : index
    %c0_76 = arith.constant 0 : index
    %c0_77 = arith.constant 0 : index
    %c0_78 = arith.constant 0 : index
    %98 = vector.load %arg8[%c0_75, %c0_76, %c0_77, %c0_78] : memref<1x16x16x128xbf16, #tpu.memory_space<vmem>>, vector<1x16x16x128xbf16>
    tpu.vector_store %arg8[%c0_75, %c0_76, %c0_77, %c0_78], %97 {strides = array<i32>} : memref<1x16x16x128xbf16, #tpu.memory_space<vmem>>, vector<1x16x16x128xbf16>,
    return
  }
  func.func @transform_0(%arg0: i32) -> (i32, i32, i32, i32) {
    %c0_i32 = arith.constant 0 : i32
    %c0_i32_0 = arith.constant 0 : i32
    %c0_i32_1 = arith.constant 0 : i32
    %c0_i32_2 = arith.constant 0 : i32
    return %arg0, %c0_i32, %c0_i32_0, %c0_i32_1 : i32, i32, i32, i32
  }
  func.func @transform_1(%arg0: i32) -> (i32, i32, i32) {
    %c0_i32 = arith.constant 0 : i32
    %c0_i32_0 = arith.constant 0 : i32
    %c0_i32_1 = arith.constant 0 : i32
    %c0_i32_2 = arith.constant 0 : i32
    return %c0_i32, %c0_i32_0, %c0_i32_1 : i32, i32, i32
  }
  func.func @transform_2(%arg0: i32) -> (i32, i32, i32) {
    %c0_i32 = arith.constant 0 : i32
    %c0_i32_0 = arith.constant 0 : i32
    %c0_i32_1 = arith.constant 0 : i32
    %c0_i32_2 = arith.constant 0 : i32
    return %c0_i32, %c0_i32_0, %c0_i32_1 : i32, i32, i32
  }
  func.func @transform_3(%arg0: i32) -> (i32, i32) {
    %c0_i32 = arith.constant 0 : i32
    %c0_i32_0 = arith.constant 0 : i32
    %c0_i32_1 = arith.constant 0 : i32
    return %c0_i32, %c0_i32_0 : i32, i32
  }
  func.func @transform_4(%arg0: i32) -> (i32, i32) {
    %c0_i32 = arith.constant 0 : i32
    %c0_i32_0 = arith.constant 0 : i32
    %c0_i32_1 = arith.constant 0 : i32
    return %c0_i32, %c0_i32_0 : i32, i32
  }
  func.func @transform_5(%arg0: i32) -> (i32, i32) {
    %c0_i32 = arith.constant 0 : i32
    %c0_i32_0 = arith.constant 0 : i32
    %c0_i32_1 = arith.constant 0 : i32
    return %c0_i32, %c0_i32_0 : i32, i32
  }
  func.func @transform_6(%arg0: i32) -> (i32, i32) {
    %c0_i32 = arith.constant 0 : i32
    %c0_i32_0 = arith.constant 0 : i32
    %c0_i32_1 = arith.constant 0 : i32
    return %c0_i32, %c0_i32_0 : i32, i32
  }
  func.func @transform_7(%arg0: i32) -> (i32, i32, i32, i32) {
    %c0_i32 = arith.constant 0 : i32
    %c0_i32_0 = arith.constant 0 : i32
    %c0_i32_1 = arith.constant 0 : i32
    %c0_i32_2 = arith.constant 0 : i32
    return %arg0, %c0_i32, %c0_i32_0, %c0_i32_1 : i32, i32, i32, i32
  }
}

</mosaic_0001>

<bundles_post_ra>
// kernel: tpu_custom_call.1
= control target key start
LH: loop header
LB: loop body
LE: loop exit
PB: predicated region body
PF: predicated region fallthrough
CT: control target
= control target key end

     0   :  { %s17213_s0 = inlined_call_operand.hbm [shape: bf16[2,16,16,128], index: 0, kind: input, shape index: {}]   ;;  %s17214_s1 = inlined_call_operand.hbm [shape: bf16[3,384,128], index: 1, kind: input, shape index: {}]   ;;  %s17215_s2 = inlined_call_operand.hbm [shape: bf16[3,384,128], index: 2, kind: input, shape index: {}]   ;;  %s17216_s3 = inlined_call_operand.vmem [shape: f32[1,128], index: 3, kind: input, shape index: {}]   ;;  %s17217_s4 = inlined_call_operand.vmem [shape: f32[1,128], index: 4, kind: input, shape index: {}]   ;;  %s17218_s5 = inlined_call_operand.vmem [shape: f32[1,128], index: 5, kind: input, shape index: {}]   ;;  %s17219_s6 = inlined_call_operand.vmem [shape: f32[1,128], index: 6, kind: input, shape index: {}]   ;;  %s17220_s7 = inlined_call_operand.hbm [shape: bf16[2,16,16,128], index: 7, kind: output, shape index: {}]  }
   0x1   :  { %17228 = sst [smem:[#allocation157_spill]] %s17214_s1 }
   0x2   :  { %12 = vsyncpa [#allocation4], 0 }
   0x3   :  { %14 = vsyncpa [#allocation4 + $0x1], 0 }
   0x4   :  { %15 = vsyncpa [#allocation7], 0 }
   0x5   :  { %16 = vsyncpa [#allocation5], 0 }
   0x6   :  { %18 = vsyncpa [#allocation5 + $0x1], 0  ;;  %s14104_s24 = smov 0   ;;  %s14106_s25 = smov 0  }
   0x7   :  { %s14108_s26 = smov 0   ;;  %s14110_s27 = smov 0  }
   0x8 LB: > { %s14125_s28 = sadd.s32 4294967295, %s14053_s27   ;;  %s11342_s29 = sadd.s32 4294967294, %s14053_s27   ;;  %s14053_s27 = sphi %s14110_s27, %s17824_s27   ;;  %s14049_s26 = sphi %s14108_s26, %s17823_s26   ;;  %s14045_s25 = sphi %s14106_s25, %s17822_s25   ;;  %s14041_s24 = sphi %s14104_s24, %s17821_s24  }
   0x9   : > { %p44_p0 = scmp.ne.s32.totalorder %s14045_s25, %s14041_s24  ;;  %p17222_p1 = scmp.eq.s32.totalorder %s14125_s28, 0 }
   0xa   : > { %p194_p2 = scmp.eq.s32.totalorder %s14125_s28, 1  ;;  %p200_p3 = scmp.eq.s32.totalorder %s11342_s29, 1 }
   0xb   : > { %p14134_p4 = por %p17222_p1, %p44_p0  ;;  %p11343_p5 = scmp.ge.s32.totalorder %s14053_s27, 1 }
   0xc   : > { %p14139_p6 = por %p200_p3, %p44_p0  ;;  %p207_p7 = scmp.lt.s32.totalorder %s14053_s27, 3 }
   0xd   : > { %s17229_s30 = scalar_select %p14134_p4, 1, 0 }
   0xe   : > { %s17230_s8 = scalar_select %p14139_p6, 1, 0 }
   0xf   : > { %p14144_p8 = pnand %p11343_p5, %p207_p7  ;;  %s14055_s10 = smov [#allocation6]  }
  0x10   : > { %s219_s11 = sshll.u32 %s14055_s10, 4  ;;  %s14056_s13 = smov [#allocation8]   ;;  %s220_s11 = int_to_ptr.vmem [resolvable:$true] %s219_s11 }
  0x11   : > { %s17231_s9 = scalar_select %p14144_p8, 1, 0 }
  0x12   : > { %p13312_p9 = pneg %p14144_p8  ;;  %s232_s14 = sshll.u32 %s14056_s13, 4  ;;  %s233_s14 = int_to_ptr.vmem [resolvable:$true] %s232_s14 }
  0x13   : > { %s13916_s15 = scalar_lea.vmem %s220_s11, 9216  ;;  %p13924_p5 = scmp.lt.s32.totalorder %s220_s11, %s220_s11 }
  0x14   : > { %p14153_p11 = pnand %p13312_p9, %p17222_p1  ;;  %p13917_p13 = scmp.ne.s32.totalorder %s220_s11, %s13916_s15 }
  0x15   : > { %p13925_p7 = scmp.lt.s32.totalorder %s13916_s15, %s13916_s15 }
  0x16   : > { %p13907_p12 = pneg %p14153_p11 }
  0x17   : > { %p13926_p10 = por %p13925_p7, %p13924_p5 }
  0x18   : > { %p13919_p0 = pnand %p13917_p13, %p13907_p12 }
  0x1a   : > { %p13920_p3 = pneg %p13919_p0 }
  0x1c   : > { %p13927_p9 = pnand %p13926_p10, %p13920_p3 }
  0x1e   : > { %13930 = shalt.err (!%p13927_p9)
}
  0x1f   : > { %s17221_s16 = smov 64   ;;  %s17223_s17 = smov 4  }
  0x20   : > { %s17233_s1 = sld [smem:[#allocation157_spill]]  ;;  %s13942_s20 = scalar_lea.vmem %s233_s14, 9216 }
  0x21   : > { %p13943_p13 = scmp.ne.s32.totalorder %s233_s14, %s13942_s20  ;;  %p13950_p10 = scmp.lt.s32.totalorder %s233_s14, %s233_s14 }
  0x22   : > { %p13951_p3 = scmp.lt.s32.totalorder %s13942_s20, %s13942_s20 }
  0x23   : > { %p13945_p0 = pnand %p13943_p13, %p13907_p12 }
  0x24   : > { %p13952_p7 = por %p13951_p3, %p13950_p10 }
  0x25   : > { %p13946_p5 = pneg %p13945_p0 }
  0x26   : > { %13315 = dma.hbm_to_vmem [thread:$0]  (!%p14153_p11), %s17233_s1, 9216, %s220_s11, [#allocation7], %s17221_s16, %s17221_s16, %s17223_s17  }
  0x27   : > { %p13953_p9 = pnand %p13952_p7, %p13946_p5 }
  0x29   : > { %13956 = shalt.err (!%p13953_p9)
}
  0x2a   : > { %13318 = dma.hbm_to_vmem [thread:$0]  (!%p14153_p11), %s17215_s2, 9216, %s233_s14, [#allocation7], %s17221_s16, %s17221_s16, %s17223_s17  }
  0x2b   : > { %s14182_s23 = sadd.s32 1, %s14053_s27   ;;  %s31_s29 = sadd.s32 1, %s14049_s26 }
  0x2c   : > { %s28_s10 = ssub.s32 %s14053_s27, %s14182_s23  ;;  %p38_p12 = scmp.ne.s32.totalorder %s14049_s26, %s14045_s25 }
  0x2d   : > { %p29_p13 = scmp.eq.s32.totalorder %s28_s10, 0  ;;  %p39_p0 = scmp.eq.s32.totalorder %s14053_s27, 0 }
  0x2e   : > { %p14192_p5 = por %p194_p2, %p38_p12  ;;  %p13329_p10 = scmp.lt.s32.totalorder %s14053_s27, 2 }
  0x2f   : > { %s14198_s12 = scalar_select %p29_p13, %s14049_s26, %s31_s29  }
  0x30   : > { %s17234_s11 = scalar_select %p14192_p5, 1, 0 }
  0x31   : > { %p40_p3 = por %p39_p0, %p38_p12  ;;  %s258_s13 = sand.u32 1, %s14049_s26  }
  0x32   : > { %s11347_s15 = sshll.u32 %s258_s13, 7  ;;  %s11956_s14 = sshll.u32 %s14053_s27, 11 }
  0x33   : > { %s14205_s20 = scalar_lea.hbm %s17213_s0, %s11956_s14  ;;  %s262_s21 = scalar_lea.vmem [#allocation3], %s11347_s15 }
  0x34   : > { %s269_s22 = sshll.u32 %s262_s21, 4  ;;  %p14209_p2 = pnand %p13329_p10, %p40_p3  ;;  %s14207_s22 = int_to_ptr.vmem [resolvable:$true] %s269_s22 }
  0x35   : > { %s14213_s29 = scalar_lea.sflag [#allocation4], %s258_s13  ;;  %s13957_s16 = scalar_lea.hbm %s14205_s20, 2048 }
  0x36   : > { %p13958_p11 = scmp.ne.s32.totalorder %s14205_s20, %s13957_s16  ;;  %p13959_p7 = pneg %p14209_p2 }
  0x37   : > { %s13962_s15 = scalar_lea.hbm %s17213_s0, 4096  ;;  %p13963_p13 = scmp.lt.s32.totalorder %s14205_s20, %s17213_s0 }
  0x38   : > { %p13960_p9 = pnand %p13959_p7, %p13958_p11  ;;  %p13964_p0 = scmp.lt.s32.totalorder %s13962_s15, %s13957_s16 }
  0x3a   : > { %p13961_p12 = pneg %p13960_p9  ;;  %p13965_p10 = por %p13964_p0, %p13963_p13 }
  0x3c   : > { %p13966_p3 = pnand %p13965_p10, %p13961_p12 }
  0x3e   : > { %13969 = shalt.err (!%p13966_p3)
}
  0x3f   : > { %s13970_s13 = scalar_lea.vmem %s14207_s22, 2048  ;;  %s14059_s17 = smov [#allocation3]  }
  0x40   : > { %p13971_p1 = scmp.ne.s32.totalorder %s14207_s22, %s13970_s13  ;;  %s13975_s1 = sshll.u32 %s14059_s17, 4  ;;  %s13976_s1 = int_to_ptr.vmem [resolvable:$false] %s13975_s1 }
  0x41   : > { %s13977_s14 = scalar_lea.vmem %s13976_s1, 4096  ;;  %p13978_p9 = scmp.lt.s32.totalorder %s14207_s22, %s13976_s1 }
  0x42   : > { %p13973_p6 = pnand %p13971_p1, %p13959_p7  ;;  %p13979_p5 = scmp.lt.s32.totalorder %s13977_s14, %s13970_s13 }
  0x44   : > { %p13974_p11 = pneg %p13973_p6  ;;  %p13980_p4 = por %p13979_p5, %p13978_p9 }
  0x46   : > { %p13981_p8 = pnand %p13980_p4, %p13974_p11 }
  0x48   : > { %13984 = shalt.err (!%p13981_p8)
}
  0x49   : > { %s17236_s16 = smov 4   ;;  %s17237_s18 = smov 64  }
  0x4a   : > { %13322 = dma.hbm_to_vmem [thread:$0]  (!%p14209_p2), %s14205_s20, 2048, %s14207_s22, %s14213_s29, %s17237_s18, %s17237_s18, %s17236_s16  }
  0x4b   : > { %p17238_p1 = scmp.ne.s32.totalorder %s17231_s9, 0 }
  0x4d   : > { %281 = sbr.rel (%p17238_p1) target bundleno = 1408 (0x580), region = 48 }
  0x52   : > { %s14240_s17 = sand.u32 1, %s14045_s25   ;;  %p17239_p4 = scmp.ne.s32.totalorder %s17229_s30, 0 }
  0x53   : > { %s11351_s1 = sshll.u32 %s14240_s17, 7  ;;  %s284_s15 = scalar_lea.sflag [#allocation4], %s14240_s17 }
  0x54   : > { %s14246_s10 = scalar_lea.vmem [#allocation3], %s11351_s1 }
  0x55   : > { %14028 = dma.done.wait (%p17239_p4), %s284_s15, 2048  }
  0x56   : > { %14030 = vsyncadd (%p17239_p4), %s284_s15, 4294965248  ;;  %p17240_p6 = scmp.eq.s32.totalorder %s14125_s28, 0 }
  0x58   : > { %14032 = dma.done.wait (%p17240_p6), [#allocation7], 18432   ;;  %p17241_p8 = pmov %p17240_p6 }
  0x59   : > { %v14060_v0 = vmov 0   ;;  %v13372_v1 = vld [vmem:[#allocation6 + $0x138] sm:$0xff]   ;;  %v13375_v4 = vld [vmem:[#allocation6 + $0x130] sm:$0xff]   ;;  %v13378_v7 = vld [vmem:[#allocation6 + $0x128] sm:$0xff]   ;;  %vm821_vm0 = vcmask 1042432   ;;  %s16892_s30 = scalar_lea.vmem [#allocation9], %s11351_s1 }
  0x5a   : > { %14034 = vsyncadd (%p17241_p8), [#allocation7], 4294948864  ;;  %355 = vst [vmem:[#allocation2 + $0x1c] sm:$0xf] %v14060_v0  ;;  %v13373_v2 = vld [vmem:[#allocation6 + $0x178] sm:$0xff]   ;;  %12196 = vmatprep.subr.bf16.mxu0 %v13372_v1  ;;  %v13376_v5 = vld [vmem:[#allocation6 + $0x170] sm:$0xff]  }
  0x5b   : > { %327 = vst [vmem:[#allocation2] sm:$0xf] %v14060_v0  ;;  %328 = vst [vmem:[#allocation2 + $0x4] sm:$0xf] %v14060_v0  ;;  %v13374_v3 = vld [vmem:[#allocation6 + $0xf8] sm:$0xff]   ;;  %13012 = vmatprep.subr.bf16.mxu1 %v13373_v2  ;;  %v13377_v6 = vld [vmem:[#allocation6 + $0xf0] sm:$0xff]  }
  0x5c   : > { %329 = vst [vmem:[#allocation2 + $0x8] sm:$0xf] %v14060_v0  ;;  %330 = vst [vmem:[#allocation2 + $0xc] sm:$0xf] %v14060_v0  ;;  %12197 = vmatpush3.bf16.msra.mxu0 %v13374_v3  ;;  %13013 = vmatpush3.bf16.msra.mxu1 %v13373_v2  ;;  %v13379_v8 = vld [vmem:[#allocation6 + $0x168] sm:$0xff]   ;;  %v13381_v10 = vld [vmem:[#allocation6 + $0x120] sm:$0xff]  }
  0x5d   : > { %332 = vst [vmem:[#allocation2 + $0x110] sm:$0xf] %v14060_v0  ;;  %333 = vst [vmem:[#allocation2 + $0x114] sm:$0xf] %v14060_v0  ;;  %12198 = vmatprep.subr.bf16.mxu0 %v13375_v4  ;;  %13014 = vmatprep.subr.bf16.mxu1 %v13376_v5  ;;  %v13380_v9 = vld [vmem:[#allocation6 + $0xe8] sm:$0xff]   ;;  %v13382_v11 = vld [vmem:[#allocation6 + $0x160] sm:$0xff]  }
  0x5e   : > { %334 = vst [vmem:[#allocation2 + $0x118] sm:$0xf] %v14060_v0  ;;  %335 = vst [vmem:[#allocation2 + $0x11c] sm:$0xf] %v14060_v0  ;;  %v13383_v12 = vld [vmem:[#allocation6 + $0xe0] sm:$0xff]   ;;  %v13384_v13 = vld [vmem:[#allocation6 + $0x118] sm:$0xff]  }
  0x5f   : > { %337 = vst [vmem:[#allocation2 + $0x10] sm:$0xf] %v14060_v0  ;;  %338 = vst [vmem:[#allocation2 + $0x20] sm:$0xf] %v14060_v0  ;;  %v13385_v14 = vld [vmem:[#allocation6 + $0x158] sm:$0xff]   ;;  %v13387_v16 = vld [vmem:[#allocation6 + $0x110] sm:$0xff]  }
  0x60   : > { %339 = vst [vmem:[#allocation2 + $0x30] sm:$0xf] %v14060_v0  ;;  %340 = vst [vmem:[#allocation2 + $0x40] sm:$0xf] %v14060_v0  ;;  %12199 = vmatpush3.bf16.msra.mxu0 %v13377_v6  ;;  %13015 = vmatpush3.bf16.msra.mxu1 %v13376_v5  ;;  %v13386_v15 = vld [vmem:[#allocation6 + $0xd8] sm:$0xff]   ;;  %v13388_v17 = vld [vmem:[#allocation6 + $0x150] sm:$0xff]  }
  0x61   : > { %341 = vst [vmem:[#allocation2 + $0x50] sm:$0xf] %v14060_v0  ;;  %342 = vst [vmem:[#allocation2 + $0x60] sm:$0xf] %v14060_v0  ;;  %12200 = vmatprep.subr.bf16.mxu0 %v13378_v7  ;;  %13016 = vmatprep.subr.bf16.mxu1 %v13379_v8  ;;  %v13389_v18 = vld [vmem:[#allocation6 + $0xd0] sm:$0xff]   ;;  %v13390_v19 = vld [vmem:[#allocation6 + $0x108] sm:$0xff]  }
  0x62   : > { %343 = vst [vmem:[#allocation2 + $0x70] sm:$0xf] %v14060_v0  ;;  %344 = vst [vmem:[#allocation2 + $0x80] sm:$0xf] %v14060_v0  ;;  %v13391_v20 = vld [vmem:[#allocation6 + $0x148] sm:$0xff]   ;;  %v13393_v22 = vld [vmem:[#allocation6 + $0x100] sm:$0xff]  }
  0x63   : > { %345 = vst [vmem:[#allocation2 + $0x90] sm:$0xf] %v14060_v0  ;;  %346 = vst [vmem:[#allocation2 + $0xa0] sm:$0xf] %v14060_v0  ;;  %v13392_v21 = vld [vmem:[#allocation6 + $0xc8] sm:$0xff]   ;;  %v372_v23 = vld [vmem:[%s14246_s10] sm:$0xff]  }
  0x64   : > { %347 = vst [vmem:[#allocation2 + $0xb0] sm:$0xf] %v14060_v0  ;;  %348 = vst [vmem:[#allocation2 + $0xc0] sm:$0xf] %v14060_v0  ;;  %12201 = vmatpush3.bf16.msra.mxu0 %v13380_v9  ;;  %13017 = vmatpush3.bf16.msra.mxu1 %v13379_v8  ;;  %v13394_v24 = vld [vmem:[#allocation6 + $0x140] sm:$0xff]   ;;  %v374_v25 = vld [vmem:[%s14246_s10 + $0x8] sm:$0xff]  }
  0x65   : > { %349 = vst [vmem:[#allocation2 + $0xd0] sm:$0xf] %v14060_v0  ;;  %350 = vst [vmem:[#allocation2 + $0xe0] sm:$0xf] %v14060_v0  ;;  %12202 = vmatprep.subr.bf16.mxu0 %v13381_v10  ;;  %13018 = vmatprep.subr.bf16.mxu1 %v13382_v11  ;;  %v13395_v28 = vld [vmem:[#allocation6 + $0xc0] sm:$0xff]   ;;  %v14260_v30 = vld [vmem:[#allocation6 + $0xb8] sm:$0xff]  }
  0x66   : > { %351 = vst [vmem:[#allocation2 + $0xf0] sm:$0xf] %v14060_v0  ;;  %352 = vst [vmem:[#allocation2 + $0x100] sm:$0xf] %v14060_v0  ;;  %v1655_v29 = vld [vmem:[#allocation2 + $0x10] sm:$0x8] }
  0x67   : > { %356 = vst [vmem:[#allocation2 + $0x2c] sm:$0xf] %v14060_v0  ;;  %357 = vst [vmem:[#allocation2 + $0x3c] sm:$0xf] %v14060_v0  ;;  %v13401_v31 = vld [vmem:[#allocation6 + $0x78] sm:$0xff]   ;;  %v376_v32 = vld [vmem:[%s14246_s10 + $0x10] sm:$0xff]  }
  0x68   : > { %358 = vst [vmem:[#allocation2 + $0x4c] sm:$0xf] %v14060_v0  ;;  %359 = vst [vmem:[#allocation2 + $0x5c] sm:$0xf] %v14060_v0  ;;  %12203 = vmatpush3.bf16.msra.mxu0 %v13383_v12  ;;  %13019 = vmatpush3.bf16.msra.mxu1 %v13382_v11  ;;  %v378_v34 = vld [vmem:[%s14246_s10 + $0x18] sm:$0xff]   ;;  %v380_v57 = vld [vmem:[%s14246_s10 + $0x20] sm:$0xff]  }
  0x69   : > { %360 = vst [vmem:[#allocation2 + $0x6c] sm:$0xf] %v14060_v0  ;;  %361 = vst [vmem:[#allocation2 + $0x7c] sm:$0xf] %v14060_v0  ;;  %12204 = vmatprep.subr.bf16.mxu0 %v13384_v13  ;;  %13020 = vmatprep.subr.bf16.mxu1 %v13385_v14  ;;  %v1659_v35 = vld [vmem:[#allocation2 + $0x20] sm:$0x8] }
  0x6a   : > { %362 = vst [vmem:[#allocation2 + $0x8c] sm:$0xf] %v14060_v0  ;;  %363 = vst [vmem:[#allocation2 + $0x9c] sm:$0xf] %v14060_v0  ;;  %vm870_vm1 = vsmask.f32 4352 }
  0x6b   : > { %364 = vst [vmem:[#allocation2 + $0xac] sm:$0xf] %v14060_v0  ;;  %365 = vst [vmem:[#allocation2 + $0xbc] sm:$0xf] %v14060_v0  ;;  %v382_v58 = vld [vmem:[%s14246_s10 + $0x28] sm:$0xff]   ;;  %s12021_s1 = sshll.u32 %s14125_s28, 11 }
  0x6c   : > { %366 = vst [vmem:[#allocation2 + $0xcc] sm:$0xf] %v14060_v0  ;;  %367 = vst [vmem:[#allocation2 + $0xdc] sm:$0xf] %v14060_v0  ;;  %12205 = vmatpush3.bf16.msra.mxu0 %v13386_v15  ;;  %13021 = vmatpush3.bf16.msra.mxu1 %v13385_v14  ;;  %s17167_s22 = scalar_lea.hbm %s17220_s7, %s12021_s1  ;;  %s11237_s29 = scalar_lea.sflag [#allocation5], %s14240_s17 }
  0x6d   : > { %368 = vst [vmem:[#allocation2 + $0xec] sm:$0xf] %v14060_v0  ;;  %369 = vst [vmem:[#allocation2 + $0xfc] sm:$0xf] %v14060_v0  ;;  %12206 = vmatprep.subr.bf16.mxu0 %v13387_v16  ;;  %13022 = vmatprep.subr.bf16.mxu1 %v13388_v17  ;;  %p17818_p2 = scmp.ne.s32.totalorder %s17234_s11, 0  ;;  %s14061_s28 = smov [#allocation9]  }
  0x6e   : > { %370 = vst [vmem:[#allocation2 + $0x10c] sm:$0xf] %v14060_v0  ;;  %336 = vst [vmem:[#allocation2] sm:$0xf] %v14060_v0  ;;  %s13989_s21 = sshll.u32 %s14061_s28, 4  ;;  %s13990_s21 = int_to_ptr.vmem [resolvable:$false] %s13989_s21 }
  0x6f   : > { %353 = vst [vmem:[#allocation2 + $0x110] sm:$0xf] %v14060_v0  ;;  %354 = vst [vmem:[#allocation2 + $0xc] sm:$0xf] %v14060_v0  ;;  %s13991_s13 = scalar_lea.vmem %s13990_s21, 4096 }
  0x70   : > { %371 = vst [vmem:[#allocation2 + $0x11c] sm:$0xf] %v14060_v0  ;;  %12207 = vmatpush3.bf16.msra.mxu0 %v13389_v18  ;;  %13023 = vmatpush3.bf16.msra.mxu1 %v13388_v17  ;;  %405 = vst [vmem:[#allocation2 + $0x14] sm:$0xff] %v372_v23   ;;  %v13397_v26 = vld [vmem:[#allocation2 + $0x1c] ss:$0 sps:$4 sm:$0x11]  }
  0x71   : > { %12208 = vmatprep.subr.bf16.mxu0 %v13390_v19  ;;  %13024 = vmatprep.subr.bf16.mxu1 %v13391_v20  ;;  %407 = vst [vmem:[#allocation2 + $0x24] sm:$0xff] %v374_v25   ;;  %v14258_v27 = vld [vmem:[#allocation2 + $0x2c] ss:$0 sps:$4 sm:$0x11]   ;;  %409 = vst [vmem:[#allocation2 + $0x34] sm:$0xff] %v376_v32   ;;  %v2040_v38 = vrot.slane %v13397_v26, 5 }
  0x72   : > { %v14263_v33 = vld [vmem:[#allocation2 + $0x3c] ss:$0 sps:$4 sm:$0x11]   ;;  %411 = vst [vmem:[#allocation2 + $0x44] sm:$0xff] %v378_v34   ;;  %v2043_v39 = vrot.slane %v14258_v27, 5  ;;  %413 = vst [vmem:[#allocation2 + $0x54] sm:$0xff] %v380_v57  }
  0x73   : > { %v2046_v46 = vrot.slane %v14263_v33, 5  ;;  %415 = vst [vmem:[#allocation2 + $0x64] sm:$0xff] %v382_v58  }
  0x74   : > { %12209 = vmatpush3.bf16.msra.mxu0 %v13392_v21  ;;  %13025 = vmatpush3.bf16.msra.mxu1 %v13391_v20 }
  0x75   : > { %12210 = vmatprep.subr.bf16.mxu0 %v13393_v22  ;;  %13026 = vmatprep.subr.bf16.mxu1 %v13394_v24 }
  0x77   : > { %v1656_v36 = vld [vmem:[#allocation2 + $0x14] sm:$0xf]  ;;  %v1657_v37 = vld [vmem:[#allocation2 + $0x18] sm:$0xf] }
  0x78   : > { %12211 = vmatpush3.bf16.msra.mxu0 %v13395_v28  ;;  %13027 = vmatpush3.bf16.msra.mxu1 %v13394_v24  ;;  %v11451_v40 = vcombine.low %v1656_v36, %v1657_v37  ;;  %v11419_v41 = vcombine.low %v1655_v29, %v1656_v36  ;;  %v11420_v42 = vcombine.low %v1657_v37, %v1657_v37  ;;  %v1660_v43 = vld [vmem:[#allocation2 + $0x24] sm:$0xf]  ;;  %v1661_v44 = vld [vmem:[#allocation2 + $0x28] sm:$0xf]  ;;  %v14280_v15 = vld [vmem:[#allocation2 + $0x34] sm:$0xf] }
  0x79   : > { %13060 = vmatprep.subr.bf16.mxu0 %v14260_v30  ;;  %12332 = vmatprep.subr.bf16.mxu1 %v13401_v31  ;;  %v14268_v45 = vcombine.low %v1660_v43, %v1661_v44  ;;  %v14271_v47 = vcombine.low %v1659_v35, %v1660_v43  ;;  %v14273_v48 = vcombine.low %v1661_v44, %v1661_v44  ;;  %v14282_v20 = vld [vmem:[#allocation2 + $0x38] sm:$0xf]  ;;  %v14287_v35 = vld [vmem:[#allocation2 + $0x44] sm:$0xf]  ;;  %v13417_v36 = vld [vmem:[#allocation6 + $0xb0] sm:$0xff]  }
  0x7a   : > { %v1864_v49 = vshrl.u32 %v11451_v40, 16  ;;  %v1867_v50 = vshll.u32 %v11451_v40, 16  ;;  %v2039_v51 = vrot.slane %v11451_v40, 5  ;;  %v2088_v52 = vshrl.u32 %v11419_v41, 16  ;;  %v13402_v44 = vld [vmem:[#allocation6 + $0x38] sm:$0xff]  }
  0x7b   : > { %v2091_v53 = vshll.u32 %v11419_v41, 16  ;;  %v2096_v54 = vshrl.u32 %v11420_v42, 16  ;;  %v2099_v55 = vshll.u32 %v11420_v42, 16  ;;  %v2042_v56 = vrot.slane %v14268_v45, 5  ;;  %v14295_v41 = vld [vmem:[#allocation2 + $0x48] sm:$0xf] }
  0x7c   : > { %v1866_v59 = vrot.slane %v1864_v49, 4  ;;  %v1869_v60 = vrot.slane %v1867_v50, 5  ;;  %v2041_v61 = vsel %vm821_vm0, %v2039_v51, %v2040_v38  ;;  %v2114_v62 = vshrl.u32 %v2039_v51, 16  ;;  %v384_v42 = vld [vmem:[%s14246_s10 + $0x30] sm:$0xff]  }
  0x7d   : > { %v2117_v63 = vshll.u32 %v2039_v51, 16  ;;  %v2122_v0 = vshrl.u32 %v2041_v61, 16  ;;  %v2125_v1 = vshll.u32 %v2041_v61, 16  ;;  %v2090_v2 = vrot.slane %v2088_v52, 3  ;;  %417 = vst [vmem:[#allocation2 + $0x74] sm:$0xff] %v384_v42  }
  0x7e   : > { %v1870_v3 = vor.u32 %v1869_v60, %v1866_v59  ;;  %v2116_v4 = vrot.slane %v2114_v62, 3  ;;  %v2093_v5 = vrot.slane %v2091_v53, 4  ;;  %v2098_v6 = vrot.slane %v2096_v54, 3  ;;  %v13409_v60 = vld [vmem:[#allocation6 + $0x70] sm:$0xff]  }
  0x7f   : > { %v2119_v7 = vrot.slane %v2117_v63, 4  ;;  %v2124_v8 = vrot.slane %v2122_v0, 3  ;;  %v2127_v9 = vrot.slane %v2125_v1, 4  ;;  %v2101_v10 = vrot.slane %v2099_v55, 4 }
  0x80   : > { %v2105_v11 = vshrl.u32 %v1870_v3, 16  ;;  %v2108_v12 = vshll.u32 %v1870_v3, 16  ;;  %v2094_v13 = vor.u32 %v2093_v5, %v2090_v2  ;;  %v2044_v14 = vsel %vm821_vm0, %v2042_v56, %v2043_v39  ;;  %v13408_v55 = vld [vmem:[#allocation2 + $0x4c] ss:$0 sps:$4 sm:$0x11]  }
  0x81   : > { %v2120_v16 = vor.u32 %v2119_v7, %v2116_v4  ;;  %v2128_v17 = vor.u32 %v2127_v9, %v2124_v8  ;;  %v2102_v18 = vor.u32 %v2101_v10, %v2098_v6  ;;  %v2157_v19 = vshrl.u32 %v2042_v56, 16  ;;  %v388_v4 = vld [vmem:[%s14246_s10 + $0x40] sm:$0xff]  }
  0x82   : > { %v2107_v21 = vrot.slane %v2105_v11, 3  ;;  %v2110_v22 = vrot.slane %v2108_v12, 4  ;;  %v2160_v23 = vshll.u32 %v2042_v56, 16  ;;  %v2165_v24 = vshrl.u32 %v2044_v14, 16  ;;  %v386_v56 = vld [vmem:[%s14246_s10 + $0x38] sm:$0xff]   ;;  %421 = vst [vmem:[#allocation2 + $0x94] sm:$0xff] %v388_v4  }
  0x83   : > { %v2129_v25 = vsel %vm870_vm1, %v2120_v16, %v2128_v17  ;;  %v2103_v26 = vsel %vm870_vm1, %v2094_v13, %v2102_v18  ;;  %v2159_v27 = vrot.slane %v2157_v19, 3  ;;  %v2168_v28 = vshll.u32 %v2044_v14, 16  ;;  %419 = vst [vmem:[#allocation2 + $0x84] sm:$0xff] %v386_v56   ;;  %v13412_v11 = vld [vmem:[#allocation2 + $0x5c] ss:$0 sps:$4 sm:$0x11]  }
  0x84   : > { %v2111_v29 = vor.u32 %v2110_v22, %v2107_v21  ;;  %13028 = vmatprep.mubr.bf16.mxu1 %v2129_v25  ;;  %v2162_v31 = vrot.slane %v2160_v23, 4  ;;  %v2167_v32 = vrot.slane %v2165_v24, 3  ;;  %v1872_v34 = vshrl.u32 %v14268_v45, 16  ;;  %v13418_v12 = vld [vmem:[#allocation6 + $0x68] sm:$0xff]   ;;  %v14314_v18 = vld [vmem:[#allocation2 + $0x54] sm:$0xf] }
  0x85   : > { %v2170_v37 = vrot.slane %v2168_v28, 4  ;;  %v1875_v38 = vshll.u32 %v14268_v45, 16  ;;  %v14292_v39 = vcombine.low %v14280_v15, %v14282_v20  ;;  %v2131_v40 = vshrl.u32 %v14271_v47, 16  ;;  %v1663_v19 = vld [vmem:[#allocation2 + $0x30] sm:$0x8]  ;;  %v390_v21 = vld [vmem:[%s14246_s10 + $0x48] sm:$0xff]  }
  0x86   : > { %3048 = vmatprep.mubr.bf16.mxu0 %v2111_v29  ;;  %v2163_v43 = vor.u32 %v2162_v31, %v2159_v27  ;;  %v1874_v49 = vrot.slane %v1872_v34, 4  ;;  %v2134_v50 = vshll.u32 %v14271_v47, 16  ;;  %v2139_v51 = vshrl.u32 %v14273_v48, 16  ;;  %423 = vst [vmem:[#allocation2 + $0xa4] sm:$0xff] %v390_v21   ;;  %v14346_v21 = vld [vmem:[#allocation2 + $0x74] sm:$0xf] }
  0x87   : > { %3049 = vmatmul.mubr.bf16.vlgmr.msra.gmra.mxu0 %v2103_v26  ;;  %v2171_v45 = vor.u32 %v2170_v37, %v2167_v32  ;;  %v1877_v52 = vrot.slane %v1875_v38, 5  ;;  %v2045_v53 = vrot.slane %v14292_v39, 5  ;;  %v2133_v54 = vrot.slane %v2131_v40, 3  ;;  %v14317_v26 = vld [vmem:[#allocation2 + $0x58] sm:$0xf] }
  0x88   : > { %13061 = vmatpush3.bf16.msra.mxu0 %v14260_v30  ;;  %v2136_v57 = vrot.slane %v2134_v50, 4  ;;  %v2141_v58 = vrot.slane %v2139_v51, 3  ;;  %v2142_v59 = vshll.u32 %v14273_v48, 16  ;;  %v14306_v47 = vcombine.low %v14287_v35, %v14295_v41  ;;  %v13410_v30 = vld [vmem:[#allocation6 + $0x30] sm:$0xff]   ;;  %v14322_v32 = vld [vmem:[#allocation2 + $0x64] sm:$0xf] }
  0x89   : > { %v2172_v61 = vsel %vm870_vm1, %v2163_v43, %v2171_v45  ;;  %v1878_v62 = vor.u32 %v1877_v52, %v1874_v49  ;;  %v2047_v63 = vsel %vm821_vm0, %v2045_v53, %v2046_v46  ;;  %v2200_v0 = vshrl.u32 %v2045_v53, 16  ;;  %13062 = vmatprep.subr.bf16.mxu0 %v13417_v36  ;;  %v14324_v34 = vld [vmem:[#allocation2 + $0x6c] ss:$0 sps:$4 sm:$0x11]   ;;  %v13426_v43 = vld [vmem:[#allocation6 + $0x60] sm:$0xff]  }
  0x8a   : > { %13029 = vmatmul.mubr.bf16.vlgmr.msra.gmra.mxu1 %v2172_v61  ;;  %v2203_v1 = vshll.u32 %v2045_v53, 16  ;;  %v2208_v2 = vshrl.u32 %v2047_v63, 16  ;;  %v2211_v48 = vshll.u32 %v2047_v63, 16  ;;  %v2137_v3 = vor.u32 %v2136_v57, %v2133_v54  ;;  %v14332_v52 = vld [vmem:[#allocation2 + $0x68] sm:$0xf] }
  0x8b   : > { %12333 = vmatpush3.bf16.msra.mxu1 %v13402_v44  ;;  %v2148_v5 = vshrl.u32 %v1878_v62, 16  ;;  %v2151_v6 = vshll.u32 %v1878_v62, 16  ;;  %v2202_v7 = vrot.slane %v2200_v0, 3  ;;  %v2144_v8 = vrot.slane %v2142_v59, 4  ;;  %v13434_v44 = vld [vmem:[#allocation6 + $0xa8] sm:$0xff]   ;;  %v13435_v0 = vld [vmem:[#allocation6 + $0x58] sm:$0xff]  }
  0x8c   : > { %v2205_v9 = vrot.slane %v2203_v1, 4  ;;  %v2210_v33 = vrot.slane %v2208_v2, 3  ;;  %v2213_v10 = vrot.slane %v2211_v48, 4  ;;  %v2048_v46 = vrot.slane %v14306_v47, 5  ;;  %12334 = vmatprep.subr.bf16.mxu1 %v13409_v60  ;;  %13063 = vmatpush3.bf16.msra.mxu0 %v13417_v36  ;;  %v13419_v36 = vld [vmem:[#allocation6 + $0x28] sm:$0xff]   ;;  %v13427_v60 = vld [vmem:[#allocation6 + $0x20] sm:$0xff]  }
  0x8d   : > { %v2150_v13 = vrot.slane %v2148_v5, 3  ;;  %v2153_v14 = vrot.slane %v2151_v6, 4  ;;  %v2145_v16 = vor.u32 %v2144_v8, %v2141_v58  ;;  %v2049_v17 = vrot.slane %v13408_v55, 5  ;;  %13064 = vmatprep.subr.bf16.mxu0 %v13434_v44 }
  0x8e   : > { %v2206_v22 = vor.u32 %v2205_v9, %v2202_v7  ;;  %v2214_v23 = vor.u32 %v2213_v10, %v2210_v33  ;;  %v2243_v24 = vshrl.u32 %v2048_v46, 16  ;;  %v2246_v25 = vshll.u32 %v2048_v46, 16  ;;  %v13436_v10 = vld [vmem:[#allocation6 + $0x18] sm:$0xff]  }
  0x8f   : > { %v2154_v27 = vor.u32 %v2153_v14, %v2150_v13  ;;  %v2146_v28 = vsel %vm870_vm1, %v2137_v3, %v2145_v16  ;;  %v2050_v29 = vsel %vm821_vm0, %v2048_v46, %v2049_v17  ;;  %12335 = vmatpush3.bf16.msra.mxu1 %v13410_v30  ;;  %v1880_v31 = vshrl.u32 %v14292_v39, 16  ;;  %v392_v3 = vld [vmem:[%s14246_s10 + $0x50] sm:$0xff]  }
  0x90   : > { %v2215_v37 = vsel %vm870_vm1, %v2206_v22, %v2214_v23  ;;  %v2245_v38 = vrot.slane %v2243_v24, 3  ;;  %v2248_v40 = vrot.slane %v2246_v25, 4  ;;  %v2251_v42 = vshrl.u32 %v2050_v29, 16  ;;  %12336 = vmatprep.subr.bf16.mxu1 %v13418_v12  ;;  %13065 = vmatpush3.bf16.msra.mxu0 %v13434_v44  ;;  %425 = vst [vmem:[#allocation2 + $0xb4] sm:$0xff] %v392_v3  }
  0x91   : > { %3056 = vmatprep.mubr.bf16.mxu0 %v2154_v27  ;;  %13032 = vmatprep.mubr.bf16.mxu1 %v2215_v37  ;;  %v2254_v49 = vshll.u32 %v2050_v29, 16  ;;  %v1882_v50 = vrot.slane %v1880_v31, 4  ;;  %v1883_v51 = vshll.u32 %v14292_v39, 16  ;;  %v14330_v45 = vcombine.low %v14314_v18, %v14317_v26  ;;  %v13421_v22 = vld [vmem:[#allocation2 + $0x7c] ss:$0 sps:$4 sm:$0x11]  }
  0x92   : > { %3057 = vmatmul.mubr.bf16.gmra.mxu0 %v2146_v28  ;;  %v2249_v53 = vor.u32 %v2248_v40, %v2245_v38  ;;  %v2253_v54 = vrot.slane %v2251_v42, 3  ;;  %v2052_v55 = vrot.slane %v13412_v11, 5  ;;  %v11423_v56 = vcombine.low %v1663_v19, %v14280_v15  ;;  %v14349_v28 = vld [vmem:[#allocation2 + $0x78] sm:$0xf]  ;;  %v1667_v38 = vld [vmem:[#allocation2 + $0x40] sm:$0x8] }
  0x93   : > { %v2256_v57 = vrot.slane %v2254_v49, 4  ;;  %v1885_v58 = vrot.slane %v1883_v51, 5  ;;  %v2051_v59 = vrot.slane %v14330_v45, 5  ;;  %v11424_v39 = vcombine.low %v14282_v20, %v14282_v20  ;;  %12337 = vmatpush3.bf16.msra.mxu1 %v13419_v36  ;;  %v394_v29 = vld [vmem:[%s14246_s10 + $0x58] sm:$0xff]   ;;  %v14359_v51 = vld [vmem:[#allocation2 + $0x88] sm:$0xf] }
  0x94   : > { %v2174_v61 = vshrl.u32 %v11423_v56, 16  ;;  %v2177_v62 = vshll.u32 %v11423_v56, 16  ;;  %v14340_v63 = vcombine.low %v14322_v32, %v14332_v52  ;;  %v2055_v15 = vrot.slane %v14324_v34, 5  ;;  %12338 = vmatprep.subr.bf16.mxu1 %v13426_v43  ;;  %v14353_v40 = vld [vmem:[#allocation2 + $0x8c] ss:$0 sps:$4 sm:$0x11]  }
  0x95   : > { %v2257_v30 = vor.u32 %v2256_v57, %v2253_v54  ;;  %v1886_v1 = vor.u32 %v1885_v58, %v1882_v50  ;;  %v2053_v2 = vsel %vm821_vm0, %v2051_v59, %v2052_v55  ;;  %v2286_v48 = vshrl.u32 %v2051_v59, 16  ;;  %427 = vst [vmem:[#allocation2 + $0xc4] sm:$0xff] %v394_v29   ;;  %v14357_v50 = vld [vmem:[#allocation2 + $0x84] sm:$0xf]  ;;  %v13443_v57 = vld [vmem:[#allocation6 + $0x50] sm:$0xff]  }
  0x96   : > { %v2289_v20 = vshll.u32 %v2051_v59, 16  ;;  %v2294_v4 = vshrl.u32 %v2053_v2, 16  ;;  %v2297_v5 = vshll.u32 %v2053_v2, 16  ;;  %v2176_v6 = vrot.slane %v2174_v61, 3  ;;  %v13444_v61 = vld [vmem:[#allocation6 + $0x10] sm:$0xff]  }
  0x97   : > { %v2258_v7 = vsel %vm870_vm1, %v2249_v53, %v2257_v30  ;;  %v2191_v8 = vshrl.u32 %v1886_v1, 16  ;;  %v2194_v9 = vshll.u32 %v1886_v1, 16  ;;  %v2288_v33 = vrot.slane %v2286_v48, 3  ;;  %12339 = vmatpush3.bf16.msra.mxu1 %v13427_v60  ;;  %v396_v1 = vld [vmem:[%s14246_s10 + $0x60] sm:$0xff]  }
  0x98   : > { %13033 = vmatmul.mubr.bf16.gmra.mxu1 %v2258_v7  ;;  %v2291_v46 = vrot.slane %v2289_v20, 4  ;;  %v2296_v11 = vrot.slane %v2294_v4, 3  ;;  %v2299_v12 = vrot.slane %v2297_v5, 4  ;;  %v2179_v13 = vrot.slane %v2177_v62, 4  ;;  %12340 = vmatprep.subr.bf16.mxu1 %v13435_v0  ;;  %429 = vst [vmem:[#allocation2 + $0xd4] sm:$0xff] %v396_v1   ;;  %v398_v7 = vld [vmem:[%s14246_s10 + $0x68] sm:$0xff]  }
  0x99   : > { %v2193_v14 = vrot.slane %v2191_v8, 3  ;;  %v2196_v16 = vrot.slane %v2194_v9, 4  ;;  %v2182_v17 = vshrl.u32 %v11424_v39, 16  ;;  %v2185_v19 = vshll.u32 %v11424_v39, 16  ;;  %431 = vst [vmem:[#allocation2 + $0xe4] sm:$0xff] %v398_v7  }
  0x9a   : > { %v2292_v23 = vor.u32 %v2291_v46, %v2288_v33  ;;  %v2300_v24 = vor.u32 %v2299_v12, %v2296_v11  ;;  %v2180_v25 = vor.u32 %v2179_v13, %v2176_v6  ;;  %v2054_v27 = vrot.slane %v14340_v63, 5 }
  0x9b   : > { %v2197_v31 = vor.u32 %v2196_v16, %v2193_v14  ;;  %v2184_v34 = vrot.slane %v2182_v17, 3  ;;  %v2187_v36 = vrot.slane %v2185_v19, 4  ;;  %v1888_v37 = vshrl.u32 %v14306_v47, 16  ;;  %12341 = vmatpush3.bf16.msra.mxu1 %v13436_v10 }
  0x9c   : > { %v2301_v42 = vsel %vm870_vm1, %v2292_v23, %v2300_v24  ;;  %v2056_v43 = vsel %vm821_vm0, %v2054_v27, %v2055_v15  ;;  %v2329_v44 = vshrl.u32 %v2054_v27, 16  ;;  %v2332_v49 = vshll.u32 %v2054_v27, 16  ;;  %12342 = vmatprep.subr.bf16.mxu1 %v13443_v57  ;;  %v400_v57 = vld [vmem:[%s14246_s10 + $0x70] sm:$0xff]  }
  0x9d   : > { %3064 = vmatprep.mubr.bf16.mxu0 %v2197_v31  ;;  %13036 = vmatprep.mubr.bf16.mxu1 %v2301_v42  ;;  %v2188_v53 = vor.u32 %v2187_v36, %v2184_v34  ;;  %v2337_v54 = vshrl.u32 %v2056_v43, 16  ;;  %v2340_v55 = vshll.u32 %v2056_v43, 16  ;;  %v1890_v56 = vrot.slane %v1888_v37, 4  ;;  %v14380_v36 = vld [vmem:[#allocation2 + $0x94] sm:$0xf]  ;;  %433 = vst [vmem:[#allocation2 + $0xf4] sm:$0xff] %v400_v57  }
  0x9e   : > { %v2331_v58 = vrot.slane %v2329_v44, 3  ;;  %v2334_v59 = vrot.slane %v2332_v49, 4  ;;  %v1891_v39 = vshll.u32 %v14306_v47, 16  ;;  %v14364_v60 = vcombine.low %v14346_v21, %v14349_v28  ;;  %v14382_v37 = vld [vmem:[#allocation2 + $0x98] sm:$0xf] }
  0x9f   : > { %v2189_v62 = vsel %vm870_vm1, %v2180_v25, %v2188_v53  ;;  %v2339_v15 = vrot.slane %v2337_v54, 3  ;;  %v2342_v0 = vrot.slane %v2340_v55, 4  ;;  %v2058_v30 = vrot.slane %v13421_v22, 5  ;;  %12343 = vmatpush3.bf16.msra.mxu1 %v13444_v61  ;;  %v13429_v49 = vld [vmem:[#allocation2 + $0x9c] ss:$0 sps:$4 sm:$0x11]  }
  0xa0   : > { %3065 = vmatmul.mubr.bf16.gmra.mxu0 %v2189_v62  ;;  %v2335_v2 = vor.u32 %v2334_v59, %v2331_v58  ;;  %v1893_v48 = vrot.slane %v1891_v39, 5  ;;  %v2057_v3 = vrot.slane %v14364_v60, 5  ;;  %v11425_v47 = vcombine.low %v1667_v38, %v14287_v35  ;;  %v13451_v35 = vld [vmem:[#allocation6 + $0xa0] sm:$0xff]   ;;  %v13453_v38 = vld [vmem:[#allocation6 + $0x8] sm:$0xff]   ;;  %v402_v62 = vld [vmem:[%s14246_s10 + $0x78] sm:$0xff]  }
  0xa1   : > { %v2343_v20 = vor.u32 %v2342_v0, %v2339_v15  ;;  %v11426_v4 = vcombine.low %v14295_v41, %v14295_v41  ;;  %v14374_v5 = vcombine.low %v14357_v50, %v14359_v51  ;;  %v2061_v6 = vrot.slane %v14353_v40, 5  ;;  %v13452_v41 = vld [vmem:[#allocation6 + $0x48] sm:$0xff]   ;;  %13066 = vmatprep.subr.bf16.mxu0 %v13451_v35  ;;  %435 = vst [vmem:[#allocation2 + $0x104] sm:$0xff] %v402_v62  }
  0xa2   : > { %v1894_v8 = vor.u32 %v1893_v48, %v1890_v56  ;;  %v2059_v9 = vsel %vm821_vm0, %v2057_v3, %v2058_v30  ;;  %v2372_v33 = vshrl.u32 %v2057_v3, 16  ;;  %v2375_v10 = vshll.u32 %v2057_v3, 16  ;;  %13067 = vmatpush3.bf16.msra.mxu0 %v13451_v35  ;;  %12344 = vmatprep.subr.bf16.mxu1 %v13452_v41  ;;  %v13460_v35 = vld [vmem:[#allocation6 + $0x40] sm:$0xff]  }
  0xa3   : > { %v2344_v46 = vsel %vm870_vm1, %v2335_v2, %v2343_v20  ;;  %v2380_v11 = vshrl.u32 %v2059_v9, 16  ;;  %v2383_v12 = vshll.u32 %v2059_v9, 16  ;;  %v2217_v13 = vshrl.u32 %v11425_v47, 16  ;;  %12345 = vmatpush3.bf16.msra.mxu1 %v13453_v38 }
  0xa4   : > { %13037 = vmatmul.mubr.bf16.gmra.mxu1 %v2344_v46  ;;  %v2234_v14 = vshrl.u32 %v1894_v8, 16  ;;  %v2237_v16 = vshll.u32 %v1894_v8, 16  ;;  %v2374_v17 = vrot.slane %v2372_v33, 3  ;;  %v2377_v19 = vrot.slane %v2375_v10, 4  ;;  %12346 = vmatprep.subr.bf16.mxu1 %v13460_v35 }
  0xa5   : > { %v2382_v22 = vrot.slane %v2380_v11, 3  ;;  %v2385_v23 = vrot.slane %v2383_v12, 4  ;;  %v2219_v24 = vrot.slane %v2217_v13, 3  ;;  %v2220_v25 = vshll.u32 %v11425_v47, 16  ;;  %v1671_v47 = vld [vmem:[#allocation2 + $0x50] sm:$0x8] }
  0xa6   : > { %v2236_v27 = vrot.slane %v2234_v14, 3  ;;  %v2239_v29 = vrot.slane %v2237_v16, 4  ;;  %v2378_v31 = vor.u32 %v2377_v19, %v2374_v17  ;;  %v2225_v34 = vshrl.u32 %v11426_v4, 16  ;;  %v14401_v19 = vld [vmem:[#allocation2 + $0xa4] sm:$0xf] }
  0xa7   : > { %v2386_v40 = vor.u32 %v2385_v23, %v2382_v22  ;;  %v2222_v42 = vrot.slane %v2220_v25, 4  ;;  %v2228_v43 = vshll.u32 %v11426_v4, 16  ;;  %v2060_v44 = vrot.slane %v14374_v5, 5  ;;  %v14403_v22 = vld [vmem:[#allocation2 + $0xa8] sm:$0xf]  ;;  %v13461_v23 = vld [vmem:[#allocation6] sm:$0xff]  }
  0xa8   : > { %v2240_v53 = vor.u32 %v2239_v29, %v2236_v27  ;;  %v2227_v54 = vrot.slane %v2225_v34, 3  ;;  %v1896_v55 = vshrl.u32 %v14330_v45, 16  ;;  %v1899_v56 = vshll.u32 %v14330_v45, 16  ;;  %12347 = vmatpush3.bf16.msra.mxu1 %v13461_v23 }
  0xa9   : > { %v2387_v58 = vsel %vm870_vm1, %v2378_v31, %v2386_v40  ;;  %v2223_v59 = vor.u32 %v2222_v42, %v2219_v24  ;;  %v2230_v39 = vrot.slane %v2228_v43, 4  ;;  %v2062_v61 = vsel %vm821_vm0, %v2060_v44, %v2061_v6  ;;  %v13438_v40 = vld [vmem:[#allocation2 + $0xbc] ss:$0 sps:$4 sm:$0x11]  }
  0xaa   : > { %3072 = vmatprep.mubr.bf16.mxu0 %v2240_v53  ;;  %13040 = vmatprep.mubr.bf16.mxu1 %v2387_v58  ;;  %v2415_v15 = vshrl.u32 %v2060_v44, 16  ;;  %v2418_v0 = vshll.u32 %v2060_v44, 16  ;;  %v2423_v30 = vshrl.u32 %v2062_v61, 16  ;;  %v2426_v1 = vshll.u32 %v2062_v61, 16  ;;  %v14406_v53 = vld [vmem:[#allocation2 + $0xb4] sm:$0xf] }
  0xab   : > { %v2231_v2 = vor.u32 %v2230_v39, %v2227_v54  ;;  %v1898_v48 = vrot.slane %v1896_v55, 4  ;;  %v1901_v45 = vrot.slane %v1899_v56, 5  ;;  %v14393_v3 = vcombine.low %v14380_v36, %v14382_v37  ;;  %v14408_v54 = vld [vmem:[#allocation2 + $0xb8] sm:$0xf] }
  0xac   : > { %v2417_v20 = vrot.slane %v2415_v15, 3  ;;  %v2420_v4 = vrot.slane %v2418_v0, 4  ;;  %v2425_v6 = vrot.slane %v2423_v30, 3  ;;  %v2428_v7 = vrot.slane %v2426_v1, 4  ;;  %v14414_v0 = vld [vmem:[#allocation6 + $0x238] sm:$0xff]  }
  0xad   : > { %v2232_v8 = vsel %vm870_vm1, %v2223_v59, %v2231_v2  ;;  %v1902_v9 = vor.u32 %v1901_v45, %v1898_v48  ;;  %v2063_v33 = vrot.slane %v14393_v3, 5  ;;  %v2064_v10 = vrot.slane %v13429_v49, 5  ;;  %v13467_v59 = vld [vmem:[#allocation6 + $0x98] sm:$0xff]   ;;  %13108 = vmatprep.subr.bf16.mxu1 %v14414_v0 }
  0xae   : > { %3073 = vmatmul.mubr.bf16.gmra.mxu0 %v2232_v8  ;;  %v2421_v46 = vor.u32 %v2420_v4, %v2417_v20  ;;  %v2429_v11 = vor.u32 %v2428_v7, %v2425_v6  ;;  %v11427_v12 = vcombine.low %v1671_v47, %v14314_v18  ;;  %v11428_v13 = vcombine.low %v14317_v26, %v14317_v26  ;;  %v13433_v18 = vld [vmem:[#allocation2 + $0xac] ss:$0 sps:$4 sm:$0x11]  }
  0xaf   : > { %v2277_v41 = vshrl.u32 %v1902_v9, 16  ;;  %v2280_v14 = vshll.u32 %v1902_v9, 16  ;;  %v2065_v16 = vsel %vm821_vm0, %v2063_v33, %v2064_v10  ;;  %v2458_v17 = vshrl.u32 %v2063_v33, 16  ;;  %13068 = vmatprep.subr.bf16.mxu0 %v13467_v59 }
  0xb0   : > { %v2430_v24 = vsel %vm870_vm1, %v2421_v46, %v2429_v11  ;;  %v2461_v25 = vshll.u32 %v2063_v33, 16  ;;  %v2466_v27 = vshrl.u32 %v2065_v16, 16  ;;  %v2469_v29 = vshll.u32 %v2065_v16, 16  ;;  %13069 = vmatpush3.bf16.msra.mxu0 %v13467_v59  ;;  %v1675_v33 = vld [vmem:[#allocation2 + $0x60] sm:$0x8] }
  0xb1   : > { %13041 = vmatmul.mubr.bf16.gmra.mxu1 %v2430_v24  ;;  %v2279_v31 = vrot.slane %v2277_v41, 3  ;;  %v2282_v26 = vrot.slane %v2280_v14, 4  ;;  %v2460_v34 = vrot.slane %v2458_v17, 3  ;;  %v2260_v38 = vshrl.u32 %v11427_v12, 16  ;;  %v13479_v14 = vld [vmem:[#allocation6 + $0x90] sm:$0xff]  }
  0xb2   : > { %v2463_v42 = vrot.slane %v2461_v25, 4  ;;  %v2468_v43 = vrot.slane %v2466_v27, 3  ;;  %v2471_v44 = vrot.slane %v2469_v29, 4  ;;  %v2263_v49 = vshll.u32 %v11427_v12, 16  ;;  %13070 = vmatprep.subr.bf16.mxu0 %v13479_v14 }
  0xb3   : > { %v2283_v55 = vor.u32 %v2282_v26, %v2279_v31  ;;  %v2262_v56 = vrot.slane %v2260_v38, 3  ;;  %v2268_v57 = vshrl.u32 %v11428_v13, 16  ;;  %v2271_v58 = vshll.u32 %v11428_v13, 16 }
  0xb4   : > { %v2464_v39 = vor.u32 %v2463_v42, %v2460_v34  ;;  %v2472_v61 = vor.u32 %v2471_v44, %v2468_v43  ;;  %v2265_v62 = vrot.slane %v2263_v49, 4  ;;  %v14412_v15 = vcombine.low %v14401_v19, %v14403_v22  ;;  %v14432_v42 = vld [vmem:[#allocation2 + $0xc8] sm:$0xf]  ;;  %v13442_v43 = vld [vmem:[#allocation2 + $0xcc] ss:$0 sps:$4 sm:$0x11]   ;;  %13071 = vmatpush3.bf16.msra.mxu0 %v13479_v14 }
  0xb5   : > { %3080 = vmatprep.mubr.bf16.mxu0 %v2283_v55  ;;  %v2270_v30 = vrot.slane %v2268_v57, 3  ;;  %v2273_v1 = vrot.slane %v2271_v58, 4  ;;  %v2067_v2 = vrot.slane %v13433_v18, 5  ;;  %v1904_v48 = vshrl.u32 %v14340_v63, 16 }
  0xb6   : > { %v2473_v45 = vsel %vm870_vm1, %v2464_v39, %v2472_v61  ;;  %v2266_v47 = vor.u32 %v2265_v62, %v2262_v56  ;;  %v2066_v20 = vrot.slane %v14412_v15, 5  ;;  %v1907_v4 = vshll.u32 %v14340_v63, 16  ;;  %v13491_v56 = vld [vmem:[#allocation6 + $0x88] sm:$0xff]  }
  0xb7   : > { %13044 = vmatprep.mubr.bf16.mxu1 %v2473_v45  ;;  %v2274_v6 = vor.u32 %v2273_v1, %v2270_v30  ;;  %v1906_v7 = vrot.slane %v1904_v48, 4  ;;  %v14423_v8 = vcombine.low %v14406_v53, %v14408_v54  ;;  %v2070_v9 = vrot.slane %v13438_v40, 5  ;;  %v14430_v40 = vld [vmem:[#allocation2 + $0xc4] sm:$0xf]  ;;  %13072 = vmatprep.subr.bf16.mxu0 %v13491_v56 }
  0xb8   : > { %v2068_v10 = vsel %vm821_vm0, %v2066_v20, %v2067_v2  ;;  %v2501_v35 = vshrl.u32 %v2066_v20, 16  ;;  %v2504_v46 = vshll.u32 %v2066_v20, 16  ;;  %v1909_v11 = vrot.slane %v1907_v4, 5  ;;  %v13503_v2 = vld [vmem:[#allocation6 + $0x80] sm:$0xff]   ;;  %13073 = vmatpush3.bf16.msra.mxu0 %v13491_v56 }
  0xb9   : > { %v2275_v12 = vsel %vm870_vm1, %v2266_v47, %v2274_v6  ;;  %v2509_v63 = vshrl.u32 %v2068_v10, 16  ;;  %v2512_v13 = vshll.u32 %v2068_v10, 16  ;;  %v2069_v41 = vrot.slane %v14423_v8, 5  ;;  %v13446_v4 = vld [vmem:[#allocation2 + $0xdc] ss:$0 sps:$4 sm:$0x11]   ;;  %13074 = vmatprep.subr.bf16.mxu0 %v13503_v2 }
  0xba   : > { %3081 = vmatmul.mubr.bf16.gmra.mxu0 %v2275_v12  ;;  %v2503_v16 = vrot.slane %v2501_v35, 3  ;;  %v2506_v17 = vrot.slane %v2504_v46, 4  ;;  %v1910_v23 = vor.u32 %v1909_v11, %v1906_v7  ;;  %v11429_v24 = vcombine.low %v1675_v33, %v14322_v32  ;;  %v14441_v33 = vld [vmem:[#allocation2 + $0xd4] sm:$0xf]  ;;  %v14443_v10 = vld [vmem:[#allocation2 + $0xd8] sm:$0xf] }
  0xbb   : > { %v2511_v25 = vrot.slane %v2509_v63, 3  ;;  %v2514_v27 = vrot.slane %v2512_v13, 4  ;;  %v2071_v29 = vsel %vm821_vm0, %v2069_v41, %v2070_v9  ;;  %v2544_v18 = vshrl.u32 %v2069_v41, 16  ;;  %v1679_v63 = vld [vmem:[#allocation2 + $0x70] sm:$0x8] }
  0xbc   : > { %v2507_v31 = vor.u32 %v2506_v17, %v2503_v16  ;;  %v2320_v26 = vshrl.u32 %v1910_v23, 16  ;;  %v2323_v34 = vshll.u32 %v1910_v23, 16  ;;  %v2547_v38 = vshll.u32 %v2069_v41, 16  ;;  %13075 = vmatpush3.bf16.msra.mxu0 %v13503_v2  ;;  %v13450_v2 = vld [vmem:[#allocation2 + $0xec] ss:$0 sps:$4 sm:$0x11]  }
  0xbd   : > { %v2515_v44 = vor.u32 %v2514_v27, %v2511_v25  ;;  %v2546_v49 = vrot.slane %v2544_v18, 3  ;;  %v2552_v55 = vshrl.u32 %v2071_v29, 16  ;;  %v2555_v32 = vshll.u32 %v2071_v29, 16 }
  0xbe   : > { %v2322_v57 = vrot.slane %v2320_v26, 3  ;;  %v2325_v58 = vrot.slane %v2323_v34, 4  ;;  %v2549_v59 = vrot.slane %v2547_v38, 4  ;;  %v11430_v39 = vcombine.low %v14332_v52, %v14332_v52 }
  0xbf   : > { %v2516_v61 = vsel %vm870_vm1, %v2507_v31, %v2515_v44  ;;  %v2554_v62 = vrot.slane %v2552_v55, 3  ;;  %v2557_v30 = vrot.slane %v2555_v32, 4  ;;  %v2303_v1 = vshrl.u32 %v11429_v24, 16 }
  0xc0   : > { %13045 = vmatmul.mubr.bf16.gmra.mxu1 %v2516_v61  ;;  %v2326_v48 = vor.u32 %v2325_v58, %v2322_v57  ;;  %v2550_v45 = vor.u32 %v2549_v59, %v2546_v49  ;;  %v2306_v47 = vshll.u32 %v11429_v24, 16  ;;  %v2311_v20 = vshrl.u32 %v11430_v39, 16 }
  0xc1   : > { %v2558_v6 = vor.u32 %v2557_v30, %v2554_v62  ;;  %v2305_v7 = vrot.slane %v2303_v1, 3  ;;  %v2314_v9 = vshll.u32 %v11430_v39, 16  ;;  %v14439_v52 = vcombine.low %v14430_v40, %v14432_v42  ;;  %v14458_v30 = vld [vmem:[#allocation2 + $0xe4] sm:$0xf]  ;;  %v14460_v1 = vld [vmem:[#allocation2 + $0xe8] sm:$0xf] }
  0xc2   : > { %3088 = vmatprep.mubr.bf16.mxu0 %v2326_v48  ;;  %v2308_v35 = vrot.slane %v2306_v47, 4  ;;  %v2313_v46 = vrot.slane %v2311_v20, 3  ;;  %v2073_v11 = vrot.slane %v13442_v43, 5  ;;  %v1912_v12 = vshrl.u32 %v14364_v60, 16 }
  0xc3   : > { %v2559_v13 = vsel %vm870_vm1, %v2550_v45, %v2558_v6  ;;  %v2316_v41 = vrot.slane %v2314_v9, 4  ;;  %v2072_v14 = vrot.slane %v14439_v52, 5  ;;  %v1915_v16 = vshll.u32 %v14364_v60, 16  ;;  %v13455_v9 = vld [vmem:[#allocation2 + $0xfc] ss:$0 sps:$4 sm:$0x11]  }
  0xc4   : > { %13048 = vmatprep.mubr.bf16.mxu1 %v2559_v13  ;;  %v2309_v17 = vor.u32 %v2308_v35, %v2305_v7  ;;  %v1914_v23 = vrot.slane %v1912_v12, 4  ;;  %v14451_v24 = vcombine.low %v14441_v33, %v14443_v10  ;;  %v2076_v25 = vrot.slane %v13446_v4, 5 }
  0xc5   : > { %v2317_v27 = vor.u32 %v2316_v41, %v2313_v46  ;;  %v2074_v29 = vsel %vm821_vm0, %v2072_v14, %v2073_v11  ;;  %v2587_v18 = vshrl.u32 %v2072_v14, 16  ;;  %v2590_v31 = vshll.u32 %v2072_v14, 16 }
  0xc6   : > { %v2595_v26 = vshrl.u32 %v2074_v29, 16  ;;  %v2598_v34 = vshll.u32 %v2074_v29, 16  ;;  %v1917_v38 = vrot.slane %v1915_v16, 5  ;;  %v2075_v43 = vrot.slane %v14451_v24, 5 }
  0xc7   : > { %v2318_v60 = vsel %vm870_vm1, %v2309_v17, %v2317_v27  ;;  %v2589_v44 = vrot.slane %v2587_v18, 3  ;;  %v2592_v49 = vrot.slane %v2590_v31, 4  ;;  %v11431_v55 = vcombine.low %v1679_v63, %v14346_v21  ;;  %v14469_v27 = vld [vmem:[#allocation2 + $0xf4] sm:$0xf] }
  0xc8   : > { %3089 = vmatmul.mubr.bf16.gmra.mxu0 %v2318_v60  ;;  %v2597_v32 = vrot.slane %v2595_v26, 3  ;;  %v2600_v56 = vrot.slane %v2598_v34, 4  ;;  %v1918_v57 = vor.u32 %v1917_v38, %v1914_v23  ;;  %v2077_v58 = vsel %vm821_vm0, %v2075_v43, %v2076_v25 }
  0xc9   : > { %v2593_v59 = vor.u32 %v2592_v49, %v2589_v44  ;;  %v2630_v39 = vshrl.u32 %v2075_v43, 16  ;;  %v2633_v61 = vshll.u32 %v2075_v43, 16  ;;  %v2638_v62 = vshrl.u32 %v2077_v58, 16 }
  0xca   : > { %v2601_v48 = vor.u32 %v2600_v56, %v2597_v32  ;;  %v2363_v45 = vshrl.u32 %v1918_v57, 16  ;;  %v2366_v47 = vshll.u32 %v1918_v57, 16  ;;  %v2641_v20 = vshll.u32 %v2077_v58, 16 }
  0xcb   : > { %v2632_v21 = vrot.slane %v2630_v39, 3  ;;  %v2635_v4 = vrot.slane %v2633_v61, 4  ;;  %v2640_v6 = vrot.slane %v2638_v62, 3  ;;  %v11432_v7 = vcombine.low %v14349_v28, %v14349_v28  ;;  %v14471_v28 = vld [vmem:[#allocation2 + $0xf8] sm:$0xf] }
  0xcc   : > { %v2602_v35 = vsel %vm870_vm1, %v2593_v59, %v2601_v48  ;;  %v2365_v46 = vrot.slane %v2363_v45, 3  ;;  %v2368_v11 = vrot.slane %v2366_v47, 4  ;;  %v2643_v12 = vrot.slane %v2641_v20, 4  ;;  %v1683_v39 = vld [vmem:[#allocation2 + $0x80] sm:$0x8] }
  0xcd   : > { %13049 = vmatmul.mubr.bf16.gmra.mxu1 %v2602_v35  ;;  %v2636_v63 = vor.u32 %v2635_v4, %v2632_v21  ;;  %v2346_v13 = vshrl.u32 %v11431_v55, 16  ;;  %v2349_v41 = vshll.u32 %v11431_v55, 16  ;;  %v2354_v14 = vshrl.u32 %v11432_v7, 16  ;;  %v13515_v21 = vld [vmem:[#allocation6 + $0x1f8] sm:$0xff]  }
  0xce   : > { %v2369_v16 = vor.u32 %v2368_v11, %v2365_v46  ;;  %v2644_v17 = vor.u32 %v2643_v12, %v2640_v6  ;;  %v2357_v23 = vshll.u32 %v11432_v7, 16  ;;  %v14467_v25 = vcombine.low %v14458_v30, %v14460_v1  ;;  %12468 = vmatprep.subr.bf16.mxu0 %v13515_v21 }
  0xcf   : > { %v2348_v29 = vrot.slane %v2346_v13, 3  ;;  %v2351_v18 = vrot.slane %v2349_v41, 4  ;;  %v2356_v31 = vrot.slane %v2354_v14, 3  ;;  %v2079_v26 = vrot.slane %v13450_v2, 5 }
  0xd0   : > { %3096 = vmatprep.mubr.bf16.mxu0 %v2369_v16  ;;  %v2645_v34 = vsel %vm870_vm1, %v2636_v63, %v2644_v17  ;;  %v2359_v38 = vrot.slane %v2357_v23, 4  ;;  %v2078_v43 = vrot.slane %v14467_v25, 5  ;;  %v1920_v60 = vshrl.u32 %v14374_v5, 16  ;;  %v1716_v63 = vld [vmem:[#allocation2 + $0x104] sm:$0xf] }
  0xd1   : > { %13052 = vmatprep.mubr.bf16.mxu1 %v2645_v34  ;;  %v2352_v44 = vor.u32 %v2351_v18, %v2348_v29  ;;  %v1923_v49 = vshll.u32 %v14374_v5, 16  ;;  %v14479_v55 = vcombine.low %v14469_v27, %v14471_v28  ;;  %v2082_v32 = vrot.slane %v13455_v9, 5  ;;  %v1717_v17 = vld [vmem:[#allocation2 + $0x108] sm:$0xf] }
  0xd2   : > { %v2360_v56 = vor.u32 %v2359_v38, %v2356_v31  ;;  %v2080_v57 = vsel %vm821_vm0, %v2078_v43, %v2079_v26  ;;  %v2673_v58 = vshrl.u32 %v2078_v43, 16  ;;  %v2676_v59 = vshll.u32 %v2078_v43, 16  ;;  %v13459_v26 = vld [vmem:[#allocation2 + $0x10c] ss:$0 sps:$4 sm:$0x11]  }
  0xd3   : > { %v2681_v61 = vshrl.u32 %v2080_v57, 16  ;;  %v2684_v62 = vshll.u32 %v2080_v57, 16  ;;  %v1922_v2 = vrot.slane %v1920_v60, 4  ;;  %v1925_v48 = vrot.slane %v1923_v49, 5 }
  0xd4   : > { %v2361_v45 = vsel %vm870_vm1, %v2352_v44, %v2360_v56  ;;  %v2675_v47 = vrot.slane %v2673_v58, 3  ;;  %v2678_v20 = vrot.slane %v2676_v59, 4  ;;  %v2081_v5 = vrot.slane %v14479_v55, 5 }
  0xd5   : > { %3097 = vmatmul.mubr.bf16.gmra.mxu0 %v2361_v45  ;;  %v2683_v4 = vrot.slane %v2681_v61, 3  ;;  %v2686_v6 = vrot.slane %v2684_v62, 4  ;;  %v1926_v7 = vor.u32 %v1925_v48, %v1922_v2  ;;  %v11433_v9 = vcombine.low %v1683_v39, %v14357_v50  ;;  %v438_v39 = vld [vmem:[#allocation2 + $0x4] sm:$0xf]  ;;  %v14491_v61 = vld [vmem:[#allocation2 + $0x8] sm:$0xf] }
  0xd6   : > { %v2679_v35 = vor.u32 %v2678_v20, %v2675_v47  ;;  %v2083_v46 = vsel %vm821_vm0, %v2081_v5, %v2082_v32  ;;  %v2716_v11 = vshrl.u32 %v2081_v5, 16  ;;  %v2719_v12 = vshll.u32 %v2081_v5, 16 }
  0xd7   : > { %v2687_v13 = vor.u32 %v2686_v6, %v2683_v4  ;;  %v2406_v41 = vshrl.u32 %v1926_v7, 16  ;;  %v2409_v14 = vshll.u32 %v1926_v7, 16  ;;  %v2724_v16 = vshrl.u32 %v2083_v46, 16 }
  0xd8   : > { %v2718_v23 = vrot.slane %v2716_v11, 3  ;;  %v2721_v29 = vrot.slane %v2719_v12, 4  ;;  %v2727_v18 = vshll.u32 %v2083_v46, 16  ;;  %v11434_v31 = vcombine.low %v14359_v51, %v14359_v51 }
  0xd9   : > { %v2688_v50 = vsel %vm870_vm1, %v2679_v35, %v2687_v13  ;;  %v2408_v34 = vrot.slane %v2406_v41, 3  ;;  %v2411_v38 = vrot.slane %v2409_v14, 4  ;;  %v2726_v43 = vrot.slane %v2724_v16, 3  ;;  %v1687_v14 = vld [vmem:[#allocation2 + $0x90] sm:$0x8] }
  0xda   : > { %13053 = vmatmul.mubr.bf16.gmra.mxu1 %v2688_v50  ;;  %v2722_v60 = vor.u32 %v2721_v29, %v2718_v23  ;;  %v2729_v44 = vrot.slane %v2727_v18, 4  ;;  %v2389_v49 = vshrl.u32 %v11433_v9, 16  ;;  %v2392_v32 = vshll.u32 %v11433_v9, 16 }
  0xdb   : > { %v2412_v56 = vor.u32 %v2411_v38, %v2408_v34  ;;  %v2397_v57 = vshrl.u32 %v11434_v31, 16  ;;  %v2400_v58 = vshll.u32 %v11434_v31, 16  ;;  %v14489_v59 = vcombine.low %v1716_v63, %v1717_v17 }
  0xdc   : > { %v2730_v51 = vor.u32 %v2729_v44, %v2726_v43  ;;  %v2391_v62 = vrot.slane %v2389_v49, 3  ;;  %v2394_v2 = vrot.slane %v2392_v32, 4  ;;  %v2085_v48 = vrot.slane %v13459_v26, 5 }
  0xdd   : > { %3104 = vmatprep.mubr.bf16.mxu0 %v2412_v56  ;;  %v2399_v45 = vrot.slane %v2397_v57, 3  ;;  %v2402_v47 = vrot.slane %v2400_v58, 4  ;;  %v2084_v20 = vrot.slane %v14489_v59, 5  ;;  %v1928_v5 = vshrl.u32 %v14393_v3, 16 }
  0xde   : > { %v2731_v21 = vsel %vm870_vm1, %v2722_v60, %v2730_v51  ;;  %v2395_v4 = vor.u32 %v2394_v2, %v2391_v62  ;;  %v1931_v6 = vshll.u32 %v14393_v3, 16  ;;  %v14498_v7 = vcombine.low %v438_v39, %v14491_v61  ;;  %v437_v62 = vld [vmem:[#allocation2] sm:$0x8] }
  0xdf   : > { %13056 = vmatprep.mubr.bf16.mxu1 %v2731_v21  ;;  %v2403_v9 = vor.u32 %v2402_v47, %v2399_v45  ;;  %v2086_v35 = vsel %vm821_vm0, %v2084_v20, %v2085_v48  ;;  %v2759_v46 = vshrl.u32 %v2084_v20, 16  ;;  %v2762_v11 = vshll.u32 %v2084_v20, 16 }
  0xe0   : > { %v2767_v12 = vshrl.u32 %v2086_v35, 16  ;;  %v2770_v63 = vshll.u32 %v2086_v35, 16  ;;  %v1930_v13 = vrot.slane %v1928_v5, 4  ;;  %v1933_v41 = vrot.slane %v1931_v6, 5  ;;  %v442_v35 = vld [vmem:[#allocation2 + $0x14] sm:$0xf] }
  0xe1   : > { %v2404_v16 = vsel %vm870_vm1, %v2395_v4, %v2403_v9  ;;  %v2761_v17 = vrot.slane %v2759_v46, 3  ;;  %v2764_v23 = vrot.slane %v2762_v11, 4  ;;  %v646_v3 = vshrl.u32 %v14498_v7, 16  ;;  %v443_v46 = vld [vmem:[#allocation2 + $0x18] sm:$0xf] }
  0xe2   : > { %3105 = vmatmul.mubr.bf16.gmra.mxu0 %v2404_v16  ;;  %v2769_v29 = vrot.slane %v2767_v12, 3  ;;  %v2772_v18 = vrot.slane %v2770_v63, 4  ;;  %v1934_v31 = vor.u32 %v1933_v41, %v1930_v13  ;;  %v649_v26 = vshll.u32 %v14498_v7, 16  ;;  %v1691_v11 = vld [vmem:[#allocation2 + $0xa0] sm:$0x8] }
  0xe3   : > { %v2765_v50 = vor.u32 %v2764_v23, %v2761_v17  ;;  %v648_v34 = vrot.slane %v646_v3, 4  ;;  %v11435_v38 = vcombine.low %v1687_v14, %v14380_v36  ;;  %v11436_v43 = vcombine.low %v14382_v37, %v14382_v37  ;;  %v441_v14 = vld [vmem:[#allocation2 + $0x10] sm:$0x8] }
  0xe4   : > { %v2773_v60 = vor.u32 %v2772_v18, %v2769_v29  ;;  %v2449_v44 = vshrl.u32 %v1934_v31, 16  ;;  %v2452_v49 = vshll.u32 %v1934_v31, 16  ;;  %v651_v32 = vrot.slane %v649_v26, 5 }
  0xe5   : > { %v2432_v56 = vshrl.u32 %v11435_v38, 16  ;;  %v2435_v57 = vshll.u32 %v11435_v38, 16  ;;  %v2440_v58 = vshrl.u32 %v11436_v43, 16  ;;  %v2443_v51 = vshll.u32 %v11436_v43, 16 }
  0xe6   : > { %v2774_v2 = vsel %vm870_vm1, %v2765_v50, %v2773_v60  ;;  %v2451_v48 = vrot.slane %v2449_v44, 3  ;;  %v2454_v45 = vrot.slane %v2452_v49, 4  ;;  %v652_v47 = vor.u32 %v651_v32, %v648_v34 }
  0xe7   : > { %13057 = vmatmul.mubr.bf16.gmra.mxu1 %v2774_v2  ;;  %v2434_v20 = vrot.slane %v2432_v56, 3  ;;  %v2437_v36 = vrot.slane %v2435_v57, 4  ;;  %v2442_v5 = vrot.slane %v2440_v58, 3  ;;  %v2445_v21 = vrot.slane %v2443_v51, 4 }
  0xe8   : > { %v2455_v37 = vor.u32 %v2454_v45, %v2451_v48  ;;  %v889_v4 = vshrl.u32 %v652_v47, 16  ;;  %v892_v6 = vshll.u32 %v652_v47, 16  ;;  %v11355_v9 = vcombine.low %v437_v62, %v438_v39 }
  0xe9   : > { %v2438_v12 = vor.u32 %v2437_v36, %v2434_v20  ;;  %v2446_v63 = vor.u32 %v2445_v21, %v2442_v5  ;;  %v11356_v13 = vcombine.low %v14491_v61, %v14491_v61  ;;  %v1936_v41 = vshrl.u32 %v14412_v15, 16  ;;  %v13480_v20 = vld [vmem:[#allocation6 + $0x230] sm:$0xff]  }
  0xea   : > { %3112 = vmatprep.mubr.bf16.mxu0 %v2455_v37  ;;  %v891_v16 = vrot.slane %v889_v4, 3  ;;  %v894_v17 = vrot.slane %v892_v6, 4  ;;  %v872_v23 = vshrl.u32 %v11355_v9, 16  ;;  %v875_v3 = vshll.u32 %v11355_v9, 16 }
  0xeb   : > { %v2447_v29 = vsel %vm870_vm1, %v2438_v12, %v2446_v63  ;;  %v880_v18 = vshrl.u32 %v11356_v13, 16  ;;  %v883_v39 = vshll.u32 %v11356_v13, 16  ;;  %v1938_v31 = vrot.slane %v1936_v41, 4 }
  0xec   : > { %v895_v26 = vor.u32 %v894_v17, %v891_v16  ;;  %3113 = vmatmul.mubr.bf16.gmra.mxu0 %v2447_v29  ;;  %v874_v50 = vrot.slane %v872_v23, 3  ;;  %v877_v34 = vrot.slane %v875_v3, 4  ;;  %v1939_v38 = vshll.u32 %v14412_v15, 16  ;;  %v446_v16 = vld [vmem:[#allocation2 + $0x24] sm:$0xf]  ;;  %v13492_v23 = vld [vmem:[#allocation6 + $0x228] sm:$0xff]  }
  0xed   : > { %v882_v61 = vrot.slane %v880_v18, 3  ;;  %v885_v43 = vrot.slane %v883_v39, 4  ;;  %v14513_v60 = vcombine.low %v442_v35, %v443_v46  ;;  %v11437_v44 = vcombine.low %v1691_v11, %v14401_v19  ;;  %v447_v17 = vld [vmem:[#allocation2 + $0x28] sm:$0xf] }
  0xee   : > { %3514 = vmatprep.mubr.bf16.mxu1 %v895_v26  ;;  %v878_v49 = vor.u32 %v877_v34, %v874_v50  ;;  %v1941_v32 = vrot.slane %v1939_v38, 5  ;;  %v11438_v56 = vcombine.low %v14403_v22, %v14403_v22  ;;  %v11357_v57 = vcombine.low %v441_v14, %v442_v35 }
  0xef   : > { %v886_v58 = vor.u32 %v885_v43, %v882_v61  ;;  %v654_v51 = vshrl.u32 %v14513_v60, 16  ;;  %v657_v62 = vshll.u32 %v14513_v60, 16  ;;  %v2475_v2 = vshrl.u32 %v11437_v44, 16 }
  0xf0   : > { %v1942_v15 = vor.u32 %v1941_v32, %v1938_v31  ;;  %v2478_v48 = vshll.u32 %v11437_v44, 16  ;;  %v2483_v45 = vshrl.u32 %v11438_v56, 16  ;;  %v2486_v47 = vshll.u32 %v11438_v56, 16  ;;  %v1695_v31 = vld [vmem:[#allocation2 + $0xb0] sm:$0x8] }
  0xf1   : > { %v887_v19 = vsel %vm870_vm1, %v878_v49, %v886_v58  ;;  %v656_v36 = vrot.slane %v654_v51, 4  ;;  %v659_v5 = vrot.slane %v657_v62, 5  ;;  %v2477_v21 = vrot.slane %v2475_v2, 3  ;;  %v445_v44 = vld [vmem:[#allocation2 + $0x20] sm:$0x8] }
  0xf2   : > { %3515 = vmatmul.mubr.bf16.vlgmr.msra.gmra.mxu1 %v887_v19  ;;  %v2492_v37 = vshrl.u32 %v1942_v15, 16  ;;  %v2495_v22 = vshll.u32 %v1942_v15, 16  ;;  %v2480_v4 = vrot.slane %v2478_v48, 4  ;;  %v2485_v6 = vrot.slane %v2483_v45, 3  ;;  %v13504_v58 = vld [vmem:[#allocation6 + $0x220] sm:$0xff]   ;;  %v13517_v19 = vld [vmem:[#allocation6 + $0x218] sm:$0xff]  }
  0xf3   : > { %13109 = vmatpush3.bf16.msra.mxu1 %v14414_v0  ;;  %v660_v9 = vor.u32 %v659_v5, %v656_v36  ;;  %v2488_v35 = vrot.slane %v2486_v47, 4  ;;  %v11358_v11 = vcombine.low %v443_v46, %v443_v46  ;;  %v915_v12 = vshrl.u32 %v11357_v57, 16 }
  0xf4   : > { %v2494_v63 = vrot.slane %v2492_v37, 3  ;;  %v2497_v13 = vrot.slane %v2495_v22, 4  ;;  %v2481_v41 = vor.u32 %v2480_v4, %v2477_v21  ;;  %v918_v14 = vshll.u32 %v11357_v57, 16  ;;  %13110 = vmatprep.subr.bf16.mxu1 %v13480_v20 }
  0xf5   : > { %v932_v3 = vshrl.u32 %v660_v9, 16  ;;  %v935_v29 = vshll.u32 %v660_v9, 16  ;;  %v2489_v18 = vor.u32 %v2488_v35, %v2485_v6  ;;  %v917_v39 = vrot.slane %v915_v12, 3 }
  0xf6   : > { %v2498_v26 = vor.u32 %v2497_v13, %v2494_v63  ;;  %v920_v50 = vrot.slane %v918_v14, 4  ;;  %v923_v0 = vshrl.u32 %v11358_v11, 16  ;;  %v926_v34 = vshll.u32 %v11358_v11, 16 }
  0xf7   : > { %v934_v38 = vrot.slane %v932_v3, 3  ;;  %v937_v46 = vrot.slane %v935_v29, 4  ;;  %v2490_v61 = vsel %vm870_vm1, %v2481_v41, %v2489_v18  ;;  %v1944_v43 = vshrl.u32 %v14423_v8, 16  ;;  %13111 = vmatpush3.bf16.msra.mxu1 %v13480_v20 }
  0xf8   : > { %3120 = vmatprep.mubr.bf16.mxu0 %v2498_v26  ;;  %v921_v49 = vor.u32 %v920_v50, %v917_v39  ;;  %v925_v32 = vrot.slane %v923_v0, 3  ;;  %v928_v56 = vrot.slane %v926_v34, 4  ;;  %v1947_v57 = vshll.u32 %v14423_v8, 16  ;;  %13112 = vmatprep.subr.bf16.mxu1 %v13492_v23  ;;  %v451_v26 = vld [vmem:[#allocation2 + $0x38] sm:$0xf]  ;;  %v13532_v50 = vld [vmem:[#allocation6 + $0x210] sm:$0xff]  }
  0xf9   : > { %v938_v51 = vor.u32 %v937_v46, %v934_v38  ;;  %3121 = vmatmul.mubr.bf16.gmra.mxu0 %v2490_v61  ;;  %v1946_v62 = vrot.slane %v1944_v43, 4  ;;  %v14525_v2 = vcombine.low %v446_v16, %v447_v17  ;;  %v11439_v15 = vcombine.low %v1695_v31, %v14406_v53  ;;  %v1699_v61 = vld [vmem:[#allocation2 + $0xc0] sm:$0x8] }
  0xfa   : > { %v929_v48 = vor.u32 %v928_v56, %v925_v32  ;;  %v1949_v45 = vrot.slane %v1947_v57, 5  ;;  %v11440_v47 = vcombine.low %v14408_v54, %v14408_v54  ;;  %v11359_v20 = vcombine.low %v445_v44, %v446_v16 }
  0xfb   : > { %3522 = vmatprep.mubr.bf16.mxu1 %v938_v51  ;;  %v662_v36 = vshrl.u32 %v14525_v2, 16  ;;  %v665_v8 = vshll.u32 %v14525_v2, 16  ;;  %v2518_v5 = vshrl.u32 %v11439_v15, 16  ;;  %v2521_v21 = vshll.u32 %v11439_v15, 16  ;;  %13113 = vmatpush3.bf16.msra.mxu1 %v13492_v23  ;;  %v450_v23 = vld [vmem:[#allocation2 + $0x34] sm:$0xf] }
  0xfc   : > { %v930_v37 = vsel %vm870_vm1, %v921_v49, %v929_v48  ;;  %v1950_v22 = vor.u32 %v1949_v45, %v1946_v62  ;;  %v2526_v4 = vshrl.u32 %v11440_v47, 16  ;;  %v2529_v53 = vshll.u32 %v11440_v47, 16  ;;  %13114 = vmatprep.subr.bf16.mxu1 %v13504_v58 }
  0xfd   : > { %3523 = vmatmul.mubr.bf16.gmra.mxu1 %v930_v37  ;;  %v664_v6 = vrot.slane %v662_v36, 4  ;;  %v667_v9 = vrot.slane %v665_v8, 5  ;;  %v2520_v54 = vrot.slane %v2518_v5, 3  ;;  %v2523_v35 = vrot.slane %v2521_v21, 4 }
  0xfe   : > { %v2535_v11 = vshrl.u32 %v1950_v22, 16  ;;  %v2538_v12 = vshll.u32 %v1950_v22, 16  ;;  %v2528_v63 = vrot.slane %v2526_v4, 3  ;;  %v2531_v13 = vrot.slane %v2529_v53, 4  ;;  %v449_v53 = vld [vmem:[#allocation2 + $0x30] sm:$0x8] }
  0xff   : > { %v668_v41 = vor.u32 %v667_v9, %v664_v6  ;;  %v2524_v14 = vor.u32 %v2523_v35, %v2520_v54  ;;  %v11360_v16 = vcombine.low %v447_v17, %v447_v17  ;;  %v958_v3 = vshrl.u32 %v11359_v20, 16  ;;  %13115 = vmatpush3.bf16.msra.mxu1 %v13504_v58 }
 0x100   : > { %v2537_v29 = vrot.slane %v2535_v11, 3  ;;  %v2540_v18 = vrot.slane %v2538_v12, 4  ;;  %v2532_v39 = vor.u32 %v2531_v13, %v2528_v63  ;;  %v961_v31 = vshll.u32 %v11359_v20, 16  ;;  %13116 = vmatprep.subr.bf16.mxu1 %v13517_v19 }
 0x101   : > { %v975_v0 = vshrl.u32 %v668_v41, 16  ;;  %v978_v34 = vshll.u32 %v668_v41, 16  ;;  %v960_v38 = vrot.slane %v958_v3, 3  ;;  %v966_v46 = vshrl.u32 %v11360_v16, 16 }
 0x102   : > { %v2541_v43 = vor.u32 %v2540_v18, %v2537_v29  ;;  %v2533_v44 = vsel %vm870_vm1, %v2524_v14, %v2532_v39  ;;  %v963_v49 = vrot.slane %v961_v31, 4  ;;  %v969_v17 = vshll.u32 %v11360_v16, 16  ;;  %v13547_v16 = vld [vmem:[#allocation6 + $0x208] sm:$0xff]   ;;  %v454_v31 = vld [vmem:[#allocation2 + $0x44] sm:$0xf] }
 0x103   : > { %v977_v32 = vrot.slane %v975_v0, 3  ;;  %v980_v56 = vrot.slane %v978_v34, 4  ;;  %v968_v57 = vrot.slane %v966_v46, 3  ;;  %v1952_v58 = vshrl.u32 %v14439_v52, 16  ;;  %13117 = vmatpush3.bf16.msra.mxu1 %v13517_v19 }
 0x104   : > { %3128 = vmatprep.mubr.bf16.mxu0 %v2541_v43  ;;  %v964_v51 = vor.u32 %v963_v49, %v960_v38  ;;  %v971_v62 = vrot.slane %v969_v17, 4  ;;  %v1955_v15 = vshll.u32 %v14439_v52, 16  ;;  %v14536_v48 = vcombine.low %v450_v23, %v451_v26  ;;  %13118 = vmatprep.subr.bf16.mxu1 %v13532_v50  ;;  %v453_v43 = vld [vmem:[#allocation2 + $0x40] sm:$0x8] }
 0x105   : > { %v981_v45 = vor.u32 %v980_v56, %v977_v32  ;;  %3129 = vmatmul.mubr.bf16.gmra.mxu0 %v2533_v44  ;;  %v1954_v47 = vrot.slane %v1952_v58, 4  ;;  %v11441_v20 = vcombine.low %v1699_v61, %v14430_v40  ;;  %v11442_v36 = vcombine.low %v14432_v42, %v14432_v42  ;;  %v1703_v61 = vld [vmem:[#allocation2 + $0xd0] sm:$0x8] }
 0x106   : > { %v972_v8 = vor.u32 %v971_v62, %v968_v57  ;;  %v1957_v5 = vrot.slane %v1955_v15, 5  ;;  %v670_v19 = vshrl.u32 %v14536_v48, 16  ;;  %v673_v21 = vshll.u32 %v14536_v48, 16 }
 0x107   : > { %3530 = vmatprep.mubr.bf16.mxu1 %v981_v45  ;;  %v2561_v37 = vshrl.u32 %v11441_v20, 16  ;;  %v2564_v52 = vshll.u32 %v11441_v20, 16  ;;  %v2569_v22 = vshrl.u32 %v11442_v36, 16  ;;  %v2572_v4 = vshll.u32 %v11442_v36, 16  ;;  %13119 = vmatpush3.bf16.msra.mxu1 %v13532_v50  ;;  %v455_v50 = vld [vmem:[#allocation2 + $0x48] sm:$0xf] }
 0x108   : > { %v973_v6 = vsel %vm870_vm1, %v964_v51, %v972_v8  ;;  %v1958_v9 = vor.u32 %v1957_v5, %v1954_v47  ;;  %v672_v40 = vrot.slane %v670_v19, 4  ;;  %v675_v54 = vrot.slane %v673_v21, 5  ;;  %13120 = vmatprep.subr.bf16.mxu1 %v13547_v16 }
 0x109   : > { %3531 = vmatmul.mubr.bf16.gmra.mxu1 %v973_v6  ;;  %v2563_v42 = vrot.slane %v2561_v37, 3  ;;  %v2566_v35 = vrot.slane %v2564_v52, 4  ;;  %v2571_v11 = vrot.slane %v2569_v22, 3  ;;  %v2574_v12 = vrot.slane %v2572_v4, 4 }
 0x10a   : > { %v2578_v63 = vshrl.u32 %v1958_v9, 16  ;;  %v2581_v13 = vshll.u32 %v1958_v9, 16  ;;  %v676_v41 = vor.u32 %v675_v54, %v672_v40  ;;  %v11361_v14 = vcombine.low %v449_v53, %v450_v23 }
 0x10b   : > { %v2567_v3 = vor.u32 %v2566_v35, %v2563_v42  ;;  %v2575_v29 = vor.u32 %v2574_v12, %v2571_v11  ;;  %v11362_v18 = vcombine.low %v451_v26, %v451_v26  ;;  %v1960_v39 = vshrl.u32 %v14451_v24, 16  ;;  %13121 = vmatpush3.bf16.msra.mxu1 %v13547_v16 }
 0x10c   : > { %v2580_v0 = vrot.slane %v2578_v63, 3  ;;  %v2583_v34 = vrot.slane %v2581_v13, 4  ;;  %v1018_v38 = vshrl.u32 %v676_v41, 16  ;;  %v1021_v46 = vshll.u32 %v676_v41, 16 }
 0x10d   : > { %v2576_v44 = vsel %vm870_vm1, %v2567_v3, %v2575_v29  ;;  %v1001_v49 = vshrl.u32 %v11361_v14, 16  ;;  %v1004_v17 = vshll.u32 %v11361_v14, 16  ;;  %v1009_v23 = vshrl.u32 %v11362_v18, 16 }
 0x10e   : > { %v2584_v32 = vor.u32 %v2583_v34, %v2580_v0  ;;  %v1020_v56 = vrot.slane %v1018_v38, 3  ;;  %v1023_v26 = vrot.slane %v1021_v46, 4  ;;  %v1012_v57 = vshll.u32 %v11362_v18, 16 }
 0x10f   : > { %v1003_v58 = vrot.slane %v1001_v49, 3  ;;  %v1006_v51 = vrot.slane %v1004_v17, 4  ;;  %v1011_v62 = vrot.slane %v1009_v23, 3  ;;  %v1962_v15 = vrot.slane %v1960_v39, 4  ;;  %v458_v39 = vld [vmem:[#allocation2 + $0x54] sm:$0xf] }
 0x110   : > { %3136 = vmatprep.mubr.bf16.mxu0 %v2584_v32  ;;  %v1024_v45 = vor.u32 %v1023_v26, %v1020_v56  ;;  %v1014_v47 = vrot.slane %v1012_v57, 4  ;;  %v1963_v20 = vshll.u32 %v14451_v24, 16  ;;  %v14547_v36 = vcombine.low %v454_v31, %v455_v50  ;;  %v457_v23 = vld [vmem:[#allocation2 + $0x50] sm:$0x8] }
 0x111   : > { %3137 = vmatmul.mubr.bf16.gmra.mxu0 %v2576_v44  ;;  %v1007_v8 = vor.u32 %v1006_v51, %v1003_v58  ;;  %v11443_v5 = vcombine.low %v1703_v61, %v14441_v33  ;;  %v11444_v19 = vcombine.low %v14443_v10, %v14443_v10  ;;  %v11363_v21 = vcombine.low %v453_v43, %v454_v31  ;;  %v459_v31 = vld [vmem:[#allocation2 + $0x58] sm:$0xf]  ;;  %v1707_v61 = vld [vmem:[#allocation2 + $0xe0] sm:$0x8] }
 0x112   : > { %3538 = vmatprep.mubr.bf16.mxu1 %v1024_v45  ;;  %v1015_v37 = vor.u32 %v1014_v47, %v1011_v62  ;;  %v1965_v52 = vrot.slane %v1963_v20, 5  ;;  %v678_v22 = vshrl.u32 %v14547_v36, 16  ;;  %v681_v4 = vshll.u32 %v14547_v36, 16 }
 0x113   : > { %v2604_v53 = vshrl.u32 %v11443_v5, 16  ;;  %v2607_v6 = vshll.u32 %v11443_v5, 16  ;;  %v2612_v24 = vshrl.u32 %v11444_v19, 16  ;;  %v2615_v9 = vshll.u32 %v11444_v19, 16 }
 0x114   : > { %v1016_v40 = vsel %vm870_vm1, %v1007_v8, %v1015_v37  ;;  %v1966_v54 = vor.u32 %v1965_v52, %v1962_v15  ;;  %v680_v42 = vrot.slane %v678_v22, 4  ;;  %v683_v33 = vrot.slane %v681_v4, 5 }
 0x115   : > { %3539 = vmatmul.mubr.bf16.gmra.mxu1 %v1016_v40  ;;  %v2606_v35 = vrot.slane %v2604_v53, 3  ;;  %v2609_v10 = vrot.slane %v2607_v6, 4  ;;  %v2614_v11 = vrot.slane %v2612_v24, 3  ;;  %v2617_v12 = vrot.slane %v2615_v9, 4 }
 0x116   : > { %v2621_v63 = vshrl.u32 %v1966_v54, 16  ;;  %v2624_v13 = vshll.u32 %v1966_v54, 16  ;;  %v684_v41 = vor.u32 %v683_v33, %v680_v42  ;;  %v11364_v14 = vcombine.low %v455_v50, %v455_v50 }
 0x117   : > { %v2610_v16 = vor.u32 %v2609_v10, %v2606_v35  ;;  %v2618_v3 = vor.u32 %v2617_v12, %v2614_v11  ;;  %v1044_v29 = vshrl.u32 %v11363_v21, 16  ;;  %v1047_v18 = vshll.u32 %v11363_v21, 16 }
 0x118   : > { %v2623_v0 = vrot.slane %v2621_v63, 3  ;;  %v2626_v34 = vrot.slane %v2624_v13, 4  ;;  %v1061_v38 = vshrl.u32 %v684_v41, 16  ;;  %v1064_v46 = vshll.u32 %v684_v41, 16 }
 0x119   : > { %v2619_v43 = vsel %vm870_vm1, %v2610_v16, %v2618_v3  ;;  %v1046_v44 = vrot.slane %v1044_v29, 3  ;;  %v1049_v49 = vrot.slane %v1047_v18, 4  ;;  %v1052_v17 = vshrl.u32 %v11364_v14, 16  ;;  %v462_v3 = vld [vmem:[#allocation2 + $0x64] sm:$0xf] }
 0x11a   : > { %v2627_v32 = vor.u32 %v2626_v34, %v2623_v0  ;;  %v1063_v56 = vrot.slane %v1061_v38, 3  ;;  %v1066_v50 = vrot.slane %v1064_v46, 4  ;;  %v1055_v26 = vshll.u32 %v11364_v14, 16  ;;  %v463_v29 = vld [vmem:[#allocation2 + $0x68] sm:$0xf]  ;;  %v13562_v18 = vld [vmem:[#allocation6 + $0x200] sm:$0xff]  }
 0x11b   : > { %v1050_v57 = vor.u32 %v1049_v49, %v1046_v44  ;;  %v1054_v58 = vrot.slane %v1052_v17, 3  ;;  %v1968_v51 = vshrl.u32 %v14467_v25, 16  ;;  %v1971_v62 = vshll.u32 %v14467_v25, 16  ;;  %v1711_v46 = vld [vmem:[#allocation2 + $0xf0] sm:$0x8]  ;;  %13122 = vmatprep.subr.bf16.mxu1 %v13562_v18 }
 0x11c   : > { %3144 = vmatprep.mubr.bf16.mxu0 %v2627_v32  ;;  %v1067_v15 = vor.u32 %v1066_v50, %v1063_v56  ;;  %v1057_v45 = vrot.slane %v1055_v26, 4  ;;  %v14558_v47 = vcombine.low %v458_v39, %v459_v31  ;;  %v11445_v20 = vcombine.low %v1707_v61, %v14458_v30  ;;  %v461_v56 = vld [vmem:[#allocation2 + $0x60] sm:$0x8]  ;;  %13123 = vmatpush3.bf16.msra.mxu1 %v13562_v18  ;;  %v467_v18 = vld [vmem:[#allocation2 + $0x78] sm:$0xf] }
 0x11d   : > { %3145 = vmatmul.mubr.bf16.gmra.mxu0 %v2619_v43  ;;  %v1970_v8 = vrot.slane %v1968_v51, 4  ;;  %v1973_v5 = vrot.slane %v1971_v62, 5  ;;  %v11446_v19 = vcombine.low %v14460_v1, %v14460_v1  ;;  %v11365_v21 = vcombine.low %v457_v23, %v458_v39 }
 0x11e   : > { %3546 = vmatprep.mubr.bf16.mxu1 %v1067_v15  ;;  %v1058_v37 = vor.u32 %v1057_v45, %v1054_v58  ;;  %v686_v52 = vshrl.u32 %v14558_v47, 16  ;;  %v689_v25 = vshll.u32 %v14558_v47, 16  ;;  %v2647_v22 = vshrl.u32 %v11445_v20, 16 }
 0x11f   : > { %v1974_v4 = vor.u32 %v1973_v5, %v1970_v8  ;;  %v2650_v53 = vshll.u32 %v11445_v20, 16  ;;  %v2655_v6 = vshrl.u32 %v11446_v19, 16  ;;  %v2658_v24 = vshll.u32 %v11446_v19, 16 }
 0x120   : > { %v1059_v30 = vsel %vm870_vm1, %v1050_v57, %v1058_v37  ;;  %v688_v9 = vrot.slane %v686_v52, 4  ;;  %v691_v40 = vrot.slane %v689_v25, 5  ;;  %v2649_v54 = vrot.slane %v2647_v22, 3 }
 0x121   : > { %3547 = vmatmul.mubr.bf16.gmra.mxu1 %v1059_v30  ;;  %v2664_v42 = vshrl.u32 %v1974_v4, 16  ;;  %v2667_v1 = vshll.u32 %v1974_v4, 16  ;;  %v2652_v33 = vrot.slane %v2650_v53, 4  ;;  %v2657_v35 = vrot.slane %v2655_v6, 3 }
 0x122   : > { %v692_v10 = vor.u32 %v691_v40, %v688_v9  ;;  %v2660_v11 = vrot.slane %v2658_v24, 4  ;;  %v11366_v12 = vcombine.low %v459_v31, %v459_v31  ;;  %v1087_v63 = vshrl.u32 %v11365_v21, 16 }
 0x123   : > { %v2666_v13 = vrot.slane %v2664_v42, 3  ;;  %v2669_v41 = vrot.slane %v2667_v1, 4  ;;  %v2653_v14 = vor.u32 %v2652_v33, %v2649_v54  ;;  %v1090_v16 = vshll.u32 %v11365_v21, 16 }
 0x124   : > { %v1104_v39 = vshrl.u32 %v692_v10, 16  ;;  %v1107_v0 = vshll.u32 %v692_v10, 16  ;;  %v2661_v34 = vor.u32 %v2660_v11, %v2657_v35  ;;  %v1089_v38 = vrot.slane %v1087_v63, 3 }
 0x125   : > { %v2670_v61 = vor.u32 %v2669_v41, %v2666_v13  ;;  %v1092_v43 = vrot.slane %v1090_v16, 4  ;;  %v1095_v44 = vshrl.u32 %v11366_v12, 16  ;;  %v1098_v49 = vshll.u32 %v11366_v12, 16  ;;  %v466_v13 = vld [vmem:[#allocation2 + $0x74] sm:$0xf] }
 0x126   : > { %v1106_v17 = vrot.slane %v1104_v39, 3  ;;  %v1109_v31 = vrot.slane %v1107_v0, 4  ;;  %v2662_v23 = vsel %vm870_vm1, %v2653_v14, %v2661_v34  ;;  %v1976_v32 = vshrl.u32 %v14479_v55, 16 }
 0x127   : > { %3152 = vmatprep.mubr.bf16.mxu0 %v2670_v61  ;;  %v1093_v50 = vor.u32 %v1092_v43, %v1089_v38  ;;  %v1097_v26 = vrot.slane %v1095_v44, 3  ;;  %v1100_v57 = vrot.slane %v1098_v49, 4  ;;  %v1979_v58 = vshll.u32 %v14479_v55, 16 }
 0x128   : > { %v1110_v51 = vor.u32 %v1109_v31, %v1106_v17  ;;  %3153 = vmatmul.mubr.bf16.gmra.mxu0 %v2662_v23  ;;  %v1978_v62 = vrot.slane %v1976_v32, 4  ;;  %v14569_v15 = vcombine.low %v462_v3, %v463_v29  ;;  %v11447_v45 = vcombine.low %v1711_v46, %v14469_v27  ;;  %v1715_v46 = vld [vmem:[#allocation2 + $0x100] sm:$0x8] }
 0x129   : > { %v1101_v20 = vor.u32 %v1100_v57, %v1097_v26  ;;  %v1981_v8 = vrot.slane %v1979_v58, 5  ;;  %v11448_v5 = vcombine.low %v14471_v28, %v14471_v28  ;;  %v11367_v19 = vcombine.low %v461_v56, %v462_v3  ;;  %v13899_v57 = vld [vmem:[#allocation2 + $0x108] sm:$0xf] }
 0x12a   : > { %3554 = vmatprep.mubr.bf16.mxu1 %v1110_v51  ;;  %v694_v21 = vshrl.u32 %v14569_v15, 16  ;;  %v697_v37 = vshll.u32 %v14569_v15, 16  ;;  %v2690_v52 = vshrl.u32 %v11447_v45, 16  ;;  %v2693_v55 = vshll.u32 %v11447_v45, 16  ;;  %v465_v51 = vld [vmem:[#allocation2 + $0x70] sm:$0x8] }
 0x12b   : > { %v1102_v25 = vsel %vm870_vm1, %v1093_v50, %v1101_v20  ;;  %v1982_v22 = vor.u32 %v1981_v8, %v1978_v62  ;;  %v2698_v4 = vshrl.u32 %v11448_v5, 16  ;;  %v2701_v53 = vshll.u32 %v11448_v5, 16  ;;  %v13898_v50 = vld [vmem:[#allocation2 + $0x104] sm:$0xf] }
 0x12c   : > { %3555 = vmatmul.mubr.bf16.gmra.mxu1 %v1102_v25  ;;  %v696_v27 = vrot.slane %v694_v21, 4  ;;  %v699_v6 = vrot.slane %v697_v37, 5  ;;  %v2692_v24 = vrot.slane %v2690_v52, 3  ;;  %v2695_v30 = vrot.slane %v2693_v55, 4  ;;  %v470_v5 = vld [vmem:[#allocation2 + $0x84] sm:$0xf] }
 0x12d   : > { %v2707_v9 = vshrl.u32 %v1982_v22, 16  ;;  %v2710_v28 = vshll.u32 %v1982_v22, 16  ;;  %v2700_v40 = vrot.slane %v2698_v4, 3  ;;  %v2703_v54 = vrot.slane %v2701_v53, 4 }
 0x12e   : > { %v700_v42 = vor.u32 %v699_v6, %v696_v27  ;;  %v2696_v1 = vor.u32 %v2695_v30, %v2692_v24  ;;  %v11368_v33 = vcombine.low %v463_v29, %v463_v29  ;;  %v1130_v35 = vshrl.u32 %v11367_v19, 16 }
 0x12f   : > { %v2709_v10 = vrot.slane %v2707_v9, 3  ;;  %v2712_v11 = vrot.slane %v2710_v28, 4  ;;  %v2704_v12 = vor.u32 %v2703_v54, %v2700_v40  ;;  %v1133_v63 = vshll.u32 %v11367_v19, 16  ;;  %v471_v19 = vld [vmem:[#allocation2 + $0x88] sm:$0xf] }
 0x130   : > { %v1147_v41 = vshrl.u32 %v700_v42, 16  ;;  %v1150_v14 = vshll.u32 %v700_v42, 16  ;;  %v1132_v16 = vrot.slane %v1130_v35, 3  ;;  %v1138_v3 = vshrl.u32 %v11368_v33, 16 }
 0x131   : > { %v2713_v39 = vor.u32 %v2712_v11, %v2709_v10  ;;  %v2705_v0 = vsel %vm870_vm1, %v2696_v1, %v2704_v12  ;;  %v1135_v34 = vrot.slane %v1133_v63, 4  ;;  %v1141_v38 = vshll.u32 %v11368_v33, 16 }
 0x132   : > { %v1149_v61 = vrot.slane %v1147_v41, 3  ;;  %v1152_v43 = vrot.slane %v1150_v14, 4  ;;  %v1140_v29 = vrot.slane %v1138_v3, 3  ;;  %v1984_v44 = vshrl.u32 %v14489_v59, 16 }
 0x133   : > { %3160 = vmatprep.mubr.bf16.mxu0 %v2713_v39  ;;  %v1136_v49 = vor.u32 %v1135_v34, %v1132_v16  ;;  %v1143_v17 = vrot.slane %v1141_v38, 4  ;;  %v1987_v31 = vshll.u32 %v14489_v59, 16  ;;  %v14580_v23 = vcombine.low %v466_v13, %v467_v18  ;;  %v13511_v3 = vld [vmem:[#allocation2 + $0xc] ss:$0 sps:$4 sm:$0x11]  }
 0x134   : > { %v1153_v32 = vor.u32 %v1152_v43, %v1149_v61  ;;  %3161 = vmatmul.mubr.bf16.gmra.mxu0 %v2705_v0  ;;  %v1986_v56 = vrot.slane %v1984_v44, 4  ;;  %v11449_v26 = vcombine.low %v1715_v46, %v13898_v50  ;;  %v11450_v58 = vcombine.low %v13899_v57, %v13899_v57 }
 0x135   : > { %v1144_v62 = vor.u32 %v1143_v17, %v1140_v29  ;;  %v1989_v45 = vrot.slane %v1987_v31, 5  ;;  %v702_v20 = vshrl.u32 %v14580_v23, 16  ;;  %v705_v8 = vshll.u32 %v14580_v23, 16 }
 0x136   : > { %3562 = vmatprep.mubr.bf16.mxu1 %v1153_v32  ;;  %v2733_v59 = vshrl.u32 %v11449_v26, 16  ;;  %v2736_v21 = vshll.u32 %v11449_v26, 16  ;;  %v2741_v37 = vshrl.u32 %v11450_v58, 16  ;;  %v2744_v52 = vshll.u32 %v11450_v58, 16 }
 0x137   : > { %v1145_v55 = vsel %vm870_vm1, %v1136_v49, %v1144_v62  ;;  %v1990_v25 = vor.u32 %v1989_v45, %v1986_v56  ;;  %v704_v22 = vrot.slane %v702_v20, 4  ;;  %v707_v4 = vrot.slane %v705_v8, 5 }
 0x138   : > { %3563 = vmatmul.mubr.bf16.gmra.mxu1 %v1145_v55  ;;  %v2735_v53 = vrot.slane %v2733_v59, 3  ;;  %v2738_v27 = vrot.slane %v2736_v21, 4  ;;  %v2743_v6 = vrot.slane %v2741_v37, 3  ;;  %v2746_v24 = vrot.slane %v2744_v52, 4  ;;  %v474_v55 = vld [vmem:[#allocation2 + $0x94] sm:$0xf] }
 0x139   : > { %v2750_v30 = vshrl.u32 %v1990_v25, 16  ;;  %v2753_v9 = vshll.u32 %v1990_v25, 16  ;;  %v708_v28 = vor.u32 %v707_v4, %v704_v22  ;;  %v11369_v40 = vcombine.low %v465_v51, %v466_v13  ;;  %v469_v13 = vld [vmem:[#allocation2 + $0x80] sm:$0x8]  ;;  %v14593_v25 = vld [vmem:[#allocation2 + $0x98] sm:$0xf] }
 0x13a   : > { %v2739_v54 = vor.u32 %v2738_v27, %v2735_v53  ;;  %v2747_v42 = vor.u32 %v2746_v24, %v2743_v6  ;;  %v11370_v1 = vcombine.low %v467_v18, %v467_v18  ;;  %v14585_v33 = vcombine.low %v470_v5, %v471_v19  ;;  %v13514_v59 = vld [vmem:[#allocation2 + $0x1c] ss:$0 sps:$4 sm:$0x11]  }
 0x13b   : > { %v2752_v35 = vrot.slane %v2750_v30, 3  ;;  %v2755_v10 = vrot.slane %v2753_v9, 4  ;;  %v1190_v11 = vshrl.u32 %v708_v28, 16  ;;  %v1193_v12 = vshll.u32 %v708_v28, 16 }
 0x13c   : > { %v2748_v63 = vsel %vm870_vm1, %v2739_v54, %v2747_v42  ;;  %v1173_v41 = vshrl.u32 %v11369_v40, 16  ;;  %v1176_v14 = vshll.u32 %v11369_v40, 16  ;;  %v1181_v16 = vshrl.u32 %v11370_v1, 16  ;;  %v13519_v54 = vld [vmem:[#allocation2 + $0x2c] ss:$0 sps:$4 sm:$0x11]  }
 0x13d   : > { %v2756_v39 = vor.u32 %v2755_v10, %v2752_v35  ;;  %v1192_v0 = vrot.slane %v1190_v11, 3  ;;  %v1195_v34 = vrot.slane %v1193_v12, 4  ;;  %v1184_v38 = vshll.u32 %v11370_v1, 16 }
 0x13e   : > { %v1175_v46 = vrot.slane %v1173_v41, 3  ;;  %v1178_v61 = vrot.slane %v1176_v14, 4  ;;  %v1183_v18 = vrot.slane %v1181_v16, 3  ;;  %v710_v43 = vshrl.u32 %v14585_v33, 16 }
 0x13f   : > { %3168 = vmatprep.mubr.bf16.mxu0 %v2756_v39  ;;  %v1196_v29 = vor.u32 %v1195_v34, %v1192_v0  ;;  %v1186_v44 = vrot.slane %v1184_v38, 4  ;;  %v713_v49 = vshll.u32 %v14585_v33, 16  ;;  %v822_v17 = vrot.slane %v14498_v7, 5  ;;  %v473_v34 = vld [vmem:[#allocation2 + $0x90] sm:$0x8] }
 0x140   : > { %3169 = vmatmul.mubr.bf16.gmra.mxu0 %v2748_v63  ;;  %v1179_v31 = vor.u32 %v1178_v61, %v1175_v46  ;;  %v712_v32 = vrot.slane %v710_v43, 4  ;;  %v823_v56 = vrot.slane %v13511_v3, 5  ;;  %v11371_v50 = vcombine.low %v469_v13, %v470_v5 }
 0x141   : > { %3570 = vmatprep.mubr.bf16.mxu1 %v1196_v29  ;;  %v1187_v26 = vor.u32 %v1186_v44, %v1183_v18  ;;  %v715_v57 = vrot.slane %v713_v49, 5  ;;  %v898_v58 = vshrl.u32 %v822_v17, 16  ;;  %v901_v51 = vshll.u32 %v822_v17, 16 }
 0x142   : > { %v824_v62 = vsel %vm821_vm0, %v822_v17, %v823_v56  ;;  %v11372_v45 = vcombine.low %v471_v19, %v471_v19  ;;  %v1216_v20 = vshrl.u32 %v11371_v50, 16  ;;  %v1219_v8 = vshll.u32 %v11371_v50, 16 }
 0x143   : > { %v1188_v21 = vsel %vm870_vm1, %v1179_v31, %v1187_v26  ;;  %v716_v37 = vor.u32 %v715_v57, %v712_v32  ;;  %v900_v7 = vrot.slane %v898_v58, 3  ;;  %v903_v52 = vrot.slane %v901_v51, 4 }
 0x144   : > { %3571 = vmatmul.mubr.bf16.gmra.mxu1 %v1188_v21  ;;  %v906_v5 = vshrl.u32 %v824_v62, 16  ;;  %v909_v22 = vshll.u32 %v824_v62, 16  ;;  %v1218_v4 = vrot.slane %v1216_v20, 3  ;;  %v1221_v53 = vrot.slane %v1219_v8, 4 }
 0x145   : > { %v1233_v27 = vshrl.u32 %v716_v37, 16  ;;  %v1236_v6 = vshll.u32 %v716_v37, 16  ;;  %v904_v24 = vor.u32 %v903_v52, %v900_v7  ;;  %v1224_v19 = vshrl.u32 %v11372_v45, 16  ;;  %v13516_v37 = vld [vmem:[#allocation6 + $0x1b8] sm:$0xff]  }
 0x146   : > { %v908_v30 = vrot.slane %v906_v5, 3  ;;  %v911_v9 = vrot.slane %v909_v22, 4  ;;  %v1222_v28 = vor.u32 %v1221_v53, %v1218_v4  ;;  %v1227_v40 = vshll.u32 %v11372_v45, 16 }
 0x147   : > { %v1235_v42 = vrot.slane %v1233_v27, 3  ;;  %v1238_v1 = vrot.slane %v1236_v6, 4  ;;  %v1226_v35 = vrot.slane %v1224_v19, 3  ;;  %v825_v10 = vrot.slane %v14513_v60, 5  ;;  %v14596_v11 = vpop.f32.mrf.mxu0 }
 0x148   : > { %17242 = vst [vmem:[#allocation13_spill] sm:$0xff] %v14596_v11  ;;  %v912_v12 = vor.u32 %v911_v9, %v908_v30  ;;  %v1229_v63 = vrot.slane %v1227_v40, 4  ;;  %v826_v41 = vrot.slane %v13514_v59, 5  ;;  %v14599_v14 = vcombine.low %v474_v55, %v14593_v25  ;;  %v13522_v6 = vld [vmem:[#allocation2 + $0x3c] ss:$0 sps:$4 sm:$0x11]  }
 0x149   : > { %v1239_v16 = vor.u32 %v1238_v1, %v1235_v42  ;;  %v941_v3 = vshrl.u32 %v825_v10, 16  ;;  %v944_v39 = vshll.u32 %v825_v10, 16  ;;  %v828_v0 = vrot.slane %v14525_v2, 5  ;;  %v14602_v38 = vpop.f32.mrf.mxu0 }
 0x14a   : > { %17243 = vst [vmem:[#allocation14_spill] sm:$0xff] %v14602_v38  ;;  %v913_v13 = vsel %vm870_vm1, %v904_v24, %v912_v12  ;;  %v1230_v46 = vor.u32 %v1229_v63, %v1226_v35  ;;  %v827_v60 = vsel %vm821_vm0, %v825_v10, %v826_v41  ;;  %v718_v61 = vshrl.u32 %v14599_v14, 16  ;;  %v14607_v18 = vpop.f32.mrf.mxu1  ;;  %v13523_v24 = vld [vmem:[#allocation6 + $0x1f0] sm:$0xff]   ;;  %v478_v10 = vld [vmem:[#allocation2 + $0xa4] sm:$0xf] }
 0x14b   : > { %17244 = vst [vmem:[#allocation15_spill] sm:$0xff] %v14607_v18  ;;  %3578 = vmatprep.mubr.bf16.mxu1 %v1239_v16  ;;  %13076 = vmatprep.mubr.bf16.mxu0 %v913_v13  ;;  %v943_v43 = vrot.slane %v941_v3, 3  ;;  %v946_v29 = vrot.slane %v944_v39, 4  ;;  %v949_v44 = vshrl.u32 %v827_v60, 16  ;;  %v952_v49 = vshll.u32 %v827_v60, 16  ;;  %v14609_v17 = vpop.f32.mrf.mxu0  ;;  %v13524_v35 = vld [vmem:[#allocation6 + $0x1b0] sm:$0xff]  }
 0x14c   : > { %17245 = vst [vmem:[#allocation16_spill] sm:$0xff] %v14609_v17  ;;  %v1231_v2 = vsel %vm870_vm1, %v1222_v28, %v1230_v46  ;;  %v720_v31 = vrot.slane %v718_v61, 4  ;;  %v721_v32 = vshll.u32 %v14599_v14, 16  ;;  %v829_v56 = vrot.slane %v13519_v54, 5  ;;  %v14613_v50 = vpop.f32.mrf.mxu1  ;;  %v14623_v12 = vld [vmem:[#allocation2 + $0xa8] sm:$0xf] }
 0x14d   : > { %17246 = vst [vmem:[#allocation17_spill] sm:$0xff] %v14613_v50  ;;  %3579 = vmatmul.mubr.bf16.gmra.mxu1 %v1231_v2  ;;  %v947_v26 = vor.u32 %v946_v29, %v943_v43  ;;  %v951_v57 = vrot.slane %v949_v44, 3  ;;  %v954_v58 = vrot.slane %v952_v49, 4  ;;  %v984_v51 = vshrl.u32 %v828_v0, 16  ;;  %v14616_v59 = vpop.f32.mrf.mxu0 }
 0x14e   : > { %v723_v62 = vrot.slane %v721_v32, 5  ;;  %v830_v45 = vsel %vm821_vm0, %v828_v0, %v829_v56  ;;  %v987_v20 = vshll.u32 %v828_v0, 16  ;;  %v11373_v8 = vcombine.low %v473_v34, %v474_v55  ;;  %17247 = vst [vmem:[#allocation18_spill] sm:$0xff] %v14616_v59  ;;  %v14620_v19 = vpop.f32.mrf.mxu1  ;;  %v13530_v0 = vld [vmem:[#allocation6 + $0x1e8] sm:$0xff]  }
 0x14f   : > { %v955_v21 = vor.u32 %v954_v58, %v951_v57  ;;  %v986_v7 = vrot.slane %v984_v51, 3  ;;  %v992_v52 = vshrl.u32 %v830_v45, 16  ;;  %v995_v5 = vshll.u32 %v830_v45, 16  ;;  %17248 = vst [vmem:[#allocation19_spill] sm:$0xff] %v14620_v19  ;;  %v13538_v58 = vld [vmem:[#allocation6 + $0x1e0] sm:$0xff]  }
 0x150   : > { %v724_v22 = vor.u32 %v723_v62, %v720_v31  ;;  %v989_v4 = vrot.slane %v987_v20, 4  ;;  %v11374_v53 = vcombine.low %v14593_v25, %v14593_v25  ;;  %v1259_v27 = vshrl.u32 %v11373_v8, 16  ;;  %v13526_v25 = vld [vmem:[#allocation2 + $0x4c] ss:$0 sps:$4 sm:$0x11]   ;;  %v14628_v61 = vpop.f32.mrf.mxu1 }
 0x151   : > { %v956_v30 = vsel %vm870_vm1, %v947_v26, %v955_v21  ;;  %v994_v55 = vrot.slane %v992_v52, 3  ;;  %v997_v9 = vrot.slane %v995_v5, 4  ;;  %v1262_v28 = vshll.u32 %v11373_v8, 16  ;;  %17250 = vst [vmem:[#allocation21_spill] sm:$0xff] %v14628_v61  ;;  %v13531_v31 = vld [vmem:[#allocation6 + $0x1a8] sm:$0xff]  }
 0x152   : > { %13077 = vmatmul.mubr.bf16.vlgmr.msra.gmra.mxu0 %v956_v30  ;;  %v1276_v40 = vshrl.u32 %v724_v22, 16  ;;  %v1279_v54 = vshll.u32 %v724_v22, 16  ;;  %v990_v42 = vor.u32 %v989_v4, %v986_v7  ;;  %v1261_v1 = vrot.slane %v1259_v27, 3  ;;  %v14625_v63 = vpop.f32.mrf.mxu0  ;;  %v477_v27 = vld [vmem:[#allocation2 + $0xa0] sm:$0x8] }
 0x153   : > { %17249 = vst [vmem:[#allocation20_spill] sm:$0xff] %v14625_v63  ;;  %12469 = vmatpush3.bf16.msra.mxu0 %v13516_v37  ;;  %v998_v41 = vor.u32 %v997_v9, %v994_v55  ;;  %v1264_v16 = vrot.slane %v1262_v28, 4  ;;  %v1267_v3 = vshrl.u32 %v11374_v53, 16  ;;  %v1270_v39 = vshll.u32 %v11374_v53, 16 }
 0x154   : > { %v1278_v34 = vrot.slane %v1276_v40, 3  ;;  %v1281_v13 = vrot.slane %v1279_v54, 4  ;;  %v831_v46 = vrot.slane %v14536_v48, 5  ;;  %v832_v60 = vrot.slane %v13522_v6, 5  ;;  %12470 = vmatprep.subr.bf16.mxu0 %v13523_v24  ;;  %v14630_v43 = vpop.f32.mrf.mxu0 }
 0x155   : > { %17251 = vst [vmem:[#allocation22_spill] sm:$0xff] %v14630_v43  ;;  %v999_v29 = vsel %vm870_vm1, %v990_v42, %v998_v41  ;;  %v1265_v44 = vor.u32 %v1264_v16, %v1261_v1  ;;  %v1269_v49 = vrot.slane %v1267_v3, 3  ;;  %v1272_v2 = vrot.slane %v1270_v39, 4  ;;  %v13529_v42 = vld [vmem:[#allocation2 + $0x5c] ss:$0 sps:$4 sm:$0x11]  }
 0x156   : > { %v1282_v32 = vor.u32 %v1281_v13, %v1278_v34  ;;  %13080 = vmatprep.mubr.bf16.mxu0 %v999_v29  ;;  %v833_v56 = vsel %vm821_vm0, %v831_v46, %v832_v60  ;;  %v1027_v26 = vshrl.u32 %v831_v46, 16  ;;  %v1030_v57 = vshll.u32 %v831_v46, 16  ;;  %v14640_v52 = vpop.f32.mrf.mxu0  ;;  %v13539_v1 = vld [vmem:[#allocation6 + $0x1a0] sm:$0xff]   ;;  %v13545_v3 = vld [vmem:[#allocation6 + $0x1d8] sm:$0xff]  }
 0x157   : > { %v1273_v48 = vor.u32 %v1272_v2, %v1269_v49  ;;  %v1035_v51 = vshrl.u32 %v833_v56, 16  ;;  %v1038_v62 = vshll.u32 %v833_v56, 16  ;;  %12471 = vmatpush3.bf16.msra.mxu0 %v13524_v35  ;;  %v14635_v45 = vcombine.low %v478_v10, %v14623_v12  ;;  %17253 = vst [vmem:[#allocation24_spill] sm:$0xff] %v14640_v52 }
 0x158   : > { %3586 = vmatprep.mubr.bf16.mxu1 %v1282_v32  ;;  %v1029_v20 = vrot.slane %v1027_v26, 3  ;;  %v1032_v8 = vrot.slane %v1030_v57, 4  ;;  %v834_v21 = vrot.slane %v14547_v36, 5  ;;  %v835_v37 = vrot.slane %v13526_v25, 5  ;;  %12472 = vmatprep.subr.bf16.mxu0 %v13530_v0  ;;  %v14638_v7 = vpop.f32.mrf.mxu1  ;;  %v14650_v0 = vpop.f32.mrf.mxu0  ;;  %v13546_v26 = vld [vmem:[#allocation6 + $0x198] sm:$0xff]  }
 0x159   : > { %17252 = vst [vmem:[#allocation23_spill] sm:$0xff] %v14638_v7  ;;  %v1274_v5 = vsel %vm870_vm1, %v1265_v44, %v1273_v48  ;;  %v1037_v22 = vrot.slane %v1035_v51, 3  ;;  %v1040_v4 = vrot.slane %v1038_v62, 4  ;;  %v726_v53 = vshrl.u32 %v14635_v45, 16  ;;  %17256 = vst [vmem:[#allocation27_spill] sm:$0xff] %v14650_v0 }
 0x15a   : > { %3587 = vmatmul.mubr.bf16.gmra.mxu1 %v1274_v5  ;;  %v1033_v6 = vor.u32 %v1032_v8, %v1029_v20  ;;  %v729_v24 = vshll.u32 %v14635_v45, 16  ;;  %v836_v30 = vsel %vm821_vm0, %v834_v21, %v835_v37  ;;  %v1070_v36 = vshrl.u32 %v834_v21, 16  ;;  %v14646_v55 = vpop.f32.mrf.mxu1  ;;  %v482_v62 = vld [vmem:[#allocation2 + $0xb4] sm:$0xf]  ;;  %v483_v20 = vld [vmem:[#allocation2 + $0xb8] sm:$0xf] }
 0x15b   : > { %17254 = vst [vmem:[#allocation25_spill] sm:$0xff] %v14646_v55  ;;  %v1041_v9 = vor.u32 %v1040_v4, %v1037_v22  ;;  %v728_v28 = vrot.slane %v726_v53, 4  ;;  %v1073_v40 = vshll.u32 %v834_v21, 16  ;;  %v1078_v54 = vshrl.u32 %v836_v30, 16  ;;  %12473 = vmatpush3.bf16.msra.mxu0 %v13531_v31 }
 0x15c   : > { %v731_v35 = vrot.slane %v729_v24, 5  ;;  %v1072_v25 = vrot.slane %v1070_v36, 3  ;;  %v1081_v41 = vshll.u32 %v836_v30, 16  ;;  %v11375_v16 = vcombine.low %v477_v27, %v478_v10  ;;  %12474 = vmatprep.subr.bf16.mxu0 %v13538_v58  ;;  %v14648_v39 = vpop.f32.mrf.mxu1  ;;  %v13534_v24 = vld [vmem:[#allocation2 + $0x6c] ss:$0 sps:$4 sm:$0x11]  }
 0x15d   : > { %17255 = vst [vmem:[#allocation26_spill] sm:$0xff] %v14648_v39  ;;  %v1042_v34 = vsel %vm870_vm1, %v1033_v6, %v1041_v9  ;;  %v1075_v13 = vrot.slane %v1073_v40, 4  ;;  %v1080_v46 = vrot.slane %v1078_v54, 3  ;;  %v11376_v60 = vcombine.low %v14623_v12, %v14623_v12  ;;  %v13553_v12 = vld [vmem:[#allocation6 + $0x1d0] sm:$0xff]  }
 0x15e   : > { %13081 = vmatmul.mubr.bf16.gmra.mxu0 %v1042_v34  ;;  %v732_v29 = vor.u32 %v731_v35, %v728_v28  ;;  %v1083_v44 = vrot.slane %v1081_v41, 4  ;;  %v1302_v49 = vshrl.u32 %v11375_v16, 16  ;;  %v1305_v2 = vshll.u32 %v11375_v16, 16  ;;  %v14656_v8 = vpop.f32.mrf.mxu1  ;;  %v481_v54 = vld [vmem:[#allocation2 + $0xb0] sm:$0x8]  ;;  %v13560_v16 = vld [vmem:[#allocation6 + $0x1c8] sm:$0xff]  }
 0x15f   : > { %v1076_v31 = vor.u32 %v1075_v13, %v1072_v25  ;;  %v1310_v10 = vshrl.u32 %v11376_v60, 16  ;;  %v1313_v32 = vshll.u32 %v11376_v60, 16  ;;  %v837_v56 = vrot.slane %v14558_v47, 5  ;;  %12475 = vmatpush3.bf16.msra.mxu0 %v13539_v1  ;;  %17257 = vst [vmem:[#allocation28_spill] sm:$0xff] %v14656_v8  ;;  %v13554_v1 = vld [vmem:[#allocation6 + $0x190] sm:$0xff]  }
 0x160   : > { %v1319_v57 = vshrl.u32 %v732_v29, 16  ;;  %v1322_v58 = vshll.u32 %v732_v29, 16  ;;  %v1084_v48 = vor.u32 %v1083_v44, %v1080_v46  ;;  %v1304_v51 = vrot.slane %v1302_v49, 3  ;;  %12476 = vmatprep.subr.bf16.mxu0 %v13545_v3  ;;  %v14658_v21 = vpop.f32.mrf.mxu0 }
 0x161   : > { %17258 = vst [vmem:[#allocation29_spill] sm:$0xff] %v14658_v21  ;;  %v1307_v37 = vrot.slane %v1305_v2, 4  ;;  %v1312_v5 = vrot.slane %v1310_v10, 3  ;;  %v1315_v22 = vrot.slane %v1313_v32, 4  ;;  %v838_v4 = vrot.slane %v13529_v42, 5 }
 0x162   : > { %v1321_v53 = vrot.slane %v1319_v57, 3  ;;  %v1324_v47 = vrot.slane %v1322_v58, 4  ;;  %v1085_v27 = vsel %vm870_vm1, %v1076_v31, %v1084_v48  ;;  %v1113_v6 = vshrl.u32 %v837_v56, 16  ;;  %v14661_v30 = vpop.f32.mrf.mxu0  ;;  %v13561_v58 = vld [vmem:[#allocation6 + $0x188] sm:$0xff]  }
 0x163   : > { %17259 = vst [vmem:[#allocation30_spill] sm:$0xff] %v14661_v30  ;;  %13084 = vmatprep.mubr.bf16.mxu0 %v1085_v27  ;;  %v1308_v36 = vor.u32 %v1307_v37, %v1304_v51  ;;  %v1316_v9 = vor.u32 %v1315_v22, %v1312_v5  ;;  %v839_v28 = vsel %vm821_vm0, %v837_v56, %v838_v4  ;;  %v1116_v40 = vshll.u32 %v837_v56, 16  ;;  %v13537_v37 = vld [vmem:[#allocation2 + $0x7c] ss:$0 sps:$4 sm:$0x11]  }
 0x164   : > { %12477 = vmatpush3.bf16.msra.mxu0 %v13546_v26  ;;  %v1325_v35 = vor.u32 %v1324_v47, %v1321_v53  ;;  %v1115_v25 = vrot.slane %v1113_v6, 3  ;;  %v1121_v42 = vshrl.u32 %v839_v28, 16  ;;  %v1124_v41 = vshll.u32 %v839_v28, 16  ;;  %v14664_v3 = vpop.f32.mrf.mxu1  ;;  %v14672_v10 = vpop.f32.mrf.mxu0  ;;  %v14680_v28 = vld [vmem:[#allocation2 + $0xc8] sm:$0xf] }
 0x165   : > { %12478 = vmatprep.subr.bf16.mxu0 %v13553_v12  ;;  %17260 = vst [vmem:[#allocation31_spill] sm:$0xff] %v14664_v3  ;;  %v1317_v34 = vsel %vm870_vm1, %v1308_v36, %v1316_v9  ;;  %v1118_v13 = vrot.slane %v1116_v40, 4  ;;  %v14667_v46 = vcombine.low %v482_v62, %v483_v20  ;;  %v840_v60 = vrot.slane %v14569_v15, 5  ;;  %17262 = vst [vmem:[#allocation33_spill] sm:$0xff] %v14672_v10  ;;  %v486_v9 = vld [vmem:[#allocation2 + $0xc4] sm:$0xf] }
 0x166   : > { %3594 = vmatprep.mubr.bf16.mxu1 %v1325_v35  ;;  %v1123_v29 = vrot.slane %v1121_v42, 3  ;;  %v1126_v44 = vrot.slane %v1124_v41, 4  ;;  %v841_v49 = vrot.slane %v13534_v24, 5  ;;  %v11377_v2 = vcombine.low %v481_v54, %v482_v62  ;;  %v14670_v31 = vpop.f32.mrf.mxu1  ;;  %v13568_v62 = vld [vmem:[#allocation6 + $0x1c0] sm:$0xff]   ;;  %v14682_v40 = vpop.f32.mrf.mxu0  ;;  %v14953_v10 = vld [vmem:[#allocation2 + $0x98] sm:$0xf] }
 0x167   : > { %17261 = vst [vmem:[#allocation32_spill] sm:$0xff] %v14670_v31  ;;  %3595 = vmatmul.mubr.bf16.gmra.mxu1 %v1317_v34  ;;  %v1119_v32 = vor.u32 %v1118_v13, %v1115_v25  ;;  %v734_v56 = vshrl.u32 %v14667_v46, 16  ;;  %v737_v26 = vshll.u32 %v14667_v46, 16  ;;  %v1156_v57 = vshrl.u32 %v840_v60, 16  ;;  %17264 = vst [vmem:[#allocation35_spill] sm:$0xff] %v14682_v40  ;;  %v13569_v34 = vld [vmem:[#allocation6 + $0x180] sm:$0xff]  }
 0x168   : > { %12479 = vmatpush3.bf16.msra.mxu0 %v13554_v1  ;;  %v1127_v48 = vor.u32 %v1126_v44, %v1123_v29  ;;  %v842_v15 = vsel %vm821_vm0, %v840_v60, %v841_v49  ;;  %v1159_v51 = vshll.u32 %v840_v60, 16  ;;  %v11378_v12 = vcombine.low %v483_v20, %v483_v20  ;;  %v14677_v47 = vpop.f32.mrf.mxu1 }
 0x169   : > { %12480 = vmatprep.subr.bf16.mxu0 %v13560_v16  ;;  %v736_v5 = vrot.slane %v734_v56, 4  ;;  %v739_v22 = vrot.slane %v737_v26, 5  ;;  %v1158_v4 = vrot.slane %v1156_v57, 3  ;;  %v1164_v53 = vshrl.u32 %v842_v15, 16  ;;  %17263 = vst [vmem:[#allocation34_spill] sm:$0xff] %v14677_v47 }
 0x16a   : > { %v1128_v27 = vsel %vm870_vm1, %v1119_v32, %v1127_v48  ;;  %v1161_v6 = vrot.slane %v1159_v51, 4  ;;  %v1167_v24 = vshll.u32 %v842_v15, 16  ;;  %v1345_v36 = vshrl.u32 %v11377_v2, 16  ;;  %v14684_v49 = vpop.f32.mrf.mxu1 }
 0x16b   : > { %13085 = vmatmul.mubr.bf16.gmra.mxu0 %v1128_v27  ;;  %v740_v20 = vor.u32 %v739_v22, %v736_v5  ;;  %v1166_v54 = vrot.slane %v1164_v53, 3  ;;  %v1348_v1 = vshll.u32 %v11377_v2, 16  ;;  %v1353_v35 = vshrl.u32 %v11378_v12, 16  ;;  %17265 = vst [vmem:[#allocation36_spill] sm:$0xff] %v14684_v49  ;;  %v485_v5 = vld [vmem:[#allocation2 + $0xc0] sm:$0x8] }
 0x16c   : > { %v1162_v25 = vor.u32 %v1161_v6, %v1158_v4  ;;  %v1169_v42 = vrot.slane %v1167_v24, 4  ;;  %v1347_v41 = vrot.slane %v1345_v36, 3  ;;  %v1356_v16 = vshll.u32 %v11378_v12, 16  ;;  %12481 = vmatpush3.bf16.msra.mxu0 %v13561_v58  ;;  %v13541_v2 = vld [vmem:[#allocation2 + $0x8c] ss:$0 sps:$4 sm:$0x11]  }
 0x16d   : > { %v1362_v13 = vshrl.u32 %v740_v20, 16  ;;  %v1365_v60 = vshll.u32 %v740_v20, 16  ;;  %v1350_v29 = vrot.slane %v1348_v1, 4  ;;  %v1355_v44 = vrot.slane %v1353_v35, 3  ;;  %12482 = vmatprep.subr.bf16.mxu0 %v13568_v62 }
 0x16e   : > { %v1170_v32 = vor.u32 %v1169_v42, %v1166_v54  ;;  %v1358_v56 = vrot.slane %v1356_v16, 4  ;;  %v843_v26 = vrot.slane %v14580_v23, 5  ;;  %v844_v57 = vrot.slane %v13537_v37, 5  ;;  %v14687_v48 = vpop.f32.mrf.mxu0 }
 0x16f   : > { %17266 = vst [vmem:[#allocation37_spill] sm:$0xff] %v14687_v48  ;;  %v1364_v15 = vrot.slane %v1362_v13, 3  ;;  %v1367_v51 = vrot.slane %v1365_v60, 4  ;;  %v1351_v12 = vor.u32 %v1350_v29, %v1347_v41  ;;  %v14690_v58 = vcombine.low %v486_v9, %v14680_v28 }
 0x170   : > { %v1171_v22 = vsel %vm870_vm1, %v1162_v25, %v1170_v32  ;;  %v1359_v62 = vor.u32 %v1358_v56, %v1355_v44  ;;  %v845_v4 = vsel %vm821_vm0, %v843_v26, %v844_v57  ;;  %v1199_v53 = vshrl.u32 %v843_v26, 16  ;;  %12483 = vmatpush3.bf16.msra.mxu0 %v13569_v34  ;;  %v14694_v27 = vpop.f32.mrf.mxu0 }
 0x171   : > { %17267 = vst [vmem:[#allocation38_spill] sm:$0xff] %v14694_v27  ;;  %v1368_v23 = vor.u32 %v1367_v51, %v1364_v15  ;;  %13088 = vmatprep.mubr.bf16.mxu0 %v1171_v22  ;;  %v1202_v37 = vshll.u32 %v843_v26, 16  ;;  %v1207_v6 = vshrl.u32 %v845_v4, 16  ;;  %v1210_v24 = vshll.u32 %v845_v4, 16  ;;  %v14696_v36 = vpop.f32.mrf.mxu1 }
 0x172   : > { %17268 = vst [vmem:[#allocation39_spill] sm:$0xff] %v14696_v36  ;;  %v1360_v20 = vsel %vm870_vm1, %v1351_v12, %v1359_v62  ;;  %v1201_v54 = vrot.slane %v1199_v53, 3  ;;  %v742_v1 = vshrl.u32 %v14690_v58, 16  ;;  %v745_v35 = vshll.u32 %v14690_v58, 16  ;;  %v14701_v25 = vpop.f32.mrf.mxu0 }
 0x173   : > { %17269 = vst [vmem:[#allocation40_spill] sm:$0xff] %v14701_v25  ;;  %3602 = vmatprep.mubr.bf16.mxu1 %v1368_v23  ;;  %v1204_v42 = vrot.slane %v1202_v37, 4  ;;  %v1209_v41 = vrot.slane %v1207_v6, 3  ;;  %v1212_v16 = vrot.slane %v1210_v24, 4  ;;  %v846_v34 = vrot.slane %v14585_v33, 5  ;;  %v14704_v32 = vpop.f32.mrf.mxu1 }
 0x174   : > { %3603 = vmatmul.mubr.bf16.gmra.mxu1 %v1360_v20  ;;  %v744_v13 = vrot.slane %v742_v1, 4  ;;  %v747_v60 = vrot.slane %v745_v35, 5  ;;  %v847_v29 = vrot.slane %v13541_v2, 5  ;;  %v11379_v44 = vcombine.low %v485_v5, %v486_v9  ;;  %17270 = vst [vmem:[#allocation41_spill] sm:$0xff] %v14704_v32  ;;  %v14709_v4 = vpop.f32.mrf.mxu0  ;;  %v490_v20 = vld [vmem:[#allocation2 + $0xd4] sm:$0xf] }
 0x175   : > { %v1205_v56 = vor.u32 %v1204_v42, %v1201_v54  ;;  %v1213_v26 = vor.u32 %v1212_v16, %v1209_v41  ;;  %v1242_v57 = vshrl.u32 %v846_v34, 16  ;;  %v1245_v15 = vshll.u32 %v846_v34, 16  ;;  %17271 = vst [vmem:[#allocation42_spill] sm:$0xff] %v14709_v4  ;;  %v13544_v5 = vld [vmem:[#allocation2 + $0x9c] ss:$0 sps:$4 sm:$0x11]   ;;  %v14712_v54 = vpop.f32.mrf.mxu1 }
 0x176   : > { %v748_v51 = vor.u32 %v747_v60, %v744_v13  ;;  %v848_v12 = vsel %vm821_vm0, %v846_v34, %v847_v29  ;;  %v11380_v22 = vcombine.low %v14680_v28, %v14680_v28  ;;  %v1388_v62 = vshrl.u32 %v11379_v44, 16  ;;  %17272 = vst [vmem:[#allocation43_spill] sm:$0xff] %v14712_v54  ;;  %v491_v41 = vld [vmem:[#allocation2 + $0xd8] sm:$0xf]  ;;  %v3821_v25 = vld [vmem:[#allocation2 + $0x60] sm:$0x8] }
 0x177   : > { %v1214_v33 = vsel %vm870_vm1, %v1205_v56, %v1213_v26  ;;  %v1244_v53 = vrot.slane %v1242_v57, 3  ;;  %v1247_v2 = vrot.slane %v1245_v15, 4  ;;  %v1250_v9 = vshrl.u32 %v848_v12, 16 }
 0x178   : > { %13089 = vmatmul.mubr.bf16.gmra.mxu0 %v1214_v33  ;;  %v1405_v23 = vshrl.u32 %v748_v51, 16  ;;  %v1408_v37 = vshll.u32 %v748_v51, 16  ;;  %v1253_v6 = vshll.u32 %v848_v12, 16  ;;  %v1390_v24 = vrot.slane %v1388_v62, 3 }
 0x179   : > { %v1248_v1 = vor.u32 %v1247_v2, %v1244_v53  ;;  %v1252_v35 = vrot.slane %v1250_v9, 3  ;;  %v1391_v28 = vshll.u32 %v11379_v44, 16  ;;  %v1396_v42 = vshrl.u32 %v11380_v22, 16  ;;  %v14719_v53 = vpop.f32.mrf.mxu1 }
 0x17a   : > { %v1407_v16 = vrot.slane %v1405_v23, 3  ;;  %v1410_v34 = vrot.slane %v1408_v37, 4  ;;  %v1255_v13 = vrot.slane %v1253_v6, 4  ;;  %v1399_v60 = vshll.u32 %v11380_v22, 16  ;;  %v14714_v29 = vpop.f32.mrf.mxu0  ;;  %17274 = vst [vmem:[#allocation45_spill] sm:$0xff] %v14719_v53 }
 0x17b   : > { %17273 = vst [vmem:[#allocation44_spill] sm:$0xff] %v14714_v29  ;;  %v1393_v56 = vrot.slane %v1391_v28, 4  ;;  %v1398_v26 = vrot.slane %v1396_v42, 3  ;;  %v849_v57 = vrot.slane %v14599_v14, 5  ;;  %v850_v15 = vrot.slane %v13544_v5, 5 }
 0x17c   : > { %v1411_v51 = vor.u32 %v1410_v34, %v1407_v16  ;;  %v1256_v12 = vor.u32 %v1255_v13, %v1252_v35  ;;  %v1401_v62 = vrot.slane %v1399_v60, 4  ;;  %v14717_v33 = vcombine.low %v490_v20, %v491_v41  ;;  %v14721_v44 = vpop.f32.mrf.mxu0  ;;  %v13549_v37 = vld [vmem:[#allocation2 + $0xac] ss:$0 sps:$4 sm:$0x11]   ;;  %v489_v6 = vld [vmem:[#allocation2 + $0xd0] sm:$0x8] }
 0x17d   : > { %17275 = vst [vmem:[#allocation46_spill] sm:$0xff] %v14721_v44  ;;  %v1394_v2 = vor.u32 %v1393_v56, %v1390_v24  ;;  %v851_v9 = vsel %vm821_vm0, %v849_v57, %v850_v15  ;;  %v1285_v22 = vshrl.u32 %v849_v57, 16  ;;  %v1288_v23 = vshll.u32 %v849_v57, 16 }
 0x17e   : > { %3610 = vmatprep.mubr.bf16.mxu1 %v1411_v51  ;;  %v1257_v14 = vsel %vm870_vm1, %v1248_v1, %v1256_v12  ;;  %v1402_v5 = vor.u32 %v1401_v62, %v1398_v26  ;;  %v1293_v28 = vshrl.u32 %v851_v9, 16  ;;  %v1296_v35 = vshll.u32 %v851_v9, 16  ;;  %v14731_v51 = vpop.f32.mrf.mxu0 }
 0x17f   : > { %13092 = vmatprep.mubr.bf16.mxu0 %v1257_v14  ;;  %v1287_v42 = vrot.slane %v1285_v22, 3  ;;  %v1290_v16 = vrot.slane %v1288_v23, 4  ;;  %v750_v34 = vshrl.u32 %v14717_v33, 16  ;;  %v753_v13 = vshll.u32 %v14717_v33, 16  ;;  %17276 = vst [vmem:[#allocation47_spill] sm:$0xff] %v14731_v51 }
 0x180   : > { %v1403_v24 = vsel %vm870_vm1, %v1394_v2, %v1402_v5  ;;  %v1295_v60 = vrot.slane %v1293_v28, 3  ;;  %v1298_v56 = vrot.slane %v1296_v35, 4  ;;  %v852_v57 = vrot.slane %v14635_v45, 5  ;;  %v14729_v15 = vpop.f32.mrf.mxu1  ;;  %v13552_v45 = vld [vmem:[#allocation2 + $0xbc] ss:$0 sps:$4 sm:$0x11]  }
 0x181   : > { %3611 = vmatmul.mubr.bf16.gmra.mxu1 %v1403_v24  ;;  %v1291_v1 = vor.u32 %v1290_v16, %v1287_v42  ;;  %v752_v26 = vrot.slane %v750_v34, 4  ;;  %v755_v12 = vrot.slane %v753_v13, 5  ;;  %v853_v62 = vrot.slane %v13549_v37, 5  ;;  %v14738_v34 = vpop.f32.mrf.mxu0 }
 0x182   : > { %v1299_v9 = vor.u32 %v1298_v56, %v1295_v60  ;;  %v1328_v22 = vshrl.u32 %v852_v57, 16  ;;  %v1331_v23 = vshll.u32 %v852_v57, 16  ;;  %v11381_v14 = vcombine.low %v489_v6, %v490_v20  ;;  %v14733_v54 = vpop.f32.mrf.mxu1  ;;  %17278 = vst [vmem:[#allocation49_spill] sm:$0xff] %v14738_v34  ;;  %v494_v60 = vld [vmem:[#allocation2 + $0xe4] sm:$0xf] }
 0x183   : > { %17277 = vst [vmem:[#allocation48_spill] sm:$0xff] %v14733_v54  ;;  %v756_v2 = vor.u32 %v755_v12, %v752_v26  ;;  %v854_v5 = vsel %vm821_vm0, %v852_v57, %v853_v62  ;;  %v11382_v28 = vcombine.low %v491_v41, %v491_v41  ;;  %v855_v35 = vrot.slane %v14667_v46, 5  ;;  %v495_v56 = vld [vmem:[#allocation2 + $0xe8] sm:$0xf] }
 0x184   : > { %v1300_v36 = vsel %vm870_vm1, %v1291_v1, %v1299_v9  ;;  %v1330_v24 = vrot.slane %v1328_v22, 3  ;;  %v1333_v42 = vrot.slane %v1331_v23, 4  ;;  %v1336_v16 = vshrl.u32 %v854_v5, 16  ;;  %v14740_v26 = vpop.f32.mrf.mxu1  ;;  %v13556_v23 = vld [vmem:[#allocation2 + $0xcc] ss:$0 sps:$4 sm:$0x11]  }
 0x185   : > { %13093 = vmatmul.mubr.bf16.gmra.mxu0 %v1300_v36  ;;  %v1448_v37 = vshrl.u32 %v756_v2, 16  ;;  %v1451_v13 = vshll.u32 %v756_v2, 16  ;;  %v1339_v20 = vshll.u32 %v854_v5, 16  ;;  %v1431_v6 = vshrl.u32 %v11381_v14, 16 }
 0x186   : > { %v1334_v41 = vor.u32 %v1333_v42, %v1330_v24  ;;  %v1338_v57 = vrot.slane %v1336_v16, 3  ;;  %v1434_v12 = vshll.u32 %v11381_v14, 16  ;;  %v1439_v46 = vshrl.u32 %v11382_v28, 16  ;;  %v14744_v31 = vpop.f32.mrf.mxu1 }
 0x187   : > { %v1450_v62 = vrot.slane %v1448_v37, 3  ;;  %v1453_v1 = vrot.slane %v1451_v13, 4  ;;  %v1341_v9 = vrot.slane %v1339_v20, 4  ;;  %v1433_v22 = vrot.slane %v1431_v6, 3  ;;  %17280 = vst [vmem:[#allocation51_spill] sm:$0xff] %v14744_v31 }
 0x188   : > { %v1436_v54 = vrot.slane %v1434_v12, 4  ;;  %v1441_v53 = vrot.slane %v1439_v46, 3  ;;  %v1442_v36 = vshll.u32 %v11382_v28, 16  ;;  %v856_v32 = vrot.slane %v13552_v45, 5  ;;  %v14742_v2 = vpop.f32.mrf.mxu0  ;;  %v493_v37 = vld [vmem:[#allocation2 + $0xe0] sm:$0x8] }
 0x189   : > { %17279 = vst [vmem:[#allocation50_spill] sm:$0xff] %v14742_v2  ;;  %v1454_v5 = vor.u32 %v1453_v1, %v1450_v62  ;;  %v1342_v47 = vor.u32 %v1341_v9, %v1338_v57  ;;  %v1371_v3 = vshrl.u32 %v855_v35, 16  ;;  %v1374_v49 = vshll.u32 %v855_v35, 16 }
 0x18a   : > { %v1437_v24 = vor.u32 %v1436_v54, %v1433_v22  ;;  %v1444_v14 = vrot.slane %v1442_v36, 4  ;;  %v857_v42 = vsel %vm821_vm0, %v855_v35, %v856_v32  ;;  %v14747_v16 = vcombine.low %v494_v60, %v495_v56  ;;  %v14749_v13 = vpop.f32.mrf.mxu0 }
 0x18b   : > { %17281 = vst [vmem:[#allocation52_spill] sm:$0xff] %v14749_v13  ;;  %3618 = vmatprep.mubr.bf16.mxu1 %v1454_v5  ;;  %v1343_v28 = vsel %vm870_vm1, %v1334_v41, %v1342_v47  ;;  %v1373_v45 = vrot.slane %v1371_v3, 3  ;;  %v1376_v20 = vrot.slane %v1374_v49, 4  ;;  %v1379_v6 = vshrl.u32 %v857_v42, 16 }
 0x18c   : > { %13096 = vmatprep.mubr.bf16.mxu0 %v1343_v28  ;;  %v1445_v57 = vor.u32 %v1444_v14, %v1441_v53  ;;  %v1382_v12 = vshll.u32 %v857_v42, 16  ;;  %v758_v46 = vshrl.u32 %v14747_v16, 16  ;;  %v761_v54 = vshll.u32 %v14747_v16, 16  ;;  %v14757_v22 = vpop.f32.mrf.mxu0 }
 0x18d   : > { %v1377_v62 = vor.u32 %v1376_v20, %v1373_v45  ;;  %v1381_v32 = vrot.slane %v1379_v6, 3  ;;  %v858_v35 = vrot.slane %v14690_v58, 5  ;;  %v859_v1 = vrot.slane %v13556_v23, 5  ;;  %v14755_v9 = vpop.f32.mrf.mxu1  ;;  %17282 = vst [vmem:[#allocation53_spill] sm:$0xff] %v14757_v22 }
 0x18e   : > { %v1446_v3 = vsel %vm870_vm1, %v1437_v24, %v1445_v57  ;;  %v1384_v47 = vrot.slane %v1382_v12, 4  ;;  %v760_v49 = vrot.slane %v758_v46, 4  ;;  %v763_v41 = vrot.slane %v761_v54, 5  ;;  %v13559_v20 = vld [vmem:[#allocation2 + $0xdc] ss:$0 sps:$4 sm:$0x11]   ;;  %v14763_v12 = vpop.f32.mrf.mxu0 }
 0x18f   : > { %3619 = vmatmul.mubr.bf16.gmra.mxu1 %v1446_v3  ;;  %v860_v53 = vsel %vm821_vm0, %v858_v35, %v859_v1  ;;  %v1414_v36 = vshrl.u32 %v858_v35, 16  ;;  %v1417_v5 = vshll.u32 %v858_v35, 16  ;;  %v11383_v14 = vcombine.low %v493_v37, %v494_v60  ;;  %v14761_v42 = vpop.f32.mrf.mxu1  ;;  %v498_v57 = vld [vmem:[#allocation2 + $0xf4] sm:$0xf]  ;;  %17283 = vst [vmem:[#allocation54_spill] sm:$0xff] %v14763_v12 }
 0x190   : > { %v1385_v28 = vor.u32 %v1384_v47, %v1381_v32  ;;  %v764_v58 = vor.u32 %v763_v41, %v760_v49  ;;  %v1422_v23 = vshrl.u32 %v860_v53, 16  ;;  %v1425_v45 = vshll.u32 %v860_v53, 16  ;;  %v499_v60 = vld [vmem:[#allocation2 + $0xf8] sm:$0xf] }
 0x191   : > { %v1416_v6 = vrot.slane %v1414_v36, 3  ;;  %v1419_v31 = vrot.slane %v1417_v5, 4  ;;  %v11384_v39 = vcombine.low %v495_v56, %v495_v56  ;;  %v1474_v24 = vshrl.u32 %v11383_v14, 16  ;;  %v14766_v37 = vpop.f32.mrf.mxu1 }
 0x192   : > { %v1386_v46 = vsel %vm870_vm1, %v1377_v62, %v1385_v28  ;;  %v1491_v54 = vshrl.u32 %v764_v58, 16  ;;  %v1494_v1 = vshll.u32 %v764_v58, 16  ;;  %v1424_v35 = vrot.slane %v1422_v23, 3  ;;  %v13564_v28 = vld [vmem:[#allocation2 + $0xec] ss:$0 sps:$4 sm:$0x11]  }
 0x193   : > { %13097 = vmatmul.mubr.bf16.gmra.mxu0 %v1386_v46  ;;  %v1420_v32 = vor.u32 %v1419_v31, %v1416_v6  ;;  %v1427_v3 = vrot.slane %v1425_v45, 4  ;;  %v1476_v47 = vrot.slane %v1474_v24, 3  ;;  %v1477_v49 = vshll.u32 %v11383_v14, 16  ;;  %v14771_v31 = vpop.f32.mrf.mxu1  ;;  %v497_v24 = vld [vmem:[#allocation2 + $0xf0] sm:$0x8] }
 0x194   : > { %v1493_v41 = vrot.slane %v1491_v54, 3  ;;  %v1496_v53 = vrot.slane %v1494_v1, 4  ;;  %v1482_v56 = vshrl.u32 %v11384_v39, 16  ;;  %v1485_v36 = vshll.u32 %v11384_v39, 16  ;;  %17285 = vst [vmem:[#allocation56_spill] sm:$0xff] %v14771_v31 }
 0x195   : > { %v1428_v5 = vor.u32 %v1427_v3, %v1424_v35  ;;  %v1479_v7 = vrot.slane %v1477_v49, 4  ;;  %v861_v8 = vrot.slane %v14717_v33, 5  ;;  %v862_v62 = vrot.slane %v13559_v20, 5  ;;  %v14769_v58 = vpop.f32.mrf.mxu0 }
 0x196   : > { %17284 = vst [vmem:[#allocation55_spill] sm:$0xff] %v14769_v58  ;;  %v1497_v23 = vor.u32 %v1496_v53, %v1493_v41  ;;  %v1484_v55 = vrot.slane %v1482_v56, 3  ;;  %v1487_v12 = vrot.slane %v1485_v36, 4  ;;  %v11402_v46 = vcombine.low %v498_v57, %v499_v60 }
 0x197   : > { %v1429_v14 = vsel %vm870_vm1, %v1420_v32, %v1428_v5  ;;  %v1480_v45 = vor.u32 %v1479_v7, %v1476_v47  ;;  %v863_v6 = vsel %vm821_vm0, %v861_v8, %v862_v62  ;;  %v1457_v39 = vshrl.u32 %v861_v8, 16  ;;  %v14775_v54 = vpop.f32.mrf.mxu0 }
 0x198   : > { %17286 = vst [vmem:[#allocation57_spill] sm:$0xff] %v14775_v54  ;;  %3626 = vmatprep.mubr.bf16.mxu1 %v1497_v23  ;;  %13100 = vmatprep.mubr.bf16.mxu0 %v1429_v14  ;;  %v1488_v33 = vor.u32 %v1487_v12, %v1484_v55  ;;  %v1460_v20 = vshll.u32 %v861_v8, 16  ;;  %v1465_v1 = vshrl.u32 %v863_v6, 16  ;;  %v1468_v35 = vshll.u32 %v863_v6, 16 }
 0x199   : > { %v1459_v3 = vrot.slane %v1457_v39, 3  ;;  %v766_v49 = vshrl.u32 %v11402_v46, 16  ;;  %v769_v41 = vshll.u32 %v11402_v46, 16  ;;  %v864_v53 = vrot.slane %v14747_v16, 5  ;;  %v14781_v5 = vpop.f32.mrf.mxu0 }
 0x19a   : > { %v1489_v32 = vsel %vm870_vm1, %v1480_v45, %v1488_v33  ;;  %v1462_v7 = vrot.slane %v1460_v20, 4  ;;  %v1467_v47 = vrot.slane %v1465_v1, 3  ;;  %v1470_v56 = vrot.slane %v1468_v35, 4  ;;  %v14779_v36 = vpop.f32.mrf.mxu1  ;;  %17287 = vst [vmem:[#allocation58_spill] sm:$0xff] %v14781_v5 }
 0x19b   : > { %3627 = vmatmul.mubr.bf16.gmra.mxu1 %v1489_v32  ;;  %v768_v62 = vrot.slane %v766_v49, 4  ;;  %v771_v55 = vrot.slane %v769_v41, 5  ;;  %v865_v8 = vrot.slane %v13564_v28, 5  ;;  %v1500_v12 = vshrl.u32 %v864_v53, 16  ;;  %v14787_v41 = vld [vmem:[#allocation2 + $0x24] sm:$0xf] }
 0x19c   : > { %v1463_v23 = vor.u32 %v1462_v7, %v1459_v3  ;;  %v1471_v14 = vor.u32 %v1470_v56, %v1467_v47  ;;  %v1503_v6 = vshll.u32 %v864_v53, 16  ;;  %v11385_v39 = vcombine.low %v497_v24, %v498_v57  ;;  %v14783_v31 = vpop.f32.mrf.mxu1  ;;  %v13567_v1 = vld [vmem:[#allocation2 + $0xfc] ss:$0 sps:$4 sm:$0x11]   ;;  %v14789_v28 = vld [vmem:[#allocation2 + $0x28] sm:$0xf]  ;;  %v14791_v3 = vpop.f32.mrf.mxu0 }
 0x19d   : > { %v772_v16 = vor.u32 %v771_v55, %v768_v62  ;;  %v866_v45 = vsel %vm821_vm0, %v864_v53, %v865_v8  ;;  %v1502_v33 = vrot.slane %v1500_v12, 3  ;;  %v11386_v20 = vcombine.low %v499_v60, %v499_v60  ;;  %17288 = vst [vmem:[#allocation59_spill] sm:$0xff] %v14791_v3 }
 0x19e   : > { %v1472_v35 = vsel %vm870_vm1, %v1463_v23, %v1471_v14  ;;  %v1505_v5 = vrot.slane %v1503_v6, 4  ;;  %v1508_v32 = vshrl.u32 %v866_v45, 16  ;;  %v1511_v49 = vshll.u32 %v866_v45, 16  ;;  %v14793_v53 = vpop.f32.mrf.mxu1 }
 0x19f   : > { %13101 = vmatmul.mubr.bf16.gmra.mxu0 %v1472_v35  ;;  %v1534_v57 = vshrl.u32 %v772_v16, 16  ;;  %v1537_v24 = vshll.u32 %v772_v16, 16  ;;  %v1517_v7 = vshrl.u32 %v11385_v39, 16  ;;  %v1520_v47 = vshll.u32 %v11385_v39, 16 }
 0x1a0   : > { %v1506_v60 = vor.u32 %v1505_v5, %v1502_v33  ;;  %v1510_v56 = vrot.slane %v1508_v32, 3  ;;  %v1513_v62 = vrot.slane %v1511_v49, 4  ;;  %v1525_v55 = vshrl.u32 %v11386_v20, 16  ;;  %v13571_v5 = vld [vmem:[#allocation2 + $0x2c] ss:$0 sps:$4 sm:$0x11]   ;;  %v14799_v33 = vpop.f32.mrf.mxu1 }
 0x1a1   : > { %v1536_v8 = vrot.slane %v1534_v57, 3  ;;  %v1539_v12 = vrot.slane %v1537_v24, 4  ;;  %v1519_v23 = vrot.slane %v1517_v7, 3  ;;  %v1522_v14 = vrot.slane %v1520_v47, 4  ;;  %17290 = vst [vmem:[#allocation61_spill] sm:$0xff] %v14799_v33 }
 0x1a2   : > { %v1514_v6 = vor.u32 %v1513_v62, %v1510_v56  ;;  %v1527_v45 = vrot.slane %v1525_v55, 3  ;;  %v1528_v54 = vshll.u32 %v11386_v20, 16  ;;  %v867_v58 = vrot.slane %v11402_v46, 5  ;;  %v14795_v3 = vpop.f32.mrf.mxu0 }
 0x1a3   : > { %17289 = vst [vmem:[#allocation60_spill] sm:$0xff] %v14795_v3  ;;  %v1540_v35 = vor.u32 %v1539_v12, %v1536_v8  ;;  %v1523_v16 = vor.u32 %v1522_v14, %v1519_v23  ;;  %v868_v22 = vrot.slane %v13567_v1, 5  ;;  %v11563_v39 = vcombine.low %v14787_v41, %v14789_v28  ;;  %v3809_v3 = vld [vmem:[#allocation2 + $0x30] sm:$0x8] }
 0x1a4   : > { %v1515_v32 = vsel %vm870_vm1, %v1506_v60, %v1514_v6  ;;  %v1530_v49 = vrot.slane %v1528_v54, 4  ;;  %v1543_v57 = vshrl.u32 %v867_v58, 16  ;;  %v1546_v24 = vshll.u32 %v867_v58, 16  ;;  %v14802_v7 = vpop.f32.mrf.mxu0  ;;  %v3805_v6 = vld [vmem:[#allocation2 + $0x20] sm:$0x8] }
 0x1a5   : > { %17291 = vst [vmem:[#allocation62_spill] sm:$0xff] %v14802_v7  ;;  %3634 = vmatprep.mubr.bf16.mxu1 %v1540_v35  ;;  %13104 = vmatprep.mubr.bf16.mxu0 %v1515_v32  ;;  %v869_v46 = vsel %vm821_vm0, %v867_v58, %v868_v22  ;;  %v4014_v20 = vshrl.u32 %v11563_v39, 16  ;;  %v4017_v47 = vshll.u32 %v11563_v39, 16  ;;  %v4189_v1 = vrot.slane %v11563_v39, 5 }
 0x1a6   : > { %v1531_v56 = vor.u32 %v1530_v49, %v1527_v45  ;;  %v1545_v62 = vrot.slane %v1543_v57, 3  ;;  %v1548_v55 = vrot.slane %v1546_v24, 4  ;;  %v1551_v8 = vshrl.u32 %v869_v46, 16  ;;  %v14805_v12 = vpop.f32.mrf.mxu0  ;;  %v13575_v24 = vld [vmem:[#allocation2 + $0x3c] ss:$0 sps:$4 sm:$0x11]  }
 0x1a7   : > { %17292 = vst [vmem:[#allocation63_spill] sm:$0xff] %v14805_v12  ;;  %v1554_v23 = vshll.u32 %v869_v46, 16  ;;  %v4016_v60 = vrot.slane %v4014_v20, 4  ;;  %v4019_v54 = vrot.slane %v4017_v47, 5  ;;  %v4190_v14 = vrot.slane %v13571_v5, 5  ;;  %v14807_v33 = vpop.f32.mrf.mxu1 }
 0x1a8   : > { %17293 = vst [vmem:[#allocation64_spill] sm:$0xff] %v14807_v33  ;;  %v1532_v35 = vsel %vm870_vm1, %v1523_v16, %v1531_v56  ;;  %v1549_v32 = vor.u32 %v1548_v55, %v1545_v62  ;;  %v1553_v22 = vrot.slane %v1551_v8, 3  ;;  %v4264_v58 = vshrl.u32 %v4189_v1, 16  ;;  %v14810_v7 = vpop.f32.mrf.mxu0  ;;  %v3810_v16 = vld [vmem:[#allocation2 + $0x34] sm:$0xf] }
 0x1a9   : > { %17294 = vst [vmem:[#allocation65_spill] sm:$0xff] %v14810_v7  ;;  %3635 = vmatmul.mubr.bf16.gmra.mxu1 %v1532_v35  ;;  %v1556_v45 = vrot.slane %v1554_v23, 4  ;;  %v4020_v39 = vor.u32 %v4019_v54, %v4016_v60  ;;  %v4191_v49 = vsel %vm821_vm0, %v4189_v1, %v4190_v14  ;;  %v4267_v57 = vshll.u32 %v4189_v1, 16  ;;  %v14813_v46 = vpop.f32.mrf.mxu1  ;;  %v3811_v56 = vld [vmem:[#allocation2 + $0x38] sm:$0xf] }
 0x1aa   : > { %17295 = vst [vmem:[#allocation66_spill] sm:$0xff] %v14813_v46  ;;  %v4266_v5 = vrot.slane %v4264_v58, 3  ;;  %v4272_v20 = vshrl.u32 %v4191_v49, 16  ;;  %v4275_v47 = vshll.u32 %v4191_v49, 16  ;;  %v11531_v12 = vcombine.low %v3805_v6, %v14787_v41 }
 0x1ab   : > { %v1557_v62 = vor.u32 %v1556_v45, %v1553_v22  ;;  %v4255_v55 = vshrl.u32 %v4020_v39, 16  ;;  %v4258_v8 = vshll.u32 %v4020_v39, 16  ;;  %v4269_v7 = vrot.slane %v4267_v57, 4  ;;  %v14816_v35 = vpop.f32.mrf.mxu1 }
 0x1ac   : > { %17296 = vst [vmem:[#allocation67_spill] sm:$0xff] %v14816_v35  ;;  %v4274_v23 = vrot.slane %v4272_v20, 3  ;;  %v4277_v60 = vrot.slane %v4275_v47, 4  ;;  %v11532_v1 = vcombine.low %v14789_v28, %v14789_v28  ;;  %v4238_v54 = vshrl.u32 %v11531_v12, 16  ;;  %v14820_v14 = vpop.f32.mrf.mxu0 }
 0x1ad   : > { %17297 = vst [vmem:[#allocation68_spill] sm:$0xff] %v14820_v14  ;;  %v1558_v58 = vsel %vm870_vm1, %v1549_v32, %v1557_v62  ;;  %v4257_v49 = vrot.slane %v4255_v55, 3  ;;  %v4260_v41 = vrot.slane %v4258_v8, 4  ;;  %v4270_v6 = vor.u32 %v4269_v7, %v4266_v5  ;;  %v14823_v13 = vpop.f32.mrf.mxu1 }
 0x1ae   : > { %13105 = vmatmul.mubr.bf16.gmra.mxu0 %v1558_v58  ;;  %v4278_v22 = vor.u32 %v4277_v60, %v4274_v23  ;;  %v4240_v45 = vrot.slane %v4238_v54, 3  ;;  %v4241_v39 = vshll.u32 %v11531_v12, 16  ;;  %v4246_v57 = vshrl.u32 %v11532_v1, 16  ;;  %17298 = vst [vmem:[#allocation69_spill] sm:$0xff] %v14823_v13  ;;  %v14825_v20 = vpop.f32.mrf.mxu0 }
 0x1af   : > { %17299 = vst [vmem:[#allocation70_spill] sm:$0xff] %v14825_v20  ;;  %v4261_v47 = vor.u32 %v4260_v41, %v4257_v49  ;;  %v4249_v28 = vshll.u32 %v11532_v1, 16  ;;  %v11564_v2 = vcombine.low %v3810_v16, %v3811_v56  ;;  %v4193_v19 = vrot.slane %v13575_v24, 5 }
 0x1b0   : > { %v4279_v14 = vsel %vm870_vm1, %v4270_v6, %v4278_v22  ;;  %v4243_v32 = vrot.slane %v4241_v39, 4  ;;  %v4248_v62 = vrot.slane %v4246_v57, 3  ;;  %v14828_v8 = vpop.f32.mrf.mxu0  ;;  %v11533_v60 = vcombine.low %v3809_v3, %v3810_v16  ;;  %v13579_v3 = vld [vmem:[#allocation2 + $0x4c] ss:$0 sps:$4 sm:$0x11]  }
 0x1b1   : > { %5198 = vmatprep.mubr.bf16.mxu0 %v4261_v47  ;;  %13124 = vmatprep.mubr.bf16.mxu1 %v4279_v14  ;;  %v4251_v7 = vrot.slane %v4249_v28, 4  ;;  %v4192_v5 = vrot.slane %v11564_v2, 5  ;;  %v4022_v55 = vshrl.u32 %v11564_v2, 16  ;;  %17300 = vst [vmem:[#allocation71_spill] sm:$0xff] %v14828_v8  ;;  %v4025_v23 = vshll.u32 %v11564_v2, 16 }
 0x1b2   : > { %v4244_v12 = vor.u32 %v4243_v32, %v4240_v45  ;;  %v14830_v54 = vpop.f32.mrf.mxu1  ;;  %v14836_v45 = vld [vmem:[#allocation2 + $0x44] sm:$0xf]  ;;  %v14838_v2 = vld [vmem:[#allocation2 + $0x48] sm:$0xf]  ;;  %v14840_v16 = vpop.f32.mrf.mxu0 }
 0x1b3   : > { %17301 = vst [vmem:[#allocation72_spill] sm:$0xff] %v14830_v54  ;;  %v4252_v58 = vor.u32 %v4251_v7, %v4248_v62  ;;  %v4194_v1 = vsel %vm821_vm0, %v4192_v5, %v4193_v19  ;;  %v4307_v24 = vshrl.u32 %v4192_v5, 16  ;;  %v4310_v49 = vshll.u32 %v4192_v5, 16  ;;  %17303 = vst [vmem:[#allocation74_spill] sm:$0xff] %v14840_v16 }
 0x1b4   : > { %v4315_v41 = vshrl.u32 %v4194_v1, 16  ;;  %v4318_v6 = vshll.u32 %v4194_v1, 16  ;;  %v4024_v22 = vrot.slane %v4022_v55, 4  ;;  %v14833_v39 = vpop.f32.mrf.mxu1  ;;  %v4027_v28 = vrot.slane %v4025_v23, 5  ;;  %v14846_v23 = vld [vmem:[#allocation2 + $0x58] sm:$0xf] }
 0x1b5   : > { %17302 = vst [vmem:[#allocation73_spill] sm:$0xff] %v14833_v39  ;;  %v4253_v14 = vsel %vm870_vm1, %v4244_v12, %v4252_v58  ;;  %v4309_v57 = vrot.slane %v4307_v24, 3  ;;  %v4312_v47 = vrot.slane %v4310_v49, 4  ;;  %v11534_v62 = vcombine.low %v3811_v56, %v3811_v56  ;;  %v14844_v58 = vld [vmem:[#allocation2 + $0x54] sm:$0xf] }
 0x1b6   : > { %5199 = vmatmul.mubr.bf16.vlgmr.msra.gmra.mxu0 %v4253_v14  ;;  %v4317_v19 = vrot.slane %v4315_v41, 3  ;;  %v4320_v32 = vrot.slane %v4318_v6, 4  ;;  %v4281_v7 = vshrl.u32 %v11533_v60, 16  ;;  %v14842_v5 = vpop.f32.mrf.mxu1  ;;  %v4028_v1 = vor.u32 %v4027_v28, %v4024_v22  ;;  %v13581_v41 = vld [vmem:[#allocation2 + $0x5c] ss:$0 sps:$4 sm:$0x11]  }
 0x1b7   : > { %17304 = vst [vmem:[#allocation75_spill] sm:$0xff] %v14842_v5  ;;  %v4313_v55 = vor.u32 %v4312_v47, %v4309_v57  ;;  %v4284_v12 = vshll.u32 %v11533_v60, 16  ;;  %v4289_v13 = vshrl.u32 %v11534_v62, 16  ;;  %v4292_v39 = vshll.u32 %v11534_v62, 16 }
 0x1b8   : > { %v4321_v24 = vor.u32 %v4320_v32, %v4317_v19  ;;  %v4283_v49 = vrot.slane %v4281_v7, 3  ;;  %v4298_v54 = vshrl.u32 %v4028_v1, 16  ;;  %v4301_v16 = vshll.u32 %v4028_v1, 16  ;;  %v14848_v6 = vpop.f32.mrf.mxu1 }
 0x1b9   : > { %v4286_v14 = vrot.slane %v4284_v12, 4  ;;  %17305 = vst [vmem:[#allocation76_spill] sm:$0xff] %v14848_v6  ;;  %v14850_v56 = vpop.f32.mrf.mxu0  ;;  %v4291_v22 = vrot.slane %v4289_v13, 3  ;;  %v4294_v60 = vrot.slane %v4292_v39, 4  ;;  %v11565_v47 = vcombine.low %v14836_v45, %v14838_v2 }
 0x1ba   : > { %v4322_v57 = vsel %vm870_vm1, %v4313_v55, %v4321_v24  ;;  %v4300_v28 = vrot.slane %v4298_v54, 3  ;;  %v4303_v19 = vrot.slane %v4301_v16, 4  ;;  %v4196_v62 = vrot.slane %v13579_v3, 5 }
 0x1bb   : > { %13125 = vmatmul.mubr.bf16.vlgmr.msra.gmra.mxu1 %v4322_v57  ;;  %v4287_v32 = vor.u32 %v4286_v14, %v4283_v49  ;;  %v14855_v7 = vpop.f32.mrf.mxu0  ;;  %v4295_v1 = vor.u32 %v4294_v60, %v4291_v22  ;;  %v4195_v12 = vrot.slane %v11565_v47, 5  ;;  %v14859_v6 = vcombine.low %v14844_v58, %v14846_v23  ;;  %v3813_v14 = vld [vmem:[#allocation2 + $0x40] sm:$0x8] }
 0x1bc   : > { %v4304_v5 = vor.u32 %v4303_v19, %v4300_v28  ;;  %v4199_v55 = vrot.slane %v13581_v41, 5  ;;  %v4030_v13 = vshrl.u32 %v11565_v47, 16  ;;  %v4033_v39 = vshll.u32 %v11565_v47, 16 }
 0x1bd   : > { %v14861_v24 = vpop.f32.mrf.mxu1  ;;  %v14863_v8 = vpop.f32.mrf.mxu0  ;;  %v4296_v54 = vsel %vm870_vm1, %v4287_v32, %v4295_v1  ;;  %v4197_v3 = vsel %vm821_vm0, %v4195_v12, %v4196_v62  ;;  %v4350_v16 = vshrl.u32 %v4195_v12, 16  ;;  %v4353_v49 = vshll.u32 %v4195_v12, 16 }
 0x1be   : > { %17306 = vst [vmem:[#allocation77_spill] sm:$0xff] %v14861_v24  ;;  %5206 = vmatprep.mubr.bf16.mxu0 %v4304_v5  ;;  %v4358_v57 = vshrl.u32 %v4197_v3, 16  ;;  %v4361_v22 = vshll.u32 %v4197_v3, 16  ;;  %v4198_v60 = vrot.slane %v14859_v6, 5  ;;  %v4032_v19 = vrot.slane %v4030_v13, 4 }
 0x1bf   : > { %v14868_v28 = vpop.f32.mrf.mxu1  ;;  %5207 = vmatmul.mubr.bf16.gmra.mxu0 %v4296_v54  ;;  %v4352_v41 = vrot.slane %v4350_v16, 3  ;;  %v4355_v47 = vrot.slane %v4353_v49, 4  ;;  %v4035_v24 = vrot.slane %v4033_v39, 5  ;;  %v14873_v12 = vpop.f32.mrf.mxu0  ;;  %v11535_v16 = vcombine.low %v3813_v14, %v14836_v45 }
 0x1c0   : > { %17307 = vst [vmem:[#allocation78_spill] sm:$0xff] %v14868_v28  ;;  %v4360_v20 = vrot.slane %v4358_v57, 3  ;;  %v4363_v34 = vrot.slane %v4361_v22, 4  ;;  %v4200_v32 = vsel %vm821_vm0, %v4198_v60, %v4199_v55  ;;  %v4393_v62 = vshrl.u32 %v4198_v60, 16 }
 0x1c1   : > { %v14871_v1 = vpop.f32.mrf.mxu1  ;;  %v4356_v5 = vor.u32 %v4355_v47, %v4352_v41  ;;  %v4396_v3 = vshll.u32 %v4198_v60, 16  ;;  %v4401_v51 = vshrl.u32 %v4200_v32, 16  ;;  %v4404_v44 = vshll.u32 %v4200_v32, 16 }
 0x1c2   : > { %17308 = vst [vmem:[#allocation79_spill] sm:$0xff] %v14871_v1  ;;  %v4364_v29 = vor.u32 %v4363_v34, %v4360_v20  ;;  %v4395_v28 = vrot.slane %v4393_v62, 3  ;;  %v4036_v54 = vor.u32 %v4035_v24, %v4032_v19  ;;  %v11536_v55 = vcombine.low %v14838_v2, %v14838_v2  ;;  %v3817_v19 = vld [vmem:[#allocation2 + $0x50] sm:$0x8] }
 0x1c3   : > { %v4398_v13 = vrot.slane %v4396_v3, 4  ;;  %v4403_v39 = vrot.slane %v4401_v51, 3  ;;  %v4406_v49 = vrot.slane %v4404_v44, 4  ;;  %v4324_v4 = vshrl.u32 %v11535_v16, 16  ;;  %v14879_v41 = vpop.f32.mrf.mxu1  ;;  %v14888_v3 = vld [vmem:[#allocation2 + $0x68] sm:$0xf] }
 0x1c4   : > { %v4365_v57 = vsel %vm870_vm1, %v4356_v5, %v4364_v29  ;;  %v4341_v22 = vshrl.u32 %v4036_v54, 16  ;;  %v4344_v1 = vshll.u32 %v4036_v54, 16  ;;  %17309 = vst [vmem:[#allocation80_spill] sm:$0xff] %v14879_v41  ;;  %v4327_v24 = vshll.u32 %v11535_v16, 16  ;;  %v14886_v5 = vld [vmem:[#allocation2 + $0x64] sm:$0xf] }
 0x1c5   : > { %v14881_v60 = vpop.f32.mrf.mxu0  ;;  %13128 = vmatprep.mubr.bf16.mxu1 %v4365_v57  ;;  %v4399_v34 = vor.u32 %v4398_v13, %v4395_v28  ;;  %v4407_v20 = vor.u32 %v4406_v49, %v4403_v39  ;;  %v4332_v45 = vshrl.u32 %v11536_v55, 16  ;;  %v4326_v44 = vrot.slane %v4324_v4, 3  ;;  %v13587_v13 = vld [vmem:[#allocation2 + $0x6c] ss:$0 sps:$4 sm:$0x11]  }
 0x1c6   : > { %v4343_v14 = vrot.slane %v4341_v22, 3  ;;  %v4346_v51 = vrot.slane %v4344_v1, 4  ;;  %v4335_v47 = vshll.u32 %v11536_v55, 16  ;;  %v4329_v32 = vrot.slane %v4327_v24, 4  ;;  %v14901_v24 = vld [vmem:[#allocation2 + $0x78] sm:$0xf] }
 0x1c7   : > { %v14883_v2 = vpop.f32.mrf.mxu0  ;;  %v4408_v29 = vsel %vm870_vm1, %v4399_v34, %v4407_v20  ;;  %v4334_v62 = vrot.slane %v4332_v45, 3  ;;  %v4038_v16 = vshrl.u32 %v14859_v6, 16  ;;  %v4041_v49 = vshll.u32 %v14859_v6, 16  ;;  %v14899_v20 = vld [vmem:[#allocation2 + $0x74] sm:$0xf] }
 0x1c8   : > { %13129 = vmatmul.mubr.bf16.gmra.mxu1 %v4408_v29  ;;  %v4347_v28 = vor.u32 %v4346_v51, %v4343_v14  ;;  %v4337_v54 = vrot.slane %v4335_v47, 4  ;;  %v4330_v39 = vor.u32 %v4329_v32, %v4326_v44  ;;  %v11537_v55 = vcombine.low %v3817_v19, %v14844_v58 }
 0x1c9   : > { %v14891_v1 = vpop.f32.mrf.mxu1  ;;  %v14893_v4 = vpop.f32.mrf.mxu0  ;;  %v4040_v22 = vrot.slane %v4038_v16, 4  ;;  %v11538_v34 = vcombine.low %v14846_v23, %v14846_v23  ;;  %v4043_v14 = vrot.slane %v4041_v49, 5  ;;  %v11567_v58 = vcombine.low %v14886_v5, %v14888_v3 }
 0x1ca   : > { %17310 = vst [vmem:[#allocation81_spill] sm:$0xff] %v14891_v1  ;;  %17311 = vst [vmem:[#allocation82_spill] sm:$0xff] %v14893_v4  ;;  %5214 = vmatprep.mubr.bf16.mxu0 %v4347_v28  ;;  %v4338_v57 = vor.u32 %v4337_v54, %v4334_v62  ;;  %v4367_v51 = vshrl.u32 %v11537_v55, 16  ;;  %v4370_v47 = vshll.u32 %v11537_v55, 16  ;;  %v4202_v55 = vrot.slane %v13587_v13, 5 }
 0x1cb   : > { %v14903_v45 = vpop.f32.mrf.mxu1  ;;  %v4375_v6 = vshrl.u32 %v11538_v34, 16  ;;  %v4378_v29 = vshll.u32 %v11538_v34, 16  ;;  %v14910_v32 = vpop.f32.mrf.mxu0  ;;  %v4044_v23 = vor.u32 %v4043_v14, %v4040_v22  ;;  %v13589_v54 = vld [vmem:[#allocation2 + $0x7c] ss:$0 sps:$4 sm:$0x11]   ;;  %v14914_v34 = vcombine.low %v14899_v20, %v14901_v24 }
 0x1cc   : > { %17312 = vst [vmem:[#allocation83_spill] sm:$0xff] %v14903_v45  ;;  %v4339_v44 = vsel %vm870_vm1, %v4330_v39, %v4338_v57  ;;  %17314 = vst [vmem:[#allocation85_spill] sm:$0xff] %v14910_v32  ;;  %v4369_v62 = vrot.slane %v4367_v51, 3  ;;  %v4372_v28 = vrot.slane %v4370_v47, 4  ;;  %v4201_v45 = vrot.slane %v11567_v58, 5 }
 0x1cd   : > { %v14908_v19 = vpop.f32.mrf.mxu1  ;;  %5215 = vmatmul.mubr.bf16.gmra.mxu0 %v4339_v44  ;;  %v4377_v16 = vrot.slane %v4375_v6, 3  ;;  %v4380_v49 = vrot.slane %v4378_v29, 4  ;;  %v4384_v1 = vshrl.u32 %v4044_v23, 16  ;;  %v4387_v39 = vshll.u32 %v4044_v23, 16 }
 0x1ce   : > { %17313 = vst [vmem:[#allocation84_spill] sm:$0xff] %v14908_v19  ;;  %v4373_v57 = vor.u32 %v4372_v28, %v4369_v62  ;;  %v4203_v19 = vsel %vm821_vm0, %v4201_v45, %v4202_v55  ;;  %v4436_v32 = vshrl.u32 %v4201_v45, 16  ;;  %v4439_v44 = vshll.u32 %v4201_v45, 16 }
 0x1cf   : > { %v4381_v41 = vor.u32 %v4380_v49, %v4377_v16  ;;  %v14917_v22 = vpop.f32.mrf.mxu1  ;;  %v4386_v51 = vrot.slane %v4384_v1, 3  ;;  %v4389_v47 = vrot.slane %v4387_v39, 4  ;;  %v4444_v6 = vshrl.u32 %v4203_v19, 16 }
 0x1d0   : > { %17315 = vst [vmem:[#allocation86_spill] sm:$0xff] %v14917_v22  ;;  %v4447_v13 = vshll.u32 %v4203_v19, 16  ;;  %v4438_v23 = vrot.slane %v4436_v32, 3  ;;  %v4441_v62 = vrot.slane %v4439_v44, 4  ;;  %v4204_v28 = vrot.slane %v14914_v34, 5 }
 0x1d1   : > { %v14919_v14 = vpop.f32.mrf.mxu0  ;;  %v4382_v29 = vsel %vm870_vm1, %v4373_v57, %v4381_v41  ;;  %v4390_v16 = vor.u32 %v4389_v47, %v4386_v51  ;;  %v4446_v49 = vrot.slane %v4444_v6, 3  ;;  %v4205_v45 = vrot.slane %v13589_v54, 5 }
 0x1d2   : > { %v4449_v55 = vrot.slane %v4447_v13, 4  ;;  %v4442_v22 = vor.u32 %v4441_v62, %v4438_v23  ;;  %v4479_v27 = vshrl.u32 %v4204_v28, 16  ;;  %v4482_v48 = vshll.u32 %v4204_v28, 16 }
 0x1d3   : > { %v14923_v4 = vpop.f32.mrf.mxu0  ;;  %5222 = vmatprep.mubr.bf16.mxu0 %v4390_v16  ;;  %v4206_v19 = vsel %vm821_vm0, %v4204_v28, %v4205_v45  ;;  %v4046_v32 = vshrl.u32 %v11567_v58, 16  ;;  %v4049_v57 = vshll.u32 %v11567_v58, 16 }
 0x1d4   : > { %v4450_v41 = vor.u32 %v4449_v55, %v4446_v49  ;;  %v4481_v44 = vrot.slane %v4479_v27, 3  ;;  %v4484_v51 = vrot.slane %v4482_v48, 4  ;;  %v4487_v47 = vshrl.u32 %v4206_v19, 16 }
 0x1d5   : > { %v14925_v1 = vpop.f32.mrf.mxu1  ;;  %v14927_v39 = vpop.f32.mrf.mxu0  ;;  %5223 = vmatmul.mubr.bf16.gmra.mxu0 %v4382_v29  ;;  %v4490_v6 = vshll.u32 %v4206_v19, 16  ;;  %v4048_v23 = vrot.slane %v4046_v32, 4  ;;  %v4051_v62 = vrot.slane %v4049_v57, 5  ;;  %v11539_v49 = vcombine.low %v3821_v25, %v14886_v5  ;;  %v13595_v19 = vld [vmem:[#allocation2 + $0x8c] ss:$0 sps:$4 sm:$0x11]  }
 0x1d6   : > { %17316 = vst [vmem:[#allocation87_spill] sm:$0xff] %v14925_v1  ;;  %v4451_v13 = vsel %vm870_vm1, %v4442_v22, %v4450_v41  ;;  %v4485_v1 = vor.u32 %v4484_v51, %v4481_v44  ;;  %v4489_v40 = vrot.slane %v4487_v47, 3  ;;  %v11540_v48 = vcombine.low %v14888_v3, %v14888_v3  ;;  %v3825_v41 = vld [vmem:[#allocation2 + $0x70] sm:$0x8]  ;;  %v14941_v25 = vld [vmem:[#allocation2 + $0x84] sm:$0xf] }
 0x1d7   : > { %v14930_v54 = vpop.f32.mrf.mxu1  ;;  %13132 = vmatprep.mubr.bf16.mxu1 %v4451_v13  ;;  %v4492_v16 = vrot.slane %v4490_v6, 4  ;;  %v14936_v58 = vpop.f32.mrf.mxu0  ;;  %v4052_v27 = vor.u32 %v4051_v62, %v4048_v23  ;;  %v4410_v55 = vshrl.u32 %v11539_v49, 16  ;;  %v4413_v45 = vshll.u32 %v11539_v49, 16  ;;  %v14943_v5 = vld [vmem:[#allocation2 + $0x88] sm:$0xf] }
 0x1d8   : > { %17317 = vst [vmem:[#allocation88_spill] sm:$0xff] %v14930_v54  ;;  %v4054_v22 = vshrl.u32 %v14914_v34, 16  ;;  %v4418_v44 = vshrl.u32 %v11540_v48, 16  ;;  %v4421_v51 = vshll.u32 %v11540_v48, 16  ;;  %v4057_v48 = vshll.u32 %v14914_v34, 16 }
 0x1d9   : > { %v14934_v28 = vpop.f32.mrf.mxu1  ;;  %v4493_v29 = vor.u32 %v4492_v16, %v4489_v40  ;;  %v4427_v32 = vshrl.u32 %v4052_v27, 16  ;;  %v4430_v57 = vshll.u32 %v4052_v27, 16  ;;  %v4412_v6 = vrot.slane %v4410_v55, 3  ;;  %v14951_v54 = vld [vmem:[#allocation2 + $0x94] sm:$0xf] }
 0x1da   : > { %17318 = vst [vmem:[#allocation89_spill] sm:$0xff] %v14934_v28  ;;  %v4415_v13 = vrot.slane %v4413_v45, 4  ;;  %v4420_v16 = vrot.slane %v4418_v44, 3  ;;  %v4423_v49 = vrot.slane %v4421_v51, 4  ;;  %v4056_v28 = vrot.slane %v4054_v22, 4 }
 0x1db   : > { %v4494_v47 = vsel %vm870_vm1, %v4485_v1, %v4493_v29  ;;  %v14946_v3 = vpop.f32.mrf.mxu1  ;;  %v4429_v23 = vrot.slane %v4427_v32, 3  ;;  %v4432_v62 = vrot.slane %v4430_v57, 4  ;;  %v11541_v45 = vcombine.low %v3825_v41, %v14899_v20  ;;  %v13634_v20 = vld [vmem:[#allocation8 + $0x138] sm:$0xff]  }
 0x1dc   : > { %17319 = vst [vmem:[#allocation90_spill] sm:$0xff] %v14946_v3  ;;  %13133 = vmatmul.mubr.bf16.gmra.mxu1 %v4494_v47  ;;  %v4416_v27 = vor.u32 %v4415_v13, %v4412_v6  ;;  %v4424_v55 = vor.u32 %v4423_v49, %v4420_v16  ;;  %v11542_v32 = vcombine.low %v14901_v24, %v14901_v24  ;;  %v4059_v57 = vrot.slane %v4057_v48, 5  ;;  %v13635_v41 = vld [vmem:[#allocation8 + $0xf8] sm:$0xff]  }
 0x1dd   : > { %v14948_v40 = vpop.f32.mrf.mxu0  ;;  %v4433_v29 = vor.u32 %v4432_v62, %v4429_v23  ;;  %v14962_v44 = vcombine.low %v14941_v25, %v14943_v5  ;;  %v4208_v22 = vrot.slane %v13595_v19, 5  ;;  %v4453_v6 = vshrl.u32 %v11541_v45, 16  ;;  %v13597_v49 = vld [vmem:[#allocation2 + $0x9c] ss:$0 sps:$4 sm:$0x11]   ;;  %12604 = vmatprep.subr.bf16.mxu1 %v13634_v20 }
 0x1de   : > { %v4425_v47 = vsel %vm870_vm1, %v4416_v27, %v4424_v55  ;;  %v4456_v13 = vshll.u32 %v11541_v45, 16  ;;  %v4461_v23 = vshrl.u32 %v11542_v32, 16  ;;  %v4060_v24 = vor.u32 %v4059_v57, %v4056_v28  ;;  %v13636_v19 = vld [vmem:[#allocation8 + $0x178] sm:$0xff]   ;;  %12605 = vmatpush3.bf16.msra.mxu1 %v13635_v41 }
 0x1df   : > { %v14955_v1 = vpop.f32.mrf.mxu0  ;;  %5230 = vmatprep.mubr.bf16.mxu0 %v4433_v29  ;;  %v4464_v62 = vshll.u32 %v11542_v32, 16  ;;  %v4207_v16 = vrot.slane %v14962_v44, 5  ;;  %v14974_v27 = vcombine.low %v14951_v54, %v14953_v10  ;;  %13156 = vmatprep.subr.bf16.mxu0 %v13636_v19 }
 0x1e0   : > { %5231 = vmatmul.mubr.bf16.gmra.mxu0 %v4425_v47  ;;  %v4458_v3 = vrot.slane %v4456_v13, 4  ;;  %v4470_v55 = vshrl.u32 %v4060_v24, 16  ;;  %v4473_v45 = vshll.u32 %v4060_v24, 16  ;;  %v13637_v47 = vld [vmem:[#allocation8 + $0x130] sm:$0xff]  }
 0x1e1   : > { %v14964_v34 = vpop.f32.mrf.mxu1  ;;  %v14966_v51 = vpop.f32.mrf.mxu0  ;;  %v4466_v28 = vrot.slane %v4464_v62, 4  ;;  %v4209_v32 = vsel %vm821_vm0, %v4207_v16, %v4208_v22  ;;  %13157 = vmatpush3.bf16.msra.mxu0 %v13636_v19  ;;  %12606 = vmatprep.subr.bf16.mxu1 %v13637_v47  ;;  %v4210_v22 = vrot.slane %v14974_v27, 5  ;;  %v3829_v19 = vld [vmem:[#allocation2 + $0x80] sm:$0x8]  ;;  %v4065_v47 = vshll.u32 %v14962_v44, 16 }
 0x1e2   : > { %17320 = vst [vmem:[#allocation91_spill] sm:$0xff] %v14964_v34  ;;  %17321 = vst [vmem:[#allocation92_spill] sm:$0xff] %v14966_v51  ;;  %v4455_v34 = vrot.slane %v4453_v6, 3  ;;  %v4463_v51 = vrot.slane %v4461_v23, 3  ;;  %v13638_v6 = vld [vmem:[#allocation8 + $0xf0] sm:$0xff]   ;;  %v4522_v23 = vshrl.u32 %v4207_v16, 16 }
 0x1e3   : > { %v14970_v48 = vpop.f32.mrf.mxu1  ;;  %v14976_v29 = vpop.f32.mrf.mxu0  ;;  %v4530_v30 = vshrl.u32 %v4209_v32, 16  ;;  %v4472_v21 = vrot.slane %v4470_v55, 3  ;;  %v4475_v18 = vrot.slane %v4473_v45, 4  ;;  %v4533_v20 = vshll.u32 %v4209_v32, 16  ;;  %12607 = vmatpush3.bf16.msra.mxu1 %v13638_v6 }
 0x1e4   : > { %17322 = vst [vmem:[#allocation93_spill] sm:$0xff] %v14970_v48  ;;  %17323 = vst [vmem:[#allocation94_spill] sm:$0xff] %v14976_v29  ;;  %v4459_v13 = vor.u32 %v4458_v3, %v4455_v34  ;;  %v4525_v48 = vshll.u32 %v4207_v16, 16  ;;  %v4467_v29 = vor.u32 %v4466_v28, %v4463_v51  ;;  %v4524_v24 = vrot.slane %v4522_v23, 3 }
 0x1e5   : > { %v14979_v57 = vpop.f32.mrf.mxu1  ;;  %v4532_v61 = vrot.slane %v4530_v30, 3  ;;  %v4476_v50 = vor.u32 %v4475_v18, %v4472_v21  ;;  %v4535_v34 = vrot.slane %v4533_v20, 4  ;;  %v4211_v16 = vrot.slane %v13597_v49, 5 }
 0x1e6   : > { %17324 = vst [vmem:[#allocation95_spill] sm:$0xff] %v14979_v57  ;;  %v4527_v62 = vrot.slane %v4525_v48, 4  ;;  %v4468_v3 = vsel %vm870_vm1, %v4459_v13, %v4467_v29  ;;  %v4565_v51 = vshrl.u32 %v4210_v22, 16  ;;  %v4568_v45 = vshll.u32 %v4210_v22, 16 }
 0x1e7   : > { %v14982_v57 = vpop.f32.mrf.mxu1  ;;  %5238 = vmatprep.mubr.bf16.mxu0 %v4476_v50  ;;  %v4536_v30 = vor.u32 %v4535_v34, %v4532_v61  ;;  %v4212_v48 = vsel %vm821_vm0, %v4210_v22, %v4211_v16  ;;  %v4062_v32 = vshrl.u32 %v14962_v44, 16  ;;  %v4067_v50 = vrot.slane %v4065_v47, 5 }
 0x1e8   : > { %17325 = vst [vmem:[#allocation96_spill] sm:$0xff] %v14982_v57  ;;  %v14984_v41 = vpop.f32.mrf.mxu0  ;;  %v4528_v55 = vor.u32 %v4527_v62, %v4524_v24  ;;  %5239 = vmatmul.mubr.bf16.gmra.mxu0 %v4468_v3  ;;  %v4567_v18 = vrot.slane %v4565_v51, 3  ;;  %v4570_v21 = vrot.slane %v4568_v45, 4  ;;  %v4573_v29 = vshrl.u32 %v4212_v48, 16 }
 0x1e9   : > { %v4576_v49 = vshll.u32 %v4212_v48, 16  ;;  %v4064_v20 = vrot.slane %v4062_v32, 4  ;;  %v11543_v22 = vcombine.low %v3829_v19, %v14941_v25  ;;  %v11544_v34 = vcombine.low %v14943_v5, %v14943_v5 }
 0x1ea   : > { %v14987_v28 = vpop.f32.mrf.mxu0  ;;  %v4537_v23 = vsel %vm870_vm1, %v4528_v55, %v4536_v30  ;;  %v4571_v61 = vor.u32 %v4570_v21, %v4567_v18  ;;  %v4575_v24 = vrot.slane %v4573_v29, 3  ;;  %v4070_v48 = vshrl.u32 %v14974_v27, 16  ;;  %v3833_v55 = vld [vmem:[#allocation2 + $0x90] sm:$0x8]  ;;  %v15007_v29 = vld [vmem:[#allocation2 + $0xa4] sm:$0xf] }
 0x1eb   : > { %13136 = vmatprep.mubr.bf16.mxu1 %v4537_v23  ;;  %v4578_v62 = vrot.slane %v4576_v49, 4  ;;  %v4068_v3 = vor.u32 %v4067_v50, %v4064_v20  ;;  %v4496_v51 = vshrl.u32 %v11543_v22, 16  ;;  %v4499_v45 = vshll.u32 %v11543_v22, 16  ;;  %v13603_v30 = vld [vmem:[#allocation2 + $0xac] ss:$0 sps:$4 sm:$0x11]  }
 0x1ec   : > { %v14992_v13 = vpop.f32.mrf.mxu1  ;;  %v14994_v6 = vpop.f32.mrf.mxu0  ;;  %v4504_v25 = vshrl.u32 %v11544_v34, 16  ;;  %v4507_v19 = vshll.u32 %v11544_v34, 16  ;;  %v13639_v20 = vld [vmem:[#allocation8 + $0x128] sm:$0xff]   ;;  %v4072_v57 = vrot.slane %v4070_v48, 4 }
 0x1ed   : > { %17326 = vst [vmem:[#allocation97_spill] sm:$0xff] %v14992_v13  ;;  %v4579_v16 = vor.u32 %v4578_v62, %v4575_v24  ;;  %v4513_v18 = vshrl.u32 %v4068_v3, 16  ;;  %v4516_v21 = vshll.u32 %v4068_v3, 16  ;;  %v4498_v5 = vrot.slane %v4496_v51, 3  ;;  %v13640_v50 = vld [vmem:[#allocation8 + $0xe8] sm:$0xff]   ;;  %12608 = vmatprep.subr.bf16.mxu1 %v13639_v20 }
 0x1ee   : > { %v14998_v44 = vpop.f32.mrf.mxu1  ;;  %v15005_v47 = vpop.f32.mrf.mxu0  ;;  %v4501_v23 = vrot.slane %v4499_v45, 4  ;;  %v4506_v22 = vrot.slane %v4504_v25, 3  ;;  %v4073_v3 = vshll.u32 %v14974_v27, 16  ;;  %v11545_v51 = vcombine.low %v3833_v55, %v14951_v54  ;;  %12609 = vmatpush3.bf16.msra.mxu1 %v13640_v50  ;;  %v15024_v25 = vld [vmem:[#allocation2 + $0xb4] sm:$0xf] }
 0x1ef   : > { %17327 = vst [vmem:[#allocation98_spill] sm:$0xff] %v14998_v44  ;;  %v4580_v49 = vsel %vm870_vm1, %v4571_v61, %v4579_v16  ;;  %v4515_v24 = vrot.slane %v4513_v18, 3  ;;  %v4518_v62 = vrot.slane %v4516_v21, 4  ;;  %v4509_v44 = vrot.slane %v4507_v19, 4  ;;  %v13641_v18 = vld [vmem:[#allocation8 + $0x170] sm:$0xff]  }
 0x1f0   : > { %v15003_v32 = vpop.f32.mrf.mxu1  ;;  %13137 = vmatmul.mubr.bf16.gmra.mxu1 %v4580_v49  ;;  %v4502_v13 = vor.u32 %v4501_v23, %v4498_v5  ;;  %v11546_v45 = vcombine.low %v14953_v10, %v14953_v10  ;;  %v4075_v21 = vrot.slane %v4073_v3, 5  ;;  %v4214_v27 = vrot.slane %v13603_v30, 5  ;;  %v15026_v19 = vld [vmem:[#allocation2 + $0xb8] sm:$0xf]  ;;  %13158 = vmatprep.subr.bf16.mxu0 %v13641_v18 }
 0x1f1   : > { %17328 = vst [vmem:[#allocation99_spill] sm:$0xff] %v15003_v32  ;;  %v15010_v32 = vld [vmem:[#allocation2 + $0xa8] sm:$0xf]  ;;  %v4519_v61 = vor.u32 %v4518_v62, %v4515_v24  ;;  %v4510_v16 = vor.u32 %v4509_v44, %v4506_v22  ;;  %v4539_v44 = vshrl.u32 %v11545_v51, 16  ;;  %v4542_v55 = vshll.u32 %v11545_v51, 16  ;;  %13159 = vmatpush3.bf16.msra.mxu0 %v13641_v18 }
 0x1f2   : > { %v15013_v34 = vpop.f32.mrf.mxu1  ;;  %v15022_v48 = vcombine.low %v15007_v29, %v15010_v32  ;;  %v4547_v10 = vshrl.u32 %v11546_v45, 16  ;;  %v4076_v5 = vor.u32 %v4075_v21, %v4072_v57  ;;  %v4550_v23 = vshll.u32 %v11546_v45, 16  ;;  %v13605_v51 = vld [vmem:[#allocation2 + $0xbc] ss:$0 sps:$4 sm:$0x11]  }
 0x1f3   : > { %17329 = vst [vmem:[#allocation100_spill] sm:$0xff] %v15013_v34  ;;  %5246 = vmatprep.mubr.bf16.mxu0 %v4519_v61  ;;  %v4511_v54 = vsel %vm870_vm1, %v4502_v13, %v4510_v16  ;;  %v4541_v30 = vrot.slane %v4539_v44, 3  ;;  %v4544_v24 = vrot.slane %v4542_v55, 4  ;;  %v15036_v22 = vcombine.low %v15024_v25, %v15026_v19 }
 0x1f4   : > { %v15015_v35 = vpop.f32.mrf.mxu0  ;;  %5247 = vmatmul.mubr.bf16.gmra.mxu0 %v4511_v54  ;;  %v4213_v20 = vrot.slane %v15022_v48, 5  ;;  %v4549_v62 = vrot.slane %v4547_v10, 3  ;;  %v4556_v13 = vshrl.u32 %v4076_v5, 16  ;;  %v4559_v3 = vshll.u32 %v4076_v5, 16 }
 0x1f5   : > { %17330 = vst [vmem:[#allocation101_spill] sm:$0xff] %v15015_v35  ;;  %v4552_v61 = vrot.slane %v4550_v23, 4  ;;  %v4545_v21 = vor.u32 %v4544_v24, %v4541_v30 }
 0x1f6   : > { %v15028_v49 = vpop.f32.mrf.mxu0  ;;  %v4215_v16 = vsel %vm821_vm0, %v4213_v20, %v4214_v27  ;;  %v4608_v54 = vshrl.u32 %v4213_v20, 16  ;;  %v4611_v44 = vshll.u32 %v4213_v20, 16  ;;  %v4558_v10 = vrot.slane %v4556_v13, 3 }
 0x1f7   : > { %17331 = vst [vmem:[#allocation102_spill] sm:$0xff] %v15028_v49  ;;  %v4616_v55 = vshrl.u32 %v4215_v16, 16  ;;  %v4553_v34 = vor.u32 %v4552_v61, %v4549_v62  ;;  %v4619_v0 = vshll.u32 %v4215_v16, 16  ;;  %v4216_v27 = vrot.slane %v15036_v22, 5  ;;  %v3853_v49 = vld [vmem:[#allocation2 + $0xe0] sm:$0x8] }
 0x1f8   : > { %v15032_v50 = vpop.f32.mrf.mxu1  ;;  %v15041_v45 = vpop.f32.mrf.mxu0  ;;  %v4610_v18 = vrot.slane %v4608_v54, 3  ;;  %v4613_v5 = vrot.slane %v4611_v44, 4  ;;  %v4078_v61 = vshrl.u32 %v15022_v48, 16  ;;  %v4081_v16 = vshll.u32 %v15022_v48, 16  ;;  %v3837_v54 = vld [vmem:[#allocation2 + $0xa0] sm:$0x8] }
 0x1f9   : > { %17332 = vst [vmem:[#allocation103_spill] sm:$0xff] %v15032_v50  ;;  %17334 = vst [vmem:[#allocation105_spill] sm:$0xff] %v15041_v45  ;;  %v4561_v50 = vrot.slane %v4559_v3, 4  ;;  %v4618_v23 = vrot.slane %v4616_v55, 3  ;;  %v4621_v63 = vrot.slane %v4619_v0, 4  ;;  %v4217_v45 = vrot.slane %v13605_v51, 5 }
 0x1fa   : > { %v15039_v57 = vpop.f32.mrf.mxu1  ;;  %v15047_v30 = vpop.f32.mrf.mxu0  ;;  %v4614_v20 = vor.u32 %v4613_v5, %v4610_v18  ;;  %v4651_v24 = vshrl.u32 %v4216_v27, 16  ;;  %v4654_v13 = vshll.u32 %v4216_v27, 16  ;;  %v4080_v55 = vrot.slane %v4078_v61, 4 }
 0x1fb   : > { %17333 = vst [vmem:[#allocation104_spill] sm:$0xff] %v15039_v57  ;;  %v4562_v43 = vor.u32 %v4561_v50, %v4558_v10  ;;  %v4554_v57 = vsel %vm870_vm1, %v4545_v21, %v4553_v34  ;;  %17336 = vst [vmem:[#allocation107_spill] sm:$0xff] %v15047_v30  ;;  %v4622_v62 = vor.u32 %v4621_v63, %v4618_v23  ;;  %v4083_v10 = vrot.slane %v4081_v16, 5 }
 0x1fc   : > { %v15043_v52 = vpop.f32.mrf.mxu1  ;;  %v4218_v3 = vsel %vm821_vm0, %v4216_v27, %v4217_v45  ;;  %v4653_v34 = vrot.slane %v4651_v24, 3  ;;  %v4656_v0 = vrot.slane %v4654_v13, 4  ;;  %v11547_v48 = vcombine.low %v3837_v54, %v15007_v29 }
 0x1fd   : > { %17335 = vst [vmem:[#allocation106_spill] sm:$0xff] %v15043_v52  ;;  %5254 = vmatprep.mubr.bf16.mxu0 %v4562_v43  ;;  %v4659_v50 = vshrl.u32 %v4218_v3, 16  ;;  %v4662_v51 = vshll.u32 %v4218_v3, 16  ;;  %v4623_v21 = vsel %vm870_vm1, %v4614_v20, %v4622_v62  ;;  %v4084_v5 = vor.u32 %v4083_v10, %v4080_v55 }
 0x1fe   : > { %v15052_v44 = vpop.f32.mrf.mxu1  ;;  %5255 = vmatmul.mubr.bf16.gmra.mxu0 %v4554_v57  ;;  %13140 = vmatprep.mubr.bf16.mxu1 %v4623_v21  ;;  %v4657_v63 = vor.u32 %v4656_v0, %v4653_v34  ;;  %v11548_v57 = vcombine.low %v15010_v32, %v15010_v32  ;;  %v4582_v24 = vshrl.u32 %v11547_v48, 16  ;;  %v4585_v13 = vshll.u32 %v11547_v48, 16  ;;  %v15070_v48 = vld [vmem:[#allocation2 + $0xc4] sm:$0xf] }
 0x1ff   : > { %17337 = vst [vmem:[#allocation108_spill] sm:$0xff] %v15052_v44  ;;  %v4661_v45 = vrot.slane %v4659_v50, 3  ;;  %v4664_v18 = vrot.slane %v4662_v51, 4  ;;  %v4599_v20 = vshrl.u32 %v4084_v5, 16  ;;  %v4602_v62 = vshll.u32 %v4084_v5, 16 }
 0x200   : > { %v15055_v43 = vpop.f32.mrf.mxu0  ;;  %v4590_v3 = vshrl.u32 %v11548_v57, 16  ;;  %v4593_v61 = vshll.u32 %v11548_v57, 16  ;;  %v4584_v29 = vrot.slane %v4582_v24, 3  ;;  %v4587_v54 = vrot.slane %v4585_v13, 4  ;;  %v3841_v50 = vld [vmem:[#allocation2 + $0xb0] sm:$0x8] }
 0x201   : > { %17338 = vst [vmem:[#allocation109_spill] sm:$0xff] %v15055_v43  ;;  %v4665_v27 = vor.u32 %v4664_v18, %v4661_v45  ;;  %v4601_v32 = vrot.slane %v4599_v20, 3  ;;  %v4604_v51 = vrot.slane %v4602_v62, 4  ;;  %v4086_v18 = vshrl.u32 %v15036_v22, 16  ;;  %v15072_v5 = vld [vmem:[#allocation2 + $0xc8] sm:$0xf] }
 0x202   : > { %v15062_v16 = vpop.f32.mrf.mxu0  ;;  %v4592_v21 = vrot.slane %v4590_v3, 3  ;;  %v4595_v55 = vrot.slane %v4593_v61, 4  ;;  %v4588_v45 = vor.u32 %v4587_v54, %v4584_v29  ;;  %v13611_v24 = vld [vmem:[#allocation2 + $0xcc] ss:$0 sps:$4 sm:$0x11]   ;;  %v13642_v62 = vld [vmem:[#allocation8 + $0x120] sm:$0xff]  }
 0x203   : > { %17340 = vst [vmem:[#allocation111_spill] sm:$0xff] %v15062_v16  ;;  %v4666_v0 = vsel %vm870_vm1, %v4657_v63, %v4665_v27  ;;  %v4605_v57 = vor.u32 %v4604_v51, %v4601_v32  ;;  %v4089_v63 = vshll.u32 %v15036_v22, 16  ;;  %v11549_v27 = vcombine.low %v3841_v50, %v15024_v25  ;;  %v13643_v3 = vld [vmem:[#allocation8 + $0xe0] sm:$0xff]   ;;  %v15082_v29 = vld [vmem:[#allocation2 + $0xd4] sm:$0xf]  ;;  %12610 = vmatprep.subr.bf16.mxu1 %v13642_v62 }
 0x204   : > { %v15060_v23 = vpop.f32.mrf.mxu1  ;;  %13141 = vmatmul.mubr.bf16.gmra.mxu1 %v4666_v0  ;;  %v15076_v13 = vpop.f32.mrf.mxu0  ;;  %v4088_v61 = vrot.slane %v4086_v18, 4  ;;  %v11550_v0 = vcombine.low %v15026_v19, %v15026_v19  ;;  %v15084_v54 = vld [vmem:[#allocation2 + $0xd8] sm:$0xf]  ;;  %v13613_v51 = vld [vmem:[#allocation2 + $0xdc] ss:$0 sps:$4 sm:$0x11]   ;;  %v15089_v18 = vcombine.low %v15070_v48, %v15072_v5 }
 0x205   : > { %17339 = vst [vmem:[#allocation110_spill] sm:$0xff] %v15060_v23  ;;  %17343 = vst [vmem:[#allocation114_spill] sm:$0xff] %v15076_v13  ;;  %5262 = vmatprep.mubr.bf16.mxu0 %v4605_v57  ;;  %v4091_v32 = vrot.slane %v4089_v63, 5  ;;  %v4625_v25 = vshrl.u32 %v11549_v27, 16  ;;  %v4628_v50 = vshll.u32 %v11549_v27, 16  ;;  %12611 = vmatpush3.bf16.msra.mxu1 %v13643_v3  ;;  %v4220_v23 = vrot.slane %v13611_v24, 5 }
 0x206   : > { %v15064_v34 = vpop.f32.mrf.mxu1  ;;  %v4219_v27 = vrot.slane %v15089_v18, 5  ;;  %v15098_v62 = vcombine.low %v15082_v29, %v15084_v54  ;;  %v4223_v3 = vrot.slane %v13613_v51, 5  ;;  %v3861_v43 = vld [vmem:[#allocation2 + $0x100] sm:$0x8] }
 0x207   : > { %17341 = vst [vmem:[#allocation112_spill] sm:$0xff] %v15064_v34  ;;  %v4596_v34 = vor.u32 %v4595_v55, %v4592_v21  ;;  %v4633_v21 = vshrl.u32 %v11550_v0, 16  ;;  %v4636_v55 = vshll.u32 %v11550_v0, 16  ;;  %v4630_v57 = vrot.slane %v4628_v50, 4  ;;  %v13644_v50 = vld [vmem:[#allocation8 + $0x118] sm:$0xff]  }
 0x208   : > { %v15067_v10 = vpop.f32.mrf.mxu1  ;;  %v4694_v24 = vshrl.u32 %v4219_v27, 16  ;;  %12612 = vmatprep.subr.bf16.mxu1 %v13644_v50 }
 0x209   : > { %17342 = vst [vmem:[#allocation113_spill] sm:$0xff] %v15067_v10  ;;  %v4597_v22 = vsel %vm870_vm1, %v4588_v45, %v4596_v34  ;;  %v4627_v10 = vrot.slane %v4625_v25, 3  ;;  %v15093_v34 = vpop.f32.mrf.mxu0  ;;  %v4635_v45 = vrot.slane %v4633_v21, 3  ;;  %v4638_v63 = vrot.slane %v4636_v55, 4  ;;  %v13645_v21 = vld [vmem:[#allocation8 + $0xd8] sm:$0xff]  }
 0x20a   : > { %v15078_v20 = vpop.f32.mrf.mxu1  ;;  %5263 = vmatmul.mubr.bf16.gmra.mxu0 %v4597_v22  ;;  %17346 = vst [vmem:[#allocation117_spill] sm:$0xff] %v15093_v34  ;;  %v4697_v25 = vshll.u32 %v4219_v27, 16  ;;  %12613 = vmatpush3.bf16.msra.mxu1 %v13645_v21 }
 0x20b   : > { %17344 = vst [vmem:[#allocation115_spill] sm:$0xff] %v15078_v20  ;;  %v4092_v20 = vor.u32 %v4091_v32, %v4088_v61  ;;  %v4639_v61 = vor.u32 %v4638_v63, %v4635_v45  ;;  %v4221_v32 = vsel %vm821_vm0, %v4219_v27, %v4220_v23 }
 0x20c   : > { %v4702_v30 = vshrl.u32 %v4221_v32, 16  ;;  %v4705_v46 = vshll.u32 %v4221_v32, 16  ;;  %v4699_v38 = vrot.slane %v4697_v25, 4  ;;  %v13646_v32 = vld [vmem:[#allocation8 + $0x168] sm:$0xff]  }
 0x20d   : > { %v15091_v19 = vpop.f32.mrf.mxu1  ;;  %v4642_v22 = vshrl.u32 %v4092_v20, 16  ;;  %v4645_v44 = vshll.u32 %v4092_v20, 16  ;;  %13160 = vmatprep.subr.bf16.mxu0 %v13646_v32 }
 0x20e   : > { %17345 = vst [vmem:[#allocation116_spill] sm:$0xff] %v15091_v19  ;;  %v4631_v19 = vor.u32 %v4630_v57, %v4627_v10  ;;  %v4222_v10 = vrot.slane %v15098_v62, 5  ;;  %v4704_v51 = vrot.slane %v4702_v30, 3  ;;  %v4707_v57 = vrot.slane %v4705_v46, 4  ;;  %13161 = vmatpush3.bf16.msra.mxu0 %v13646_v32 }
 0x20f   : > { %v15100_v0 = vpop.f32.mrf.mxu1  ;;  %v4644_v55 = vrot.slane %v4642_v22, 3  ;;  %v4647_v52 = vrot.slane %v4645_v44, 4 }
 0x210   : > { %17347 = vst [vmem:[#allocation118_spill] sm:$0xff] %v15100_v0  ;;  %v4696_v0 = vrot.slane %v4694_v24, 3  ;;  %v4640_v23 = vsel %vm870_vm1, %v4631_v19, %v4639_v61  ;;  %v4224_v63 = vsel %vm821_vm0, %v4222_v10, %v4223_v3  ;;  %v4737_v27 = vshrl.u32 %v4222_v10, 16 }
 0x211   : > { %v15105_v17 = vpop.f32.mrf.mxu1  ;;  %v4648_v20 = vor.u32 %v4647_v52, %v4644_v55  ;;  %v4740_v22 = vshll.u32 %v4222_v10, 16  ;;  %v4708_v24 = vor.u32 %v4707_v57, %v4704_v51  ;;  %v4745_v25 = vshrl.u32 %v4224_v63, 16 }
 0x212   : > { %v15103_v59 = vpop.f32.mrf.mxu0  ;;  %17349 = vst [vmem:[#allocation120_spill] sm:$0xff] %v15105_v17  ;;  %v4700_v44 = vor.u32 %v4699_v38, %v4696_v0  ;;  %v4748_v17 = vshll.u32 %v4224_v63, 16  ;;  %v4739_v46 = vrot.slane %v4737_v27, 3  ;;  %v4094_v19 = vshrl.u32 %v15089_v18, 16 }
 0x213   : > { %17348 = vst [vmem:[#allocation119_spill] sm:$0xff] %v15103_v59  ;;  %5270 = vmatprep.mubr.bf16.mxu0 %v4648_v20  ;;  %v3845_v59 = vld [vmem:[#allocation2 + $0xc0] sm:$0x8]  ;;  %v15114_v52 = vpop.f32.mrf.mxu1  ;;  %v4742_v30 = vrot.slane %v4740_v22, 4  ;;  %v4747_v0 = vrot.slane %v4745_v25, 3  ;;  %v4097_v61 = vshll.u32 %v15089_v18, 16  ;;  %v11552_v20 = vcombine.low %v15072_v5, %v15072_v5 }
 0x214   : > { %v15109_v45 = vpop.f32.mrf.mxu0  ;;  %17352 = vst [vmem:[#allocation123_spill] sm:$0xff] %v15114_v52  ;;  %5271 = vmatmul.mubr.bf16.gmra.mxu0 %v4640_v23  ;;  %v4709_v38 = vsel %vm870_vm1, %v4700_v44, %v4708_v24  ;;  %v4750_v3 = vrot.slane %v4748_v17, 4  ;;  %v4096_v55 = vrot.slane %v4094_v19, 4  ;;  %v11551_v10 = vcombine.low %v3845_v59, %v15070_v48 }
 0x215   : > { %17350 = vst [vmem:[#allocation121_spill] sm:$0xff] %v15109_v45  ;;  %13144 = vmatprep.mubr.bf16.mxu1 %v4709_v38  ;;  %v4743_v21 = vor.u32 %v4742_v30, %v4739_v46  ;;  %v4099_v51 = vrot.slane %v4097_v61, 5  ;;  %v4676_v17 = vshrl.u32 %v11552_v20, 16  ;;  %v4679_v22 = vshll.u32 %v11552_v20, 16  ;;  %v3849_v46 = vld [vmem:[#allocation2 + $0xd0] sm:$0x8] }
 0x216   : > { %v15112_v50 = vpop.f32.mrf.mxu0  ;;  %v4751_v23 = vor.u32 %v4750_v3, %v4747_v0  ;;  %v4668_v44 = vshrl.u32 %v11551_v10, 16  ;;  %v4671_v27 = vshll.u32 %v11551_v10, 16  ;;  %v4102_v61 = vshrl.u32 %v15098_v62, 16  ;;  %v13648_v20 = vld [vmem:[#allocation8 + $0xd0] sm:$0xff]  }
 0x217   : > { %17351 = vst [vmem:[#allocation122_spill] sm:$0xff] %v15112_v50  ;;  %v4100_v32 = vor.u32 %v4099_v51, %v4096_v55  ;;  %v4678_v25 = vrot.slane %v4676_v17, 3  ;;  %v4681_v5 = vrot.slane %v4679_v22, 4  ;;  %v4105_v10 = vshll.u32 %v15098_v62, 16  ;;  %v13647_v55 = vld [vmem:[#allocation8 + $0x110] sm:$0xff]  }
 0x218   : > { %v15122_v57 = vpop.f32.mrf.mxu0  ;;  %v4752_v18 = vsel %vm870_vm1, %v4743_v21, %v4751_v23  ;;  %v4670_v59 = vrot.slane %v4668_v44, 3  ;;  %v4673_v48 = vrot.slane %v4671_v27, 4  ;;  %v11553_v44 = vcombine.low %v3849_v46, %v15082_v29  ;;  %v15138_v17 = vld [vmem:[#allocation2 + $0xe4] sm:$0xf]  ;;  %v15140_v22 = vld [vmem:[#allocation2 + $0xe8] sm:$0xf]  ;;  %12614 = vmatprep.subr.bf16.mxu1 %v13647_v55 }
 0x219   : > { %17353 = vst [vmem:[#allocation124_spill] sm:$0xff] %v15122_v57  ;;  %13145 = vmatmul.mubr.bf16.gmra.mxu1 %v4752_v18  ;;  %v4685_v30 = vshrl.u32 %v4100_v32, 16  ;;  %v4688_v19 = vshll.u32 %v4100_v32, 16  ;;  %v4682_v3 = vor.u32 %v4681_v5, %v4678_v25  ;;  %v11554_v27 = vcombine.low %v15084_v54, %v15084_v54  ;;  %v13621_v29 = vld [vmem:[#allocation2 + $0xfc] ss:$0 sps:$4 sm:$0x11]  }
 0x21a   : > { %v15124_v63 = vpop.f32.mrf.mxu1  ;;  %v4674_v0 = vor.u32 %v4673_v48, %v4670_v59  ;;  %v4104_v62 = vrot.slane %v4102_v61, 4  ;;  %v4107_v59 = vrot.slane %v4105_v10, 5  ;;  %v13619_v48 = vld [vmem:[#allocation2 + $0xec] ss:$0 sps:$4 sm:$0x11]   ;;  %v4711_v5 = vshrl.u32 %v11553_v44, 16  ;;  %12615 = vmatpush3.bf16.msra.mxu1 %v13648_v20 }
 0x21b   : > { %v4687_v23 = vrot.slane %v4685_v30, 3  ;;  %v4690_v51 = vrot.slane %v4688_v19, 4  ;;  %v4714_v30 = vshll.u32 %v11553_v44, 16  ;;  %v4719_v19 = vshrl.u32 %v11554_v27, 16  ;;  %v15147_v50 = vld [vmem:[#allocation2 + $0xf8] sm:$0xf] }
 0x21c   : > { %v15127_v24 = vpop.f32.mrf.mxu1  ;;  %v4683_v32 = vsel %vm870_vm1, %v4674_v0, %v4682_v3  ;;  %v4108_v46 = vor.u32 %v4107_v59, %v4104_v62  ;;  %v4722_v54 = vshll.u32 %v11554_v27, 16  ;;  %v4713_v0 = vrot.slane %v4711_v5, 3  ;;  %v13651_v57 = vld [vmem:[#allocation8 + $0x160] sm:$0xff]  }
 0x21d   : > { %v4691_v25 = vor.u32 %v4690_v51, %v4687_v23  ;;  %v4716_v3 = vrot.slane %v4714_v30, 4  ;;  %v4721_v61 = vrot.slane %v4719_v19, 3  ;;  %v15155_v10 = vcombine.low %v15138_v17, %v15140_v22  ;;  %13162 = vmatprep.subr.bf16.mxu0 %v13651_v57 }
 0x21e   : > { %v15129_v38 = vpop.f32.mrf.mxu0  ;;  %v15133_v21 = vpop.f32.mrf.mxu1  ;;  %v4728_v55 = vshrl.u32 %v4108_v46, 16  ;;  %v4731_v20 = vshll.u32 %v4108_v46, 16  ;;  %v4724_v23 = vrot.slane %v4722_v54, 4  ;;  %v4226_v51 = vrot.slane %v13619_v48, 5  ;;  %13163 = vmatpush3.bf16.msra.mxu0 %v13651_v57 }
 0x21f   : > { %17354 = vst [vmem:[#allocation125_spill] sm:$0xff] %v15129_v38  ;;  %v15145_v38 = vld [vmem:[#allocation2 + $0xf4] sm:$0xf]  ;;  %5278 = vmatprep.mubr.bf16.mxu0 %v4691_v25  ;;  %v4717_v44 = vor.u32 %v4716_v3, %v4713_v0  ;;  %v4225_v27 = vrot.slane %v15155_v10, 5  ;;  %v4229_v59 = vrot.slane %v13621_v29, 5  ;;  %v13649_v0 = vld [vmem:[#allocation8 + $0x108] sm:$0xff]   ;;  %v11556_v57 = vcombine.low %v15140_v22, %v15140_v22 }
 0x220   : > { %v15142_v18 = vpop.f32.mrf.mxu0  ;;  %5279 = vmatmul.mubr.bf16.gmra.mxu0 %v4683_v32  ;;  %v15160_v62 = vcombine.low %v15145_v38, %v15147_v50  ;;  %v4730_v25 = vrot.slane %v4728_v55, 3  ;;  %v4733_v5 = vrot.slane %v4731_v20, 4  ;;  %v4725_v30 = vor.u32 %v4724_v23, %v4721_v61  ;;  %v13650_v3 = vld [vmem:[#allocation8 + $0xc8] sm:$0xff]   ;;  %12616 = vmatprep.subr.bf16.mxu1 %v13649_v0 }
 0x221   : > { %17355 = vst [vmem:[#allocation126_spill] sm:$0xff] %v15142_v18  ;;  %v15151_v18 = vpop.f32.mrf.mxu1  ;;  %v4227_v32 = vsel %vm821_vm0, %v4225_v27, %v4226_v51  ;;  %v4780_v46 = vshrl.u32 %v4225_v27, 16  ;;  %v4783_v54 = vshll.u32 %v4225_v27, 16  ;;  %12617 = vmatpush3.bf16.msra.mxu1 %v13650_v3  ;;  %v11555_v3 = vcombine.low %v3853_v49, %v15138_v17 }
 0x222   : > { %v15149_v52 = vpop.f32.mrf.mxu0  ;;  %v4228_v48 = vrot.slane %v15160_v62, 5  ;;  %v4734_v45 = vor.u32 %v4733_v5, %v4730_v25  ;;  %v4726_v11 = vsel %vm870_vm1, %v4717_v44, %v4725_v30  ;;  %v4788_v29 = vshrl.u32 %v4227_v32, 16 }
 0x223   : > { %17356 = vst [vmem:[#allocation127_spill] sm:$0xff] %v15149_v52  ;;  %v4791_v55 = vshll.u32 %v4227_v32, 16  ;;  %v4782_v61 = vrot.slane %v4780_v46, 3  ;;  %v4785_v23 = vrot.slane %v4783_v54, 4  ;;  %v13652_v46 = vld [vmem:[#allocation8 + $0x158] sm:$0xff]   ;;  %v4765_v49 = vshll.u32 %v11556_v57, 16 }
 0x224   : > { %v15162_v19 = vpop.f32.mrf.mxu0  ;;  %v4823_v34 = vshrl.u32 %v4228_v48, 16  ;;  %5286 = vmatprep.mubr.bf16.mxu0 %v4734_v45  ;;  %v4790_v51 = vrot.slane %v4788_v29, 3  ;;  %v4826_v13 = vshll.u32 %v4228_v48, 16  ;;  %13164 = vmatprep.subr.bf16.mxu0 %v13652_v46 }
 0x225   : > { %17357 = vst [vmem:[#allocation128_spill] sm:$0xff] %v15162_v19  ;;  %v4230_v19 = vsel %vm821_vm0, %v4228_v48, %v4229_v59  ;;  %v4793_v27 = vrot.slane %v4791_v55, 4  ;;  %v4786_v44 = vor.u32 %v4785_v23, %v4782_v61  ;;  %v4110_v48 = vshrl.u32 %v15155_v10, 16  ;;  %13165 = vmatpush3.bf16.msra.mxu0 %v13652_v46  ;;  %v13653_v46 = vld [vmem:[#allocation8 + $0x100] sm:$0xff]  }
 0x226   : > { %v4831_v33 = vshrl.u32 %v4230_v19, 16  ;;  %v4825_v5 = vrot.slane %v4823_v34, 3  ;;  %v4834_v30 = vshll.u32 %v4230_v19, 16  ;;  %v4828_v54 = vrot.slane %v4826_v13, 4  ;;  %12618 = vmatprep.subr.bf16.mxu1 %v13653_v46 }
 0x227   : > { %v15164_v52 = vpop.f32.mrf.mxu1  ;;  %v4794_v59 = vor.u32 %v4793_v27, %v4790_v51  ;;  %v4113_v55 = vshll.u32 %v15155_v10, 16  ;;  %v4112_v13 = vrot.slane %v4110_v48, 4  ;;  %v4754_v61 = vshrl.u32 %v11555_v3, 16 }
 0x228   : > { %5287 = vmatmul.mubr.bf16.gmra.mxu0 %v4726_v11  ;;  %v4833_v0 = vrot.slane %v4831_v33, 3  ;;  %v4836_v29 = vrot.slane %v4834_v30, 4  ;;  %v4829_v19 = vor.u32 %v4828_v54, %v4825_v5  ;;  %v4757_v10 = vshll.u32 %v11555_v3, 16  ;;  %v3857_v54 = vld [vmem:[#allocation2 + $0xf0] sm:$0x8]  ;;  %v13654_v3 = vld [vmem:[#allocation8 + $0xc0] sm:$0xff]  }
 0x229   : > { %v15169_v20 = vpop.f32.mrf.mxu1  ;;  %v4795_v34 = vsel %vm870_vm1, %v4786_v44, %v4794_v59  ;;  %v4115_v33 = vrot.slane %v4113_v55, 5  ;;  %v4762_v27 = vshrl.u32 %v11556_v57, 16  ;;  %v4756_v5 = vrot.slane %v4754_v61, 3  ;;  %v13655_v57 = vld [vmem:[#allocation8 + $0x150] sm:$0xff]   ;;  %12619 = vmatpush3.bf16.msra.mxu1 %v13654_v3 }
 0x22a   : > { %13148 = vmatprep.mubr.bf16.mxu1 %v4795_v34  ;;  %v4837_v11 = vor.u32 %v4836_v29, %v4833_v0  ;;  %v4759_v30 = vrot.slane %v4757_v10, 4  ;;  %v4767_v59 = vrot.slane %v4765_v49, 4  ;;  %v4118_v48 = vshrl.u32 %v15160_v62, 16  ;;  %13166 = vmatprep.subr.bf16.mxu0 %v13655_v57 }
 0x22b   : > { %v15172_v25 = vpop.f32.mrf.mxu0  ;;  %v15174_v32 = vpop.f32.mrf.mxu1  ;;  %v4116_v44 = vor.u32 %v4115_v33, %v4112_v13  ;;  %v4764_v22 = vrot.slane %v4762_v27, 3  ;;  %v11557_v10 = vcombine.low %v3857_v54, %v15145_v38  ;;  %v13627_v27 = vld [vmem:[#allocation2 + $0x10c] ss:$0 sps:$4 sm:$0x11]   ;;  %13167 = vmatpush3.bf16.msra.mxu0 %v13655_v57 }
 0x22c   : > { %17358 = vst [vmem:[#allocation129_spill] sm:$0xff] %v15172_v25  ;;  %17359 = vst [vmem:[#allocation130_spill] sm:$0xff] %v15174_v32  ;;  %v4838_v17 = vsel %vm870_vm1, %v4829_v19, %v4837_v11  ;;  %v4121_v11 = vshll.u32 %v15160_v62, 16  ;;  %v4120_v61 = vrot.slane %v4118_v48, 4 }
 0x22d   : > { %v15176_v45 = vpop.f32.mrf.mxu0  ;;  %v15186_v51 = vpop.f32.mrf.mxu1  ;;  %13149 = vmatmul.mubr.bf16.gmra.mxu1 %v4838_v17  ;;  %v4771_v0 = vshrl.u32 %v4116_v44, 16  ;;  %v4774_v29 = vshll.u32 %v4116_v44, 16  ;;  %v4768_v19 = vor.u32 %v4767_v59, %v4764_v22  ;;  %v11558_v44 = vcombine.low %v15147_v50, %v15147_v50  ;;  %v13629_v59 = vld [vmem:[#allocation2 + $0x11c] ss:$0 sps:$4 sm:$0x11]  }
 0x22e   : > { %17360 = vst [vmem:[#allocation131_spill] sm:$0xff] %v15176_v45  ;;  %17362 = vst [vmem:[#allocation133_spill] sm:$0xff] %v15186_v51  ;;  %v4123_v17 = vrot.slane %v4121_v11, 5  ;;  %v4797_v22 = vshrl.u32 %v11557_v10, 16  ;;  %v4800_v38 = vshll.u32 %v11557_v10, 16 }
 0x22f   : > { %v15184_v23 = vpop.f32.mrf.mxu0  ;;  %v4773_v13 = vrot.slane %v4771_v0, 3  ;;  %v4776_v33 = vrot.slane %v4774_v29, 4  ;;  %v13656_v0 = vld [vmem:[#allocation8 + $0x148] sm:$0xff]   ;;  %v4805_v48 = vshrl.u32 %v11558_v44, 16  ;;  %v4808_v46 = vshll.u32 %v11558_v44, 16 }
 0x230   : > { %17361 = vst [vmem:[#allocation132_spill] sm:$0xff] %v15184_v23  ;;  %v4760_v23 = vor.u32 %v4759_v30, %v4756_v5  ;;  %v15202_v5 = vld [vmem:[#allocation2 + $0x108] sm:$0xf]  ;;  %v4124_v29 = vor.u32 %v4123_v17, %v4120_v61  ;;  %v15207_v11 = vld [vmem:[#allocation2 + $0x114] sm:$0xf]  ;;  %v4799_v3 = vrot.slane %v4797_v22, 3  ;;  %13168 = vmatprep.subr.bf16.mxu0 %v13656_v0 }
 0x231   : > { %v15190_v55 = vpop.f32.mrf.mxu0  ;;  %v4777_v62 = vor.u32 %v4776_v33, %v4773_v13  ;;  %v15209_v50 = vld [vmem:[#allocation2 + $0x118] sm:$0xf]  ;;  %v4802_v57 = vrot.slane %v4800_v38, 4  ;;  %v4807_v10 = vrot.slane %v4805_v48, 3  ;;  %v4810_v17 = vrot.slane %v4808_v46, 4  ;;  %13169 = vmatpush3.bf16.msra.mxu0 %v13656_v0 }
 0x232   : > { %17363 = vst [vmem:[#allocation134_spill] sm:$0xff] %v15190_v55  ;;  %v15200_v55 = vld [vmem:[#allocation2 + $0x104] sm:$0xf]  ;;  %v4769_v30 = vsel %vm870_vm1, %v4760_v23, %v4768_v19  ;;  %v4232_v19 = vrot.slane %v13627_v27, 5  ;;  %v4814_v33 = vshrl.u32 %v4124_v29, 16  ;;  %v4817_v61 = vshll.u32 %v4124_v29, 16 }
 0x233   : > { %5294 = vmatprep.mubr.bf16.mxu0 %v4777_v62  ;;  %v15215_v23 = vcombine.low %v15200_v55, %v15202_v5  ;;  %v4803_v44 = vor.u32 %v4802_v57, %v4799_v3  ;;  %v15222_v62 = vcombine.low %v15207_v11, %v15209_v50  ;;  %v4235_v22 = vrot.slane %v13629_v59, 5  ;;  %v13662_v29 = vld [vmem:[#allocation8 + $0x140] sm:$0xff]  }
 0x234   : > { %v15192_v34 = vpop.f32.mrf.mxu1  ;;  %5295 = vmatmul.mubr.bf16.gmra.mxu0 %v4769_v30  ;;  %v4816_v38 = vrot.slane %v4814_v33, 3  ;;  %v4819_v25 = vrot.slane %v4817_v61, 4  ;;  %v4811_v27 = vor.u32 %v4810_v17, %v4807_v10  ;;  %v15228_v30 = vld [vmem:[#allocation8 + $0xb8] sm:$0xff]   ;;  %13170 = vmatprep.subr.bf16.mxu0 %v13662_v29 }
 0x235   : > { %17367 = vst [vmem:[#allocation138_spill] sm:$0xff] %v15228_v30  ;;  %v4234_v57 = vrot.slane %v15222_v62, 5  ;;  %13204 = vmatprep.subr.bf16.mxu1 %v15228_v30  ;;  %13171 = vmatpush3.bf16.msra.mxu0 %v13662_v29 }
 0x236   : > { %v15196_v49 = vpop.f32.mrf.mxu1  ;;  %v4820_v32 = vor.u32 %v4819_v25, %v4816_v38  ;;  %v4812_v59 = vsel %vm870_vm1, %v4803_v44, %v4811_v27 }
 0x237   : > { %v4236_v17 = vsel %vm821_vm0, %v4234_v57, %v4235_v22 }
 0x238   : > { %v15205_v54 = vpop.f32.mrf.mxu0  ;;  %v15211_v45 = vpop.f32.mrf.mxu1  ;;  %5302 = vmatprep.mubr.bf16.mxu0 %v4820_v32  ;;  %v4917_v16 = vshrl.u32 %v4236_v17, 16  ;;  %v4126_v32 = vshrl.u32 %v15215_v23, 16 }
 0x239   : > { %17364 = vst [vmem:[#allocation135_spill] sm:$0xff] %v15205_v54  ;;  %v4231_v54 = vrot.slane %v15215_v23, 5 }
 0x23a   : > { %v15217_v13 = vpop.f32.mrf.mxu0  ;;  %v4919_v30 = vrot.slane %v4917_v16, 3  ;;  %v4128_v16 = vrot.slane %v4126_v32, 4  ;;  %v4134_v32 = vshrl.u32 %v15222_v62, 16 }
 0x23b   : > { %17365 = vst [vmem:[#allocation136_spill] sm:$0xff] %v15217_v13  ;;  %v15226_v13 = vpop.f32.mrf.mxu1  ;;  %v4233_v48 = vsel %vm821_vm0, %v4231_v54, %v4232_v19  ;;  %v4866_v46 = vshrl.u32 %v4231_v54, 16  ;;  %v4869_v3 = vshll.u32 %v4231_v54, 16  ;;  %v4912_v54 = vshll.u32 %v4234_v57, 16 }
 0x23c   : > { %v15224_v51 = vpop.f32.mrf.mxu0  ;;  %v4874_v0 = vshrl.u32 %v4233_v48, 16  ;;  %v4877_v33 = vshll.u32 %v4233_v48, 16  ;;  %v4920_v48 = vshll.u32 %v4236_v17, 16  ;;  %5303 = vmatmul.mubr.bf16.gmra.mxu0 %v4812_v59 }
 0x23d   : > { %17366 = vst [vmem:[#allocation137_spill] sm:$0xff] %v15224_v51  ;;  %v4868_v61 = vrot.slane %v4866_v46, 3  ;;  %v4871_v10 = vrot.slane %v4869_v3, 4  ;;  %v4909_v51 = vshrl.u32 %v4234_v57, 16  ;;  %v4914_v3 = vrot.slane %v4912_v54, 4 }
 0x23e   : > { %v4876_v19 = vrot.slane %v4874_v0, 3  ;;  %v4879_v35 = vrot.slane %v4877_v33, 4  ;;  %v15235_v25 = vpop.f32.mrf.mxu0  ;;  %v4922_v29 = vrot.slane %v4920_v48, 4  ;;  %v4129_v57 = vshll.u32 %v15215_v23, 16 }
 0x23f   : > { %17368 = vst [vmem:[#allocation139_spill] sm:$0xff] %v15235_v25  ;;  %v4872_v38 = vor.u32 %v4871_v10, %v4868_v61  ;;  %v4911_v27 = vrot.slane %v4909_v51, 3  ;;  %v11559_v0 = vcombine.low %v3861_v43, %v15200_v55  ;;  %v11560_v51 = vcombine.low %v15202_v5, %v15202_v5 }
 0x240   : > { %v4880_v46 = vor.u32 %v4879_v35, %v4876_v19  ;;  %v4923_v35 = vor.u32 %v4922_v29, %v4919_v30  ;;  %v4131_v59 = vrot.slane %v4129_v57, 5 }
 0x241   : > { %v15237_v44 = vpop.f32.mrf.mxu1  ;;  %v4915_v25 = vor.u32 %v4914_v3, %v4911_v27  ;;  %v4840_v10 = vshrl.u32 %v11559_v0, 16  ;;  %v4843_v17 = vshll.u32 %v11559_v0, 16  ;;  %v4848_v19 = vshrl.u32 %v11560_v51, 16  ;;  %v3865_v3 = vld [vmem:[#allocation2 + $0x110] sm:$0x8] }
 0x242   : > { %v4881_v33 = vsel %vm870_vm1, %v4872_v38, %v4880_v46  ;;  %v4851_v54 = vshll.u32 %v11560_v51, 16  ;;  %v4132_v55 = vor.u32 %v4131_v59, %v4128_v16  ;;  %v4136_v16 = vrot.slane %v4134_v32, 4 }
 0x243   : > { %v15239_v22 = vpop.f32.mrf.mxu1  ;;  %13152 = vmatprep.mubr.bf16.mxu1 %v4881_v33  ;;  %v4924_v43 = vsel %vm870_vm1, %v4915_v25, %v4923_v35  ;;  %v4842_v38 = vrot.slane %v4840_v10, 3  ;;  %v4845_v5 = vrot.slane %v4843_v17, 4  ;;  %v4850_v27 = vrot.slane %v4848_v19, 3 }
 0x244   : > { %13153 = vmatmul.mubr.bf16.gmra.mxu1 %v4924_v43  ;;  %v4853_v46 = vrot.slane %v4851_v54, 4  ;;  %v4857_v30 = vshrl.u32 %v4132_v55, 16  ;;  %v4860_v29 = vshll.u32 %v4132_v55, 16  ;;  %v4137_v33 = vshll.u32 %v15222_v62, 16 }
 0x245   : > { %v15247_v61 = vpop.f32.mrf.mxu0  ;;  %v15251_v23 = vpop.f32.mrf.mxu1  ;;  %v4846_v57 = vor.u32 %v4845_v5, %v4842_v38  ;;  %v11561_v59 = vcombine.low %v3865_v3, %v15207_v11  ;;  %v11562_v17 = vcombine.low %v15209_v50, %v15209_v50 }
 0x246   : > { %v4854_v0 = vor.u32 %v4853_v46, %v4850_v27  ;;  %v4859_v25 = vrot.slane %v4857_v30, 3  ;;  %v4862_v35 = vrot.slane %v4860_v29, 4  ;;  %v4139_v10 = vrot.slane %v4137_v33, 5 }
 0x247   : > { %v15249_v48 = vpop.f32.mrf.mxu0  ;;  %v4883_v43 = vshrl.u32 %v11561_v59, 16  ;;  %v4886_v55 = vshll.u32 %v11561_v59, 16  ;;  %v4891_v62 = vshrl.u32 %v11562_v17, 16  ;;  %v4894_v5 = vshll.u32 %v11562_v17, 16 }
 0x248   : > { %17369 = vst [vmem:[#allocation140_spill] sm:$0xff] %v15249_v48  ;;  %v15258_v48 = vpop.f32.mrf.mxu1  ;;  %v4863_v19 = vor.u32 %v4862_v35, %v4859_v25  ;;  %v4855_v54 = vsel %vm870_vm1, %v4846_v57, %v4854_v0  ;;  %v4140_v38 = vor.u32 %v4139_v10, %v4136_v16 }
 0x249   : > { %v15256_v51 = vpop.f32.mrf.mxu0  ;;  %v4885_v30 = vrot.slane %v4883_v43, 3  ;;  %v4888_v29 = vrot.slane %v4886_v55, 4  ;;  %v4893_v32 = vrot.slane %v4891_v62, 3  ;;  %v4896_v33 = vrot.slane %v4894_v5, 4 }
 0x24a   : > { %5310 = vmatprep.mubr.bf16.mxu0 %v4863_v19  ;;  %v4900_v11 = vshrl.u32 %v4140_v38, 16  ;;  %v4903_v3 = vshll.u32 %v4140_v38, 16  ;;  %v12404_v19 = vadd.f32 %v15127_v24, %v15124_v63  ;;  %v12271_v38 = vadd.f32 %v14873_v12, %v14863_v8 }
 0x24b   : > { %v15264_v27 = vpop.f32.mrf.mxu0  ;;  %5311 = vmatmul.mubr.bf16.gmra.mxu0 %v4855_v54  ;;  %v4889_v25 = vor.u32 %v4888_v29, %v4885_v30  ;;  %v4897_v0 = vor.u32 %v4896_v33, %v4893_v32  ;;  %v12268_v54 = vadd.f32 %v14855_v7, %v14850_v56  ;;  %v12280_v62 = vadd.f32 %v14923_v4, %v14919_v14  ;;  %v17379_v32 = vld [vmem:[#allocation109_spill] sm:$0xff]  ;;  %v17380_v33 = vld [vmem:[#allocation111_spill] sm:$0xff] }
 0x24c   : > { %17370 = vst [vmem:[#allocation141_spill] sm:$0xff] %v15264_v27  ;;  %v4902_v35 = vrot.slane %v4900_v11, 3  ;;  %v4905_v57 = vrot.slane %v4903_v3, 4  ;;  %v12410_v5 = vadd.f32 %v15169_v20, %v15164_v52  ;;  %v12274_v30 = vadd.f32 %v14883_v2, %v14881_v60 }
 0x24d   : > { %v4898_v27 = vsel %vm870_vm1, %v4889_v25, %v4897_v0  ;;  %v12283_v63 = vadd.f32 %v14936_v58, %v14927_v39  ;;  %v12407_v56 = vadd.f32 %v15151_v18, %v15133_v21  ;;  %v3284_v7 = vadd.f32 %v14729_v15, %v12268_v54  ;;  %v17381_v25 = vld [vmem:[#allocation101_spill] sm:$0xff] }
 0x24e   : > { %v4906_v10 = vor.u32 %v4905_v57, %v4902_v35  ;;  %v12416_v8 = vadd.f32 %v15196_v49, %v15192_v34  ;;  %v3287_v14 = vadd.f32 %v14740_v26, %v12271_v38  ;;  %v3300_v52 = vadd.f32 %v14755_v9, %v12280_v62  ;;  %v17382_v35 = vld [vmem:[#allocation102_spill] sm:$0xff]  ;;  %v17385_v54 = vld [vmem:[#allocation117_spill] sm:$0xff] }
 0x24f   : > { %v12426_v46 = vpop.f32.mrf.mxu1  ;;  %v12292_v60 = vadd.f32 %v14987_v28, %v14984_v41  ;;  %v12419_v2 = vadd.f32 %v15226_v13, %v15211_v45  ;;  %v12286_v39 = vadd.f32 %v14955_v1, %v14948_v40  ;;  %v12295_v15 = vadd.f32 %v15005_v47, %v14994_v6  ;;  %v17386_v38 = vld [vmem:[#allocation13_spill] sm:$0xff]  ;;  %v17387_v62 = vld [vmem:[#allocation14_spill] sm:$0xff] }
 0x250   : > { %5318 = vmatprep.mubr.bf16.mxu0 %v4906_v10  ;;  %v3589_v58 = vadd.f32 %v12404_v19, %v3284_v7  ;;  %v12422_v24 = vadd.f32 %v15239_v22, %v15237_v44  ;;  %v3292_v26 = vadd.f32 %v12274_v30, %v14761_v42  ;;  %v3303_v9 = vadd.f32 %v14766_v37, %v12283_v63  ;;  %v17383_v10 = vld [vmem:[#allocation64_spill] sm:$0xff]  ;;  %v17384_v19 = vld [vmem:[#allocation114_spill] sm:$0xff] }
 0x251   : > { %v12427_v50 = vpop.f32.mrf.mxu1  ;;  %v3592_v18 = vadd.f32 %v12407_v56, %v3287_v14  ;;  %v3605_v28 = vadd.f32 %v12416_v8, %v3300_v52  ;;  %v3316_v40 = vadd.f32 %v14779_v36, %v12292_v60  ;;  %v3308_v34 = vadd.f32 %v12286_v39, %v14783_v31  ;;  %v17388_v30 = vld [vmem:[#allocation16_spill] sm:$0xff]  ;;  %v17389_v63 = vld [vmem:[#allocation18_spill] sm:$0xff] }
 0x252   : > { %v15303_v41 = vadd.f32 %v15247_v61, %v3589_v58  ;;  %v12428_v20 = vadd.f32 %v12427_v50, %v12426_v46  ;;  %v3597_v6 = vadd.f32 %v12410_v5, %v3292_v26  ;;  %v3608_v47 = vadd.f32 %v12419_v2, %v3303_v9  ;;  %v17390_v7 = vld [vmem:[#allocation66_spill] sm:$0xff]  ;;  %v17391_v14 = vld [vmem:[#allocation20_spill] sm:$0xff]  ;;  %v17395_v9 = vld [vmem:[#allocation67_spill] sm:$0xff] }
 0x253   : > { %v13098_v59 = vpop.f32.mrf.mxu0  ;;  %v12429_v16 = vpop.f32.mrf.mxu1  ;;  %5319 = vmatmul.mubr.bf16.gmra.mxu0 %v4898_v27  ;;  %v15307_v1 = vadd.f32 %v15256_v51, %v3592_v18  ;;  %v3319_v42 = vadd.f32 %v14793_v53, %v12295_v15  ;;  %v3613_v51 = vadd.f32 %v12422_v24, %v3308_v34  ;;  %v12304_v50 = vadd.f32 %v17380_v33, %v17379_v32  ;;  %v17392_v52 = vld [vmem:[#allocation22_spill] sm:$0xff]  ;;  %v17393_v24 = vld [vmem:[#allocation24_spill] sm:$0xff] }
 0x254   : > { %17371 = vst [vmem:[#allocation142_spill] sm:$0xff] %v15303_v41  ;;  %v15311_v49 = vadd.f32 %v13098_v59, %v3605_v28  ;;  %v3621_v36 = vadd.f32 %v12428_v20, %v3316_v40  ;;  %v12298_v57 = vadd.f32 %v17382_v35, %v17381_v25  ;;  %v12214_v5 = vadd.f32 %v17387_v62, %v17386_v38  ;;  %v17397_v40 = vld [vmem:[#allocation17_spill] sm:$0xff]  ;;  %v17406_v35 = vld [vmem:[#allocation38_spill] sm:$0xff]  ;;  %v17413_v62 = vld [vmem:[#allocation19_spill] sm:$0xff] }
 0x255   : > { %v3757_v17 = vpop.f32.mrf.mxu0  ;;  %v12430_v55 = vpop.f32.mrf.mxu1  ;;  %17372 = vst [vmem:[#allocation143_spill] sm:$0xff] %v15307_v1  ;;  %v12217_v56 = vadd.f32 %v17389_v63, %v17388_v30  ;;  %v12220_v60 = vadd.f32 %v17392_v52, %v17391_v14  ;;  %v17405_v25 = vld [vmem:[#allocation37_spill] sm:$0xff]  ;;  %v17414_v30 = vld [vmem:[#allocation50_spill] sm:$0xff]  ;;  %v17415_v63 = vld [vmem:[#allocation52_spill] sm:$0xff] }
 0x256   : > { %17373 = vst [vmem:[#allocation144_spill] sm:$0xff] %v15311_v49  ;;  %v12431_v37 = vadd.f32 %v12430_v55, %v12429_v16  ;;  %v15315_v22 = vadd.f32 %v3757_v17, %v3597_v6  ;;  %v3332_v17 = vadd.f32 %v17383_v10, %v12304_v50  ;;  %v3324_v8 = vadd.f32 %v12298_v57, %v17390_v7  ;;  %v17416_v7 = vld [vmem:[#allocation53_spill] sm:$0xff]  ;;  %v17482_v49 = vld [vmem:[#allocation108_spill] sm:$0xff] }
 0x257   : > { %v13099_v43 = vpop.f32.mrf.mxu0  ;;  %v3212_v6 = vadd.f32 %v12214_v5, %v17397_v40  ;;  %v12232_v57 = vadd.f32 %v17406_v35, %v17405_v25  ;;  %v17428_v40 = vld [vmem:[#allocation25_spill] sm:$0xff] }
 0x258   : > { %17374 = vst [vmem:[#allocation145_spill] sm:$0xff] %v15315_v22  ;;  %v15317_v61 = vadd.f32 %v13099_v43, %v3608_v47  ;;  %v3624_v46 = vadd.f32 %v12431_v37, %v3319_v42  ;;  %v12307_v43 = vadd.f32 %v17385_v54, %v17384_v19  ;;  %v17398_v47 = vld [vmem:[#allocation21_spill] sm:$0xff]  ;;  %v17400_v37 = vld [vmem:[#allocation15_spill] sm:$0xff]  ;;  %v17410_v19 = vld [vmem:[#allocation46_spill] sm:$0xff] }
 0x259   : > { %v15286_v12 = vpop.f32.mrf.mxu0  ;;  %v15350_v34 = vadd.f32 %v12217_v56, %v17398_v47  ;;  %v12244_v56 = vadd.f32 %v17415_v63, %v17414_v30  ;;  %v17439_v63 = vld [vmem:[#allocation34_spill] sm:$0xff]  ;;  %v17495_v41 = vld [vmem:[#allocation125_spill] sm:$0xff] }
 0x25a   : > { %17375 = vst [vmem:[#allocation146_spill] sm:$0xff] %v15317_v61  ;;  %v3335_v18 = vadd.f32 %v17395_v9, %v12307_v43  ;;  %v17411_v43 = vld [vmem:[#allocation47_spill] sm:$0xff]  ;;  %v17425_v9 = vld [vmem:[#allocation62_spill] sm:$0xff]  ;;  %v17480_v61 = vld [vmem:[#allocation104_spill] sm:$0xff] }
 0x25b   : > { %v12432_v4 = vpop.f32.mrf.mxu1 }
 0x25d   : > { %v12433_v21 = vpop.f32.mrf.mxu1 }
 0x25e   : > { %v12434_v27 = vadd.f32 %v12433_v21, %v12432_v4  ;;  %v17394_v21 = vld [vmem:[#allocation27_spill] sm:$0xff] }
 0x25f   : > { %v13102_v45 = vpop.f32.mrf.mxu0  ;;  %v15313_v44 = vpop.f32.mrf.mxu1  ;;  %v12223_v26 = vadd.f32 %v17394_v21, %v17393_v24  ;;  %v17424_v21 = vld [vmem:[#allocation60_spill] sm:$0xff] }
 0x260   : > { %v15319_v11 = vadd.f32 %v13102_v45, %v3621_v36  ;;  %v3629_v15 = vadd.f32 %v12434_v27, %v3324_v8  ;;  %v17401_v36 = vld [vmem:[#allocation29_spill] sm:$0xff]  ;;  %v17402_v27 = vld [vmem:[#allocation30_spill] sm:$0xff] }
 0x261   : > { %v3773_v13 = vpop.f32.mrf.mxu0  ;;  %v15325_v3 = vpop.f32.mrf.mxu1  ;;  %v15370_v5 = vadd.f32 %v17413_v62, %v12223_v26  ;;  %v17417_v8 = vld [vmem:[#allocation54_spill] sm:$0xff]  ;;  %v12256_v26 = vadd.f32 %v17425_v9, %v17424_v21  ;;  %v17444_v21 = vld [vmem:[#allocation41_spill] sm:$0xff] }
 0x262   : > { %17376 = vst [vmem:[#allocation147_spill] sm:$0xff] %v15319_v11  ;;  %v15321_v31 = vadd.f32 %v3773_v13, %v3613_v51  ;;  %v15355_v13 = vadd.f32 %v17400_v37, %v12220_v60  ;;  %v12226_v51 = vadd.f32 %v17402_v27, %v17401_v36  ;;  %v17420_v60 = vld [vmem:[#allocation55_spill] sm:$0xff]  ;;  %v17429_v37 = vld [vmem:[#allocation28_spill] sm:$0xff]  ;;  %v17476_v11 = vld [vmem:[#allocation98_spill] sm:$0xff] }
 0x263   : > { %v13103_v29 = vpop.f32.mrf.mxu0  ;;  %v17430_v27 = vld [vmem:[#allocation68_spill] sm:$0xff] }
 0x264   : > { %17377 = vst [vmem:[#allocation148_spill] sm:$0xff] %v15321_v31  ;;  %v15323_v53 = vadd.f32 %v13103_v29, %v3624_v46  ;;  %v17403_v46 = vld [vmem:[#allocation33_spill] sm:$0xff]  ;;  %v17404_v29 = vld [vmem:[#allocation35_spill] sm:$0xff]  ;;  %v15389_v47 = vadd.f32 %v12226_v51, %v17428_v40  ;;  %v17437_v51 = vld [vmem:[#allocation36_spill] sm:$0xff] }
 0x265   : > { %v15331_v59 = vpop.f32.mrf.mxu0  ;;  %v12229_v32 = vadd.f32 %v17404_v29, %v17403_v46  ;;  %v17431_v46 = vld [vmem:[#allocation70_spill] sm:$0xff]  ;;  %v17478_v31 = vld [vmem:[#allocation100_spill] sm:$0xff] }
 0x266   : > { %17378 = vst [vmem:[#allocation149_spill] sm:$0xff] %v15323_v53  ;;  %v12262_v29 = vadd.f32 %v17431_v46, %v17430_v27  ;;  %v17449_v27 = vld [vmem:[#allocation51_spill] sm:$0xff]  ;;  %v17473_v53 = vld [vmem:[#allocation61_spill] sm:$0xff] }
 0x267   : > { %v15392_v36 = vadd.f32 %v12229_v32, %v17429_v37  ;;  %v17438_v32 = vld [vmem:[#allocation31_spill] sm:$0xff] }
 0x268   : > { %v15409_v30 = vadd.f32 %v17438_v32, %v12244_v56  ;;  %v17447_v56 = vld [vmem:[#allocation43_spill] sm:$0xff]  ;;  %v17454_v32 = vld [vmem:[#allocation77_spill] sm:$0xff] }
 0x269   : > { %v12438_v0 = vpop.f32.mrf.mxu1 }
 0x26b   : > { %v12439_v16 = vpop.f32.mrf.mxu1 }
 0x26c   : > { %v12440_v55 = vadd.f32 %v12439_v16, %v12438_v0  ;;  %v17407_v0 = vld [vmem:[#allocation40_spill] sm:$0xff]  ;;  %v17408_v16 = vld [vmem:[#allocation42_spill] sm:$0xff] }
 0x26d   : > { %v12441_v4 = vpop.f32.mrf.mxu1  ;;  %v12235_v10 = vadd.f32 %v17408_v16, %v17407_v0  ;;  %v17434_v0 = vld [vmem:[#allocation23_spill] sm:$0xff] }
 0x26e   : > { %v13106_v2 = vpop.f32.mrf.mxu0  ;;  %v3637_v39 = vadd.f32 %v12440_v55, %v3332_v17  ;;  %v17409_v17 = vld [vmem:[#allocation44_spill] sm:$0xff]  ;;  %v17412_v55 = vld [vmem:[#allocation49_spill] sm:$0xff]  ;;  %v3236_v16 = vadd.f32 %v17434_v0, %v12232_v57 }
 0x26f   : > { %v12442_v58 = vpop.f32.mrf.mxu1  ;;  %v12238_v54 = vadd.f32 %v17410_v19, %v17409_v17  ;;  %v12241_v38 = vadd.f32 %v17412_v55, %v17411_v43  ;;  %v17435_v17 = vld [vmem:[#allocation26_spill] sm:$0xff]  ;;  %v17436_v43 = vld [vmem:[#allocation32_spill] sm:$0xff]  ;;  %v17443_v57 = vld [vmem:[#allocation85_spill] sm:$0xff] }
 0x270   : > { %v15346_v28 = vadd.f32 %v13106_v2, %v3637_v39  ;;  %v3789_v20 = vpop.f32.mrf.mxu0  ;;  %v12443_v45 = vadd.f32 %v12442_v58, %v12441_v4  ;;  %v12247_v4 = vadd.f32 %v17417_v8, %v17416_v7  ;;  %v17421_v2 = vld [vmem:[#allocation57_spill] sm:$0xff]  ;;  %v17423_v58 = vld [vmem:[#allocation59_spill] sm:$0xff]  ;;  %v15400_v19 = vadd.f32 %v17435_v17, %v12235_v10  ;;  %v17440_v8 = vld [vmem:[#allocation72_spill] sm:$0xff] }
 0x271   : > { %v15352_v42 = vadd.f32 %v3789_v20, %v3629_v15  ;;  %v12250_v39 = vadd.f32 %v17421_v2, %v17420_v60  ;;  %v17422_v15 = vld [vmem:[#allocation58_spill] sm:$0xff]  ;;  %v17427_v20 = vld [vmem:[#allocation65_spill] sm:$0xff]  ;;  %v15403_v55 = vadd.f32 %v12238_v54, %v17436_v43  ;;  %v15406_v62 = vadd.f32 %v12241_v38, %v17437_v51  ;;  %v17446_v38 = vld [vmem:[#allocation39_spill] sm:$0xff] }
 0x272   : > { %17396 = vst [vmem:[#allocation109_spill] sm:$0xff] %v15346_v28  ;;  %v13107_v33 = vpop.f32.mrf.mxu0  ;;  %v3640_v50 = vadd.f32 %v12443_v45, %v3335_v18  ;;  %v12253_v24 = vadd.f32 %v17423_v58, %v17422_v15  ;;  %v17426_v18 = vld [vmem:[#allocation63_spill] sm:$0xff]  ;;  %v15412_v7 = vadd.f32 %v17439_v63, %v12247_v4  ;;  %v17441_v60 = vld [vmem:[#allocation73_spill] sm:$0xff]  ;;  %v17442_v15 = vld [vmem:[#allocation82_spill] sm:$0xff] }
 0x273   : > { %17399 = vst [vmem:[#allocation111_spill] sm:$0xff] %v15352_v42  ;;  %v12259_v45 = vadd.f32 %v17427_v20, %v17426_v18  ;;  %v12350_v2 = vadd.f32 %v17441_v60, %v17440_v8  ;;  %v12277_v58 = vadd.f32 %v17443_v57, %v17442_v15  ;;  %v15419_v9 = vadd.f32 %v12250_v39, %v17444_v21  ;;  %v17445_v54 = vld [vmem:[#allocation45_spill] sm:$0xff]  ;;  %v17448_v4 = vld [vmem:[#allocation48_spill] sm:$0xff]  ;;  %v17452_v43 = vld [vmem:[#allocation75_spill] sm:$0xff] }
 0x274   : > { %v15376_v14 = vadd.f32 %v13107_v33, %v3640_v50  ;;  %v15378_v52 = vpop.f32.mrf.mxu0  ;;  %v17432_v33 = vld [vmem:[#allocation71_spill] sm:$0xff]  ;;  %v17433_v50 = vld [vmem:[#allocation74_spill] sm:$0xff]  ;;  %v15422_v18 = vadd.f32 %v12253_v24, %v17445_v54  ;;  %v15425_v20 = vadd.f32 %v17446_v38, %v12256_v26  ;;  %v15431_v37 = vadd.f32 %v12262_v29, %v17448_v4  ;;  %v17453_v24 = vld [vmem:[#allocation76_spill] sm:$0xff] }
 0x275   : > { %17419 = vst [vmem:[#allocation102_spill] sm:$0xff] %v15378_v52  ;;  %v12265_v25 = vadd.f32 %v17433_v50, %v17432_v33  ;;  %v15428_v40 = vadd.f32 %v17447_v56, %v12259_v45  ;;  %v17450_v33 = vld [vmem:[#allocation92_spill] sm:$0xff]  ;;  %v17451_v50 = vld [vmem:[#allocation94_spill] sm:$0xff]  ;;  %v12353_v51 = vadd.f32 %v17453_v24, %v17452_v43  ;;  %v17456_v8 = vld [vmem:[#allocation79_spill] sm:$0xff] }
 0x276   : > { %17418 = vst [vmem:[#allocation101_spill] sm:$0xff] %v15376_v14  ;;  %v12484_v35 = vpop.f32.mrf.mxu0  ;;  %v12289_v0 = vadd.f32 %v17451_v50, %v17450_v33  ;;  %v17455_v26 = vld [vmem:[#allocation78_spill] sm:$0xff]  ;;  %v17457_v45 = vld [vmem:[#allocation80_spill] sm:$0xff]  ;;  %v17458_v15 = vld [vmem:[#allocation81_spill] sm:$0xff]  ;;  %v3517_v33 = vadd.f32 %v12350_v2, %v3212_v6 }
 0x277   : > { %v15434_v46 = vadd.f32 %v12265_v25, %v17449_v27  ;;  %v12356_v63 = vadd.f32 %v17455_v26, %v17454_v32  ;;  %v12359_v60 = vadd.f32 %v17457_v45, %v17456_v8  ;;  %v17459_v29 = vld [vmem:[#allocation83_spill] sm:$0xff]  ;;  %v17460_v25 = vld [vmem:[#allocation56_spill] sm:$0xff]  ;;  %v17462_v56 = vld [vmem:[#allocation86_spill] sm:$0xff] }
 0x278   : > { %v12485_v10 = vpop.f32.mrf.mxu0  ;;  %v12362_v57 = vadd.f32 %v17459_v29, %v17458_v15  ;;  %v15447_v54 = vadd.f32 %v12277_v58, %v17460_v25  ;;  %v17461_v38 = vld [vmem:[#allocation84_spill] sm:$0xff]  ;;  %v17464_v4 = vld [vmem:[#allocation107_spill] sm:$0xff]  ;;  %v17467_v26 = vld [vmem:[#allocation89_spill] sm:$0xff] }
 0x279   : > { %v12486_v39 = vadd.f32 %v12485_v10, %v12484_v35  ;;  %v12365_v35 = vadd.f32 %v17462_v56, %v17461_v38  ;;  %v17463_v10 = vld [vmem:[#allocation105_spill] sm:$0xff]  ;;  %v17465_v43 = vld [vmem:[#allocation87_spill] sm:$0xff]  ;;  %v17466_v24 = vld [vmem:[#allocation88_spill] sm:$0xff]  ;;  %v15462_v38 = vadd.f32 %v12289_v0, %v17473_v53  ;;  %v3528_v22 = vadd.f32 %v12359_v60, %v15370_v5 }
 0x27a   : > { %v12487_v17 = vpop.f32.mrf.mxu0  ;;  %v12301_v27 = vadd.f32 %v17464_v4, %v17463_v10  ;;  %v12368_v32 = vadd.f32 %v17466_v24, %v17465_v43  ;;  %v17468_v8 = vld [vmem:[#allocation90_spill] sm:$0xff]  ;;  %v17469_v14 = vld [vmem:[#allocation91_spill] sm:$0xff]  ;;  %v17470_v15 = vld [vmem:[#allocation93_spill] sm:$0xff]  ;;  %v3533_v5 = vadd.f32 %v12362_v57, %v15389_v47 }
 0x27b   : > { %v13126_v21 = vpop.f32.mrf.mxu1  ;;  %v12371_v45 = vadd.f32 %v17468_v8, %v17467_v26  ;;  %v12374_v29 = vadd.f32 %v17470_v15, %v17469_v14  ;;  %v17471_v28 = vld [vmem:[#allocation95_spill] sm:$0xff]  ;;  %v17472_v58 = vld [vmem:[#allocation96_spill] sm:$0xff]  ;;  %v17474_v56 = vld [vmem:[#allocation121_spill] sm:$0xff] }
 0x27c   : > { %v12488_v50 = vpop.f32.mrf.mxu0  ;;  %v12377_v25 = vadd.f32 %v17472_v58, %v17471_v28  ;;  %v3678_v10 = vadd.f32 %v17474_v56, %v3517_v33  ;;  %v17475_v4 = vld [vmem:[#allocation97_spill] sm:$0xff]  ;;  %v17477_v24 = vld [vmem:[#allocation99_spill] sm:$0xff]  ;;  %v17481_v15 = vld [vmem:[#allocation106_spill] sm:$0xff] }
 0x27d   : > { %v5361_v42 = vpop.f32.mrf.mxu1  ;;  %v12489_v2 = vadd.f32 %v12488_v50, %v12487_v17  ;;  %v12380_v43 = vadd.f32 %v17476_v11, %v17475_v4  ;;  %v12383_v26 = vadd.f32 %v17478_v31, %v17477_v24  ;;  %v17479_v8 = vld [vmem:[#allocation103_spill] sm:$0xff]  ;;  %v15473_v28 = vadd.f32 %v17482_v49, %v17481_v15  ;;  %v15478_v53 = vld [vmem:[%s17216_s3] ss:$0 sm:$0xff]  ;;  %v17484_v11 = vld [vmem:[#allocation110_spill] sm:$0xff] }
 0x27e   : > { %v5362_v6 = vadd.f32 %v12486_v39, %v5361_v42  ;;  %v12386_v14 = vadd.f32 %v17480_v61, %v17479_v8  ;;  %v17483_v0 = vld [vmem:[#allocation69_spill] sm:$0xff]  ;;  %v17485_v17 = vld [vmem:[#allocation112_spill] sm:$0xff]  ;;  %v3520_v31 = vadd.f32 %v12353_v51, %v15350_v34  ;;  %v17487_v56 = vld [vmem:[#allocation115_spill] sm:$0xff]  ;;  %v3525_v4 = vadd.f32 %v12356_v63, %v15355_v13 }
 0x27f   : > { %v13127_v42 = vpop.f32.mrf.mxu1  ;;  %v15481_v39 = vadd.f32 %v12301_v27, %v17483_v0  ;;  %v12392_v33 = vadd.f32 %v17485_v17, %v17484_v11  ;;  %v12490_v61 = vpop.f32.mrf.mxu0  ;;  %v17486_v58 = vld [vmem:[#allocation113_spill] sm:$0xff]  ;;  %v17488_v24 = vld [vmem:[#allocation116_spill] sm:$0xff]  ;;  %v17489_v8 = vld [vmem:[#allocation118_spill] sm:$0xff]  ;;  %v3541_v51 = vadd.f32 %v12368_v32, %v3236_v16  ;;  %v3557_v47 = vadd.f32 %v12380_v43, %v15409_v30 }
 0x280   : > { %v5488_v50 = vadd.f32 %v5362_v6, %v3678_v10  ;;  %v12395_v49 = vadd.f32 %v17487_v56, %v17486_v58  ;;  %v12398_v15 = vadd.f32 %v17489_v8, %v17488_v24  ;;  %v15495_v27 = vld [vmem:[%s17217_s4] ss:$0 sm:$0xff]  ;;  %v17490_v11 = vld [vmem:[#allocation124_spill] sm:$0xff]  ;;  %v17491_v58 = vld [vmem:[#allocation119_spill] sm:$0xff]  ;;  %v3549_v57 = vadd.f32 %v12374_v29, %v15403_v55 }
 0x281   : > { %v5364_v0 = vpop.f32.mrf.mxu1  ;;  %v3681_v34 = vadd.f32 %v17490_v11, %v3520_v31  ;;  %v12491_v17 = vpop.f32.mrf.mxu0  ;;  %v3686_v13 = vadd.f32 %v17491_v58, %v3525_v4  ;;  %v17492_v63 = vld [vmem:[#allocation120_spill] sm:$0xff]  ;;  %v17493_v56 = vld [vmem:[#allocation123_spill] sm:$0xff]  ;;  %v17494_v8 = vld [vmem:[#allocation122_spill] sm:$0xff]  ;;  %v15505_v52 = vadd.f32 %v17495_v41, %v3541_v51  ;;  %v3544_v4 = vadd.f32 %v12371_v45, %v15400_v19 }
 0x282   : > { %v5527_v10 = vmul.f32 %v15478_v53, %v5488_v50  ;;  %v5365_v6 = vadd.f32 %v12489_v2, %v5364_v0  ;;  %v12401_v24 = vadd.f32 %v17493_v56, %v17492_v63  ;;  %v12492_v60 = vadd.f32 %v12491_v17, %v12490_v61  ;;  %v17496_v50 = vld [vmem:[#allocation126_spill] sm:$0xff]  ;;  %v17497_v51 = vld [vmem:[#allocation127_spill] sm:$0xff]  ;;  %v17501_v45 = vld [vmem:[#allocation129_spill] sm:$0xff] }
 0x283   : > { %v3689_v1 = vadd.f32 %v17494_v8, %v3528_v22  ;;  %v12493_v32 = vpop.f32.mrf.mxu0  ;;  %v15509_v2 = vadd.f32 %v17496_v50, %v3533_v5  ;;  %v3536_v0 = vadd.f32 %v12365_v35, %v15392_v36  ;;  %v3560_v19 = vadd.f32 %v12383_v26, %v15412_v7  ;;  %v17499_v36 = vld [vmem:[#allocation130_spill] sm:$0xff]  ;;  %v17502_v43 = vld [vmem:[#allocation131_spill] sm:$0xff] }
 0x284   : > { %v5566_v31 = vadd.f32 %v15495_v27, %v5527_v10  ;;  %v5489_v16 = vadd.f32 %v5365_v6, %v3681_v34  ;;  %v5370_v11 = vadd.f32 %v13126_v21, %v12492_v60  ;;  %v15517_v10 = vadd.f32 %v17497_v51, %v3544_v4  ;;  %v17498_v34 = vld [vmem:[#allocation128_spill] sm:$0xff]  ;;  %v17500_v21 = vld [vmem:[#allocation133_spill] sm:$0xff] }
 0x285   : > { %v12494_v61 = vpop.f32.mrf.mxu0  ;;  %v15520_v6 = vadd.f32 %v17498_v34, %v3536_v0  ;;  %v12413_v35 = vadd.f32 %v17500_v21, %v17499_v36  ;;  %v15527_v29 = vadd.f32 %v17501_v45, %v3557_v47  ;;  %v15530_v63 = vadd.f32 %v17502_v43, %v3549_v57  ;;  %v17503_v60 = vld [vmem:[#allocation132_spill] sm:$0xff]  ;;  %v17505_v47 = vld [vmem:[#allocation135_spill] sm:$0xff]  ;;  %v17510_v36 = vld [vmem:[#allocation141_spill] sm:$0xff] }
 0x286   : > { %v5598_v22 = vmax.f32 %v5566_v31, 0.0  ;;  %v5528_v41 = vmul.f32 %v15478_v53, %v5489_v16  ;;  %v5490_v17 = vadd.f32 %v5370_v11, %v3686_v13  ;;  %v12495_v58 = vadd.f32 %v12494_v61, %v12493_v32  ;;  %v15543_v0 = vld [vmem:[#allocation2 + $0x1c] ss:$0 sps:$4 sm:$0x11]  }
 0x287   : > { %v15534_v13 = vadd.f32 %v17503_v60, %v3560_v19  ;;  %v3552_v7 = vadd.f32 %v12377_v25, %v15406_v62  ;;  %v3573_v26 = vadd.f32 %v12392_v33, %v15425_v20  ;;  %v3565_v16 = vadd.f32 %v12386_v14, %v15419_v9  ;;  %v15558_v33 = vld [vmem:[#allocation2 + $0x2c] ss:$0 sps:$4 sm:$0x11]   ;;  %v15568_v61 = vld [vmem:[#allocation2 + $0x3c] ss:$0 sps:$4 sm:$0x11]  }
 0x288   : > { %v11957_v30 = vpack.c.bf16 %v5598_v22, %v5598_v22  ;;  %v5567_v55 = vadd.f32 %v15495_v27, %v5528_v41  ;;  %v5529_v56 = vmul.f32 %v15478_v53, %v5490_v17  ;;  %v5373_v5 = vadd.f32 %v13127_v42, %v12495_v58  ;;  %v15538_v31 = vpop.f32.mrf.mxu1  ;;  %v17504_v42 = vld [vmem:[#allocation134_spill] sm:$0xff]  ;;  %v17507_v22 = vld [vmem:[#allocation137_spill] sm:$0xff]  ;;  %v7006_v58 = vld [vmem:[#allocation2 + $0x10] sm:$0x8] }
 0x289   : > { %v3576_v32 = vadd.f32 %v12395_v49, %v15428_v40  ;;  %v15546_v11 = vadd.f32 %v17504_v42, %v3552_v7  ;;  %v15549_v62 = vadd.f32 %v17505_v47, %v3573_v26  ;;  %v12425_v20 = vadd.f32 %v15258_v48, %v15251_v23  ;;  %v17506_v49 = vld [vmem:[#allocation136_spill] sm:$0xff]  ;;  %v15595_v7 = vld [vmem:[#allocation2 + $0x8c] ss:$0 sps:$4 sm:$0x11]  }
 0x28a   : > { %5758 = vst [vmem:[#allocation2 + $0x14] sm:$0xf] %v11957_v30  ;;  %v5599_v8 = vmax.f32 %v5567_v55, 0.0  ;;  %v5568_v50 = vadd.f32 %v15495_v27, %v5529_v56  ;;  %v5491_v4 = vadd.f32 %v5373_v5, %v3689_v1  ;;  %v3568_v9 = vadd.f32 %v15473_v28, %v15422_v18  ;;  %v5377_v18 = vpop.f32.mrf.mxu1  ;;  %v15575_v19 = vld [vmem:[#allocation2 + $0x5c] ss:$0 sps:$4 sm:$0x11]  }
 0x28b   : > { %v12437_v40 = vadd.f32 %v15325_v3, %v15313_v44  ;;  %v15561_v57 = vadd.f32 %v17506_v49, %v3565_v16  ;;  %v15564_v41 = vadd.f32 %v17507_v22, %v3576_v32  ;;  %v3581_v48 = vadd.f32 %v12398_v15, %v15431_v37  ;;  %v15570_v44 = vld [vmem:[#allocation2 + $0x4c] ss:$0 sps:$4 sm:$0x11]   ;;  %v17508_v37 = vld [vmem:[#allocation139_spill] sm:$0xff] }
 0x28c   : > { %v11958_v25 = vpack.c.bf16 %v5599_v8, %v5599_v8  ;;  %v5600_v14 = vmax.f32 %v5568_v50, 0.0  ;;  %v5530_v1 = vmul.f32 %v15478_v53, %v5491_v4  ;;  %v3584_v23 = vadd.f32 %v12401_v24, %v15434_v46  ;;  %v17509_v46 = vld [vmem:[#allocation140_spill] sm:$0xff]  ;;  %v17511_v47 = vld [vmem:[#allocation102_spill] sm:$0xff] }
 0x28d   : > { %v12496_v28 = vpop.f32.mrf.mxu0  ;;  %v3600_v3 = vadd.f32 %v12413_v35, %v15447_v54  ;;  %v7391_v17 = vrot.slane %v15543_v0, 5  ;;  %v15578_v15 = vadd.f32 %v17508_v37, %v3568_v9  ;;  %v15581_v24 = vadd.f32 %v17509_v46, %v3581_v48  ;;  %v15587_v35 = vld [vmem:[#allocation2 + $0x6c] ss:$0 sps:$4 sm:$0x11]  }
 0x28e   : > { %5759 = vst [vmem:[#allocation2 + $0x18] sm:$0xf] %v11958_v25  ;;  %v11959_v51 = vpack.c.bf16 %v5600_v14, %v5600_v14  ;;  %v5569_v34 = vadd.f32 %v15495_v27, %v5530_v1  ;;  %v15584_v21 = vadd.f32 %v17510_v36, %v3584_v23  ;;  %v3616_v30 = vadd.f32 %v12425_v20, %v15462_v38  ;;  %v15589_v55 = vld [vmem:[#allocation2 + $0x7c] ss:$0 sps:$4 sm:$0x11]   ;;  %v15600_v38 = vpop.f32.mrf.mxu1 }
 0x28f   : > { %v12497_v54 = vpop.f32.mrf.mxu0  ;;  %v15592_v45 = vadd.f32 %v15286_v12, %v3600_v3  ;;  %v3632_v43 = vadd.f32 %v12437_v40, %v15481_v39  ;;  %v7394_v32 = vrot.slane %v15558_v33, 5  ;;  %v7397_v12 = vrot.slane %v15568_v61, 5  ;;  %v15606_v42 = vld [vmem:[#allocation2 + $0x9c] ss:$0 sps:$4 sm:$0x11]  }
 0x290   : > { %5760 = vst [vmem:[#allocation2 + $0x24] sm:$0xf] %v11959_v51  ;;  %v5601_v56 = vmax.f32 %v5569_v34, 0.0  ;;  %v12498_v5 = vadd.f32 %v12497_v54, %v12496_v28  ;;  %v15598_v26 = vadd.f32 %v15331_v59, %v3616_v30  ;;  %v7400_v39 = vrot.slane %v15570_v44, 5  ;;  %v5380_v23 = vpop.f32.mrf.mxu1 }
 0x291   : > { %v7007_v60 = vld [vmem:[#allocation2 + $0x14] sm:$0xf]  ;;  %v12499_v8 = vpop.f32.mrf.mxu0  ;;  %v7403_v0 = vrot.slane %v15575_v19, 5  ;;  %v15609_v20 = vadd.f32 %v17511_v47, %v3632_v43  ;;  %v7406_v40 = vrot.slane %v15587_v35, 5  ;;  %v7409_v22 = vrot.slane %v15589_v55, 5 }
 0x292   : > { %v11717_v16 = vcombine.low %v7006_v58, %v7007_v60  ;;  %v11960_v50 = vpack.c.bf16 %v5601_v56, %v5601_v56  ;;  %v5378_v4 = vadd.f32 %v12498_v5, %v5377_v18  ;;  %v5795_v34 = vld [vmem:[#allocation2 + $0x14] sm:$0xf] }
 0x293   : > { %v12500_v59 = vpop.f32.mrf.mxu0 }
 0x294   : > { %v7439_v25 = vshrl.u32 %v11717_v16, 16  ;;  %v7442_v9 = vshll.u32 %v11717_v16, 16  ;;  %5761 = vst [vmem:[#allocation2 + $0x28] sm:$0xf] %v11960_v50  ;;  %v5492_v14 = vadd.f32 %v5378_v4, %v15509_v2  ;;  %v12501_v1 = vadd.f32 %v12500_v59, %v12499_v8 }
 0x295   : > { %v7008_v49 = vld [vmem:[#allocation2 + $0x18] sm:$0xf]  ;;  %v12502_v36 = vpop.f32.mrf.mxu0 }
 0x296   : > { %v11749_v18 = vcombine.low %v7007_v60, %v7008_v49  ;;  %v11718_v28 = vcombine.low %v7008_v49, %v7008_v49  ;;  %v15615_v3 = vrot.slane %v7439_v25, 3  ;;  %v15617_v51 = vrot.slane %v7442_v9, 4  ;;  %v5796_v58 = vld [vmem:[#allocation2 + $0x18] sm:$0xf] }
 0x297   : > { %v5531_v37 = vmul.f32 %v15478_v53, %v5492_v14  ;;  %v5381_v46 = vadd.f32 %v12501_v1, %v5380_v23  ;;  %v15621_v30 = vcombine.low %v5795_v34, %v5796_v58  ;;  %v12503_v16 = vpop.f32.mrf.mxu0  ;;  %v7011_v48 = vld [vmem:[#allocation2 + $0x24] sm:$0xf] }
 0x298   : > { %v7390_v54 = vrot.slane %v11749_v18, 5  ;;  %v7215_v43 = vshrl.u32 %v11749_v18, 16  ;;  %v7218_v56 = vshll.u32 %v11749_v18, 16  ;;  %v7445_v5 = vor.u32 %v15617_v51, %v15615_v3 }
 0x299   : > { %v5570_v60 = vadd.f32 %v15495_v27, %v5531_v37  ;;  %v5493_v8 = vadd.f32 %v5381_v46, %v15520_v6  ;;  %v7447_v50 = vshrl.u32 %v11718_v28, 16  ;;  %v7450_v4 = vshll.u32 %v11718_v28, 16  ;;  %v12505_v49 = vpop.f32.mrf.mxu0  ;;  %v13699_v6 = vld [vmem:[#allocation8 + $0x78] sm:$0xff]  }
 0x29a   : > { %v12504_v47 = vadd.f32 %v12503_v16, %v12502_v36  ;;  %v7392_v59 = vsel %vm821_vm0, %v7390_v54, %v7391_v17  ;;  %v7465_v25 = vshrl.u32 %v7390_v54, 16  ;;  %v7468_v9 = vshll.u32 %v7390_v54, 16  ;;  %12740 = vmatprep.subr.bf16.mxu0 %v13699_v6 }
 0x29b   : > { %v5602_v14 = vmax.f32 %v5570_v60, 0.0  ;;  %v5532_v1 = vmul.f32 %v15478_v53, %v5493_v8  ;;  %v7473_v23 = vshrl.u32 %v7392_v59, 16  ;;  %v7476_v18 = vshll.u32 %v7392_v59, 16  ;;  %v12506_v46 = vpop.f32.mrf.mxu0  ;;  %v7012_v16 = vld [vmem:[#allocation2 + $0x28] sm:$0xf] }
 0x29c   : > { %v5386_v3 = vadd.f32 %v15538_v31, %v12504_v47  ;;  %v7467_v51 = vrot.slane %v7465_v25, 3  ;;  %v7470_v34 = vrot.slane %v7468_v9, 4  ;;  %v7217_v58 = vrot.slane %v7215_v43, 4  ;;  %v7010_v59 = vld [vmem:[#allocation2 + $0x20] sm:$0x8]  ;;  %v15632_v47 = vpop.f32.mrf.mxu1 }
 0x29d   : > { %v11961_v37 = vpack.c.bf16 %v5602_v14, %v5602_v14  ;;  %v5571_v28 = vadd.f32 %v15495_v27, %v5532_v1  ;;  %v7475_v36 = vrot.slane %v7473_v23, 3  ;;  %v7478_v17 = vrot.slane %v7476_v18, 4 }
 0x29e   : > { %v5494_v54 = vadd.f32 %v5386_v3, %v15505_v52  ;;  %v12507_v60 = vadd.f32 %v12506_v46, %v12505_v49  ;;  %v7471_v8 = vor.u32 %v7470_v34, %v7467_v51  ;;  %v7220_v2 = vrot.slane %v7218_v56, 5 }
 0x29f   : > { %5762 = vst [vmem:[#allocation2 + $0x34] sm:$0xf] %v11961_v37  ;;  %v5603_v31 = vmax.f32 %v5571_v28, 0.0  ;;  %v7479_v43 = vor.u32 %v7478_v17, %v7475_v36  ;;  %v7449_v25 = vrot.slane %v7447_v50, 3  ;;  %v7452_v9 = vrot.slane %v7450_v4, 4  ;;  %v5393_v4 = vpop.f32.mrf.mxu1 }
 0x2a0   : > { %v5533_v14 = vmul.f32 %v15478_v53, %v5494_v54  ;;  %v5389_v1 = vadd.f32 %v15600_v38, %v12507_v60  ;;  %v7221_v23 = vor.u32 %v7220_v2, %v7217_v58  ;;  %v11750_v18 = vcombine.low %v7011_v48, %v7012_v16  ;;  %v12508_v37 = vpop.f32.mrf.mxu0 }
 0x2a1   : > { %v11962_v52 = vpack.c.bf16 %v5603_v31, %v5603_v31  ;;  %v7480_v49 = vsel %vm870_vm1, %v7471_v8, %v7479_v43  ;;  %v7453_v56 = vor.u32 %v7452_v9, %v7449_v25  ;;  %v15637_v3 = vcombine.low %v7010_v59, %v7011_v48  ;;  %v15647_v9 = vpop.f32.mrf.mxu1 }
 0x2a2   : > { %v5572_v51 = vadd.f32 %v15495_v27, %v5533_v14  ;;  %v5495_v34 = vadd.f32 %v5389_v1, %v15517_v10  ;;  %13172 = vmatprep.mubr.bf16.mxu0 %v7480_v49  ;;  %v7456_v6 = vshrl.u32 %v7221_v23, 16  ;;  %v7459_v50 = vshll.u32 %v7221_v23, 16  ;;  %v12509_v54 = vpop.f32.mrf.mxu0  ;;  %v13671_v49 = vld [vmem:[#allocation8 + $0xb0] sm:$0xff]  }
 0x2a3   : > { %5763 = vst [vmem:[#allocation2 + $0x38] sm:$0xf] %v11962_v52  ;;  %v7454_v38 = vsel %vm870_vm1, %v7445_v5, %v7453_v56  ;;  %v7393_v2 = vrot.slane %v11750_v18, 5  ;;  %v7223_v58 = vshrl.u32 %v11750_v18, 16  ;;  %v7226_v28 = vshll.u32 %v11750_v18, 16 }
 0x2a4   : > { %v5604_v46 = vmax.f32 %v5572_v51, 0.0  ;;  %v5534_v36 = vmul.f32 %v15478_v53, %v5495_v34  ;;  %v7458_v48 = vrot.slane %v7456_v6, 3  ;;  %v7461_v17 = vrot.slane %v7459_v50, 4  ;;  %v12511_v14 = vpop.f32.mrf.mxu0 }
 0x2a5   : > { %v7395_v10 = vsel %vm821_vm0, %v7393_v2, %v7394_v32  ;;  %v7508_v60 = vshrl.u32 %v7393_v2, 16  ;;  %v7511_v8 = vshll.u32 %v7393_v2, 16  ;;  %v7225_v59 = vrot.slane %v7223_v58, 4 }
 0x2a6   : > { %v11963_v31 = vpack.c.bf16 %v5604_v46, %v5604_v46  ;;  %v5573_v43 = vadd.f32 %v15495_v27, %v5534_v36  ;;  %v12510_v5 = vadd.f32 %v12509_v54, %v12508_v37  ;;  %v7462_v25 = vor.u32 %v7461_v17, %v7458_v48  ;;  %v12512_v34 = vpop.f32.mrf.mxu0  ;;  %v17512_v48 = vld [vmem:[#allocation138_spill] sm:$0xff]  ;;  %v5396_v54 = vpop.f32.mrf.mxu1 }
 0x2a7   : > { %v7510_v1 = vrot.slane %v7508_v60, 3  ;;  %v7513_v23 = vrot.slane %v7511_v8, 4  ;;  %v7516_v18 = vshrl.u32 %v7395_v10, 16  ;;  %v7519_v52 = vshll.u32 %v7395_v10, 16  ;;  %v7014_v60 = vld [vmem:[#allocation2 + $0x30] sm:$0x8] }
 0x2a8   : > { %5764 = vst [vmem:[#allocation2 + $0x44] sm:$0xf] %v11963_v31  ;;  %v5605_v33 = vmax.f32 %v5573_v43, 0.0  ;;  %v5394_v56 = vadd.f32 %v12510_v5, %v5393_v4  ;;  %8399 = vmatprep.mubr.bf16.mxu1 %v7462_v25  ;;  %v7228_v32 = vrot.slane %v7226_v28, 5  ;;  %v11720_v51 = vcombine.low %v7012_v16, %v7012_v16  ;;  %v13700_v8 = vld [vmem:[#allocation8 + $0x38] sm:$0xff]   ;;  %v12514_v5 = vpop.f32.mrf.mxu0 }
 0x2a9   : > { %8400 = vmatmul.mubr.bf16.vlgmr.msra.gmra.mxu1 %v7454_v38  ;;  %v7514_v6 = vor.u32 %v7513_v23, %v7510_v1  ;;  %v7518_v50 = vrot.slane %v7516_v18, 3  ;;  %v7521_v37 = vrot.slane %v7519_v52, 4  ;;  %v7482_v2 = vshrl.u32 %v15637_v3, 16  ;;  %v13680_v38 = vld [vmem:[#allocation8 + $0xa8] sm:$0xff]   ;;  %v13705_v1 = vld [vmem:[#allocation8 + $0x70] sm:$0xff]  }
 0x2aa   : > { %v11964_v58 = vpack.c.bf16 %v5605_v33, %v5605_v33  ;;  %v5496_v46 = vadd.f32 %v5394_v56, %v15530_v63  ;;  %v12513_v36 = vadd.f32 %v12512_v34, %v12511_v14  ;;  %13205 = vmatpush3.bf16.msra.mxu1 %v17512_v48  ;;  %v7229_v17 = vor.u32 %v7228_v32, %v7225_v59  ;;  %v7016_v14 = vld [vmem:[#allocation2 + $0x38] sm:$0xf]  ;;  %v12515_v32 = vpop.f32.mrf.mxu0 }
 0x2ab   : > { %v7522_v10 = vor.u32 %v7521_v37, %v7518_v50  ;;  %v7484_v4 = vrot.slane %v7482_v2, 3  ;;  %v7485_v28 = vshll.u32 %v15637_v3, 16  ;;  %v7490_v16 = vshrl.u32 %v11720_v51, 16  ;;  %13206 = vmatprep.subr.bf16.mxu1 %v13671_v49  ;;  %v7015_v3 = vld [vmem:[#allocation2 + $0x34] sm:$0xf] }
 0x2ac   : > { %5765 = vst [vmem:[#allocation2 + $0x48] sm:$0xf] %v11964_v58  ;;  %v5535_v31 = vmul.f32 %v15478_v53, %v5496_v46  ;;  %v5397_v43 = vadd.f32 %v12513_v36, %v5396_v54  ;;  %v7499_v63 = vshrl.u32 %v7229_v17, 16  ;;  %v7502_v25 = vshll.u32 %v7229_v17, 16  ;;  %v13689_v36 = vld [vmem:[#allocation8 + $0xa0] sm:$0xff]   ;;  %v12517_v48 = vpop.f32.mrf.mxu0 }
 0x2ad   : > { %v7523_v59 = vsel %vm870_vm1, %v7514_v6, %v7522_v10  ;;  %v7487_v23 = vrot.slane %v7485_v28, 4  ;;  %v7492_v18 = vrot.slane %v7490_v16, 3  ;;  %v7493_v52 = vshll.u32 %v11720_v51, 16 }
 0x2ae   : > { %v5574_v33 = vadd.f32 %v15495_v27, %v5535_v31  ;;  %v5497_v56 = vadd.f32 %v5397_v43, %v15546_v11  ;;  %13173 = vmatmul.mubr.bf16.vlgmr.msra.gmra.mxu0 %v7523_v59  ;;  %v7501_v34 = vrot.slane %v7499_v63, 3  ;;  %v7504_v50 = vrot.slane %v7502_v25, 4  ;;  %13207 = vmatpush3.bf16.msra.mxu1 %v13671_v49  ;;  %v13706_v11 = vld [vmem:[#allocation8 + $0x30] sm:$0xff]   ;;  %v12518_v43 = vpop.f32.mrf.mxu0 }
 0x2af   : > { %v12516_v37 = vadd.f32 %v12515_v32, %v12514_v5  ;;  %v7488_v2 = vor.u32 %v7487_v23, %v7484_v4  ;;  %v7495_v58 = vrot.slane %v7493_v52, 4  ;;  %v11751_v46 = vcombine.low %v7015_v3, %v7016_v14  ;;  %13208 = vmatprep.subr.bf16.mxu1 %v13680_v38  ;;  %12741 = vmatpush3.bf16.msra.mxu0 %v13700_v8 }
 0x2b0   : > { %v5606_v6 = vmax.f32 %v5574_v33, 0.0  ;;  %v5536_v51 = vmul.f32 %v15478_v53, %v5497_v56  ;;  %v7505_v17 = vor.u32 %v7504_v50, %v7501_v34  ;;  %v11721_v54 = vcombine.low %v7014_v60, %v7015_v3  ;;  %12742 = vmatprep.subr.bf16.mxu0 %v13705_v1  ;;  %v13698_v1 = vld [vmem:[#allocation8 + $0x98] sm:$0xff]   ;;  %v15667_v23 = vpop.f32.mrf.mxu1 }
 0x2b1   : > { %v5402_v10 = vadd.f32 %v15632_v47, %v12516_v37  ;;  %v7496_v28 = vor.u32 %v7495_v58, %v7492_v18  ;;  %v7396_v16 = vrot.slane %v11751_v46, 5  ;;  %v7231_v49 = vshrl.u32 %v11751_v46, 16  ;;  %v13711_v58 = vld [vmem:[#allocation8 + $0x90] sm:$0xff]  }
 0x2b2   : > { %v11965_v31 = vpack.c.bf16 %v5606_v6, %v5606_v6  ;;  %v5575_v4 = vadd.f32 %v15495_v27, %v5536_v51  ;;  %8407 = vmatprep.mubr.bf16.mxu1 %v7505_v17  ;;  %v7234_v5 = vshll.u32 %v11751_v46, 16  ;;  %v15660_v8 = vcombine.low %v7016_v14, %v7016_v14  ;;  %13209 = vmatpush3.bf16.msra.mxu1 %v13680_v38  ;;  %v13712_v46 = vld [vmem:[#allocation8 + $0x68] sm:$0xff]   ;;  %v5409_v51 = vpop.f32.mrf.mxu1 }
 0x2b3   : > { %v5498_v63 = vadd.f32 %v5402_v10, %v15527_v29  ;;  %v12519_v25 = vadd.f32 %v12518_v43, %v12517_v48  ;;  %v7497_v60 = vsel %vm870_vm1, %v7488_v2, %v7496_v28  ;;  %v7398_v47 = vsel %vm821_vm0, %v7396_v16, %v7397_v12  ;;  %13210 = vmatprep.subr.bf16.mxu1 %v13689_v36  ;;  %v13713_v6 = vld [vmem:[#allocation8 + $0x28] sm:$0xff]   ;;  %v7018_v28 = vld [vmem:[#allocation2 + $0x40] sm:$0x8] }
 0x2b4   : > { %5766 = vst [vmem:[#allocation2 + $0x54] sm:$0xf] %v11965_v31  ;;  %v5607_v59 = vmax.f32 %v5575_v4, 0.0  ;;  %8408 = vmatmul.mubr.bf16.gmra.mxu1 %v7497_v60  ;;  %v7551_v18 = vshrl.u32 %v7396_v16, 16  ;;  %v7554_v14 = vshll.u32 %v7396_v16, 16  ;;  %v7559_v52 = vshrl.u32 %v7398_v47, 16  ;;  %12743 = vmatpush3.bf16.msra.mxu0 %v13706_v11 }
 0x2b5   : > { %v5537_v29 = vmul.f32 %v15478_v53, %v5498_v63  ;;  %v5405_v38 = vadd.f32 %v15647_v9, %v12519_v25  ;;  %v7562_v3 = vshll.u32 %v7398_v47, 16  ;;  %v7233_v33 = vrot.slane %v7231_v49, 4  ;;  %v12520_v9 = vpop.f32.mrf.mxu0  ;;  %v7019_v31 = vld [vmem:[#allocation2 + $0x44] sm:$0xf]  ;;  %v7020_v4 = vld [vmem:[#allocation2 + $0x48] sm:$0xf]  ;;  %12744 = vmatprep.subr.bf16.mxu0 %v13712_v46 }
 0x2b6   : > { %v11966_v61 = vpack.c.bf16 %v5607_v59, %v5607_v59  ;;  %v7553_v56 = vrot.slane %v7551_v18, 3  ;;  %v7556_v12 = vrot.slane %v7554_v14, 4  ;;  %v7561_v32 = vrot.slane %v7559_v52, 3  ;;  %13211 = vmatpush3.bf16.msra.mxu1 %v13689_v36  ;;  %v13719_v47 = vld [vmem:[#allocation8 + $0x20] sm:$0xff]  }
 0x2b7   : > { %v5576_v34 = vadd.f32 %v15495_v27, %v5537_v29  ;;  %v5499_v50 = vadd.f32 %v5405_v38, %v15534_v13  ;;  %v7564_v37 = vrot.slane %v7562_v3, 4  ;;  %v7236_v2 = vrot.slane %v7234_v5, 5  ;;  %13212 = vmatprep.subr.bf16.mxu1 %v13698_v1  ;;  %v12521_v43 = vpop.f32.mrf.mxu0  ;;  %v15678_v29 = vpop.f32.mrf.mxu1 }
 0x2b8   : > { %5767 = vst [vmem:[#allocation2 + $0x58] sm:$0xf] %v11966_v61  ;;  %v7557_v48 = vor.u32 %v7556_v12, %v7553_v56  ;;  %v7525_v17 = vshrl.u32 %v11721_v54, 16  ;;  %v7528_v11 = vshll.u32 %v11721_v54, 16  ;;  %v7533_v10 = vshrl.u32 %v15660_v8, 16  ;;  %12745 = vmatpush3.bf16.msra.mxu0 %v13713_v6  ;;  %v13718_v54 = vld [vmem:[#allocation8 + $0x60] sm:$0xff]  }
 0x2b9   : > { %v5608_v36 = vmax.f32 %v5576_v34, 0.0  ;;  %v5538_v16 = vmul.f32 %v15478_v53, %v5499_v50  ;;  %v7565_v49 = vor.u32 %v7564_v37, %v7561_v32  ;;  %v7237_v13 = vor.u32 %v7236_v2, %v7233_v33  ;;  %v12523_v38 = vpop.f32.mrf.mxu0  ;;  %12746 = vmatprep.subr.bf16.mxu0 %v13718_v54 }
 0x2ba   : > { %v7527_v5 = vrot.slane %v7525_v17, 3  ;;  %v7530_v63 = vrot.slane %v7528_v11, 4  ;;  %v7535_v25 = vrot.slane %v7533_v10, 3  ;;  %v7536_v60 = vshll.u32 %v15660_v8, 16  ;;  %13213 = vmatpush3.bf16.msra.mxu1 %v13698_v1  ;;  %v5412_v11 = vpop.f32.mrf.mxu1 }
 0x2bb   : > { %v11967_v59 = vpack.c.bf16 %v5608_v36, %v5608_v36  ;;  %v5577_v18 = vadd.f32 %v15495_v27, %v5538_v16  ;;  %v12522_v14 = vadd.f32 %v12521_v43, %v12520_v9  ;;  %v7566_v52 = vsel %vm870_vm1, %v7557_v48, %v7565_v49  ;;  %13214 = vmatprep.subr.bf16.mxu1 %v13711_v58  ;;  %v12524_v34 = vpop.f32.mrf.mxu0 }
 0x2bc   : > { %13176 = vmatprep.mubr.bf16.mxu0 %v7566_v52  ;;  %v7542_v3 = vshrl.u32 %v7237_v13, 16  ;;  %v7545_v33 = vshll.u32 %v7237_v13, 16  ;;  %v7531_v61 = vor.u32 %v7530_v63, %v7527_v5  ;;  %v7538_v56 = vrot.slane %v7536_v60, 4  ;;  %12747 = vmatpush3.bf16.msra.mxu0 %v13719_v47 }
 0x2bd   : > { %5768 = vst [vmem:[#allocation2 + $0x64] sm:$0xf] %v11967_v59  ;;  %v5609_v8 = vmax.f32 %v5577_v18, 0.0  ;;  %v5410_v1 = vadd.f32 %v12522_v14, %v5409_v51  ;;  %v11752_v12 = vcombine.low %v7019_v31, %v7020_v4  ;;  %v15680_v32 = vcombine.low %v7018_v28, %v7019_v31  ;;  %v13724_v59 = vld [vmem:[#allocation8 + $0x88] sm:$0xff]   ;;  %v13725_v18 = vld [vmem:[#allocation8 + $0x58] sm:$0xff]  }
 0x2be   : > { %v7544_v50 = vrot.slane %v7542_v3, 3  ;;  %v7547_v37 = vrot.slane %v7545_v33, 4  ;;  %v7539_v2 = vor.u32 %v7538_v56, %v7535_v25  ;;  %v15682_v46 = vcombine.low %v7020_v4, %v7020_v4  ;;  %13215 = vmatpush3.bf16.msra.mxu1 %v13711_v58  ;;  %v12526_v13 = vpop.f32.mrf.mxu0  ;;  %v13726_v14 = vld [vmem:[#allocation8 + $0x18] sm:$0xff]   ;;  %12748 = vmatprep.subr.bf16.mxu0 %v13725_v18 }
 0x2bf   : > { %v11968_v6 = vpack.c.bf16 %v5609_v8, %v5609_v8  ;;  %v5500_v9 = vadd.f32 %v5410_v1, %v15561_v57  ;;  %v12525_v48 = vadd.f32 %v12524_v34, %v12523_v38  ;;  %v7399_v17 = vrot.slane %v11752_v12, 5  ;;  %13216 = vmatprep.subr.bf16.mxu1 %v13724_v59 }
 0x2c0   : > { %v7548_v10 = vor.u32 %v7547_v37, %v7544_v50  ;;  %v7540_v51 = vsel %vm870_vm1, %v7531_v61, %v7539_v2  ;;  %v7239_v36 = vshrl.u32 %v11752_v12, 16  ;;  %v7242_v28 = vshll.u32 %v11752_v12, 16  ;;  %v12527_v60 = vpop.f32.mrf.mxu0  ;;  %12749 = vmatpush3.bf16.msra.mxu0 %v13726_v14 }
 0x2c1   : > { %5769 = vst [vmem:[#allocation2 + $0x68] sm:$0xf] %v11968_v6  ;;  %v5539_v16 = vmul.f32 %v15478_v53, %v5500_v9  ;;  %v5413_v49 = vadd.f32 %v12525_v48, %v5412_v11  ;;  %v7401_v58 = vsel %vm821_vm0, %v7399_v17, %v7400_v39  ;;  %v7594_v31 = vshrl.u32 %v7399_v17, 16 }
 0x2c2   : > { %8415 = vmatprep.mubr.bf16.mxu1 %v7548_v10  ;;  %v7597_v57 = vshll.u32 %v7399_v17, 16  ;;  %v7602_v4 = vshrl.u32 %v7401_v58, 16  ;;  %v7605_v43 = vshll.u32 %v7401_v58, 16  ;;  %v7241_v5 = vrot.slane %v7239_v36, 4  ;;  %v12529_v61 = vpop.f32.mrf.mxu0  ;;  %13217 = vmatpush3.bf16.msra.mxu1 %v13724_v59 }
 0x2c3   : > { %v5578_v63 = vadd.f32 %v15495_v27, %v5539_v16  ;;  %v5501_v25 = vadd.f32 %v5413_v49, %v15578_v15  ;;  %8416 = vmatmul.mubr.bf16.gmra.mxu1 %v7540_v51  ;;  %v7596_v54 = vrot.slane %v7594_v31, 3  ;;  %v7244_v47 = vrot.slane %v7242_v28, 5  ;;  %v7024_v51 = vld [vmem:[#allocation2 + $0x58] sm:$0xf]  ;;  %v7023_v31 = vld [vmem:[#allocation2 + $0x54] sm:$0xf] }
 0x2c4   : > { %v12528_v44 = vadd.f32 %v12527_v60, %v12526_v13  ;;  %v7599_v52 = vrot.slane %v7597_v57, 4  ;;  %v7604_v39 = vrot.slane %v7602_v4, 3  ;;  %v7607_v38 = vrot.slane %v7605_v43, 4  ;;  %v12530_v2 = vpop.f32.mrf.mxu0  ;;  %v15699_v36 = vpop.f32.mrf.mxu1  ;;  %v7022_v57 = vld [vmem:[#allocation2 + $0x50] sm:$0x8] }
 0x2c5   : > { %v5610_v3 = vmax.f32 %v5578_v63, 0.0  ;;  %v5540_v33 = vmul.f32 %v15478_v53, %v5501_v25  ;;  %v7245_v56 = vor.u32 %v7244_v47, %v7241_v5  ;;  %v7568_v8 = vshrl.u32 %v15680_v32, 16 }
 0x2c6   : > { %v5418_v15 = vadd.f32 %v15667_v23, %v12528_v44  ;;  %v7600_v1 = vor.u32 %v7599_v52, %v7596_v54  ;;  %v7608_v12 = vor.u32 %v7607_v38, %v7604_v39  ;;  %v7571_v34 = vshll.u32 %v15680_v32, 16  ;;  %v5425_v59 = vpop.f32.mrf.mxu1 }
 0x2c7   : > { %v11969_v50 = vpack.c.bf16 %v5610_v3, %v5610_v3  ;;  %v5579_v37 = vadd.f32 %v15495_v27, %v5540_v33  ;;  %v7585_v6 = vshrl.u32 %v7245_v56, 16  ;;  %v7588_v9 = vshll.u32 %v7245_v56, 16  ;;  %v13731_v33 = vld [vmem:[#allocation8 + $0x50] sm:$0xff]  }
 0x2c8   : > { %v5502_v48 = vadd.f32 %v5418_v15, %v15549_v62  ;;  %v12531_v17 = vadd.f32 %v12530_v2, %v12529_v61  ;;  %v7609_v11 = vsel %vm870_vm1, %v7600_v1, %v7608_v12  ;;  %v7570_v10 = vrot.slane %v7568_v8, 3  ;;  %v13732_v61 = vld [vmem:[#allocation8 + $0x10] sm:$0xff]   ;;  %12750 = vmatprep.subr.bf16.mxu0 %v13731_v33  ;;  %v15713_v2 = vpop.f32.mrf.mxu1 }
 0x2c9   : > { %5770 = vst [vmem:[#allocation2 + $0x74] sm:$0xf] %v11969_v50  ;;  %v5611_v23 = vmax.f32 %v5579_v37, 0.0  ;;  %13177 = vmatmul.mubr.bf16.gmra.mxu0 %v7609_v11  ;;  %v7587_v32 = vrot.slane %v7585_v6, 3  ;;  %v7590_v28 = vrot.slane %v7588_v9, 4  ;;  %v7573_v16 = vrot.slane %v7571_v34, 4 }
 0x2ca   : > { %v5541_v49 = vmul.f32 %v15478_v53, %v5502_v48  ;;  %v5421_v13 = vadd.f32 %v15678_v29, %v12531_v17  ;;  %v7576_v58 = vshrl.u32 %v15682_v46, 16  ;;  %v7579_v62 = vshll.u32 %v15682_v46, 16  ;;  %v12532_v18 = vpop.f32.mrf.mxu0  ;;  %12751 = vmatpush3.bf16.msra.mxu0 %v13732_v61 }
 0x2cb   : > { %v11970_v4 = vpack.c.bf16 %v5611_v23, %v5611_v23  ;;  %v7591_v43 = vor.u32 %v7590_v28, %v7587_v32  ;;  %v7574_v5 = vor.u32 %v7573_v16, %v7570_v10  ;;  %v11753_v63 = vcombine.low %v7023_v31, %v7024_v51 }
 0x2cc   : > { %v5580_v25 = vadd.f32 %v15495_v27, %v5541_v49  ;;  %v5503_v60 = vadd.f32 %v5421_v13, %v15564_v41  ;;  %v7578_v54 = vrot.slane %v7576_v58, 3  ;;  %v7581_v47 = vrot.slane %v7579_v62, 4  ;;  %v12533_v56 = vpop.f32.mrf.mxu0 }
 0x2cd   : > { %5771 = vst [vmem:[#allocation2 + $0x78] sm:$0xf] %v11970_v4  ;;  %8423 = vmatprep.mubr.bf16.mxu1 %v7591_v43  ;;  %v7402_v29 = vrot.slane %v11753_v63, 5  ;;  %v7247_v14 = vshrl.u32 %v11753_v63, 16  ;;  %v7250_v44 = vshll.u32 %v11753_v63, 16  ;;  %v11725_v46 = vcombine.low %v7022_v57, %v7023_v31  ;;  %v5428_v57 = vpop.f32.mrf.mxu1 }
 0x2ce   : > { %v5612_v52 = vmax.f32 %v5580_v25, 0.0  ;;  %v5542_v39 = vmul.f32 %v15478_v53, %v5503_v60  ;;  %v7582_v38 = vor.u32 %v7581_v47, %v7578_v54  ;;  %v11726_v3 = vcombine.low %v7024_v51, %v7024_v51  ;;  %v12535_v6 = vpop.f32.mrf.mxu0  ;;  %v7026_v25 = vld [vmem:[#allocation2 + $0x60] sm:$0x8] }
 0x2cf   : > { %v7404_v41 = vsel %vm821_vm0, %v7402_v29, %v7403_v0  ;;  %v7637_v8 = vshrl.u32 %v7402_v29, 16  ;;  %v7640_v15 = vshll.u32 %v7402_v29, 16  ;;  %v7249_v1 = vrot.slane %v7247_v14, 4  ;;  %v7028_v29 = vld [vmem:[#allocation2 + $0x68] sm:$0xf] }
 0x2d0   : > { %v11971_v12 = vpack.c.bf16 %v5612_v52, %v5612_v52  ;;  %v5581_v34 = vadd.f32 %v15495_v27, %v5542_v39  ;;  %v12534_v50 = vadd.f32 %v12533_v56, %v12532_v18  ;;  %v7583_v37 = vsel %vm870_vm1, %v7574_v5, %v7582_v38  ;;  %v12536_v23 = vpop.f32.mrf.mxu0  ;;  %v7027_v18 = vld [vmem:[#allocation2 + $0x64] sm:$0xf] }
 0x2d1   : > { %8424 = vmatmul.mubr.bf16.gmra.mxu1 %v7583_v37  ;;  %v7639_v9 = vrot.slane %v7637_v8, 3  ;;  %v7642_v48 = vrot.slane %v7640_v15, 4  ;;  %v7645_v17 = vshrl.u32 %v7404_v41, 16  ;;  %v7648_v19 = vshll.u32 %v7404_v41, 16  ;;  %v13737_v56 = vld [vmem:[#allocation8 + $0x80] sm:$0xff]   ;;  %v13739_v41 = vld [vmem:[#allocation8 + $0x8] sm:$0xff]  }
 0x2d2   : > { %5772 = vst [vmem:[#allocation2 + $0x84] sm:$0xf] %v11971_v12  ;;  %v5613_v0 = vmax.f32 %v5581_v34, 0.0  ;;  %v5426_v11 = vadd.f32 %v12534_v50, %v5425_v59  ;;  %v7252_v10 = vrot.slane %v7250_v44, 5  ;;  %v7611_v51 = vshrl.u32 %v11725_v46, 16  ;;  %13218 = vmatprep.subr.bf16.mxu1 %v13737_v56 }
 0x2d3   : > { %v7643_v32 = vor.u32 %v7642_v48, %v7639_v9  ;;  %v7647_v28 = vrot.slane %v7645_v17, 3  ;;  %v7650_v16 = vrot.slane %v7648_v19, 4  ;;  %v7614_v49 = vshll.u32 %v11725_v46, 16  ;;  %13219 = vmatpush3.bf16.msra.mxu1 %v13737_v56 }
 0x2d4   : > { %v11972_v13 = vpack.c.bf16 %v5613_v0, %v5613_v0  ;;  %v5504_v58 = vadd.f32 %v5426_v11, %v15581_v24  ;;  %v12537_v62 = vadd.f32 %v12536_v23, %v12535_v6  ;;  %v7253_v31 = vor.u32 %v7252_v10, %v7249_v1  ;;  %v12538_v14 = vpop.f32.mrf.mxu0  ;;  %v15731_v11 = vld [vmem:[%s17217_s4] ss:$0 sm:$0xff] }
 0x2d5   : > { %v7651_v4 = vor.u32 %v7650_v16, %v7647_v28  ;;  %v7613_v43 = vrot.slane %v7611_v51, 3  ;;  %v7616_v5 = vrot.slane %v7614_v49, 4  ;;  %v7619_v63 = vshrl.u32 %v11726_v3, 16 }
 0x2d6   : > { %5773 = vst [vmem:[#allocation2 + $0x88] sm:$0xf] %v11972_v13  ;;  %v5543_v60 = vmul.f32 %v15478_v53, %v5504_v58  ;;  %v5429_v54 = vadd.f32 %v12537_v62, %v5428_v57  ;;  %v7628_v47 = vshrl.u32 %v7253_v31, 16  ;;  %v7631_v59 = vshll.u32 %v7253_v31, 16  ;;  %v13738_v53 = vld [vmem:[#allocation8 + $0x48] sm:$0xff]   ;;  %v12539_v8 = vpop.f32.mrf.mxu0 }
 0x2d7   : > { %v7652_v44 = vsel %vm870_vm1, %v7643_v32, %v7651_v4  ;;  %v7617_v24 = vor.u32 %v7616_v5, %v7613_v43  ;;  %v7621_v46 = vrot.slane %v7619_v63, 3  ;;  %v7622_v52 = vshll.u32 %v11726_v3, 16  ;;  %v15725_v3 = vld [vmem:[%s17216_s3] ss:$0 sm:$0xff]  ;;  %12752 = vmatprep.subr.bf16.mxu0 %v13738_v53  ;;  %v17513_v62 = vld [vmem:[#allocation142_spill] sm:$0xff] }
 0x2d8   : > { %v5582_v39 = vadd.f32 %v15495_v27, %v5543_v60  ;;  %v5505_v38 = vadd.f32 %v5429_v54, %v15584_v21  ;;  %13180 = vmatprep.mubr.bf16.mxu0 %v7652_v44  ;;  %v7630_v33 = vrot.slane %v7628_v47, 3  ;;  %v7633_v61 = vrot.slane %v7631_v59, 4  ;;  %v12541_v6 = vpop.f32.mrf.mxu0  ;;  %12753 = vmatpush3.bf16.msra.mxu0 %v13739_v41 }
 0x2d9   : > { %v7624_v15 = vrot.slane %v7622_v52, 4  ;;  %v11754_v1 = vcombine.low %v7027_v18, %v7028_v29  ;;  %v11727_v12 = vcombine.low %v7026_v25, %v7027_v18  ;;  %v15720_v34 = vcombine.low %v7028_v29, %v7028_v29  ;;  %v15744_v47 = vpop.f32.mrf.mxu1 }
 0x2da   : > { %v5614_v50 = vmax.f32 %v5582_v39, 0.0  ;;  %v5544_v27 = vmul.f32 %v15725_v3, %v5505_v38  ;;  %v12540_v21 = vadd.f32 %v12539_v8, %v12538_v14  ;;  %v7634_v37 = vor.u32 %v7633_v61, %v7630_v33  ;;  %v12542_v28 = vpop.f32.mrf.mxu0  ;;  %v7031_v38 = vld [vmem:[#allocation2 + $0x74] sm:$0xf]  ;;  %v13744_v33 = vld [vmem:[#allocation8 + $0x40] sm:$0xff]  }
 0x2db   : > { %v7625_v9 = vor.u32 %v7624_v15, %v7621_v46  ;;  %v7405_v48 = vrot.slane %v11754_v1, 5  ;;  %v7255_v17 = vshrl.u32 %v11754_v1, 16  ;;  %v7258_v19 = vshll.u32 %v11754_v1, 16  ;;  %12754 = vmatprep.subr.bf16.mxu0 %v13744_v33 }
 0x2dc   : > { %v11973_v0 = vpack.c.bf16 %v5614_v50, %v5614_v50  ;;  %v5583_v10 = vadd.f32 %v15731_v11, %v5544_v27  ;;  %v5434_v51 = vadd.f32 %v15699_v36, %v12540_v21  ;;  %8431 = vmatprep.mubr.bf16.mxu1 %v7634_v37  ;;  %v7654_v23 = vshrl.u32 %v11727_v12, 16  ;;  %v5441_v27 = vpop.f32.mrf.mxu1 }
 0x2dd   : > { %v7626_v32 = vsel %vm870_vm1, %v7617_v24, %v7625_v9  ;;  %v7407_v16 = vsel %vm821_vm0, %v7405_v48, %v7406_v40  ;;  %v7680_v49 = vshrl.u32 %v7405_v48, 16  ;;  %v7683_v13 = vshll.u32 %v7405_v48, 16  ;;  %v15742_v40 = vld [vmem:[#allocation2 + $0x78] sm:$0xf]  ;;  %v17514_v24 = vld [vmem:[#allocation143_spill] sm:$0xff] }
 0x2de   : > { %5774 = vst [vmem:[#allocation2 + $0x94] sm:$0xf] %v11973_v0  ;;  %v5615_v58 = vmax.f32 %v5583_v10, 0.0  ;;  %v5506_v31 = vadd.f32 %v5434_v51, %v17513_v62  ;;  %8432 = vmatmul.mubr.bf16.gmra.mxu1 %v7626_v32  ;;  %v12543_v57 = vadd.f32 %v12542_v28, %v12541_v6  ;;  %v7688_v4 = vshrl.u32 %v7407_v16, 16 }
 0x2df   : > { %v7682_v43 = vrot.slane %v7680_v49, 3  ;;  %v7685_v36 = vrot.slane %v7683_v13, 4  ;;  %v7691_v5 = vshll.u32 %v7407_v16, 16  ;;  %v7257_v63 = vrot.slane %v7255_v17, 4 }
 0x2e0   : > { %v11974_v25 = vpack.c.bf16 %v5615_v58, %v5615_v58  ;;  %v5545_v60 = vmul.f32 %v15725_v3, %v5506_v31  ;;  %v5437_v35 = vadd.f32 %v15713_v2, %v12543_v57  ;;  %v7690_v54 = vrot.slane %v7688_v4, 3  ;;  %v13745_v2 = vld [vmem:[#allocation8] sm:$0xff]   ;;  %v12544_v21 = vpop.f32.mrf.mxu0  ;;  %v15757_v58 = vpop.f32.mrf.mxu1 }
 0x2e1   : > { %v7686_v59 = vor.u32 %v7685_v36, %v7682_v43  ;;  %v7693_v18 = vrot.slane %v7691_v5, 4  ;;  %v7260_v29 = vrot.slane %v7258_v19, 5  ;;  %v7656_v14 = vrot.slane %v7654_v23, 3  ;;  %12755 = vmatpush3.bf16.msra.mxu0 %v13745_v2  ;;  %v7030_v36 = vld [vmem:[#allocation2 + $0x70] sm:$0x8] }
 0x2e2   : > { %5775 = vst [vmem:[#allocation2 + $0x98] sm:$0xf] %v11974_v25  ;;  %v5584_v44 = vadd.f32 %v15731_v11, %v5545_v60  ;;  %v5507_v46 = vadd.f32 %v5437_v35, %v17514_v24  ;;  %v7657_v52 = vshll.u32 %v11727_v12, 16  ;;  %v7662_v39 = vshrl.u32 %v15720_v34, 16  ;;  %v12545_v0 = vpop.f32.mrf.mxu0  ;;  %v15760_v35 = vld [vmem:[#allocation2 + $0x88] sm:$0xf] }
 0x2e3   : > { %v7694_v61 = vor.u32 %v7693_v18, %v7690_v54  ;;  %v7261_v56 = vor.u32 %v7260_v29, %v7257_v63  ;;  %v7665_v53 = vshll.u32 %v15720_v34, 16  ;;  %v11755_v41 = vcombine.low %v7031_v38, %v15742_v40  ;;  %v17515_v29 = vld [vmem:[#allocation145_spill] sm:$0xff] }
 0x2e4   : > { %v5616_v8 = vmax.f32 %v5584_v44, 0.0  ;;  %v5546_v15 = vmul.f32 %v15725_v3, %v5507_v46  ;;  %v7659_v1 = vrot.slane %v7657_v52, 4  ;;  %v7664_v50 = vrot.slane %v7662_v39, 3  ;;  %v12547_v31 = vpop.f32.mrf.mxu0  ;;  %v15763_v52 = vld [vmem:[#allocation2 + $0x84] sm:$0xf]  ;;  %v5444_v39 = vpop.f32.mrf.mxu1 }
 0x2e5   : > { %v7695_v12 = vsel %vm870_vm1, %v7686_v59, %v7694_v61  ;;  %v7671_v37 = vshrl.u32 %v7261_v56, 16  ;;  %v7674_v6 = vshll.u32 %v7261_v56, 16  ;;  %v7667_v9 = vrot.slane %v7665_v53, 4 }
 0x2e6   : > { %v11975_v48 = vpack.c.bf16 %v5616_v8, %v5616_v8  ;;  %v5585_v17 = vadd.f32 %v15731_v11, %v5546_v15  ;;  %13181 = vmatmul.mubr.bf16.gmra.mxu0 %v7695_v12  ;;  %v7660_v34 = vor.u32 %v7659_v1, %v7656_v14  ;;  %v7408_v19 = vrot.slane %v11755_v41, 5  ;;  %v12548_v55 = vpop.f32.mrf.mxu0 }
 0x2e7   : > { %v7673_v10 = vrot.slane %v7671_v37, 3  ;;  %v7676_v51 = vrot.slane %v7674_v6, 4  ;;  %v7668_v23 = vor.u32 %v7667_v9, %v7664_v50  ;;  %v7263_v32 = vshrl.u32 %v11755_v41, 16  ;;  %v13752_v37 = vld [vmem:[#allocation8 + $0x1f8] sm:$0xff]  }
 0x2e8   : > { %5776 = vst [vmem:[#allocation2 + $0xa4] sm:$0xf] %v11975_v48  ;;  %v5617_v28 = vmax.f32 %v5585_v17, 0.0  ;;  %v12546_v16 = vadd.f32 %v12545_v0, %v12544_v21  ;;  %v7410_v49 = vsel %vm821_vm0, %v7408_v19, %v7409_v22  ;;  %v7723_v13 = vshrl.u32 %v7408_v19, 16  ;;  %v12550_v33 = vpop.f32.mrf.mxu0  ;;  %12876 = vmatprep.subr.bf16.mxu1 %v13752_v37 }
 0x2e9   : > { %v7677_v62 = vor.u32 %v7676_v51, %v7673_v10  ;;  %v7669_v57 = vsel %vm870_vm1, %v7660_v34, %v7668_v23  ;;  %v7726_v4 = vshll.u32 %v7408_v19, 16  ;;  %v7731_v43 = vshrl.u32 %v7410_v49, 16 }
 0x2ea   : > { %v11976_v5 = vpack.c.bf16 %v5617_v28, %v5617_v28  ;;  %v5442_v63 = vadd.f32 %v12546_v16, %v5441_v27  ;;  %v7725_v25 = vrot.slane %v7723_v13, 3  ;;  %v7734_v60 = vshll.u32 %v7410_v49, 16  ;;  %v12551_v50 = vpop.f32.mrf.mxu0 }
 0x2eb   : > { %8439 = vmatprep.mubr.bf16.mxu1 %v7677_v62  ;;  %v7728_v54 = vrot.slane %v7726_v4, 4  ;;  %v7733_v22 = vrot.slane %v7731_v43, 3  ;;  %v7265_v59 = vrot.slane %v7263_v32, 4  ;;  %v7266_v18 = vshll.u32 %v11755_v41, 16  ;;  %v17516_v4 = vld [vmem:[#allocation144_spill] sm:$0xff] }
 0x2ec   : > { %5777 = vst [vmem:[#allocation2 + $0xa8] sm:$0xf] %v11976_v5  ;;  %v5508_v14 = vadd.f32 %v5442_v63, %v17515_v29  ;;  %8440 = vmatmul.mubr.bf16.gmra.mxu1 %v7669_v57  ;;  %v12549_v44 = vadd.f32 %v12548_v55, %v12547_v31  ;;  %v7736_v24 = vrot.slane %v7734_v60, 4  ;;  %v11729_v46 = vcombine.low %v7030_v36, %v7031_v38  ;;  %v12553_v19 = vpop.f32.mrf.mxu0  ;;  %v13756_v55 = vld [vmem:[#allocation8 + $0x238] sm:$0xff]  }
 0x2ed   : > { %v7729_v2 = vor.u32 %v7728_v54, %v7725_v25  ;;  %v7268_v61 = vrot.slane %v7266_v18, 5  ;;  %v11730_v56 = vcombine.low %v15742_v40, %v15742_v40  ;;  %v15769_v53 = vcombine.low %v15763_v52, %v15760_v35  ;;  %v15785_v29 = vpop.f32.mrf.mxu1  ;;  %13252 = vmatprep.subr.bf16.mxu0 %v13756_v55 }
 0x2ee   : > { %v5547_v41 = vmul.f32 %v15725_v3, %v5508_v14  ;;  %v5445_v8 = vadd.f32 %v12549_v44, %v5444_v39  ;;  %v7737_v15 = vor.u32 %v7736_v24, %v7733_v22  ;;  %v7697_v1 = vshrl.u32 %v11729_v46, 16  ;;  %v12554_v62 = vpop.f32.mrf.mxu0 }
 0x2ef   : > { %v7269_v38 = vor.u32 %v7268_v61, %v7265_v59  ;;  %v7700_v27 = vshll.u32 %v11729_v46, 16  ;;  %v7705_v21 = vshrl.u32 %v11730_v56, 16  ;;  %v7708_v12 = vshll.u32 %v11730_v56, 16  ;;  %v7034_v56 = vld [vmem:[#allocation2 + $0x80] sm:$0x8] }
 0x2f0   : > { %v5586_v6 = vadd.f32 %v15731_v11, %v5547_v41  ;;  %v5509_v9 = vadd.f32 %v5445_v8, %v15592_v45  ;;  %v7738_v40 = vsel %vm870_vm1, %v7729_v2, %v7737_v15  ;;  %v12552_v48 = vadd.f32 %v12551_v50, %v12550_v33  ;;  %v17518_v2 = vld [vmem:[#allocation146_spill] sm:$0xff] }
 0x2f1   : > { %13184 = vmatprep.mubr.bf16.mxu0 %v7738_v40  ;;  %v7714_v17 = vshrl.u32 %v7269_v38, 16  ;;  %v7717_v34 = vshll.u32 %v7269_v38, 16  ;;  %v7699_v0 = vrot.slane %v7697_v1, 3  ;;  %v7702_v10 = vrot.slane %v7700_v27, 4  ;;  %v15792_v1 = vld [vmem:[#allocation2 + $0x98] sm:$0xf] }
 0x2f2   : > { %v5618_v51 = vmax.f32 %v5586_v6, 0.0  ;;  %v5548_v23 = vmul.f32 %v15725_v3, %v5509_v9  ;;  %v5450_v32 = vadd.f32 %v15744_v47, %v12552_v48  ;;  %v7707_v28 = vrot.slane %v7705_v21, 3  ;;  %v5457_v21 = vpop.f32.mrf.mxu1  ;;  %v15798_v48 = vld [vmem:[#allocation2 + $0x94] sm:$0xf] }
 0x2f3   : > { %v7716_v16 = vrot.slane %v7714_v17, 3  ;;  %v7719_v49 = vrot.slane %v7717_v34, 4  ;;  %v7703_v13 = vor.u32 %v7702_v10, %v7699_v0  ;;  %v7710_v45 = vrot.slane %v7708_v12, 4 }
 0x2f4   : > { %v11977_v31 = vpack.c.bf16 %v5618_v51, %v5618_v51  ;;  %v5587_v57 = vadd.f32 %v15731_v11, %v5548_v23  ;;  %v5510_v43 = vadd.f32 %v5450_v32, %v17516_v4  ;;  %v12555_v36 = vadd.f32 %v12554_v62, %v12553_v19  ;;  %v12556_v12 = vpop.f32.mrf.mxu0 }
 0x2f5   : > { %v7720_v5 = vor.u32 %v7719_v49, %v7716_v16  ;;  %v7711_v63 = vor.u32 %v7710_v45, %v7707_v28  ;;  %v7411_v25 = vrot.slane %v15769_v53, 5  ;;  %v7271_v60 = vshrl.u32 %v15769_v53, 16 }
 0x2f6   : > { %5778 = vst [vmem:[#allocation2 + $0xb4] sm:$0xf] %v11977_v31  ;;  %v5619_v47 = vmax.f32 %v5587_v57, 0.0  ;;  %v5549_v54 = vmul.f32 %v15725_v3, %v5510_v43  ;;  %v5453_v22 = vadd.f32 %v15757_v58, %v12555_v36  ;;  %v7274_v59 = vshll.u32 %v15769_v53, 16  ;;  %v12557_v51 = vpop.f32.mrf.mxu0 }
 0x2f7   : > { %8447 = vmatprep.mubr.bf16.mxu1 %v7720_v5  ;;  %v7712_v18 = vsel %vm870_vm1, %v7703_v13, %v7711_v63  ;;  %v17517_v14 = vrot.slane %v15595_v7, 5  ;;  %v7766_v24 = vshrl.u32 %v7411_v25, 16  ;;  %v7769_v46 = vshll.u32 %v7411_v25, 16 }
 0x2f8   : > { %v11978_v39 = vpack.c.bf16 %v5619_v47, %v5619_v47  ;;  %v5588_v33 = vadd.f32 %v15731_v11, %v5549_v54  ;;  %8448 = vmatmul.mubr.bf16.gmra.mxu1 %v7712_v18  ;;  %v5511_v58 = vadd.f32 %v5453_v22, %v17518_v2  ;;  %v7273_v15 = vrot.slane %v7271_v60, 4  ;;  %v12559_v62 = vpop.f32.mrf.mxu0  ;;  %v17519_v22 = vld [vmem:[#allocation148_spill] sm:$0xff] }
 0x2f9   : > { %v7413_v44 = vsel %vm821_vm0, %v7411_v25, %v17517_v14  ;;  %v7768_v53 = vrot.slane %v7766_v24, 3  ;;  %v7771_v41 = vrot.slane %v7769_v46, 4  ;;  %v7276_v27 = vrot.slane %v7274_v59, 5 }
 0x2fa   : > { %v7774_v61 = vshrl.u32 %v7413_v44, 16  ;;  %v7777_v8 = vshll.u32 %v7413_v44, 16  ;;  %5779 = vst [vmem:[#allocation2 + $0xb8] sm:$0xf] %v11978_v39  ;;  %v5620_v7 = vmax.f32 %v5588_v33, 0.0  ;;  %v5550_v50 = vmul.f32 %v15725_v3, %v5511_v58  ;;  %v12560_v55 = vpop.f32.mrf.mxu0 }
 0x2fb   : > { %v7772_v37 = vor.u32 %v7771_v41, %v7768_v53  ;;  %v11731_v9 = vcombine.low %v7034_v56, %v15763_v52  ;;  %v11732_v40 = vcombine.low %v15760_v35, %v15760_v35  ;;  %v7277_v19 = vor.u32 %v7276_v27, %v7273_v15  ;;  %v15803_v35 = vpop.f32.mrf.mxu1 }
 0x2fc   : > { %v7776_v38 = vrot.slane %v7774_v61, 3  ;;  %v7779_v6 = vrot.slane %v7777_v8, 4  ;;  %v11979_v17 = vpack.c.bf16 %v5620_v7, %v5620_v7  ;;  %v5589_v34 = vadd.f32 %v15731_v11, %v5550_v50  ;;  %v12562_v39 = vpop.f32.mrf.mxu0 }
 0x2fd   : > { %v11757_v0 = vcombine.low %v15798_v48, %v15792_v1  ;;  %v7740_v23 = vshrl.u32 %v11731_v9, 16  ;;  %v7743_v32 = vshll.u32 %v11731_v9, 16  ;;  %v7748_v28 = vshrl.u32 %v11732_v40, 16  ;;  %v5460_v24 = vpop.f32.mrf.mxu1  ;;  %v15813_v9 = vld [vmem:[#allocation2 + $0xa8] sm:$0xf] }
 0x2fe   : > { %v7780_v10 = vor.u32 %v7779_v6, %v7776_v38  ;;  %5780 = vst [vmem:[#allocation2 + $0xc4] sm:$0xf] %v11979_v17  ;;  %v5621_v16 = vmax.f32 %v5589_v34, 0.0  ;;  %v12558_v52 = vadd.f32 %v12557_v51, %v12556_v12  ;;  %v7757_v49 = vshrl.u32 %v7277_v19, 16  ;;  %v12563_v38 = vpop.f32.mrf.mxu0 }
 0x2ff   : > { %v7760_v13 = vshll.u32 %v7277_v19, 16  ;;  %v7742_v31 = vrot.slane %v7740_v23, 3  ;;  %v7745_v57 = vrot.slane %v7743_v32, 4  ;;  %v7750_v4 = vrot.slane %v7748_v28, 3  ;;  %v15818_v28 = vld [vmem:[#allocation2 + $0xa4] sm:$0xf] }
 0x300   : > { %v7781_v45 = vsel %vm870_vm1, %v7772_v37, %v7780_v10  ;;  %v11980_v43 = vpack.c.bf16 %v5621_v16, %v5621_v16  ;;  %v5458_v36 = vadd.f32 %v12558_v52, %v5457_v21  ;;  %v7759_v5 = vrot.slane %v7757_v49, 3  ;;  %v7038_v21 = vld [vmem:[#allocation2 + $0x90] sm:$0x8] }
 0x301   : > { %13185 = vmatmul.mubr.bf16.gmra.mxu0 %v7781_v45  ;;  %v7762_v63 = vrot.slane %v7760_v13, 4  ;;  %v7746_v25 = vor.u32 %v7745_v57, %v7742_v31  ;;  %v7751_v60 = vshll.u32 %v11732_v40, 16  ;;  %v7414_v47 = vrot.slane %v11757_v0, 5  ;;  %v17521_v57 = vld [vmem:[#allocation147_spill] sm:$0xff] }
 0x302   : > { %v7279_v54 = vshrl.u32 %v11757_v0, 16  ;;  %5781 = vst [vmem:[#allocation2 + $0xc8] sm:$0xf] %v11980_v43  ;;  %v5512_v59 = vadd.f32 %v5458_v36, %v17519_v22  ;;  %v12561_v14 = vadd.f32 %v12560_v55, %v12559_v62  ;;  %v7282_v44 = vshll.u32 %v11757_v0, 16  ;;  %v12565_v0 = vpop.f32.mrf.mxu0 }
 0x303   : > { %v7763_v18 = vor.u32 %v7762_v63, %v7759_v5  ;;  %v7753_v46 = vrot.slane %v7751_v60, 4  ;;  %v17520_v33 = vrot.slane %v15606_v42, 5  ;;  %v7809_v58 = vshrl.u32 %v7414_v47, 16  ;;  %v13702_v5 = vld [vmem:[#allocation2 + $0xac] ss:$0 sps:$4 sm:$0x11]  }
 0x304   : > { %v7812_v61 = vshll.u32 %v7414_v47, 16  ;;  %v5551_v56 = vmul.f32 %v15725_v3, %v5512_v59  ;;  %v5461_v53 = vadd.f32 %v12561_v14, %v5460_v24  ;;  %v7281_v27 = vrot.slane %v7279_v54, 4 }
 0x305   : > { %v7416_v2 = vsel %vm821_vm0, %v7414_v47, %v17520_v33  ;;  %8455 = vmatprep.mubr.bf16.mxu1 %v7763_v18  ;;  %v7754_v15 = vor.u32 %v7753_v46, %v7750_v4  ;;  %v7811_v7 = vrot.slane %v7809_v58, 3  ;;  %v12564_v34 = vadd.f32 %v12563_v38, %v12562_v39  ;;  %v15830_v58 = vpop.f32.mrf.mxu1 }
 0x306   : > { %v7817_v41 = vshrl.u32 %v7416_v2, 16  ;;  %v7820_v8 = vshll.u32 %v7416_v2, 16  ;;  %v7814_v50 = vrot.slane %v7812_v61, 4  ;;  %v5590_v12 = vadd.f32 %v15731_v11, %v5551_v56 }
 0x307   : > { %v5513_v42 = vadd.f32 %v5461_v53, %v15598_v26  ;;  %v7755_v40 = vsel %vm870_vm1, %v7746_v25, %v7754_v15  ;;  %v7284_v19 = vrot.slane %v7282_v44, 5  ;;  %v11733_v32 = vcombine.low %v7038_v21, %v15798_v48 }
 0x308   : > { %v7819_v37 = vrot.slane %v7817_v41, 3  ;;  %v7822_v6 = vrot.slane %v7820_v8, 4  ;;  %v7815_v17 = vor.u32 %v7814_v50, %v7811_v7  ;;  %v5622_v10 = vmax.f32 %v5590_v12, 0.0  ;;  %8456 = vmatmul.mubr.bf16.gmra.mxu1 %v7755_v40 }
 0x309   : > { %v5552_v51 = vmul.f32 %v15725_v3, %v5513_v42  ;;  %v5466_v26 = vadd.f32 %v15785_v29, %v12564_v34  ;;  %v7285_v16 = vor.u32 %v7284_v19, %v7281_v27  ;;  %v11734_v52 = vcombine.low %v15792_v1, %v15792_v1  ;;  %v12566_v29 = vpop.f32.mrf.mxu0  ;;  %v17522_v27 = vld [vmem:[#allocation149_spill] sm:$0xff] }
 0x30a   : > { %v7823_v23 = vor.u32 %v7822_v6, %v7819_v37  ;;  %v11758_v49 = vcombine.low %v15818_v28, %v15813_v9  ;;  %v11981_v13 = vpack.c.bf16 %v5622_v10, %v5622_v10  ;;  %v7783_v31 = vshrl.u32 %v11733_v32, 16  ;;  %v7042_v37 = vld [vmem:[#allocation2 + $0xa0] sm:$0x8] }
 0x30b   : > { %v5591_v45 = vadd.f32 %v15731_v11, %v5552_v51  ;;  %v5514_v48 = vadd.f32 %v5466_v26, %v17521_v57  ;;  %v7800_v4 = vshrl.u32 %v7285_v16, 16  ;;  %v7803_v43 = vshll.u32 %v7285_v16, 16  ;;  %v12568_v8 = vpop.f32.mrf.mxu0 }
 0x30c   : > { %v7824_v62 = vsel %vm870_vm1, %v7815_v17, %v7823_v23  ;;  %v7786_v36 = vshll.u32 %v11733_v32, 16  ;;  %5782 = vst [vmem:[#allocation2 + $0xd4] sm:$0xf] %v11981_v13  ;;  %v7785_v1 = vrot.slane %v7783_v31, 3  ;;  %v7791_v25 = vshrl.u32 %v11734_v52, 16 }
 0x30d   : > { %13188 = vmatprep.mubr.bf16.mxu0 %v7824_v62  ;;  %v5623_v63 = vmax.f32 %v5591_v45, 0.0  ;;  %v7794_v60 = vshll.u32 %v11734_v52, 16  ;;  %v5553_v55 = vmul.f32 %v15725_v3, %v5514_v48  ;;  %v7802_v47 = vrot.slane %v7800_v4, 3  ;;  %v12569_v34 = vpop.f32.mrf.mxu0 }
 0x30e   : > { %v7805_v54 = vrot.slane %v7803_v43, 4  ;;  %v7788_v22 = vrot.slane %v7786_v36, 4  ;;  %v7793_v18 = vrot.slane %v7791_v25, 3  ;;  %v12567_v44 = vadd.f32 %v12566_v29, %v12565_v0  ;;  %v5473_v0 = vpop.f32.mrf.mxu1 }
 0x30f   : > { %v11982_v59 = vpack.c.bf16 %v5623_v63, %v5623_v63  ;;  %v7796_v14 = vrot.slane %v7794_v60, 4  ;;  %v5592_v24 = vadd.f32 %v15731_v11, %v5553_v55  ;;  %v7417_v33 = vrot.slane %v11758_v49, 5  ;;  %v12571_v16 = vpop.f32.mrf.mxu0  ;;  %v13708_v60 = vld [vmem:[#allocation2 + $0xbc] ss:$0 sps:$4 sm:$0x11]  }
 0x310   : > { %v7806_v46 = vor.u32 %v7805_v54, %v7802_v47  ;;  %v7789_v39 = vor.u32 %v7788_v22, %v7785_v1  ;;  %v5469_v61 = vadd.f32 %v15803_v35, %v12567_v44  ;;  %v7418_v56 = vrot.slane %v13702_v5, 5  ;;  %v15841_v5 = vpop.f32.mrf.mxu1  ;;  %v17523_v1 = vld [vmem:[#allocation111_spill] sm:$0xff] }
 0x311   : > { %5783 = vst [vmem:[#allocation2 + $0xd8] sm:$0xf] %v11982_v59  ;;  %v7797_v2 = vor.u32 %v7796_v14, %v7793_v18  ;;  %v7287_v53 = vshrl.u32 %v11758_v49, 16  ;;  %v5624_v41 = vmax.f32 %v5592_v24, 0.0  ;;  %v7852_v15 = vshrl.u32 %v7417_v33, 16  ;;  %v12572_v36 = vpop.f32.mrf.mxu0 }
 0x312   : > { %8463 = vmatprep.mubr.bf16.mxu1 %v7806_v46  ;;  %v7855_v7 = vshll.u32 %v7417_v33, 16  ;;  %v7290_v50 = vshll.u32 %v11758_v49, 16  ;;  %v5515_v21 = vadd.f32 %v5469_v61, %v17522_v27  ;;  %v7419_v12 = vsel %vm821_vm0, %v7417_v33, %v7418_v56  ;;  %v7048_v59 = vld [vmem:[#allocation2 + $0xb8] sm:$0xf]  ;;  %v7047_v46 = vld [vmem:[#allocation2 + $0xb4] sm:$0xf] }
 0x313   : > { %v7798_v38 = vsel %vm870_vm1, %v7789_v39, %v7797_v2  ;;  %v7289_v42 = vrot.slane %v7287_v53, 4  ;;  %v11983_v6 = vpack.c.bf16 %v5624_v41, %v5624_v41  ;;  %v7854_v40 = vrot.slane %v7852_v15, 3  ;;  %v12574_v22 = vpop.f32.mrf.mxu0  ;;  %v7046_v39 = vld [vmem:[#allocation2 + $0xb0] sm:$0x8] }
 0x314   : > { %8464 = vmatmul.mubr.bf16.gmra.mxu1 %v7798_v38  ;;  %v7857_v35 = vrot.slane %v7855_v7, 4  ;;  %v7860_v17 = vshrl.u32 %v7419_v12, 16  ;;  %v5554_v19 = vmul.f32 %v15725_v3, %v5515_v21  ;;  %v7863_v10 = vshll.u32 %v7419_v12, 16 }
 0x315   : > { %v12570_v51 = vadd.f32 %v12569_v34, %v12568_v8  ;;  %v7292_v23 = vrot.slane %v7290_v50, 5  ;;  %5784 = vst [vmem:[#allocation2 + $0xe4] sm:$0xf] %v11983_v6  ;;  %v11735_v52 = vcombine.low %v7042_v37, %v15818_v28  ;;  %v11736_v49 = vcombine.low %v15813_v9, %v15813_v9  ;;  %v12575_v53 = vpop.f32.mrf.mxu0  ;;  %v5476_v8 = vpop.f32.mrf.mxu1 }
 0x316   : > { %v7858_v32 = vor.u32 %v7857_v35, %v7854_v40  ;;  %v7862_v26 = vrot.slane %v7860_v17, 3  ;;  %v5593_v13 = vadd.f32 %v15731_v11, %v5554_v19  ;;  %v7865_v45 = vrot.slane %v7863_v10, 4 }
 0x317   : > { %v5474_v62 = vadd.f32 %v12570_v51, %v5473_v0  ;;  %v7293_v31 = vor.u32 %v7292_v23, %v7289_v42  ;;  %v7826_v57 = vshrl.u32 %v11735_v52, 16  ;;  %v7829_v48 = vshll.u32 %v11735_v52, 16  ;;  %v17524_v52 = vld [vmem:[#allocation109_spill] sm:$0xff] }
 0x318   : > { %v7834_v4 = vshrl.u32 %v11736_v49, 16  ;;  %v7837_v43 = vshll.u32 %v11736_v49, 16  ;;  %v5625_v29 = vmax.f32 %v5593_v13, 0.0  ;;  %v7866_v63 = vor.u32 %v7865_v45, %v7862_v26 }
 0x319   : > { %v5516_v25 = vadd.f32 %v5474_v62, %v17523_v1  ;;  %v7843_v28 = vshrl.u32 %v7293_v31, 16  ;;  %v7846_v55 = vshll.u32 %v7293_v31, 16  ;;  %v7828_v9 = vrot.slane %v7826_v57, 3 }
 0x31a   : > { %v7831_v47 = vrot.slane %v7829_v48, 4  ;;  %v7836_v54 = vrot.slane %v7834_v4, 3  ;;  %v11984_v18 = vpack.c.bf16 %v5625_v29, %v5625_v29  ;;  %v7867_v14 = vsel %vm870_vm1, %v7858_v32, %v7866_v63 }
 0x31b   : > { %v5555_v44 = vmul.f32 %v15725_v3, %v5516_v25  ;;  %v7845_v24 = vrot.slane %v7843_v28, 3  ;;  %13189 = vmatmul.mubr.bf16.gmra.mxu0 %v7867_v14  ;;  %v7848_v33 = vrot.slane %v7846_v55, 4  ;;  %v7839_v61 = vrot.slane %v7837_v43, 4  ;;  %v13715_v55 = vld [vmem:[#allocation2 + $0xcc] ss:$0 sps:$4 sm:$0x11]  }
 0x31c   : > { %v7832_v2 = vor.u32 %v7831_v47, %v7828_v9  ;;  %v12573_v56 = vadd.f32 %v12572_v36, %v12571_v16  ;;  %5785 = vst [vmem:[#allocation2 + $0xe8] sm:$0xf] %v11984_v18  ;;  %v11759_v15 = vcombine.low %v7047_v46, %v7048_v59  ;;  %v7421_v7 = vrot.slane %v13708_v60, 5  ;;  %v7052_v18 = vld [vmem:[#allocation2 + $0xc8] sm:$0xf] }
 0x31d   : > { %v5594_v41 = vadd.f32 %v15731_v11, %v5555_v44  ;;  %v12576_v50 = vadd.f32 %v12575_v53, %v12574_v22  ;;  %v7849_v38 = vor.u32 %v7848_v33, %v7845_v24  ;;  %v7840_v27 = vor.u32 %v7839_v61, %v7836_v54  ;;  %v7050_v33 = vld [vmem:[#allocation2 + $0xc0] sm:$0x8] }
 0x31e   : > { %v5477_v21 = vadd.f32 %v12573_v56, %v5476_v8  ;;  %v11737_v12 = vcombine.low %v7046_v39, %v7047_v46  ;;  %v7420_v37 = vrot.slane %v11759_v15, 5  ;;  %v7295_v40 = vshrl.u32 %v11759_v15, 16  ;;  %v7051_v39 = vld [vmem:[#allocation2 + $0xc4] sm:$0xf] }
 0x31f   : > { %v5626_v42 = vmax.f32 %v5594_v41, 0.0  ;;  %v5482_v6 = vadd.f32 %v15830_v58, %v12576_v50  ;;  %8471 = vmatprep.mubr.bf16.mxu1 %v7849_v38  ;;  %v7841_v35 = vsel %vm870_vm1, %v7832_v2, %v7840_v27  ;;  %v7298_v34 = vshll.u32 %v11759_v15, 16 }
 0x320   : > { %v5517_v17 = vadd.f32 %v5477_v21, %v15609_v20  ;;  %v11738_v19 = vcombine.low %v7048_v59, %v7048_v59  ;;  %8472 = vmatmul.mubr.bf16.gmra.mxu1 %v7841_v35  ;;  %v7422_v10 = vsel %vm821_vm0, %v7420_v37, %v7421_v7  ;;  %v7895_v51 = vshrl.u32 %v7420_v37, 16  ;;  %v12577_v20 = vpop.f32.mrf.mxu0 }
 0x321   : > { %v11985_v0 = vpack.c.bf16 %v5626_v42, %v5626_v42  ;;  %v7898_v23 = vshll.u32 %v7420_v37, 16  ;;  %v7903_v26 = vshrl.u32 %v7422_v10, 16  ;;  %v7906_v16 = vshll.u32 %v7422_v10, 16 }
 0x322   : > { %v5556_v32 = vmul.f32 %v15725_v3, %v5517_v17  ;;  %v5518_v58 = vadd.f32 %v5482_v6, %v17524_v52  ;;  %v7897_v49 = vrot.slane %v7895_v51, 3  ;;  %v7297_v45 = vrot.slane %v7295_v40, 4  ;;  %v12578_v59 = vpop.f32.mrf.mxu0 }
 0x323   : > { %5786 = vst [vmem:[#allocation2 + $0xf4] sm:$0xf] %v11985_v0  ;;  %v7900_v13 = vrot.slane %v7898_v23, 4  ;;  %v7300_v62 = vrot.slane %v7298_v34, 5  ;;  %v7905_v57 = vrot.slane %v7903_v26, 3  ;;  %v7908_v48 = vrot.slane %v7906_v16, 4 }
 0x324   : > { %v5595_v31 = vadd.f32 %v15731_v11, %v5556_v32  ;;  %v5557_v4 = vmul.f32 %v15725_v3, %v5518_v58  ;;  %v7869_v29 = vshrl.u32 %v11737_v12, 16  ;;  %v7872_v63 = vshll.u32 %v11737_v12, 16 }
 0x325   : > { %v7901_v43 = vor.u32 %v7900_v13, %v7897_v49  ;;  %v7301_v36 = vor.u32 %v7300_v62, %v7297_v45  ;;  %v7909_v25 = vor.u32 %v7908_v48, %v7905_v57  ;;  %v7877_v60 = vshrl.u32 %v11738_v19, 16  ;;  %v7056_v62 = vld [vmem:[#allocation2 + $0xd8] sm:$0xf] }
 0x326   : > { %v5627_v1 = vmax.f32 %v5595_v31, 0.0  ;;  %v5596_v28 = vadd.f32 %v15731_v11, %v5557_v4  ;;  %v7871_v54 = vrot.slane %v7869_v29, 3  ;;  %v7874_v22 = vrot.slane %v7872_v63, 4  ;;  %v7055_v63 = vld [vmem:[#allocation2 + $0xd4] sm:$0xf] }
 0x327   : > { %v7886_v9 = vshrl.u32 %v7301_v36, 16  ;;  %v7889_v47 = vshll.u32 %v7301_v36, 16  ;;  %v7910_v44 = vsel %vm870_vm1, %v7901_v43, %v7909_v25  ;;  %v7879_v46 = vrot.slane %v7877_v60, 3 }
 0x328   : > { %v11986_v14 = vpack.c.bf16 %v5627_v1, %v5627_v1  ;;  %v5628_v24 = vmax.f32 %v5596_v28, 0.0  ;;  %13192 = vmatprep.mubr.bf16.mxu0 %v7910_v44  ;;  %v7875_v56 = vor.u32 %v7874_v22, %v7871_v54  ;;  %v7880_v53 = vshll.u32 %v11738_v19, 16  ;;  %v17525_v19 = vld [vmem:[#allocation101_spill] sm:$0xff] }
 0x329   : > { %v7888_v2 = vrot.slane %v7886_v9, 3  ;;  %v7891_v61 = vrot.slane %v7889_v47, 4  ;;  %v12579_v8 = vadd.f32 %v12578_v59, %v12577_v20  ;;  %v11760_v15 = vcombine.low %v7051_v39, %v7052_v18 }
 0x32a   : > { %5787 = vst [vmem:[#allocation2 + $0xf8] sm:$0xf] %v11986_v14  ;;  %v11987_v41 = vpack.c.bf16 %v5628_v24, %v5628_v24  ;;  %v7424_v7 = vrot.slane %v13715_v55, 5  ;;  %v7882_v38 = vrot.slane %v7880_v53, 4  ;;  %v11739_v27 = vcombine.low %v7050_v33, %v7051_v39 }
 0x32b   : > { %v7892_v50 = vor.u32 %v7891_v61, %v7888_v2  ;;  %v11740_v21 = vcombine.low %v7052_v18, %v7052_v18  ;;  %v5485_v12 = vadd.f32 %v15841_v5, %v12579_v8  ;;  %v7423_v42 = vrot.slane %v11760_v15, 5  ;;  %v13721_v5 = vld [vmem:[#allocation2 + $0xdc] ss:$0 sps:$4 sm:$0x11]  }
 0x32c   : > { %5788 = vst [vmem:[#allocation2 + $0x104] sm:$0xf] %v11987_v41  ;;  %v7303_v37 = vshrl.u32 %v11760_v15, 16  ;;  %v7306_v6 = vshll.u32 %v11760_v15, 16  ;;  %v7883_v40 = vor.u32 %v7882_v38, %v7879_v46  ;;  %v7912_v35 = vshrl.u32 %v11739_v27, 16 }
 0x32d   : > { %8479 = vmatprep.mubr.bf16.mxu1 %v7892_v50  ;;  %v7915_v17 = vshll.u32 %v11739_v27, 16  ;;  %v7920_v34 = vshrl.u32 %v11740_v21, 16  ;;  %v5519_v0 = vadd.f32 %v5485_v12, %v17525_v19  ;;  %v7425_v10 = vsel %vm821_vm0, %v7423_v42, %v7424_v7  ;;  %v7054_v46 = vld [vmem:[#allocation2 + $0xd0] sm:$0x8]  ;;  %v7060_v7 = vld [vmem:[#allocation2 + $0xe8] sm:$0xf] }
 0x32e   : > { %v7938_v51 = vshrl.u32 %v7423_v42, 16  ;;  %v7941_v23 = vshll.u32 %v7423_v42, 16  ;;  %v7884_v32 = vsel %vm870_vm1, %v7875_v56, %v7883_v40  ;;  %v7946_v26 = vshrl.u32 %v7425_v10, 16  ;;  %v13728_v56 = vld [vmem:[#allocation2 + $0xec] ss:$0 sps:$4 sm:$0x11]  }
 0x32f   : > { %v7949_v16 = vshll.u32 %v7425_v10, 16  ;;  %v7305_v52 = vrot.slane %v7303_v37, 4  ;;  %8480 = vmatmul.mubr.bf16.gmra.mxu1 %v7884_v32  ;;  %v5558_v58 = vmul.f32 %v15725_v3, %v5519_v0  ;;  %v7308_v45 = vrot.slane %v7306_v6, 5  ;;  %v7059_v40 = vld [vmem:[#allocation2 + $0xe4] sm:$0xf] }
 0x330   : > { %v7940_v49 = vrot.slane %v7938_v51, 3  ;;  %v7943_v13 = vrot.slane %v7941_v23, 4  ;;  %v7948_v20 = vrot.slane %v7946_v26, 3  ;;  %v7914_v57 = vrot.slane %v7912_v35, 3 }
 0x331   : > { %v7951_v31 = vrot.slane %v7949_v16, 4  ;;  %v7917_v48 = vrot.slane %v7915_v17, 4  ;;  %v5597_v4 = vadd.f32 %v15731_v11, %v5558_v58  ;;  %v7309_v36 = vor.u32 %v7308_v45, %v7305_v52 }
 0x332   : > { %v7944_v43 = vor.u32 %v7943_v13, %v7940_v49  ;;  %v7922_v29 = vrot.slane %v7920_v34, 3  ;;  %v7923_v28 = vshll.u32 %v11740_v21, 16  ;;  %v11761_v60 = vcombine.low %v7055_v63, %v7056_v62 }
 0x333   : > { %v7952_v1 = vor.u32 %v7951_v31, %v7948_v20  ;;  %v7918_v25 = vor.u32 %v7917_v48, %v7914_v57  ;;  %v5629_v55 = vmax.f32 %v5597_v4, 0.0  ;;  %v7929_v3 = vshrl.u32 %v7309_v36, 16  ;;  %v7058_v57 = vld [vmem:[#allocation2 + $0xe0] sm:$0x8] }
 0x334   : > { %v7932_v9 = vshll.u32 %v7309_v36, 16  ;;  %v7427_v47 = vrot.slane %v13721_v5, 5  ;;  %v7925_v22 = vrot.slane %v7923_v28, 4  ;;  %v7426_v59 = vrot.slane %v11761_v60, 5 }
 0x335   : > { %v7953_v54 = vsel %vm870_vm1, %v7944_v43, %v7952_v1  ;;  %v7311_v18 = vshrl.u32 %v11761_v60, 16  ;;  %v11988_v14 = vpack.c.bf16 %v5629_v55, %v5629_v55  ;;  %v7931_v11 = vrot.slane %v7929_v3, 3 }
 0x336   : > { %13193 = vmatmul.mubr.bf16.gmra.mxu0 %v7953_v54  ;;  %v7934_v44 = vrot.slane %v7932_v9, 4  ;;  %v7314_v24 = vshll.u32 %v11761_v60, 16  ;;  %v7926_v39 = vor.u32 %v7925_v22, %v7922_v29  ;;  %v7428_v33 = vsel %vm821_vm0, %v7426_v59, %v7427_v47  ;;  %v13734_v29 = vld [vmem:[#allocation2 + $0xfc] ss:$0 sps:$4 sm:$0x11]  }
 0x337   : > { %v7981_v2 = vshrl.u32 %v7426_v59, 16  ;;  %v7984_v61 = vshll.u32 %v7426_v59, 16  ;;  %5789 = vst [vmem:[#allocation2 + $0x108] sm:$0xf] %v11988_v14  ;;  %v7989_v41 = vshrl.u32 %v7428_v33, 16  ;;  %v7992_v8 = vshll.u32 %v7428_v33, 16 }
 0x338   : > { %v7935_v53 = vor.u32 %v7934_v44, %v7931_v11  ;;  %v7313_v15 = vrot.slane %v7311_v18, 4  ;;  %v7927_v50 = vsel %vm870_vm1, %v7918_v25, %v7926_v39  ;;  %v7316_v21 = vrot.slane %v7314_v24, 5  ;;  %v7064_v60 = vld [vmem:[#allocation2 + $0xf8] sm:$0xf]  ;;  %v7063_v14 = vld [vmem:[#allocation2 + $0xf4] sm:$0xf] }
 0x339   : > { %v7983_v38 = vrot.slane %v7981_v2, 3  ;;  %v7986_v27 = vrot.slane %v7984_v61, 4  ;;  %v7991_v12 = vrot.slane %v7989_v41, 3  ;;  %v7994_v42 = vrot.slane %v7992_v8, 4 }
 0x33a   : > { %8487 = vmatprep.mubr.bf16.mxu1 %v7935_v53  ;;  %v11741_v37 = vcombine.low %v7054_v46, %v7055_v63  ;;  %v11742_v6 = vcombine.low %v7056_v62, %v7056_v62  ;;  %v7317_v17 = vor.u32 %v7316_v21, %v7313_v15  ;;  %v11762_v34 = vcombine.low %v7059_v40, %v7060_v7 }
 0x33b   : > { %8488 = vmatmul.mubr.bf16.gmra.mxu1 %v7927_v50  ;;  %v7987_v35 = vor.u32 %v7986_v27, %v7983_v38  ;;  %v7430_v19 = vrot.slane %v13728_v56, 5  ;;  %v7995_v0 = vor.u32 %v7994_v42, %v7991_v12  ;;  %v11743_v18 = vcombine.low %v7058_v57, %v7059_v40 }
 0x33c   : > { %v7955_v10 = vshrl.u32 %v11741_v37, 16  ;;  %v7958_v51 = vshll.u32 %v11741_v37, 16  ;;  %v7963_v23 = vshrl.u32 %v11742_v6, 16  ;;  %v7972_v32 = vshrl.u32 %v7317_v17, 16 }
 0x33d   : > { %v7975_v26 = vshll.u32 %v7317_v17, 16  ;;  %v7966_v16 = vshll.u32 %v11742_v6, 16  ;;  %v7429_v52 = vrot.slane %v11762_v34, 5  ;;  %v7996_v5 = vsel %vm870_vm1, %v7987_v35, %v7995_v0 }
 0x33e   : > { %v7957_v58 = vrot.slane %v7955_v10, 3  ;;  %v7960_v49 = vrot.slane %v7958_v51, 4  ;;  %v7965_v13 = vrot.slane %v7963_v23, 3  ;;  %13196 = vmatprep.mubr.bf16.mxu0 %v7996_v5  ;;  %v7974_v45 = vrot.slane %v7972_v32, 3  ;;  %v7067_v32 = vld [vmem:[#allocation2 + $0x104] sm:$0xf] }
 0x33f   : > { %v7977_v62 = vrot.slane %v7975_v26, 4  ;;  %v7968_v20 = vrot.slane %v7966_v16, 4  ;;  %v7431_v31 = vsel %vm821_vm0, %v7429_v52, %v7430_v19  ;;  %v8024_v4 = vshrl.u32 %v7429_v52, 16  ;;  %v7066_v19 = vld [vmem:[#allocation2 + $0x100] sm:$0x8] }
 0x340   : > { %v7961_v48 = vor.u32 %v7960_v49, %v7957_v58  ;;  %v8027_v43 = vshll.u32 %v7429_v52, 16  ;;  %v8032_v36 = vshrl.u32 %v7431_v31, 16  ;;  %v8035_v25 = vshll.u32 %v7431_v31, 16  ;;  %v7068_v58 = vld [vmem:[#allocation2 + $0x108] sm:$0xf] }
 0x341   : > { %v7978_v63 = vor.u32 %v7977_v62, %v7974_v45  ;;  %v7969_v1 = vor.u32 %v7968_v20, %v7965_v13  ;;  %v7319_v28 = vshrl.u32 %v11762_v34, 16  ;;  %v8026_v55 = vrot.slane %v8024_v4, 3 }
 0x342   : > { %v8029_v3 = vrot.slane %v8027_v43, 4  ;;  %v8034_v9 = vrot.slane %v8032_v36, 3  ;;  %v7322_v47 = vshll.u32 %v11762_v34, 16  ;;  %v8037_v22 = vrot.slane %v8035_v25, 4  ;;  %v7062_v34 = vld [vmem:[#allocation2 + $0xf0] sm:$0x8] }
 0x343   : > { %8495 = vmatprep.mubr.bf16.mxu1 %v7978_v63  ;;  %v7970_v54 = vsel %vm870_vm1, %v7961_v48, %v7969_v1  ;;  %v7321_v59 = vrot.slane %v7319_v28, 4  ;;  %v11744_v24 = vcombine.low %v7060_v7, %v7060_v7  ;;  %v11763_v46 = vcombine.low %v7063_v14, %v7064_v60  ;;  %v13741_v7 = vld [vmem:[#allocation2 + $0x10c] ss:$0 sps:$4 sm:$0x11]  }
 0x344   : > { %8496 = vmatmul.mubr.bf16.gmra.mxu1 %v7970_v54  ;;  %v8030_v11 = vor.u32 %v8029_v3, %v8026_v55  ;;  %v7324_v44 = vrot.slane %v7322_v47, 5  ;;  %v8038_v39 = vor.u32 %v8037_v22, %v8034_v9  ;;  %v7998_v33 = vshrl.u32 %v11743_v18, 16 }
 0x345   : > { %v8001_v2 = vshll.u32 %v11743_v18, 16  ;;  %v7433_v61 = vrot.slane %v13734_v29, 5  ;;  %v8006_v53 = vshrl.u32 %v11744_v24, 16  ;;  %v8009_v41 = vshll.u32 %v11744_v24, 16 }
 0x346   : > { %v7325_v56 = vor.u32 %v7324_v44, %v7321_v59  ;;  %v7432_v8 = vrot.slane %v11763_v46, 5  ;;  %v8039_v15 = vsel %vm870_vm1, %v8030_v11, %v8038_v39  ;;  %v8000_v50 = vrot.slane %v7998_v33, 3 }
 0x347   : > { %v8003_v38 = vrot.slane %v8001_v2, 4  ;;  %v7327_v27 = vshrl.u32 %v11763_v46, 16  ;;  %13197 = vmatmul.mubr.bf16.gmra.mxu0 %v8039_v15  ;;  %v8008_v42 = vrot.slane %v8006_v53, 3  ;;  %v8011_v37 = vrot.slane %v8009_v41, 4  ;;  %v5791_v2 = vld [vmem:[#allocation2 + $0x4] sm:$0xf] }
 0x348   : > { %v8015_v21 = vshrl.u32 %v7325_v56, 16  ;;  %v8018_v12 = vshll.u32 %v7325_v56, 16  ;;  %v7434_v40 = vsel %vm821_vm0, %v7432_v8, %v7433_v61  ;;  %v8067_v35 = vshrl.u32 %v7432_v8, 16 }
 0x349   : > { %v8004_v6 = vor.u32 %v8003_v38, %v8000_v50  ;;  %v8070_v17 = vshll.u32 %v7432_v8, 16  ;;  %v8012_v51 = vor.u32 %v8011_v37, %v8008_v42  ;;  %v8075_v23 = vshrl.u32 %v7434_v40, 16  ;;  %v5792_v8 = vld [vmem:[#allocation2 + $0x8] sm:$0xf] }
 0x34a   : > { %v8017_v0 = vrot.slane %v8015_v21, 3  ;;  %v8020_v10 = vrot.slane %v8018_v12, 4  ;;  %v8069_v26 = vrot.slane %v8067_v35, 3  ;;  %v8078_v52 = vshll.u32 %v7434_v40, 16  ;;  %v5790_v21 = vld [vmem:[#allocation2] sm:$0x8] }
 0x34b   : > { %v8072_v16 = vrot.slane %v8070_v17, 4  ;;  %v7329_v5 = vrot.slane %v7327_v27, 4  ;;  %v8013_v13 = vsel %vm870_vm1, %v8004_v6, %v8012_v51  ;;  %v8077_v45 = vrot.slane %v8075_v23, 3 }
 0x34c   : > { %v8021_v49 = vor.u32 %v8020_v10, %v8017_v0  ;;  %v7330_v62 = vshll.u32 %v11763_v46, 16  ;;  %v8080_v31 = vrot.slane %v8078_v52, 4  ;;  %v11745_v57 = vcombine.low %v7062_v34, %v7063_v14 }
 0x34d   : > { %v8073_v20 = vor.u32 %v8072_v16, %v8069_v26  ;;  %v11746_v48 = vcombine.low %v7064_v60, %v7064_v60  ;;  %v11764_v43 = vcombine.low %v7067_v32, %v7068_v58  ;;  %v7436_v36 = vrot.slane %v13741_v7, 5 }
 0x34e   : > { %8503 = vmatprep.mubr.bf16.mxu1 %v8021_v49  ;;  %v7332_v4 = vrot.slane %v7330_v62, 5  ;;  %v11747_v29 = vcombine.low %v7066_v19, %v7067_v32  ;;  %v8081_v63 = vor.u32 %v8080_v31, %v8077_v45  ;;  %v8041_v1 = vshrl.u32 %v11745_v57, 16 }
 0x34f   : > { %8504 = vmatmul.mubr.bf16.gmra.mxu1 %v8013_v13  ;;  %v8044_v25 = vshll.u32 %v11745_v57, 16  ;;  %v8049_v28 = vshrl.u32 %v11746_v48, 16  ;;  %v8052_v3 = vshll.u32 %v11746_v48, 16  ;;  %v7435_v9 = vrot.slane %v11764_v43, 5 }
 0x350   : > { %v7333_v55 = vor.u32 %v7332_v4, %v7329_v5  ;;  %v7335_v47 = vshrl.u32 %v11764_v43, 16  ;;  %v8082_v54 = vsel %vm870_vm1, %v8073_v20, %v8081_v63  ;;  %v8043_v22 = vrot.slane %v8041_v1, 3 }
 0x351   : > { %v8046_v59 = vrot.slane %v8044_v25, 4  ;;  %v8051_v18 = vrot.slane %v8049_v28, 3  ;;  %13200 = vmatprep.mubr.bf16.mxu0 %v8082_v54  ;;  %v8054_v11 = vrot.slane %v8052_v3, 4  ;;  %v7437_v44 = vsel %vm821_vm0, %v7435_v9, %v7436_v36 }
 0x352   : > { %v8058_v60 = vshrl.u32 %v7333_v55, 16  ;;  %v8061_v14 = vshll.u32 %v7333_v55, 16  ;;  %v8110_v46 = vshrl.u32 %v7435_v9, 16  ;;  %v8113_v39 = vshll.u32 %v7435_v9, 16 }
 0x353   : > { %v8047_v24 = vor.u32 %v8046_v59, %v8043_v22  ;;  %v8118_v33 = vshrl.u32 %v7437_v44, 16  ;;  %v8055_v53 = vor.u32 %v8054_v11, %v8051_v18  ;;  %v8121_v41 = vshll.u32 %v7437_v44, 16  ;;  %v13750_v55 = vld [vmem:[#allocation2 + $0xc] ss:$0 sps:$4 sm:$0x11]  }
 0x354   : > { %v8060_v61 = vrot.slane %v8058_v60, 3  ;;  %v8063_v56 = vrot.slane %v8061_v14, 4  ;;  %v8112_v15 = vrot.slane %v8110_v46, 3  ;;  %v8115_v50 = vrot.slane %v8113_v39, 4 }
 0x355   : > { %v8120_v38 = vrot.slane %v8118_v33, 3  ;;  %v7337_v27 = vrot.slane %v7335_v47, 4  ;;  %v8056_v42 = vsel %vm870_vm1, %v8047_v24, %v8055_v53  ;;  %v8123_v37 = vrot.slane %v8121_v41, 4 }
 0x356   : > { %v8064_v12 = vor.u32 %v8063_v56, %v8060_v61  ;;  %v7338_v7 = vshll.u32 %v11764_v43, 16  ;;  %v8116_v6 = vor.u32 %v8115_v50, %v8112_v15  ;;  %v11748_v40 = vcombine.low %v7068_v58, %v7068_v58  ;;  %v13751_v61 = vld [vmem:[#allocation2 + $0x1c] ss:$0 sps:$4 sm:$0x11]  }
 0x357   : > { %v8084_v35 = vshrl.u32 %v11747_v29, 16  ;;  %v8087_v17 = vshll.u32 %v11747_v29, 16  ;;  %v8124_v34 = vor.u32 %v8123_v37, %v8120_v38  ;;  %v11685_v0 = vcombine.low %v5791_v2, %v5792_v8 }
 0x358   : > { %8511 = vmatprep.mubr.bf16.mxu1 %v8064_v12  ;;  %v7340_v19 = vrot.slane %v7338_v7, 5  ;;  %v11653_v10 = vcombine.low %v5790_v21, %v5791_v2  ;;  %v8092_v32 = vshrl.u32 %v11748_v40, 16  ;;  %v8095_v26 = vshll.u32 %v11748_v40, 16  ;;  %v13754_v21 = vld [vmem:[#allocation2 + $0x2c] ss:$0 sps:$4 sm:$0x11]  }
 0x359   : > { %8512 = vmatmul.mubr.bf16.gmra.mxu1 %v8056_v42  ;;  %v8086_v51 = vrot.slane %v8084_v35, 3  ;;  %v8089_v23 = vrot.slane %v8087_v17, 4  ;;  %v8125_v16 = vsel %vm870_vm1, %v8116_v6, %v8124_v34  ;;  %v5999_v5 = vshrl.u32 %v11685_v0, 16  ;;  %v13773_v6 = vld [vmem:[#allocation8 + $0x230] sm:$0xff]  }
 0x35a   : > { %v7341_v52 = vor.u32 %v7340_v19, %v7337_v27  ;;  %v6002_v49 = vshll.u32 %v11685_v0, 16  ;;  %13201 = vmatmul.mubr.bf16.gmra.mxu0 %v8125_v16  ;;  %v8094_v58 = vrot.slane %v8092_v32, 3  ;;  %v8097_v45 = vrot.slane %v8095_v26, 4 }
 0x35b   : > { %v8090_v13 = vor.u32 %v8089_v23, %v8086_v51  ;;  %v11654_v62 = vcombine.low %v5792_v8, %v5792_v8  ;;  %v6001_v57 = vrot.slane %v5999_v5, 4  ;;  %v6223_v43 = vshrl.u32 %v11653_v10, 16  ;;  %v15882_v23 = vld [vmem:[#allocation2 + $0x28] sm:$0xf]  ;;  %v5794_v5 = vld [vmem:[#allocation2 + $0x10] sm:$0x8] }
 0x35c   : > { %v8101_v20 = vshrl.u32 %v7341_v52, 16  ;;  %v8104_v31 = vshll.u32 %v7341_v52, 16  ;;  %v6004_v48 = vrot.slane %v6002_v49, 5  ;;  %v8098_v4 = vor.u32 %v8097_v45, %v8094_v58  ;;  %v13902_v52 = vld [vmem:[#allocation8 + $0x238] sm:$0xff]  }
 0x35d   : > { %v6226_v36 = vshll.u32 %v11653_v10, 16  ;;  %v6231_v29 = vshrl.u32 %v11654_v62, 16  ;;  %v6234_v28 = vshll.u32 %v11654_v62, 16  ;;  %v6225_v9 = vrot.slane %v6223_v43, 3  ;;  %v15885_v62 = vld [vmem:[#allocation2 + $0x24] sm:$0xf] }
 0x35e   : > { %v8103_v63 = vrot.slane %v8101_v20, 3  ;;  %v8106_v1 = vrot.slane %v8104_v31, 4  ;;  %v6005_v25 = vor.u32 %v6004_v48, %v6001_v57  ;;  %v8099_v3 = vsel %vm870_vm1, %v8090_v13, %v8098_v4  ;;  %v13790_v4 = vld [vmem:[#allocation8 + $0x228] sm:$0xff]  }
 0x35f   : > { %v6228_v47 = vrot.slane %v6226_v36, 4  ;;  %v6233_v54 = vrot.slane %v6231_v29, 3  ;;  %v6236_v60 = vrot.slane %v6234_v28, 4  ;;  %v6007_v11 = vshrl.u32 %v15621_v30, 16 }
 0x360   : > { %v8107_v22 = vor.u32 %v8106_v1, %v8103_v63  ;;  %v6240_v59 = vshrl.u32 %v6005_v25, 16  ;;  %v6243_v18 = vshll.u32 %v6005_v25, 16  ;;  %v6010_v44 = vshll.u32 %v15621_v30, 16  ;;  %v13903_v1 = vld [vmem:[#allocation2 + $0x14] sm:$0xf] }
 0x361   : > { %v6229_v14 = vor.u32 %v6228_v47, %v6225_v9  ;;  %v6174_v24 = vrot.slane %v11685_v0, 5  ;;  %v6237_v33 = vor.u32 %v6236_v60, %v6233_v54  ;;  %v6175_v2 = vrot.slane %v13750_v55, 5 }
 0x362   : > { %8519 = vmatprep.mubr.bf16.mxu1 %v8107_v22  ;;  %v6242_v46 = vrot.slane %v6240_v59, 3  ;;  %v6245_v39 = vrot.slane %v6243_v18, 4  ;;  %v6009_v56 = vrot.slane %v6007_v11, 4  ;;  %v6012_v53 = vrot.slane %v6010_v44, 5  ;;  %v13755_v59 = vld [vmem:[#allocation8 + $0x1b8] sm:$0xff]   ;;  %v13807_v44 = vld [vmem:[#allocation8 + $0x220] sm:$0xff]  }
 0x363   : > { %8520 = vmatmul.mubr.bf16.gmra.mxu1 %v8099_v3  ;;  %v6249_v41 = vshrl.u32 %v6174_v24, 16  ;;  %v6252_v8 = vshll.u32 %v6174_v24, 16  ;;  %v6238_v50 = vsel %vm870_vm1, %v6229_v14, %v6237_v33  ;;  %v6176_v38 = vsel %vm821_vm0, %v6174_v24, %v6175_v2  ;;  %v13904_v3 = vld [vmem:[#allocation2 + $0x18] sm:$0xf] }
 0x364   : > { %v6246_v15 = vor.u32 %v6245_v39, %v6242_v46  ;;  %v6177_v27 = vrot.slane %v15621_v30, 5  ;;  %v6013_v12 = vor.u32 %v6012_v53, %v6009_v56  ;;  %v6257_v7 = vshrl.u32 %v6176_v38, 16  ;;  %v13760_v11 = vld [vmem:[#allocation2 + $0x3c] ss:$0 sps:$4 sm:$0x11]  }
 0x365   : > { %v6251_v42 = vrot.slane %v6249_v41, 3  ;;  %v6254_v37 = vrot.slane %v6252_v8, 4  ;;  %v6260_v40 = vshll.u32 %v6176_v38, 16  ;;  %v6178_v35 = vrot.slane %v13751_v61, 5  ;;  %v15895_v2 = vld [vmem:[#allocation2 + $0x38] sm:$0xf] }
 0x366   : > { %8865 = vmatprep.mubr.bf16.mxu0 %v6246_v15  ;;  %v6292_v17 = vshrl.u32 %v6177_v27, 16  ;;  %v6295_v34 = vshll.u32 %v6177_v27, 16  ;;  %v6283_v19 = vshrl.u32 %v6013_v12, 16  ;;  %v6286_v0 = vshll.u32 %v6013_v12, 16  ;;  %v13761_v61 = vld [vmem:[#allocation8 + $0x1f0] sm:$0xff]  }
 0x367   : > { %8866 = vmatmul.mubr.bf16.vlgmr.msra.gmra.mxu0 %v6238_v50  ;;  %v6255_v10 = vor.u32 %v6254_v37, %v6251_v42  ;;  %v6259_v51 = vrot.slane %v6257_v7, 3  ;;  %v6262_v32 = vrot.slane %v6260_v40, 4  ;;  %v6179_v30 = vsel %vm821_vm0, %v6177_v27, %v6178_v35  ;;  %v15900_v50 = vld [vmem:[#allocation2 + $0x34] sm:$0xf]  ;;  %v5798_v27 = vld [vmem:[#allocation2 + $0x20] sm:$0x8] }
 0x368   : > { %v6294_v26 = vrot.slane %v6292_v17, 3  ;;  %v6297_v16 = vrot.slane %v6295_v34, 4  ;;  %13253 = vmatpush3.bf16.msra.mxu0 %v13902_v52  ;;  %v6285_v49 = vrot.slane %v6283_v19, 3  ;;  %v6288_v13 = vrot.slane %v6286_v0, 4  ;;  %v15902_v7 = vld [vmem:[#allocation2 + $0x48] sm:$0xf] }
 0x369   : > { %v6300_v58 = vshrl.u32 %v6179_v30, 16  ;;  %v6303_v45 = vshll.u32 %v6179_v30, 16  ;;  %13254 = vmatprep.subr.bf16.mxu0 %v13773_v6  ;;  %v6263_v20 = vor.u32 %v6262_v32, %v6259_v51  ;;  %v11687_v57 = vcombine.low %v15885_v62, %v15882_v23  ;;  %v15889_v43 = vpop.f32.mrf.mxu1  ;;  %v13763_v38 = vld [vmem:[#allocation2 + $0x4c] ss:$0 sps:$4 sm:$0x11]   ;;  %v13764_v34 = vld [vmem:[#allocation8 + $0x1b0] sm:$0xff]  }
 0x36a   : > { %v6298_v31 = vor.u32 %v6297_v16, %v6294_v26  ;;  %v6181_v48 = vrot.slane %v13754_v21, 5  ;;  %v6289_v36 = vor.u32 %v6288_v13, %v6285_v49  ;;  %v11655_v25 = vcombine.low %v5794_v5, %v13903_v1  ;;  %v13820_v19 = vld [vmem:[#allocation8 + $0x218] sm:$0xff]   ;;  %v15910_v26 = vld [vmem:[#allocation2 + $0x44] sm:$0xf]  ;;  %v13769_v16 = vld [vmem:[#allocation8 + $0x1e8] sm:$0xff]  }
 0x36b   : > { %v6302_v29 = vrot.slane %v6300_v58, 3  ;;  %v6305_v63 = vrot.slane %v6303_v45, 4  ;;  %v6264_v28 = vsel %vm870_vm1, %v6255_v10, %v6263_v20  ;;  %v6180_v55 = vrot.slane %v11687_v57, 5  ;;  %v15892_v54 = vpop.f32.mrf.mxu1 }
 0x36c   : > { %v11656_v9 = vcombine.low %v13904_v3, %v13904_v3  ;;  %v6015_v47 = vshrl.u32 %v11687_v57, 16  ;;  %13255 = vmatpush3.bf16.msra.mxu0 %v13773_v6  ;;  %8873 = vmatprep.mubr.bf16.mxu0 %v6289_v36  ;;  %v6266_v18 = vshrl.u32 %v11655_v25, 16  ;;  %v6269_v60 = vshll.u32 %v11655_v25, 16 }
 0x36d   : > { %13220 = vmatprep.mubr.bf16.mxu1 %v6264_v28  ;;  %v6306_v22 = vor.u32 %v6305_v63, %v6302_v29  ;;  %v6018_v14 = vshll.u32 %v11687_v57, 16  ;;  %v6182_v24 = vsel %vm821_vm0, %v6180_v55, %v6181_v48  ;;  %v6335_v46 = vshrl.u32 %v6180_v55, 16  ;;  %13256 = vmatprep.subr.bf16.mxu0 %v13790_v4  ;;  %v15897_v56 = vpop.f32.mrf.mxu1  ;;  %v13772_v29 = vld [vmem:[#allocation8 + $0x1a8] sm:$0xff]  }
 0x36e   : > { %v6338_v39 = vshll.u32 %v6180_v55, 16  ;;  %v6274_v33 = vshrl.u32 %v11656_v9, 16  ;;  %v6343_v41 = vshrl.u32 %v6182_v24, 16  ;;  %v6346_v8 = vshll.u32 %v6182_v24, 16  ;;  %v13778_v55 = vld [vmem:[#allocation8 + $0x1e0] sm:$0xff]  }
 0x36f   : > { %v6307_v53 = vsel %vm870_vm1, %v6298_v31, %v6306_v22  ;;  %v6268_v15 = vrot.slane %v6266_v18, 3  ;;  %v6337_v21 = vrot.slane %v6335_v46, 3  ;;  %v6271_v42 = vrot.slane %v6269_v60, 4  ;;  %v15904_v0 = vpop.f32.mrf.mxu1 }
 0x370   : > { %13221 = vmatmul.mubr.bf16.vlgmr.msra.gmra.mxu1 %v6307_v53  ;;  %v6340_v12 = vrot.slane %v6338_v39, 4  ;;  %v6276_v37 = vrot.slane %v6274_v33, 3  ;;  %13257 = vmatpush3.bf16.msra.mxu0 %v13790_v4  ;;  %v6345_v6 = vrot.slane %v6343_v41, 3  ;;  %v6348_v40 = vrot.slane %v6346_v8, 4  ;;  %v13781_v33 = vld [vmem:[#allocation8 + $0x1a0] sm:$0xff]  }
 0x371   : > { %12877 = vmatpush3.bf16.msra.mxu1 %v13755_v59  ;;  %v6277_v35 = vshll.u32 %v11656_v9, 16  ;;  %v6017_v17 = vrot.slane %v6015_v47, 4  ;;  %13258 = vmatprep.subr.bf16.mxu0 %v13807_v44  ;;  %v6272_v51 = vor.u32 %v6271_v42, %v6268_v15  ;;  %v6020_v32 = vrot.slane %v6018_v14, 5  ;;  %v13831_v59 = vld [vmem:[#allocation8 + $0x210] sm:$0xff]   ;;  %v13786_v15 = vld [vmem:[#allocation8 + $0x1d8] sm:$0xff]  }
 0x372   : > { %v6341_v10 = vor.u32 %v6340_v12, %v6337_v21  ;;  %v15908_v30 = vcombine.low %v15900_v50, %v15895_v2  ;;  %12878 = vmatprep.subr.bf16.mxu1 %v13761_v61  ;;  %v6349_v52 = vor.u32 %v6348_v40, %v6345_v6  ;;  %v6184_v49 = vrot.slane %v13760_v11, 5  ;;  %v13768_v42 = vld [vmem:[#allocation2 + $0x5c] ss:$0 sps:$4 sm:$0x11]  }
 0x373   : > { %v6279_v5 = vrot.slane %v6277_v35, 4  ;;  %v15914_v13 = vcombine.low %v15910_v26, %v15902_v7  ;;  %v6021_v58 = vor.u32 %v6020_v32, %v6017_v17  ;;  %v6187_v20 = vrot.slane %v13763_v38, 5  ;;  %v15935_v17 = vld [vmem:[#allocation2 + $0x54] sm:$0xf] }
 0x374   : > { %v6183_v45 = vrot.slane %v15908_v30, 5  ;;  %v15918_v31 = vcombine.low %v5798_v27, %v15885_v62  ;;  %13259 = vmatpush3.bf16.msra.mxu0 %v13807_v44  ;;  %v6350_v57 = vsel %vm870_vm1, %v6341_v10, %v6349_v52  ;;  %v15924_v36 = vcombine.low %v15882_v23, %v15882_v23  ;;  %v15926_v63 = vpop.f32.mrf.mxu1  ;;  %v15944_v52 = vld [vmem:[#allocation2 + $0x68] sm:$0xf] }
 0x375   : > { %v6280_v48 = vor.u32 %v6279_v5, %v6276_v37  ;;  %v6186_v4 = vrot.slane %v15914_v13, 5  ;;  %12879 = vmatpush3.bf16.msra.mxu1 %v13764_v34  ;;  %13260 = vmatprep.subr.bf16.mxu0 %v13820_v19  ;;  %v6326_v1 = vshrl.u32 %v6021_v58, 16  ;;  %v6329_v25 = vshll.u32 %v6021_v58, 16  ;;  %v15937_v34 = vld [vmem:[#allocation2 + $0x58] sm:$0xf] }
 0x376   : > { %13224 = vmatprep.mubr.bf16.mxu1 %v6350_v57  ;;  %v6185_v62 = vsel %vm821_vm0, %v6183_v45, %v6184_v49  ;;  %v6378_v28 = vshrl.u32 %v6183_v45, 16  ;;  %12880 = vmatprep.subr.bf16.mxu1 %v13769_v16  ;;  %v6381_v9 = vshll.u32 %v6183_v45, 16  ;;  %v15931_v11 = vpop.f32.mrf.mxu1  ;;  %v6309_v12 = vshrl.u32 %v15918_v31, 16  ;;  %v13789_v5 = vld [vmem:[#allocation8 + $0x198] sm:$0xff]   ;;  %v13795_v57 = vld [vmem:[#allocation8 + $0x1d0] sm:$0xff]  }
 0x377   : > { %v6281_v3 = vsel %vm870_vm1, %v6272_v51, %v6280_v48  ;;  %v6386_v47 = vshrl.u32 %v6185_v62, 16  ;;  %v6389_v22 = vshll.u32 %v6185_v62, 16  ;;  %v6328_v23 = vrot.slane %v6326_v1, 3  ;;  %v5802_v1 = vld [vmem:[#allocation2 + $0x30] sm:$0x8] }
 0x378   : > { %8874 = vmatmul.mubr.bf16.gmra.mxu0 %v6281_v3  ;;  %v6331_v18 = vrot.slane %v6329_v25, 4  ;;  %v6380_v60 = vrot.slane %v6378_v28, 3  ;;  %v6188_v14 = vsel %vm821_vm0, %v6186_v4, %v6187_v20  ;;  %v6383_v44 = vrot.slane %v6381_v9, 4  ;;  %v15953_v3 = vld [vmem:[#allocation2 + $0x64] sm:$0xf] }
 0x379   : > { %v6388_v24 = vrot.slane %v6386_v47, 3  ;;  %v6391_v46 = vrot.slane %v6389_v22, 4  ;;  %v6421_v39 = vshrl.u32 %v6186_v4, 16  ;;  %12881 = vmatpush3.bf16.msra.mxu1 %v13772_v29  ;;  %13261 = vmatpush3.bf16.msra.mxu0 %v13820_v19  ;;  %v6424_v53 = vshll.u32 %v6186_v4, 16  ;;  %v15939_v19 = vpop.f32.mrf.mxu1 }
 0x37a   : > { %v6332_v61 = vor.u32 %v6331_v18, %v6328_v23  ;;  %v6429_v41 = vshrl.u32 %v6188_v14, 16  ;;  %v6432_v8 = vshll.u32 %v6188_v14, 16  ;;  %12882 = vmatprep.subr.bf16.mxu1 %v13778_v55  ;;  %13262 = vmatprep.subr.bf16.mxu0 %v13831_v59  ;;  %v6384_v38 = vor.u32 %v6383_v44, %v6380_v60  ;;  %v13798_v23 = vld [vmem:[#allocation8 + $0x190] sm:$0xff]  }
 0x37b   : > { %v6392_v27 = vor.u32 %v6391_v46, %v6388_v24  ;;  %v6423_v21 = vrot.slane %v6421_v39, 3  ;;  %v6426_v37 = vrot.slane %v6424_v53, 4  ;;  %v6312_v35 = vshll.u32 %v15918_v31, 16  ;;  %v13771_v31 = vld [vmem:[#allocation2 + $0x6c] ss:$0 sps:$4 sm:$0x11]   ;;  %v15955_v9 = vpop.f32.mrf.mxu1 }
 0x37c   : > { %8881 = vmatprep.mubr.bf16.mxu0 %v6332_v61  ;;  %v6431_v6 = vrot.slane %v6429_v41, 3  ;;  %v6434_v40 = vrot.slane %v6432_v8, 4  ;;  %v6311_v51 = vrot.slane %v6309_v12, 3  ;;  %v6317_v32 = vshrl.u32 %v15924_v36, 16  ;;  %v13803_v24 = vld [vmem:[#allocation8 + $0x1c8] sm:$0xff]  }
 0x37d   : > { %v6393_v10 = vsel %vm870_vm1, %v6384_v38, %v6392_v27  ;;  %v6320_v16 = vshll.u32 %v15924_v36, 16  ;;  %12883 = vmatpush3.bf16.msra.mxu1 %v13781_v33  ;;  %13263 = vmatpush3.bf16.msra.mxu0 %v13831_v59  ;;  %v6427_v49 = vor.u32 %v6426_v37, %v6423_v21  ;;  %v6314_v45 = vrot.slane %v6312_v35, 4  ;;  %v13806_v12 = vld [vmem:[#allocation8 + $0x188] sm:$0xff]   ;;  %v13812_v35 = vld [vmem:[#allocation8 + $0x1c0] sm:$0xff]  }
 0x37e   : > { %13225 = vmatmul.mubr.bf16.gmra.mxu1 %v6393_v10  ;;  %v6435_v58 = vor.u32 %v6434_v40, %v6431_v6  ;;  %v6023_v20 = vshrl.u32 %v15908_v30, 16  ;;  %12884 = vmatprep.subr.bf16.mxu1 %v13786_v15  ;;  %v6319_v48 = vrot.slane %v6317_v32, 3  ;;  %v6026_v29 = vshll.u32 %v15908_v30, 16 }
 0x37f   : > { %v6322_v4 = vrot.slane %v6320_v16, 4  ;;  %v15950_v36 = vcombine.low %v15935_v17, %v15937_v34  ;;  %v6315_v62 = vor.u32 %v6314_v45, %v6311_v51  ;;  %v6190_v55 = vrot.slane %v13768_v42, 5 }
 0x380   : > { %v6436_v25 = vsel %vm870_vm1, %v6427_v49, %v6435_v58  ;;  %v6025_v28 = vrot.slane %v6023_v20, 4  ;;  %v6028_v22 = vrot.slane %v6026_v29, 5  ;;  %v15960_v30 = vcombine.low %v15953_v3, %v15944_v52 }
 0x381   : > { %13228 = vmatprep.mubr.bf16.mxu1 %v6436_v25  ;;  %v6323_v47 = vor.u32 %v6322_v4, %v6319_v48  ;;  %v6189_v59 = vrot.slane %v15950_v36, 5  ;;  %12885 = vmatpush3.bf16.msra.mxu1 %v13789_v5  ;;  %v6193_v18 = vrot.slane %v13771_v31, 5  ;;  %v11659_v60 = vcombine.low %v5802_v1, %v15900_v50  ;;  %v13777_v31 = vld [vmem:[#allocation2 + $0x7c] ss:$0 sps:$4 sm:$0x11]  }
 0x382   : > { %v15965_v14 = vcombine.low %v15895_v2, %v15895_v2  ;;  %v6031_v44 = vshrl.u32 %v15914_v13, 16  ;;  %12886 = vmatprep.subr.bf16.mxu1 %v13795_v57  ;;  %v6029_v39 = vor.u32 %v6028_v22, %v6025_v28  ;;  %v6192_v50 = vrot.slane %v15960_v30, 5  ;;  %v15976_v1 = vld [vmem:[#allocation2 + $0x74] sm:$0xf]  ;;  %v15978_v25 = vld [vmem:[#allocation2 + $0x78] sm:$0xf] }
 0x383   : > { %v6324_v46 = vsel %vm870_vm1, %v6315_v62, %v6323_v47  ;;  %v6191_v33 = vsel %vm821_vm0, %v6189_v59, %v6190_v55  ;;  %v6464_v61 = vshrl.u32 %v6189_v59, 16  ;;  %v6467_v53 = vshll.u32 %v6189_v59, 16  ;;  %v15971_v15 = vpop.f32.mrf.mxu1  ;;  %v13813_v62 = vld [vmem:[#allocation8 + $0x180] sm:$0xff]   ;;  %v15981_v59 = vld [vmem:[#allocation2 + $0x88] sm:$0xf] }
 0x384   : > { %8882 = vmatmul.mubr.bf16.gmra.mxu0 %v6324_v46  ;;  %v6472_v41 = vshrl.u32 %v6191_v33, 16  ;;  %v6475_v8 = vshll.u32 %v6191_v33, 16  ;;  %17526 = vst [vmem:[#allocation64_spill] sm:$0xff] %v15971_v15  ;;  %v6369_v2 = vshrl.u32 %v6029_v39, 16  ;;  %v6372_v38 = vshll.u32 %v6029_v39, 16 }
 0x385   : > { %v6466_v27 = vrot.slane %v6464_v61, 3  ;;  %v6352_v21 = vshrl.u32 %v11659_v60, 16  ;;  %12887 = vmatpush3.bf16.msra.mxu1 %v13798_v23  ;;  %v6469_v42 = vrot.slane %v6467_v53, 4  ;;  %v6194_v40 = vsel %vm821_vm0, %v6192_v50, %v6193_v18  ;;  %v15974_v10 = vpop.f32.mrf.mxu1  ;;  %v13780_v33 = vld [vmem:[#allocation2 + $0x8c] ss:$0 sps:$4 sm:$0x11]  }
 0x386   : > { %v6474_v37 = vrot.slane %v6472_v41, 3  ;;  %v6477_v6 = vrot.slane %v6475_v8, 4  ;;  %12888 = vmatprep.subr.bf16.mxu1 %v13803_v24  ;;  %17527 = vst [vmem:[#allocation114_spill] sm:$0xff] %v15974_v10  ;;  %v6371_v51 = vrot.slane %v6369_v2, 3  ;;  %v6374_v32 = vrot.slane %v6372_v38, 4 }
 0x387   : > { %v6507_v16 = vshrl.u32 %v6192_v50, 16  ;;  %v6510_v5 = vshll.u32 %v6192_v50, 16  ;;  %v6470_v49 = vor.u32 %v6469_v42, %v6466_v27  ;;  %v6515_v45 = vshrl.u32 %v6194_v40, 16  ;;  %v15983_v23 = vpop.f32.mrf.mxu1  ;;  %v15992_v8 = vld [vmem:[#allocation2 + $0x84] sm:$0xf] }
 0x388   : > { %v6478_v58 = vor.u32 %v6477_v6, %v6474_v37  ;;  %v6518_v20 = vshll.u32 %v6194_v40, 16  ;;  %v6375_v57 = vor.u32 %v6374_v32, %v6371_v51  ;;  %v6354_v29 = vrot.slane %v6352_v21, 3  ;;  %17528 = vst [vmem:[#allocation117_spill] sm:$0xff] %v15983_v23  ;;  %v5806_v50 = vld [vmem:[#allocation2 + $0x40] sm:$0x8] }
 0x389   : > { %v6509_v48 = vrot.slane %v6507_v16, 3  ;;  %v6512_v4 = vrot.slane %v6510_v5, 4  ;;  %12889 = vmatpush3.bf16.msra.mxu1 %v13806_v12  ;;  %v6517_v55 = vrot.slane %v6515_v45, 3  ;;  %v6355_v22 = vshll.u32 %v11659_v60, 16  ;;  %v16000_v42 = vpop.f32.mrf.mxu1  ;;  %v16121_v23 = vld [vmem:[#allocation2 + $0xf8] sm:$0xf] }
 0x38a   : > { %v6479_v28 = vsel %vm870_vm1, %v6470_v49, %v6478_v58  ;;  %v6520_v47 = vrot.slane %v6518_v20, 4  ;;  %12890 = vmatprep.subr.bf16.mxu1 %v13812_v35  ;;  %8889 = vmatprep.mubr.bf16.mxu0 %v6375_v57  ;;  %v6360_v24 = vshrl.u32 %v15965_v14, 16  ;;  %v6363_v46 = vshll.u32 %v15965_v14, 16  ;;  %17529 = vst [vmem:[#allocation13_spill] sm:$0xff] %v16000_v42 }
 0x38b   : > { %13229 = vmatmul.mubr.bf16.gmra.mxu1 %v6479_v28  ;;  %v6513_v18 = vor.u32 %v6512_v4, %v6509_v48  ;;  %v6033_v39 = vrot.slane %v6031_v44, 4  ;;  %v6357_v53 = vrot.slane %v6355_v22, 4  ;;  %v6034_v41 = vshll.u32 %v15914_v13, 16 }
 0x38c   : > { %v6521_v61 = vor.u32 %v6520_v47, %v6517_v55  ;;  %v15990_v60 = vcombine.low %v15976_v1, %v15978_v25  ;;  %v6362_v2 = vrot.slane %v6360_v24, 3  ;;  %v6365_v38 = vrot.slane %v6363_v46, 4 }
 0x38d   : > { %v6196_v27 = vrot.slane %v13777_v31, 5  ;;  %v15996_v21 = vcombine.low %v15992_v8, %v15981_v59  ;;  %12891 = vmatpush3.bf16.msra.mxu1 %v13813_v62  ;;  %v6358_v44 = vor.u32 %v6357_v53, %v6354_v29  ;;  %v6036_v12 = vrot.slane %v6034_v41, 5  ;;  %v13842_v31 = vld [vmem:[#allocation8 + $0x208] sm:$0xff]  }
 0x38e   : > { %v6522_v14 = vsel %vm870_vm1, %v6513_v18, %v6521_v61  ;;  %v6195_v13 = vrot.slane %v15990_v60, 5  ;;  %v6366_v37 = vor.u32 %v6365_v38, %v6362_v2  ;;  %v6199_v40 = vrot.slane %v13780_v33, 5  ;;  %13264 = vmatprep.subr.bf16.mxu0 %v13842_v31 }
 0x38f   : > { %13232 = vmatprep.mubr.bf16.mxu1 %v6522_v14  ;;  %v6198_v6 = vrot.slane %v15996_v21, 5  ;;  %v11661_v35 = vcombine.low %v5806_v50, %v15910_v26  ;;  %v6037_v51 = vor.u32 %v6036_v12, %v6033_v39  ;;  %13265 = vmatpush3.bf16.msra.mxu0 %v13842_v31  ;;  %v16011_v50 = vld [vmem:[#allocation2 + $0x98] sm:$0xf] }
 0x390   : > { %v6197_v32 = vsel %vm821_vm0, %v6195_v13, %v6196_v27  ;;  %v6550_v16 = vshrl.u32 %v6195_v13, 16  ;;  %v6553_v5 = vshll.u32 %v6195_v13, 16  ;;  %v6367_v49 = vsel %vm870_vm1, %v6358_v44, %v6366_v37  ;;  %v13785_v44 = vld [vmem:[#allocation2 + $0x9c] ss:$0 sps:$4 sm:$0x11]  }
 0x391   : > { %v6558_v58 = vshrl.u32 %v6197_v32, 16  ;;  %v6561_v45 = vshll.u32 %v6197_v32, 16  ;;  %v6200_v20 = vsel %vm821_vm0, %v6198_v6, %v6199_v40  ;;  %8890 = vmatmul.mubr.bf16.gmra.mxu0 %v6367_v49  ;;  %v6412_v57 = vshrl.u32 %v6037_v51, 16  ;;  %v16007_v62 = vpop.f32.mrf.mxu1  ;;  %v13788_v40 = vld [vmem:[#allocation2 + $0xac] ss:$0 sps:$4 sm:$0x11]  }
 0x392   : > { %v6415_v48 = vshll.u32 %v6037_v51, 16  ;;  %v6552_v4 = vrot.slane %v6550_v16, 3  ;;  %v6555_v29 = vrot.slane %v6553_v5, 4  ;;  %17530 = vst [vmem:[#allocation14_spill] sm:$0xff] %v16007_v62  ;;  %v6593_v55 = vshrl.u32 %v6198_v6, 16 }
 0x393   : > { %v6560_v26 = vrot.slane %v6558_v58, 3  ;;  %v6563_v28 = vrot.slane %v6561_v45, 4  ;;  %v6596_v47 = vshll.u32 %v6198_v6, 16  ;;  %v6414_v22 = vrot.slane %v6412_v57, 3  ;;  %v16009_v39 = vpop.f32.mrf.mxu1  ;;  %v16019_v58 = vld [vmem:[#allocation2 + $0x94] sm:$0xf] }
 0x394   : > { %v6417_v18 = vrot.slane %v6415_v48, 4  ;;  %v6556_v24 = vor.u32 %v6555_v29, %v6552_v4  ;;  %v6601_v46 = vshrl.u32 %v6200_v20, 16  ;;  %17531 = vst [vmem:[#allocation16_spill] sm:$0xff] %v16009_v39  ;;  %v6595_v61 = vrot.slane %v6593_v55, 3  ;;  %v5810_v57 = vld [vmem:[#allocation2 + $0x50] sm:$0x8] }
 0x395   : > { %v6564_v33 = vor.u32 %v6563_v28, %v6560_v26  ;;  %v6598_v53 = vrot.slane %v6596_v47, 4  ;;  %v6604_v41 = vshll.u32 %v6200_v20, 16  ;;  %v11662_v27 = vcombine.low %v15902_v7, %v15902_v7  ;;  %v16016_v51 = vpop.f32.mrf.mxu1 }
 0x396   : > { %v6418_v2 = vor.u32 %v6417_v18, %v6414_v22  ;;  %v6603_v38 = vrot.slane %v6601_v46, 3  ;;  %v6395_v14 = vshrl.u32 %v11661_v35, 16  ;;  %v6398_v6 = vshll.u32 %v11661_v35, 16  ;;  %17532 = vst [vmem:[#allocation18_spill] sm:$0xff] %v16016_v51  ;;  %v16026_v35 = vld [vmem:[#allocation2 + $0xa8] sm:$0xf] }
 0x397   : > { %v6565_v12 = vsel %vm870_vm1, %v6556_v24, %v6564_v33  ;;  %v6599_v13 = vor.u32 %v6598_v53, %v6595_v61  ;;  %v6606_v37 = vrot.slane %v6604_v41, 4  ;;  %v6403_v16 = vshrl.u32 %v11662_v27, 16  ;;  %v16030_v18 = vld [vmem:[#allocation2 + $0xa4] sm:$0xf] }
 0x398   : > { %8897 = vmatprep.mubr.bf16.mxu0 %v6418_v2  ;;  %13233 = vmatmul.mubr.bf16.gmra.mxu1 %v6565_v12  ;;  %v6397_v32 = vrot.slane %v6395_v14, 3  ;;  %v6406_v5 = vshll.u32 %v11662_v27, 16  ;;  %v6039_v49 = vshrl.u32 %v15950_v36, 16  ;;  %v6400_v45 = vrot.slane %v6398_v6, 4 }
 0x399   : > { %v6607_v7 = vor.u32 %v6606_v37, %v6603_v38  ;;  %v6042_v20 = vshll.u32 %v15950_v36, 16  ;;  %v16024_v31 = vcombine.low %v16019_v58, %v16011_v50  ;;  %v6405_v48 = vrot.slane %v6403_v16, 3  ;;  %v16032_v36 = vpop.f32.mrf.mxu1 }
 0x39a   : > { %v6408_v4 = vrot.slane %v6406_v5, 4  ;;  %v6041_v29 = vrot.slane %v6039_v49, 4  ;;  %v6202_v26 = vrot.slane %v13785_v44, 5  ;;  %v6401_v55 = vor.u32 %v6400_v45, %v6397_v32  ;;  %17533 = vst [vmem:[#allocation66_spill] sm:$0xff] %v16032_v36 }
 0x39b   : > { %v6608_v28 = vsel %vm870_vm1, %v6599_v13, %v6607_v7  ;;  %v6044_v47 = vrot.slane %v6042_v20, 5  ;;  %v6201_v22 = vrot.slane %v16024_v31, 5  ;;  %v16036_v46 = vcombine.low %v16030_v18, %v16026_v35 }
 0x39c   : > { %13236 = vmatprep.mubr.bf16.mxu1 %v6608_v28  ;;  %v6409_v24 = vor.u32 %v6408_v4, %v6405_v48  ;;  %v6205_v33 = vrot.slane %v13788_v40, 5  ;;  %v11663_v61 = vcombine.low %v5810_v57, %v15935_v17 }
 0x39d   : > { %v6045_v53 = vor.u32 %v6044_v47, %v6041_v29  ;;  %v6203_v41 = vsel %vm821_vm0, %v6201_v22, %v6202_v26  ;;  %v6636_v2 = vshrl.u32 %v6201_v22, 16  ;;  %v6639_v38 = vshll.u32 %v6201_v22, 16 }
 0x39e   : > { %v6410_v27 = vsel %vm870_vm1, %v6401_v55, %v6409_v24  ;;  %v6644_v14 = vshrl.u32 %v6203_v41, 16  ;;  %v6647_v44 = vshll.u32 %v6203_v41, 16  ;;  %v6204_v12 = vrot.slane %v16036_v46, 5  ;;  %v16042_v16 = vpop.f32.mrf.mxu1 }
 0x39f   : > { %8898 = vmatmul.mubr.bf16.gmra.mxu0 %v6410_v27  ;;  %v6455_v13 = vshrl.u32 %v6045_v53, 16  ;;  %v6458_v37 = vshll.u32 %v6045_v53, 16  ;;  %v6638_v6 = vrot.slane %v6636_v2, 3  ;;  %v6641_v32 = vrot.slane %v6639_v38, 4  ;;  %17534 = vst [vmem:[#allocation20_spill] sm:$0xff] %v16042_v16 }
 0x3a0   : > { %v6646_v40 = vrot.slane %v6644_v14, 3  ;;  %v6649_v17 = vrot.slane %v6647_v44, 4  ;;  %v6206_v5 = vsel %vm821_vm0, %v6204_v12, %v6205_v33  ;;  %v6679_v49 = vshrl.u32 %v6204_v12, 16  ;;  %v16045_v48 = vpop.f32.mrf.mxu1  ;;  %v13794_v53 = vld [vmem:[#allocation2 + $0xbc] ss:$0 sps:$4 sm:$0x11]  }
 0x3a1   : > { %v6457_v7 = vrot.slane %v6455_v13, 3  ;;  %v6460_v45 = vrot.slane %v6458_v37, 4  ;;  %v6642_v20 = vor.u32 %v6641_v32, %v6638_v6  ;;  %v6682_v57 = vshll.u32 %v6204_v12, 16  ;;  %17535 = vst [vmem:[#allocation22_spill] sm:$0xff] %v16045_v48  ;;  %v16050_v27 = vld [vmem:[#allocation2 + $0xb4] sm:$0xf] }
 0x3a2   : > { %v6650_v4 = vor.u32 %v6649_v17, %v6646_v40  ;;  %v6681_v29 = vrot.slane %v6679_v49, 3  ;;  %v6687_v26 = vshrl.u32 %v6206_v5, 16  ;;  %v6690_v28 = vshll.u32 %v6206_v5, 16  ;;  %v16052_v14 = vld [vmem:[#allocation2 + $0xb8] sm:$0xf]  ;;  %v16054_v32 = vpop.f32.mrf.mxu1 }
 0x3a3   : > { %v6461_v55 = vor.u32 %v6460_v45, %v6457_v7  ;;  %v6684_v47 = vrot.slane %v6682_v57, 4  ;;  %v11664_v22 = vcombine.low %v15937_v34, %v15937_v34  ;;  %v6438_v24 = vshrl.u32 %v11663_v61, 16  ;;  %v13797_v6 = vld [vmem:[#allocation2 + $0xcc] ss:$0 sps:$4 sm:$0x11]   ;;  %17536 = vst [vmem:[#allocation24_spill] sm:$0xff] %v16054_v32 }
 0x3a4   : > { %v6651_v33 = vsel %vm870_vm1, %v6642_v20, %v6650_v4  ;;  %v6689_v41 = vrot.slane %v6687_v26, 3  ;;  %v6692_v2 = vrot.slane %v6690_v28, 4  ;;  %v6441_v38 = vshll.u32 %v11663_v61, 16  ;;  %v16058_v61 = vld [vmem:[#allocation2 + $0xc8] sm:$0xf] }
 0x3a5   : > { %8905 = vmatprep.mubr.bf16.mxu0 %v6461_v55  ;;  %13237 = vmatmul.mubr.bf16.gmra.mxu1 %v6651_v33  ;;  %v6685_v44 = vor.u32 %v6684_v47, %v6681_v29  ;;  %v6440_v12 = vrot.slane %v6438_v24, 3  ;;  %v6446_v13 = vshrl.u32 %v11664_v22, 16  ;;  %v6449_v37 = vshll.u32 %v11664_v22, 16  ;;  %v5814_v57 = vld [vmem:[#allocation2 + $0x60] sm:$0x8]  ;;  %v16072_v33 = vpop.f32.mrf.mxu1 }
 0x3a6   : > { %v6693_v34 = vor.u32 %v6692_v2, %v6689_v41  ;;  %v6443_v40 = vrot.slane %v6441_v38, 4  ;;  %v6047_v17 = vshrl.u32 %v15960_v30, 16  ;;  %v6050_v5 = vshll.u32 %v15960_v30, 16  ;;  %v16065_v55 = vld [vmem:[#allocation2 + $0xc4] sm:$0xf]  ;;  %17537 = vst [vmem:[#allocation27_spill] sm:$0xff] %v16072_v33 }
 0x3a7   : > { %v6448_v49 = vrot.slane %v6446_v13, 3  ;;  %v6451_v7 = vrot.slane %v6449_v37, 4  ;;  %v16062_v45 = vcombine.low %v16050_v27, %v16052_v14  ;;  %v6208_v20 = vrot.slane %v13794_v53, 5  ;;  %v13802_v48 = vld [vmem:[#allocation2 + $0xdc] ss:$0 sps:$4 sm:$0x11]  }
 0x3a8   : > { %v6694_v4 = vsel %vm870_vm1, %v6685_v44, %v6693_v34  ;;  %v6444_v29 = vor.u32 %v6443_v40, %v6440_v12  ;;  %v6049_v26 = vrot.slane %v6047_v17, 4  ;;  %v6052_v28 = vrot.slane %v6050_v5, 5  ;;  %v13853_v44 = vld [vmem:[#allocation8 + $0x200] sm:$0xff]  }
 0x3a9   : > { %13240 = vmatprep.mubr.bf16.mxu1 %v6694_v4  ;;  %v6452_v47 = vor.u32 %v6451_v7, %v6448_v49  ;;  %v6207_v30 = vrot.slane %v16062_v45, 5  ;;  %v16070_v22 = vcombine.low %v16065_v55, %v16058_v61  ;;  %v6211_v24 = vrot.slane %v13797_v6, 5  ;;  %13266 = vmatprep.subr.bf16.mxu0 %v13853_v44 }
 0x3aa   : > { %v6053_v53 = vor.u32 %v6052_v28, %v6049_v26  ;;  %v11665_v41 = vcombine.low %v5814_v57, %v15953_v3  ;;  %v11666_v2 = vcombine.low %v15944_v52, %v15944_v52  ;;  %v6055_v38 = vshrl.u32 %v15990_v60, 16  ;;  %13267 = vmatpush3.bf16.msra.mxu0 %v13853_v44 }
 0x3ab   : > { %v6453_v12 = vsel %vm870_vm1, %v6444_v29, %v6452_v47  ;;  %v6209_v13 = vsel %vm821_vm0, %v6207_v30, %v6208_v20  ;;  %v6722_v37 = vshrl.u32 %v6207_v30, 16  ;;  %v6725_v34 = vshll.u32 %v6207_v30, 16 }
 0x3ac   : > { %8906 = vmatmul.mubr.bf16.gmra.mxu0 %v6453_v12  ;;  %v6498_v40 = vshrl.u32 %v6053_v53, 16  ;;  %v6501_v6 = vshll.u32 %v6053_v53, 16  ;;  %v6730_v17 = vshrl.u32 %v6209_v13, 16  ;;  %v6733_v5 = vshll.u32 %v6209_v13, 16  ;;  %v16081_v57 = vpop.f32.mrf.mxu1  ;;  %v16084_v12 = vld [vmem:[#allocation2 + $0xd8] sm:$0xf] }
 0x3ad   : > { %v6724_v49 = vrot.slane %v6722_v37, 3  ;;  %v6727_v3 = vrot.slane %v6725_v34, 4  ;;  %v6210_v7 = vrot.slane %v16070_v22, 5  ;;  %v6481_v52 = vshrl.u32 %v11665_v41, 16  ;;  %17538 = vst [vmem:[#allocation67_spill] sm:$0xff] %v16081_v57 }
 0x3ae   : > { %v6500_v4 = vrot.slane %v6498_v40, 3  ;;  %v6503_v29 = vrot.slane %v6501_v6, 4  ;;  %v6732_v26 = vrot.slane %v6730_v17, 3  ;;  %v6735_v20 = vrot.slane %v6733_v5, 4  ;;  %v16086_v13 = vpop.f32.mrf.mxu1  ;;  %v16088_v17 = vld [vmem:[#allocation2 + $0xe8] sm:$0xf] }
 0x3af   : > { %v6728_v28 = vor.u32 %v6727_v3, %v6724_v49  ;;  %v6212_v47 = vsel %vm821_vm0, %v6210_v7, %v6211_v24  ;;  %v6765_v30 = vshrl.u32 %v6210_v7, 16  ;;  %v6768_v53 = vshll.u32 %v6210_v7, 16  ;;  %17539 = vst [vmem:[#allocation17_spill] sm:$0xff] %v16086_v13  ;;  %v13805_v13 = vld [vmem:[#allocation2 + $0xec] ss:$0 sps:$4 sm:$0x11]  }
 0x3b0   : > { %v6504_v37 = vor.u32 %v6503_v29, %v6500_v4  ;;  %v6736_v34 = vor.u32 %v6735_v20, %v6732_v26  ;;  %v6773_v33 = vshrl.u32 %v6212_v47, 16  ;;  %v6776_v32 = vshll.u32 %v6212_v47, 16  ;;  %v16090_v5 = vpop.f32.mrf.mxu1  ;;  %v16093_v47 = vld [vmem:[#allocation2 + $0xd4] sm:$0xf] }
 0x3b1   : > { %v6767_v16 = vrot.slane %v6765_v30, 3  ;;  %v6770_v44 = vrot.slane %v6768_v53, 4  ;;  %v6483_v40 = vrot.slane %v6481_v52, 3  ;;  %v6484_v6 = vshll.u32 %v11665_v41, 16  ;;  %17540 = vst [vmem:[#allocation21_spill] sm:$0xff] %v16090_v5 }
 0x3b2   : > { %8913 = vmatprep.mubr.bf16.mxu0 %v6504_v37  ;;  %v6737_v24 = vsel %vm870_vm1, %v6728_v28, %v6736_v34  ;;  %v6775_v49 = vrot.slane %v6773_v33, 3  ;;  %v6778_v3 = vrot.slane %v6776_v32, 4  ;;  %v6489_v7 = vshrl.u32 %v11666_v2, 16  ;;  %v16100_v28 = vld [vmem:[#allocation2 + $0xe4] sm:$0xf] }
 0x3b3   : > { %13241 = vmatmul.mubr.bf16.gmra.mxu1 %v6737_v24  ;;  %v6771_v4 = vor.u32 %v6770_v44, %v6767_v16  ;;  %v6486_v29 = vrot.slane %v6484_v6, 4  ;;  %v6492_v26 = vshll.u32 %v11666_v2, 16  ;;  %v6057_v20 = vrot.slane %v6055_v38, 4  ;;  %v5818_v32 = vld [vmem:[#allocation2 + $0x70] sm:$0x8]  ;;  %v16106_v2 = vpop.f32.mrf.mxu1 }
 0x3b4   : > { %v6779_v52 = vor.u32 %v6778_v3, %v6775_v49  ;;  %v6491_v41 = vrot.slane %v6489_v7, 3  ;;  %v6058_v30 = vshll.u32 %v15990_v60, 16  ;;  %v16098_v53 = vcombine.low %v16093_v47, %v16084_v12  ;;  %17541 = vst [vmem:[#allocation15_spill] sm:$0xff] %v16106_v2 }
 0x3b5   : > { %v6487_v33 = vor.u32 %v6486_v29, %v6483_v40  ;;  %v6494_v37 = vrot.slane %v6492_v26, 4  ;;  %v6214_v34 = vrot.slane %v13802_v48, 5  ;;  %v16104_v16 = vcombine.low %v16100_v28, %v16088_v17 }
 0x3b6   : > { %v6780_v38 = vsel %vm870_vm1, %v6771_v4, %v6779_v52  ;;  %v6060_v44 = vrot.slane %v6058_v30, 5  ;;  %v6213_v60 = vrot.slane %v16098_v53, 5  ;;  %v6217_v6 = vrot.slane %v13805_v13, 5 }
 0x3b7   : > { %13244 = vmatprep.mubr.bf16.mxu1 %v6780_v38  ;;  %v6495_v24 = vor.u32 %v6494_v37, %v6491_v41  ;;  %v6216_v49 = vrot.slane %v16104_v16, 5  ;;  %v11667_v40 = vcombine.low %v5818_v32, %v15976_v1  ;;  %v11668_v48 = vcombine.low %v15978_v25, %v15978_v25  ;;  %v16117_v38 = vpop.f32.mrf.mxu0 }
 0x3b8   : > { %v6061_v3 = vor.u32 %v6060_v44, %v6057_v20  ;;  %v6215_v7 = vsel %vm821_vm0, %v6213_v60, %v6214_v34  ;;  %v6808_v29 = vshrl.u32 %v6213_v60, 16  ;;  %v6811_v26 = vshll.u32 %v6213_v60, 16  ;;  %v16119_v41 = vpop.f32.mrf.mxu1 }
 0x3b9   : > { %v6496_v4 = vsel %vm870_vm1, %v6487_v33, %v6495_v24  ;;  %v6816_v52 = vshrl.u32 %v6215_v7, 16  ;;  %v6819_v30 = vshll.u32 %v6215_v7, 16  ;;  %v6218_v13 = vsel %vm821_vm0, %v6216_v49, %v6217_v6  ;;  %17542 = vst [vmem:[#allocation29_spill] sm:$0xff] %v16119_v41  ;;  %v16123_v41 = vpop.f32.mrf.mxu0 }
 0x3ba   : > { %8914 = vmatmul.mubr.bf16.gmra.mxu0 %v6496_v4  ;;  %v6541_v1 = vshrl.u32 %v6061_v3, 16  ;;  %v6544_v32 = vshll.u32 %v6061_v3, 16  ;;  %v6810_v37 = vrot.slane %v6808_v29, 3  ;;  %v6813_v25 = vrot.slane %v6811_v26, 4  ;;  %v16125_v4 = vpop.f32.mrf.mxu1 }
 0x3bb   : > { %v6818_v20 = vrot.slane %v6816_v52, 3  ;;  %v6821_v44 = vrot.slane %v6819_v30, 4  ;;  %v6851_v34 = vshrl.u32 %v6216_v49, 16  ;;  %v6854_v2 = vshll.u32 %v6216_v49, 16  ;;  %17543 = vst [vmem:[#allocation30_spill] sm:$0xff] %v16125_v4 }
 0x3bc   : > { %v6543_v60 = vrot.slane %v6541_v1, 3  ;;  %v6546_v5 = vrot.slane %v6544_v32, 4  ;;  %v6814_v33 = vor.u32 %v6813_v25, %v6810_v37  ;;  %v6859_v24 = vshrl.u32 %v6218_v13, 16  ;;  %v13811_v30 = vld [vmem:[#allocation2 + $0xfc] ss:$0 sps:$4 sm:$0x11]  }
 0x3bd   : > { %v6822_v7 = vor.u32 %v6821_v44, %v6818_v20  ;;  %v6853_v57 = vrot.slane %v6851_v34, 3  ;;  %v6856_v6 = vrot.slane %v6854_v2, 4  ;;  %v6862_v42 = vshll.u32 %v6218_v13, 16  ;;  %v16128_v25 = vld [vmem:[#allocation2 + $0x28] sm:$0xf] }
 0x3be   : > { %v6547_v3 = vor.u32 %v6546_v5, %v6543_v60  ;;  %v6861_v29 = vrot.slane %v6859_v24, 3  ;;  %v6524_v26 = vshrl.u32 %v11667_v40, 16  ;;  %v6527_v52 = vshll.u32 %v11667_v40, 16  ;;  %v16131_v34 = vld [vmem:[#allocation2 + $0xf4] sm:$0xf]  ;;  %v16140_v24 = vpop.f32.mrf.mxu1 }
 0x3bf   : > { %v6823_v49 = vsel %vm870_vm1, %v6814_v33, %v6822_v7  ;;  %v6857_v1 = vor.u32 %v6856_v6, %v6853_v57  ;;  %v6864_v32 = vrot.slane %v6862_v42, 4  ;;  %v6532_v37 = vshrl.u32 %v11668_v48, 16  ;;  %v5822_v42 = vld [vmem:[#allocation2 + $0x80] sm:$0x8]  ;;  %v16138_v33 = vpop.f32.mrf.mxu0  ;;  %17544 = vst [vmem:[#allocation33_spill] sm:$0xff] %v16140_v24 }
 0x3c0   : > { %8921 = vmatprep.mubr.bf16.mxu0 %v6547_v3  ;;  %13245 = vmatmul.mubr.bf16.gmra.mxu1 %v6823_v49  ;;  %v6526_v2 = vrot.slane %v6524_v26, 3  ;;  %v6529_v13 = vrot.slane %v6527_v52, 4  ;;  %v6535_v20 = vshll.u32 %v11668_v48, 16  ;;  %v6063_v44 = vshrl.u32 %v15996_v21, 16  ;;  %v9156_v26 = vld [vmem:[#allocation2 + $0x24] sm:$0xf] }
 0x3c1   : > { %v6865_v5 = vor.u32 %v6864_v32, %v6861_v29  ;;  %v6534_v60 = vrot.slane %v6532_v37, 3  ;;  %v6066_v40 = vshll.u32 %v15996_v21, 16  ;;  %v16136_v57 = vcombine.low %v16131_v34, %v16121_v23 }
 0x3c2   : > { %v6530_v7 = vor.u32 %v6529_v13, %v6526_v2  ;;  %v6537_v6 = vrot.slane %v6535_v20, 4  ;;  %v6065_v48 = vrot.slane %v6063_v44, 4  ;;  %v6220_v3 = vrot.slane %v13811_v30, 5  ;;  %v16152_v44 = vpop.f32.mrf.mxu0 }
 0x3c3   : > { %v6866_v52 = vsel %vm870_vm1, %v6857_v1, %v6865_v5  ;;  %v6068_v29 = vrot.slane %v6066_v40, 5  ;;  %v6219_v49 = vrot.slane %v16136_v57, 5  ;;  %v16145_v21 = vcombine.low %v9156_v26, %v16128_v25  ;;  %17545 = vst [vmem:[#allocation35_spill] sm:$0xff] %v16152_v44  ;;  %v16154_v5 = vpop.f32.mrf.mxu1 }
 0x3c4   : > { %13248 = vmatprep.mubr.bf16.mxu1 %v6866_v52  ;;  %v6538_v32 = vor.u32 %v6537_v6, %v6534_v60  ;;  %v11669_v37 = vcombine.low %v5822_v42, %v15992_v8  ;;  %v11670_v24 = vcombine.low %v15981_v59, %v15981_v59  ;;  %v6071_v2 = vshrl.u32 %v16024_v31, 16  ;;  %17546 = vst [vmem:[#allocation37_spill] sm:$0xff] %v16154_v5 }
 0x3c5   : > { %v6069_v13 = vor.u32 %v6068_v29, %v6065_v48  ;;  %v6221_v30 = vsel %vm821_vm0, %v6219_v49, %v6220_v3  ;;  %v6894_v20 = vshrl.u32 %v6219_v49, 16  ;;  %v6897_v1 = vshll.u32 %v6219_v49, 16  ;;  %v16158_v48 = vpop.f32.mrf.mxu0 }
 0x3c6   : > { %v6539_v40 = vsel %vm870_vm1, %v6530_v7, %v6538_v32  ;;  %v6902_v52 = vshrl.u32 %v6221_v30, 16  ;;  %v6905_v60 = vshll.u32 %v6221_v30, 16  ;;  %v9364_v8 = vshrl.u32 %v16145_v21, 16  ;;  %17547 = vst [vmem:[#allocation38_spill] sm:$0xff] %v16158_v48 }
 0x3c7   : > { %8922 = vmatmul.mubr.bf16.gmra.mxu0 %v6539_v40  ;;  %v6584_v42 = vshrl.u32 %v6069_v13, 16  ;;  %v6587_v59 = vshll.u32 %v6069_v13, 16  ;;  %v6896_v6 = vrot.slane %v6894_v20, 3  ;;  %v6899_v4 = vrot.slane %v6897_v1, 4  ;;  %v9155_v13 = vld [vmem:[#allocation2 + $0x20] sm:$0x8] }
 0x3c8   : > { %v6904_v3 = vrot.slane %v6902_v52, 3  ;;  %v6907_v29 = vrot.slane %v6905_v60, 4  ;;  %v9366_v49 = vrot.slane %v9364_v8, 4  ;;  %v9367_v36 = vshll.u32 %v16145_v21, 16  ;;  %v16161_v32 = vpop.f32.mrf.mxu1  ;;  %v16163_v52 = vld [vmem:[#allocation2 + $0x38] sm:$0xf]  ;;  %v16165_v60 = vpop.f32.mrf.mxu0 }
 0x3c9   : > { %v6586_v51 = vrot.slane %v6584_v42, 3  ;;  %v6589_v5 = vrot.slane %v6587_v59, 4  ;;  %v6900_v10 = vor.u32 %v6899_v4, %v6896_v6  ;;  %v6567_v7 = vshrl.u32 %v11669_v37, 16  ;;  %17548 = vst [vmem:[#allocation40_spill] sm:$0xff] %v16161_v32  ;;  %17549 = vst [vmem:[#allocation42_spill] sm:$0xff] %v16165_v60 }
 0x3ca   : > { %v6908_v30 = vor.u32 %v6907_v29, %v6904_v3  ;;  %v9369_v15 = vrot.slane %v9367_v36, 5  ;;  %v6570_v40 = vshll.u32 %v11669_v37, 16  ;;  %v6575_v39 = vshrl.u32 %v11670_v24, 16  ;;  %v16167_v8 = vpop.f32.mrf.mxu1 }
 0x3cb   : > { %v6590_v20 = vor.u32 %v6589_v5, %v6586_v51  ;;  %v6569_v1 = vrot.slane %v6567_v7, 3  ;;  %v6578_v62 = vshll.u32 %v11670_v24, 16  ;;  %v6073_v48 = vrot.slane %v6071_v2, 4  ;;  %17550 = vst [vmem:[#allocation44_spill] sm:$0xff] %v16167_v8  ;;  %v16173_v2 = vld [vmem:[#allocation2 + $0x34] sm:$0xf] }
 0x3cc   : > { %v6909_v4 = vsel %vm870_vm1, %v6900_v10, %v6908_v30  ;;  %v9370_v42 = vor.u32 %v9369_v15, %v9366_v49  ;;  %v6572_v59 = vrot.slane %v6570_v40, 4  ;;  %v6577_v6 = vrot.slane %v6575_v39, 3  ;;  %v16175_v5 = vpop.f32.mrf.mxu1 }
 0x3cd   : > { %8929 = vmatprep.mubr.bf16.mxu0 %v6590_v20  ;;  %13249 = vmatmul.mubr.bf16.gmra.mxu1 %v6909_v4  ;;  %v6580_v36 = vrot.slane %v6578_v62, 4  ;;  %v6074_v37 = vshll.u32 %v16024_v31, 16  ;;  %v11829_v51 = vcombine.low %v9155_v13, %v9156_v26  ;;  %v11830_v24 = vcombine.low %v16128_v25, %v16128_v25  ;;  %17551 = vst [vmem:[#allocation46_spill] sm:$0xff] %v16175_v5  ;;  %v16181_v31 = vpop.f32.mrf.mxu0 }
 0x3ce   : > { %v9605_v3 = vshrl.u32 %v9370_v42, 16  ;;  %v9608_v29 = vshll.u32 %v9370_v42, 16  ;;  %v6573_v7 = vor.u32 %v6572_v59, %v6569_v1  ;;  %v16179_v15 = vcombine.low %v16173_v2, %v16163_v52  ;;  %17552 = vst [vmem:[#allocation47_spill] sm:$0xff] %v16181_v31  ;;  %v16183_v13 = vpop.f32.mrf.mxu1  ;;  %v5826_v59 = vld [vmem:[#allocation2 + $0x90] sm:$0x8] }
 0x3cf   : > { %v6581_v10 = vor.u32 %v6580_v36, %v6577_v6  ;;  %v6076_v39 = vrot.slane %v6074_v37, 5  ;;  %v9588_v62 = vshrl.u32 %v11829_v51, 16  ;;  %v9591_v49 = vshll.u32 %v11829_v51, 16  ;;  %17553 = vst [vmem:[#allocation49_spill] sm:$0xff] %v16183_v13 }
 0x3d0   : > { %v9607_v26 = vrot.slane %v9605_v3, 3  ;;  %v9610_v30 = vrot.slane %v9608_v29, 4  ;;  %v9596_v25 = vshrl.u32 %v11830_v24, 16  ;;  %v9599_v40 = vshll.u32 %v11830_v24, 16  ;;  %v16188_v29 = vpop.f32.mrf.mxu0 }
 0x3d1   : > { %v6582_v20 = vsel %vm870_vm1, %v6573_v7, %v6581_v10  ;;  %v6077_v4 = vor.u32 %v6076_v39, %v6073_v48  ;;  %v9590_v1 = vrot.slane %v9588_v62, 3  ;;  %v9593_v42 = vrot.slane %v9591_v49, 4  ;;  %17554 = vst [vmem:[#allocation19_spill] sm:$0xff] %v16188_v29 }
 0x3d2   : > { %v9611_v5 = vor.u32 %v9610_v30, %v9607_v26  ;;  %8930 = vmatmul.mubr.bf16.gmra.mxu0 %v6582_v20  ;;  %v9598_v6 = vrot.slane %v9596_v25, 3  ;;  %v9601_v36 = vrot.slane %v9599_v40, 4  ;;  %v9372_v37 = vshrl.u32 %v16179_v15, 16  ;;  %v16195_v30 = vpop.f32.mrf.mxu0 }
 0x3d3   : > { %v6627_v51 = vshrl.u32 %v6077_v4, 16  ;;  %v6630_v8 = vshll.u32 %v6077_v4, 16  ;;  %v9375_v3 = vshll.u32 %v16179_v15, 16  ;;  %v9594_v24 = vor.u32 %v9593_v42, %v9590_v1  ;;  %17556 = vst [vmem:[#allocation52_spill] sm:$0xff] %v16195_v30 }
 0x3d4   : > { %10548 = vmatprep.mubr.bf16.mxu1 %v9611_v5  ;;  %v9602_v13 = vor.u32 %v9601_v36, %v9598_v6  ;;  %v9374_v7 = vrot.slane %v9372_v37, 4  ;;  %v11671_v48 = vcombine.low %v5826_v59, %v16019_v58  ;;  %v16191_v10 = vpop.f32.mrf.mxu1  ;;  %v11672_v26 = vcombine.low %v16011_v50, %v16011_v50  ;;  %v9159_v50 = vld [vmem:[#allocation2 + $0x30] sm:$0x8] }
 0x3d5   : > { %17555 = vst [vmem:[#allocation50_spill] sm:$0xff] %v16191_v10  ;;  %v6629_v39 = vrot.slane %v6627_v51, 3  ;;  %v6632_v62 = vrot.slane %v6630_v8, 4  ;;  %v9377_v49 = vrot.slane %v9375_v3, 5  ;;  %v6079_v8 = vshrl.u32 %v16036_v46, 16 }
 0x3d6   : > { %v9603_v25 = vsel %vm870_vm1, %v9594_v24, %v9602_v13  ;;  %v6610_v40 = vshrl.u32 %v11671_v48, 16  ;;  %v6613_v20 = vshll.u32 %v11671_v48, 16  ;;  %v16198_v5 = vpop.f32.mrf.mxu1  ;;  %v6618_v58 = vshrl.u32 %v11672_v26, 16  ;;  %v16202_v24 = vld [vmem:[#allocation2 + $0x48] sm:$0xf]  ;;  %v16204_v48 = vpop.f32.mrf.mxu0 }
 0x3d7   : > { %17557 = vst [vmem:[#allocation53_spill] sm:$0xff] %v16198_v5  ;;  %v6633_v4 = vor.u32 %v6632_v62, %v6629_v39  ;;  %10549 = vmatmul.mubr.bf16.vlgmr.msra.gmra.mxu1 %v9603_v25  ;;  %v9378_v1 = vor.u32 %v9377_v49, %v9374_v7  ;;  %v6621_v42 = vshll.u32 %v11672_v26, 16  ;;  %v6082_v36 = vshll.u32 %v16036_v46, 16  ;;  %17558 = vst [vmem:[#allocation54_spill] sm:$0xff] %v16204_v48 }
 0x3d8   : > { %v6612_v59 = vrot.slane %v6610_v40, 3  ;;  %v6615_v6 = vrot.slane %v6613_v20, 4  ;;  %v6620_v13 = vrot.slane %v6618_v58, 3  ;;  %v16206_v39 = vpop.f32.mrf.mxu1  ;;  %v6081_v62 = vrot.slane %v6079_v8, 4  ;;  %v9164_v20 = vld [vmem:[#allocation2 + $0x44] sm:$0xf] }
 0x3d9   : > { %8937 = vmatprep.mubr.bf16.mxu0 %v6633_v4  ;;  %v9648_v37 = vshrl.u32 %v9378_v1, 16  ;;  %v9651_v51 = vshll.u32 %v9378_v1, 16  ;;  %v6623_v3 = vrot.slane %v6621_v42, 4  ;;  %17559 = vst [vmem:[#allocation55_spill] sm:$0xff] %v16206_v39  ;;  %v6084_v49 = vrot.slane %v6082_v36, 5 }
 0x3da   : > { %v6616_v7 = vor.u32 %v6615_v6, %v6612_v59  ;;  %v11831_v46 = vcombine.low %v9159_v50, %v16173_v2  ;;  %v11832_v1 = vcombine.low %v16163_v52, %v16163_v52  ;;  %v16212_v58 = vcombine.low %v9164_v20, %v16202_v24  ;;  %v16215_v6 = vpop.f32.mrf.mxu0  ;;  %v16217_v8 = vpop.f32.mrf.mxu1 }
 0x3db   : > { %v9650_v26 = vrot.slane %v9648_v37, 3  ;;  %v9653_v25 = vrot.slane %v9651_v51, 4  ;;  %v6624_v40 = vor.u32 %v6623_v3, %v6620_v13  ;;  %v6085_v4 = vor.u32 %v6084_v49, %v6081_v62  ;;  %17560 = vst [vmem:[#allocation57_spill] sm:$0xff] %v16215_v6  ;;  %17561 = vst [vmem:[#allocation58_spill] sm:$0xff] %v16217_v8  ;;  %v5830_v62 = vld [vmem:[#allocation2 + $0xa0] sm:$0x8] }
 0x3dc   : > { %v9631_v39 = vshrl.u32 %v11831_v46, 16  ;;  %v9634_v59 = vshll.u32 %v11831_v46, 16  ;;  %v9639_v50 = vshrl.u32 %v11832_v1, 16  ;;  %v9642_v37 = vshll.u32 %v11832_v1, 16  ;;  %v16221_v8 = vpop.f32.mrf.mxu0 }
 0x3dd   : > { %v9654_v42 = vor.u32 %v9653_v25, %v9650_v26  ;;  %v6625_v5 = vsel %vm870_vm1, %v6616_v7, %v6624_v40  ;;  %v6670_v36 = vshrl.u32 %v6085_v4, 16  ;;  %v6673_v2 = vshll.u32 %v6085_v4, 16  ;;  %17562 = vst [vmem:[#allocation59_spill] sm:$0xff] %v16221_v8 }
 0x3de   : > { %8938 = vmatmul.mubr.bf16.gmra.mxu0 %v6625_v5  ;;  %v9633_v51 = vrot.slane %v9631_v39, 3  ;;  %v9636_v52 = vrot.slane %v9634_v59, 4  ;;  %v9380_v13 = vshrl.u32 %v16212_v58, 16  ;;  %v9383_v3 = vshll.u32 %v16212_v58, 16 }
 0x3df   : > { %10556 = vmatprep.mubr.bf16.mxu1 %v9654_v42  ;;  %v6672_v7 = vrot.slane %v6670_v36, 3  ;;  %v6675_v49 = vrot.slane %v6673_v2, 4  ;;  %v9641_v26 = vrot.slane %v9639_v50, 3  ;;  %v9644_v25 = vrot.slane %v9642_v37, 4  ;;  %v16229_v2 = vpop.f32.mrf.mxu0 }
 0x3e0   : > { %v9382_v40 = vrot.slane %v9380_v13, 4  ;;  %v9385_v46 = vrot.slane %v9383_v3, 5  ;;  %v16223_v5 = vpop.f32.mrf.mxu1  ;;  %v9637_v1 = vor.u32 %v9636_v52, %v9633_v51  ;;  %v11673_v39 = vcombine.low %v5830_v62, %v16030_v18  ;;  %17564 = vst [vmem:[#allocation62_spill] sm:$0xff] %v16229_v2 }
 0x3e1   : > { %17563 = vst [vmem:[#allocation60_spill] sm:$0xff] %v16223_v5  ;;  %v6676_v4 = vor.u32 %v6675_v49, %v6672_v7  ;;  %v9645_v42 = vor.u32 %v9644_v25, %v9641_v26  ;;  %v11674_v10 = vcombine.low %v16026_v35, %v16026_v35  ;;  %v6087_v36 = vshrl.u32 %v16062_v45, 16  ;;  %v9163_v49 = vld [vmem:[#allocation2 + $0x40] sm:$0x8] }
 0x3e2   : > { %v9386_v59 = vor.u32 %v9385_v46, %v9382_v40  ;;  %v6653_v37 = vshrl.u32 %v11673_v39, 16  ;;  %v6656_v13 = vshll.u32 %v11673_v39, 16  ;;  %v6090_v3 = vshll.u32 %v16062_v45, 16  ;;  %v16233_v7 = vpop.f32.mrf.mxu1  ;;  %v16235_v40 = vld [vmem:[#allocation2 + $0x58] sm:$0xf]  ;;  %v16237_v39 = vpop.f32.mrf.mxu0 }
 0x3e3   : > { %8945 = vmatprep.mubr.bf16.mxu0 %v6676_v4  ;;  %v9646_v50 = vsel %vm870_vm1, %v9637_v1, %v9645_v42  ;;  %17565 = vst [vmem:[#allocation63_spill] sm:$0xff] %v16233_v7  ;;  %v6661_v52 = vshrl.u32 %v11674_v10, 16  ;;  %v6664_v62 = vshll.u32 %v11674_v10, 16  ;;  %v6089_v25 = vrot.slane %v6087_v36, 4  ;;  %17566 = vst [vmem:[#allocation65_spill] sm:$0xff] %v16237_v39 }
 0x3e4   : > { %10557 = vmatmul.mubr.bf16.gmra.mxu1 %v9646_v50  ;;  %v9691_v51 = vshrl.u32 %v9386_v59, 16  ;;  %v9694_v18 = vshll.u32 %v9386_v59, 16  ;;  %v6655_v35 = vrot.slane %v6653_v37, 3  ;;  %v6658_v26 = vrot.slane %v6656_v13, 4  ;;  %v9168_v59 = vld [vmem:[#allocation2 + $0x54] sm:$0xf]  ;;  %v16241_v7 = vpop.f32.mrf.mxu1 }
 0x3e5   : > { %v6663_v1 = vrot.slane %v6661_v52, 3  ;;  %v6666_v42 = vrot.slane %v6664_v62, 4  ;;  %v6092_v45 = vrot.slane %v6090_v3, 5  ;;  %v11833_v5 = vcombine.low %v9163_v49, %v9164_v20  ;;  %17567 = vst [vmem:[#allocation25_spill] sm:$0xff] %v16241_v7  ;;  %v5834_v39 = vld [vmem:[#allocation2 + $0xb0] sm:$0x8]  ;;  %v16249_v7 = vpop.f32.mrf.mxu0 }
 0x3e6   : > { %v9693_v46 = vrot.slane %v9691_v51, 3  ;;  %v9696_v4 = vrot.slane %v9694_v18, 4  ;;  %v11834_v50 = vcombine.low %v16202_v24, %v16202_v24  ;;  %v6659_v37 = vor.u32 %v6658_v26, %v6655_v35  ;;  %17568 = vst [vmem:[#allocation28_spill] sm:$0xff] %v16249_v7 }
 0x3e7   : > { %v6667_v13 = vor.u32 %v6666_v42, %v6663_v1  ;;  %v16244_v36 = vcombine.low %v9168_v59, %v16235_v40  ;;  %v6093_v51 = vor.u32 %v6092_v45, %v6089_v25  ;;  %v9674_v18 = vshrl.u32 %v11833_v5, 16  ;;  %v16251_v25 = vpop.f32.mrf.mxu1  ;;  %v16256_v7 = vpop.f32.mrf.mxu0 }
 0x3e8   : > { %v9697_v10 = vor.u32 %v9696_v4, %v9693_v46  ;;  %v9677_v52 = vshll.u32 %v11833_v5, 16  ;;  %v9682_v62 = vshrl.u32 %v11834_v50, 16  ;;  %v9685_v20 = vshll.u32 %v11834_v50, 16  ;;  %17569 = vst [vmem:[#allocation68_spill] sm:$0xff] %v16251_v25  ;;  %17570 = vst [vmem:[#allocation70_spill] sm:$0xff] %v16256_v7 }
 0x3e9   : > { %v6668_v3 = vsel %vm870_vm1, %v6659_v37, %v6667_v13  ;;  %v9388_v49 = vshrl.u32 %v16244_v36, 16  ;;  %v9391_v24 = vshll.u32 %v16244_v36, 16  ;;  %v6713_v35 = vshrl.u32 %v6093_v51, 16 }
 0x3ea   : > { %10564 = vmatprep.mubr.bf16.mxu1 %v9697_v10  ;;  %8946 = vmatmul.mubr.bf16.gmra.mxu0 %v6668_v3  ;;  %v6716_v26 = vshll.u32 %v6093_v51, 16  ;;  %v9676_v46 = vrot.slane %v9674_v18, 3  ;;  %v9679_v4 = vrot.slane %v9677_v52, 4  ;;  %v9684_v5 = vrot.slane %v9682_v62, 3 }
 0x3eb   : > { %v9687_v1 = vrot.slane %v9685_v20, 4  ;;  %v9390_v42 = vrot.slane %v9388_v49, 4  ;;  %v9393_v45 = vrot.slane %v9391_v24, 5  ;;  %v6715_v10 = vrot.slane %v6713_v35, 3 }
 0x3ec   : > { %v6718_v50 = vrot.slane %v6716_v26, 4  ;;  %v11675_v37 = vcombine.low %v5834_v39, %v16050_v27  ;;  %v9680_v13 = vor.u32 %v9679_v4, %v9676_v46  ;;  %v11676_v3 = vcombine.low %v16052_v14, %v16052_v14  ;;  %v9167_v39 = vld [vmem:[#allocation2 + $0x50] sm:$0x8]  ;;  %v16262_v26 = vpop.f32.mrf.mxu0 }
 0x3ed   : > { %v9688_v2 = vor.u32 %v9687_v1, %v9684_v5  ;;  %v9394_v32 = vor.u32 %v9393_v45, %v9390_v42  ;;  %v6095_v62 = vshrl.u32 %v16070_v22, 16  ;;  %17572 = vst [vmem:[#allocation74_spill] sm:$0xff] %v16262_v26  ;;  %v16264_v1 = vld [vmem:[#allocation2 + $0x68] sm:$0xf] }
 0x3ee   : > { %v6719_v51 = vor.u32 %v6718_v50, %v6715_v10  ;;  %v6696_v18 = vshrl.u32 %v11675_v37, 16  ;;  %v6699_v52 = vshll.u32 %v11675_v37, 16  ;;  %v6704_v27 = vshrl.u32 %v11676_v3, 16 }
 0x3ef   : > { %v16259_v20 = vpop.f32.mrf.mxu1  ;;  %v9689_v49 = vsel %vm870_vm1, %v9680_v13, %v9688_v2  ;;  %v9734_v24 = vshrl.u32 %v9394_v32, 16  ;;  %v9737_v35 = vshll.u32 %v9394_v32, 16  ;;  %v6707_v4 = vshll.u32 %v11676_v3, 16  ;;  %v16269_v13 = vld [vmem:[#allocation2 + $0x64] sm:$0xf] }
 0x3f0   : > { %17571 = vst [vmem:[#allocation71_spill] sm:$0xff] %v16259_v20  ;;  %8953 = vmatprep.mubr.bf16.mxu0 %v6719_v51  ;;  %10565 = vmatmul.mubr.bf16.gmra.mxu1 %v9689_v49  ;;  %v6698_v14 = vrot.slane %v6696_v18, 3  ;;  %v6701_v46 = vrot.slane %v6699_v52, 4  ;;  %v6097_v5 = vrot.slane %v6095_v62, 4  ;;  %v6706_v50 = vrot.slane %v6704_v27, 3  ;;  %v16279_v62 = vpop.f32.mrf.mxu0 }
 0x3f1   : > { %v16266_v42 = vpop.f32.mrf.mxu1  ;;  %v9736_v45 = vrot.slane %v9734_v24, 3  ;;  %v9739_v10 = vrot.slane %v9737_v35, 4  ;;  %v6098_v2 = vshll.u32 %v16070_v22, 16  ;;  %v6709_v32 = vrot.slane %v6707_v4, 4  ;;  %17575 = vst [vmem:[#allocation32_spill] sm:$0xff] %v16279_v62 }
 0x3f2   : > { %17573 = vst [vmem:[#allocation23_spill] sm:$0xff] %v16266_v42  ;;  %v11835_v37 = vcombine.low %v9167_v39, %v9168_v59  ;;  %v11836_v3 = vcombine.low %v16235_v40, %v16235_v40  ;;  %v16277_v52 = vcombine.low %v16269_v13, %v16264_v1  ;;  %v6702_v49 = vor.u32 %v6701_v46, %v6698_v14 }
 0x3f3   : > { %v16271_v20 = vpop.f32.mrf.mxu1  ;;  %v9740_v51 = vor.u32 %v9739_v10, %v9736_v45  ;;  %v6100_v18 = vrot.slane %v6098_v2, 5  ;;  %v6710_v24 = vor.u32 %v6709_v32, %v6706_v50  ;;  %v5838_v32 = vld [vmem:[#allocation2 + $0xc0] sm:$0x8] }
 0x3f4   : > { %17574 = vst [vmem:[#allocation26_spill] sm:$0xff] %v16271_v20  ;;  %v9717_v22 = vshrl.u32 %v11835_v37, 16  ;;  %v9720_v35 = vshll.u32 %v11835_v37, 16  ;;  %v9725_v27 = vshrl.u32 %v11836_v3, 16  ;;  %v9728_v39 = vshll.u32 %v11836_v3, 16  ;;  %v16286_v37 = vpop.f32.mrf.mxu0 }
 0x3f5   : > { %10572 = vmatprep.mubr.bf16.mxu1 %v9740_v51  ;;  %v6101_v59 = vor.u32 %v6100_v18, %v6097_v5  ;;  %v9396_v4 = vshrl.u32 %v16277_v52, 16  ;;  %v16282_v45 = vpop.f32.mrf.mxu1  ;;  %v6711_v40 = vsel %vm870_vm1, %v6702_v49, %v6710_v24  ;;  %v9399_v20 = vshll.u32 %v16277_v52, 16  ;;  %17577 = vst [vmem:[#allocation31_spill] sm:$0xff] %v16286_v37 }
 0x3f6   : > { %17576 = vst [vmem:[#allocation36_spill] sm:$0xff] %v16282_v45  ;;  %v9719_v10 = vrot.slane %v9717_v22, 3  ;;  %v9722_v2 = vrot.slane %v9720_v35, 4  ;;  %8954 = vmatmul.mubr.bf16.gmra.mxu0 %v6711_v40  ;;  %v9727_v46 = vrot.slane %v9725_v27, 3  ;;  %v9730_v50 = vrot.slane %v9728_v39, 4 }
 0x3f7   : > { %v6756_v42 = vshrl.u32 %v6101_v59, 16  ;;  %v6759_v14 = vshll.u32 %v6101_v59, 16  ;;  %v9398_v5 = vrot.slane %v9396_v4, 4  ;;  %v9401_v51 = vrot.slane %v9399_v20, 5  ;;  %v16296_v20 = vpop.f32.mrf.mxu0 }
 0x3f8   : > { %v9723_v62 = vor.u32 %v9722_v2, %v9719_v10  ;;  %v9731_v45 = vor.u32 %v9730_v50, %v9727_v46  ;;  %v11677_v24 = vcombine.low %v5838_v32, %v16065_v55  ;;  %v11678_v22 = vcombine.low %v16058_v61, %v16058_v61  ;;  %17579 = vst [vmem:[#allocation72_spill] sm:$0xff] %v16296_v20  ;;  %v9171_v55 = vld [vmem:[#allocation2 + $0x60] sm:$0x8]  ;;  %v16300_v50 = vld [vmem:[#allocation2 + $0x78] sm:$0xf] }
 0x3f9   : > { %v6758_v18 = vrot.slane %v6756_v42, 3  ;;  %v6761_v3 = vrot.slane %v6759_v14, 4  ;;  %v9402_v49 = vor.u32 %v9401_v51, %v9398_v5  ;;  %v6103_v27 = vshrl.u32 %v16098_v53, 16 }
 0x3fa   : > { %v9732_v59 = vsel %vm870_vm1, %v9723_v62, %v9731_v45  ;;  %v6106_v39 = vshll.u32 %v16098_v53, 16  ;;  %v6739_v10 = vshrl.u32 %v11677_v24, 16  ;;  %v6742_v2 = vshll.u32 %v11677_v24, 16  ;;  %v16302_v62 = vpop.f32.mrf.mxu0 }
 0x3fb   : > { %v16288_v25 = vpop.f32.mrf.mxu1  ;;  %v6762_v35 = vor.u32 %v6761_v3, %v6758_v18  ;;  %10573 = vmatmul.mubr.bf16.gmra.mxu1 %v9732_v59  ;;  %v9777_v4 = vshrl.u32 %v9402_v49, 16  ;;  %v9780_v40 = vshll.u32 %v9402_v49, 16  ;;  %v6747_v14 = vshrl.u32 %v11678_v22, 16  ;;  %17581 = vst [vmem:[#allocation82_spill] sm:$0xff] %v16302_v62  ;;  %v16307_v59 = vld [vmem:[#allocation2 + $0x74] sm:$0xf] }
 0x3fc   : > { %17578 = vst [vmem:[#allocation34_spill] sm:$0xff] %v16288_v25  ;;  %v6750_v61 = vshll.u32 %v11678_v22, 16  ;;  %v6105_v46 = vrot.slane %v6103_v27, 4  ;;  %v6741_v5 = vrot.slane %v6739_v10, 3  ;;  %v6744_v51 = vrot.slane %v6742_v2, 4 }
 0x3fd   : > { %v16298_v42 = vpop.f32.mrf.mxu1  ;;  %8961 = vmatprep.mubr.bf16.mxu0 %v6762_v35  ;;  %v9779_v53 = vrot.slane %v9777_v4, 3  ;;  %v9782_v32 = vrot.slane %v9780_v40, 4  ;;  %v6749_v18 = vrot.slane %v6747_v14, 3  ;;  %v6108_v49 = vrot.slane %v6106_v39, 5  ;;  %v16317_v39 = vpop.f32.mrf.mxu0 }
 0x3fe   : > { %17580 = vst [vmem:[#allocation73_spill] sm:$0xff] %v16298_v42  ;;  %v6752_v3 = vrot.slane %v6750_v61, 4  ;;  %v11837_v24 = vcombine.low %v9171_v55, %v16269_v13  ;;  %v6745_v27 = vor.u32 %v6744_v51, %v6741_v5  ;;  %v11838_v62 = vcombine.low %v16264_v1, %v16264_v1  ;;  %17584 = vst [vmem:[#allocation45_spill] sm:$0xff] %v16317_v39 }
 0x3ff   : > { %v16304_v45 = vpop.f32.mrf.mxu1  ;;  %v9783_v22 = vor.u32 %v9782_v32, %v9779_v53  ;;  %v16315_v4 = vcombine.low %v16307_v59, %v16300_v50  ;;  %v6109_v10 = vor.u32 %v6108_v49, %v6105_v46  ;;  %v16326_v42 = vpop.f32.mrf.mxu0  ;;  %v9551_v20 = vrot.slane %v16277_v52, 5 }
 0x400   : > { %17582 = vst [vmem:[#allocation85_spill] sm:$0xff] %v16304_v45  ;;  %v6753_v40 = vor.u32 %v6752_v3, %v6749_v18  ;;  %v9760_v2 = vshrl.u32 %v11837_v24, 16  ;;  %v9763_v14 = vshll.u32 %v11837_v24, 16  ;;  %v9768_v13 = vshrl.u32 %v11838_v62, 16  ;;  %v5842_v18 = vld [vmem:[#allocation2 + $0xd0] sm:$0x8] }
 0x401   : > { %v16309_v35 = vpop.f32.mrf.mxu1  ;;  %10580 = vmatprep.mubr.bf16.mxu1 %v9783_v22  ;;  %v9771_v55 = vshll.u32 %v11838_v62, 16  ;;  %v9404_v61 = vshrl.u32 %v16315_v4, 16  ;;  %v9407_v53 = vshll.u32 %v16315_v4, 16  ;;  %v6799_v5 = vshrl.u32 %v6109_v10, 16  ;;  %17587 = vst [vmem:[#allocation48_spill] sm:$0xff] %v16326_v42 }
 0x402   : > { %17583 = vst [vmem:[#allocation41_spill] sm:$0xff] %v16309_v35  ;;  %v6754_v1 = vsel %vm870_vm1, %v6745_v27, %v6753_v40  ;;  %v6802_v51 = vshll.u32 %v6109_v10, 16  ;;  %v9762_v35 = vrot.slane %v9760_v2, 3  ;;  %v9765_v46 = vrot.slane %v9763_v14, 4 }
 0x403   : > { %8962 = vmatmul.mubr.bf16.gmra.mxu0 %v6754_v1  ;;  %v9770_v3 = vrot.slane %v9768_v13, 3  ;;  %v9773_v49 = vrot.slane %v9771_v55, 4  ;;  %v9406_v24 = vrot.slane %v9404_v61, 4  ;;  %v6801_v62 = vrot.slane %v6799_v5, 3 }
 0x404   : > { %v16321_v32 = vpop.f32.mrf.mxu1  ;;  %v6804_v39 = vrot.slane %v6802_v51, 4  ;;  %v9409_v45 = vrot.slane %v9407_v53, 5  ;;  %v9766_v25 = vor.u32 %v9765_v46, %v9762_v35  ;;  %v11679_v27 = vcombine.low %v5842_v18, %v16093_v47  ;;  %v9175_v18 = vld [vmem:[#allocation2 + $0x70] sm:$0x8]  ;;  %v16335_v46 = vpop.f32.mrf.mxu0 }
 0x405   : > { %17585 = vst [vmem:[#allocation39_spill] sm:$0xff] %v16321_v32  ;;  %v9774_v32 = vor.u32 %v9773_v49, %v9770_v3  ;;  %v11680_v40 = vcombine.low %v16084_v12, %v16084_v12  ;;  %v6111_v13 = vshrl.u32 %v16104_v16, 16  ;;  %17589 = vst [vmem:[#allocation92_spill] sm:$0xff] %v16335_v46  ;;  %v6114_v49 = vshll.u32 %v16104_v16, 16 }
 0x406   : > { %v16324_v22 = vpop.f32.mrf.mxu1  ;;  %v6805_v2 = vor.u32 %v6804_v39, %v6801_v62  ;;  %v9410_v14 = vor.u32 %v9409_v45, %v9406_v24  ;;  %v6782_v61 = vshrl.u32 %v11679_v27, 16  ;;  %v6785_v1 = vshll.u32 %v11679_v27, 16  ;;  %v13866_v46 = vld [vmem:[#allocation2 + $0x6c] ss:$0 sps:$4 sm:$0x11]  }
 0x407   : > { %17586 = vst [vmem:[#allocation43_spill] sm:$0xff] %v16324_v22  ;;  %v9775_v55 = vsel %vm870_vm1, %v9766_v25, %v9774_v32  ;;  %v6790_v53 = vshrl.u32 %v11680_v40, 16  ;;  %v6793_v51 = vshll.u32 %v11680_v40, 16  ;;  %v6113_v47 = vrot.slane %v6111_v13, 4  ;;  %v16340_v25 = vld [vmem:[#allocation2 + $0x88] sm:$0xf]  ;;  %v16342_v27 = vpop.f32.mrf.mxu0 }
 0x408   : > { %v16331_v10 = vpop.f32.mrf.mxu1  ;;  %8969 = vmatprep.mubr.bf16.mxu0 %v6805_v2  ;;  %10581 = vmatmul.mubr.bf16.gmra.mxu1 %v9775_v55  ;;  %v9820_v35 = vshrl.u32 %v9410_v14, 16  ;;  %v9823_v5 = vshll.u32 %v9410_v14, 16  ;;  %v6784_v39 = vrot.slane %v6782_v61, 3  ;;  %v6787_v45 = vrot.slane %v6785_v1, 4  ;;  %17591 = vst [vmem:[#allocation75_spill] sm:$0xff] %v16342_v27 }
 0x409   : > { %17588 = vst [vmem:[#allocation51_spill] sm:$0xff] %v16331_v10  ;;  %v6792_v3 = vrot.slane %v6790_v53, 3  ;;  %v6795_v62 = vrot.slane %v6793_v51, 4  ;;  %v6116_v2 = vrot.slane %v6114_v49, 5  ;;  %v11839_v40 = vcombine.low %v9175_v18, %v16307_v59  ;;  %v9180_v13 = vld [vmem:[#allocation2 + $0x84] sm:$0xf] }
 0x40a   : > { %v16337_v12 = vpop.f32.mrf.mxu1  ;;  %v9822_v32 = vrot.slane %v9820_v35, 3  ;;  %v9825_v24 = vrot.slane %v9823_v5, 4  ;;  %v11840_v14 = vcombine.low %v16300_v50, %v16300_v50  ;;  %v6788_v61 = vor.u32 %v6787_v45, %v6784_v39 }
 0x40b   : > { %17590 = vst [vmem:[#allocation94_spill] sm:$0xff] %v16337_v12  ;;  %v6796_v1 = vor.u32 %v6795_v62, %v6792_v3  ;;  %v16348_v53 = vcombine.low %v9180_v13, %v16340_v25  ;;  %v6117_v35 = vor.u32 %v6116_v2, %v6113_v47  ;;  %v9803_v5 = vshrl.u32 %v11839_v40, 16  ;;  %v5846_v62 = vld [vmem:[#allocation2 + $0xe0] sm:$0x8] }
 0x40c   : > { %v9826_v55 = vor.u32 %v9825_v24, %v9822_v32  ;;  %v9806_v51 = vshll.u32 %v11839_v40, 16  ;;  %v9811_v12 = vshrl.u32 %v11840_v14, 16  ;;  %v9814_v59 = vshll.u32 %v11840_v14, 16  ;;  %v16355_v32 = vpop.f32.mrf.mxu0 }
 0x40d   : > { %v6797_v49 = vsel %vm870_vm1, %v6788_v61, %v6796_v1  ;;  %v9412_v18 = vshrl.u32 %v16348_v53, 16  ;;  %v9415_v50 = vshll.u32 %v16348_v53, 16  ;;  %17593 = vst [vmem:[#allocation77_spill] sm:$0xff] %v16355_v32  ;;  %v6842_v45 = vshrl.u32 %v6117_v35, 16 }
 0x40e   : > { %10588 = vmatprep.mubr.bf16.mxu1 %v9826_v55  ;;  %8970 = vmatmul.mubr.bf16.gmra.mxu0 %v6797_v49  ;;  %v6845_v3 = vshll.u32 %v6117_v35, 16  ;;  %v9805_v24 = vrot.slane %v9803_v5, 3  ;;  %v9808_v47 = vrot.slane %v9806_v51, 4  ;;  %v9813_v2 = vrot.slane %v9811_v12, 3 }
 0x40f   : > { %v16350_v16 = vpop.f32.mrf.mxu1  ;;  %v9816_v40 = vrot.slane %v9814_v59, 4  ;;  %v9414_v55 = vrot.slane %v9412_v18, 4  ;;  %v9417_v10 = vrot.slane %v9415_v50, 5  ;;  %v6844_v14 = vrot.slane %v6842_v45, 3  ;;  %v9179_v45 = vld [vmem:[#allocation2 + $0x80] sm:$0x8] }
 0x410   : > { %17592 = vst [vmem:[#allocation76_spill] sm:$0xff] %v16350_v16  ;;  %v6847_v1 = vrot.slane %v6845_v3, 4  ;;  %v9809_v27 = vor.u32 %v9808_v47, %v9805_v24  ;;  %v11681_v32 = vcombine.low %v5846_v62, %v16100_v28  ;;  %v11682_v12 = vcombine.low %v16088_v17, %v16088_v17  ;;  %v16370_v24 = vld [vmem:[#allocation2 + $0x98] sm:$0xf] }
 0x411   : > { %v16357_v39 = vpop.f32.mrf.mxu1  ;;  %v9817_v22 = vor.u32 %v9816_v40, %v9813_v2  ;;  %v9418_v16 = vor.u32 %v9417_v10, %v9414_v55  ;;  %v6119_v5 = vshrl.u32 %v16136_v57, 16  ;;  %v9552_v37 = vrot.slane %v13866_v46, 5  ;;  %v9191_v46 = vld [vmem:[#allocation2 + $0xb0] sm:$0x8] }
 0x412   : > { %17594 = vst [vmem:[#allocation78_spill] sm:$0xff] %v16357_v39  ;;  %v16362_v39 = vpop.f32.mrf.mxu0  ;;  %v6848_v35 = vor.u32 %v6847_v1, %v6844_v14  ;;  %v6825_v50 = vshrl.u32 %v11681_v32, 16  ;;  %v6828_v10 = vshll.u32 %v11681_v32, 16  ;;  %v6833_v28 = vshrl.u32 %v11682_v12, 16  ;;  %v16377_v1 = vld [vmem:[#allocation2 + $0x94] sm:$0xf] }
 0x413   : > { %v16359_v61 = vpop.f32.mrf.mxu1  ;;  %17596 = vst [vmem:[#allocation80_spill] sm:$0xff] %v16362_v39  ;;  %v9818_v51 = vsel %vm870_vm1, %v9809_v27, %v9817_v22  ;;  %v9863_v59 = vshrl.u32 %v9418_v16, 16  ;;  %v9866_v18 = vshll.u32 %v9418_v16, 16  ;;  %v6836_v3 = vshll.u32 %v11682_v12, 16 }
 0x414   : > { %17595 = vst [vmem:[#allocation79_spill] sm:$0xff] %v16359_v61  ;;  %8977 = vmatprep.mubr.bf16.mxu0 %v6848_v35  ;;  %10589 = vmatmul.mubr.bf16.gmra.mxu1 %v9818_v51  ;;  %v6827_v2 = vrot.slane %v6825_v50, 3  ;;  %v6121_v40 = vrot.slane %v6119_v5, 4  ;;  %v16372_v17 = vpop.f32.mrf.mxu0  ;;  %v6830_v22 = vrot.slane %v6828_v10, 4  ;;  %v6835_v27 = vrot.slane %v6833_v28, 3 }
 0x415   : > { %v16364_v49 = vpop.f32.mrf.mxu1  ;;  %v9865_v47 = vrot.slane %v9863_v59, 3  ;;  %v9868_v62 = vrot.slane %v9866_v18, 4  ;;  %17598 = vst [vmem:[#allocation83_spill] sm:$0xff] %v16372_v17  ;;  %v6838_v16 = vrot.slane %v6836_v3, 4  ;;  %v6122_v14 = vshll.u32 %v16136_v57, 16 }
 0x416   : > { %17597 = vst [vmem:[#allocation81_spill] sm:$0xff] %v16364_v49  ;;  %v11841_v35 = vcombine.low %v9179_v45, %v9180_v13  ;;  %v11842_v12 = vcombine.low %v16340_v25, %v16340_v25  ;;  %v16383_v51 = vcombine.low %v16377_v1, %v16370_v24  ;;  %v6831_v18 = vor.u32 %v6830_v22, %v6827_v2 }
 0x417   : > { %v9869_v32 = vor.u32 %v9868_v62, %v9865_v47  ;;  %v6839_v50 = vor.u32 %v6838_v16, %v6835_v27  ;;  %v6124_v10 = vrot.slane %v6122_v14, 5  ;;  %v9789_v52 = vshll.u32 %v9551_v20, 16 }
 0x418   : > { %v9846_v57 = vshrl.u32 %v11841_v35, 16  ;;  %v9849_v28 = vshll.u32 %v11841_v35, 16  ;;  %v9854_v3 = vshrl.u32 %v11842_v12, 16  ;;  %v9857_v47 = vshll.u32 %v11842_v12, 16 }
 0x419   : > { %v16374_v55 = vpop.f32.mrf.mxu1  ;;  %10596 = vmatprep.mubr.bf16.mxu1 %v9869_v32  ;;  %v6840_v25 = vsel %vm870_vm1, %v6831_v18, %v6839_v50  ;;  %v6125_v62 = vor.u32 %v6124_v10, %v6121_v40  ;;  %v11684_v10 = vcombine.low %v16121_v23, %v16121_v23  ;;  %v9791_v8 = vrot.slane %v9789_v52, 4  ;;  %v13870_v52 = vld [vmem:[#allocation2 + $0x7c] ss:$0 sps:$4 sm:$0x11]  }
 0x41a   : > { %17599 = vst [vmem:[#allocation56_spill] sm:$0xff] %v16374_v55  ;;  %v16387_v59 = vpop.f32.mrf.mxu0  ;;  %v9420_v55 = vshrl.u32 %v16383_v51, 16  ;;  %8978 = vmatmul.mubr.bf16.gmra.mxu0 %v6840_v25  ;;  %v9848_v2 = vrot.slane %v9846_v57, 3  ;;  %v9851_v22 = vrot.slane %v9849_v28, 4  ;;  %v9856_v27 = vrot.slane %v9854_v3, 3 }
 0x41b   : > { %v16385_v5 = vpop.f32.mrf.mxu1  ;;  %17601 = vst [vmem:[#allocation86_spill] sm:$0xff] %v16387_v59  ;;  %v5850_v59 = vld [vmem:[#allocation2 + $0xf0] sm:$0x8]  ;;  %v9859_v16 = vrot.slane %v9857_v47, 4  ;;  %v6885_v32 = vshrl.u32 %v6125_v62, 16  ;;  %v6888_v35 = vshll.u32 %v6125_v62, 16 }
 0x41c   : > { %17600 = vst [vmem:[#allocation84_spill] sm:$0xff] %v16385_v5  ;;  %v16391_v45 = vpop.f32.mrf.mxu0  ;;  %v9423_v5 = vshll.u32 %v16383_v51, 16  ;;  %v9422_v12 = vrot.slane %v9420_v55, 4  ;;  %v9852_v18 = vor.u32 %v9851_v22, %v9848_v2  ;;  %v11683_v50 = vcombine.low %v5850_v59, %v16131_v34  ;;  %v13856_v3 = vld [vmem:[#allocation2 + $0x2c] ss:$0 sps:$4 sm:$0x11]  }
 0x41d   : > { %v16389_v13 = vpop.f32.mrf.mxu1  ;;  %17603 = vst [vmem:[#allocation107_spill] sm:$0xff] %v16391_v45  ;;  %v9860_v40 = vor.u32 %v9859_v16, %v9856_v27  ;;  %v6887_v25 = vrot.slane %v6885_v32, 3  ;;  %v6890_v57 = vrot.slane %v6888_v35, 4  ;;  %v6876_v62 = vshrl.u32 %v11684_v10, 16  ;;  %v9183_v32 = vld [vmem:[#allocation2 + $0x90] sm:$0x8] }
 0x41e   : > { %17602 = vst [vmem:[#allocation105_spill] sm:$0xff] %v16389_v13  ;;  %v9425_v13 = vrot.slane %v9423_v5, 5  ;;  %v16398_v45 = vpop.f32.mrf.mxu0  ;;  %v6871_v17 = vshll.u32 %v11683_v50, 16  ;;  %v6879_v27 = vshll.u32 %v11684_v10, 16  ;;  %v9557_v30 = vrot.slane %v16348_v53, 5 }
 0x41f   : > { %v16396_v14 = vpop.f32.mrf.mxu1  ;;  %17605 = vst [vmem:[#allocation88_spill] sm:$0xff] %v16398_v45  ;;  %v9861_v47 = vsel %vm870_vm1, %v9852_v18, %v9860_v40  ;;  %v6891_v5 = vor.u32 %v6890_v57, %v6887_v25  ;;  %v6878_v16 = vrot.slane %v6876_v62, 3 }
 0x420   : > { %17604 = vst [vmem:[#allocation87_spill] sm:$0xff] %v16396_v14  ;;  %v9426_v28 = vor.u32 %v9425_v13, %v9422_v12  ;;  %v6868_v14 = vshrl.u32 %v11683_v50, 16  ;;  %10597 = vmatmul.mubr.bf16.gmra.mxu1 %v9861_v47  ;;  %v16406_v34 = vpop.f32.mrf.mxu0  ;;  %v6873_v23 = vrot.slane %v6871_v17, 4  ;;  %v9539_v13 = vrot.slane %v16145_v21, 5 }
 0x421   : > { %17607 = vst [vmem:[#allocation90_spill] sm:$0xff] %v16406_v34  ;;  %8985 = vmatprep.mubr.bf16.mxu0 %v6891_v5  ;;  %v6881_v40 = vrot.slane %v6879_v27, 4  ;;  %v9540_v50 = vrot.slane %v13856_v3, 5  ;;  %v11843_v17 = vcombine.low %v9183_v32, %v16377_v1 }
 0x422   : > { %v9906_v2 = vshrl.u32 %v9426_v28, 16  ;;  %v9909_v22 = vshll.u32 %v9426_v28, 16  ;;  %v6870_v59 = vrot.slane %v6868_v14, 3  ;;  %v9614_v57 = vshrl.u32 %v9539_v13, 16  ;;  %v16413_v14 = vld [vmem:[#allocation2 + $0xa8] sm:$0xf] }
 0x423   : > { %v16404_v55 = vpop.f32.mrf.mxu1  ;;  %v9617_v47 = vshll.u32 %v9539_v13, 16  ;;  %v6882_v10 = vor.u32 %v6881_v40, %v6878_v16  ;;  %v9541_v45 = vsel %vm821_vm0, %v9539_v13, %v9540_v50  ;;  %v9892_v16 = vshll.u32 %v11843_v17, 16  ;;  %v9188_v13 = vld [vmem:[#allocation2 + $0xa4] sm:$0xf] }
 0x424   : > { %17606 = vst [vmem:[#allocation89_spill] sm:$0xff] %v16404_v55  ;;  %v9908_v12 = vrot.slane %v9906_v2, 3  ;;  %v9911_v18 = vrot.slane %v9909_v22, 4  ;;  %v6874_v25 = vor.u32 %v6873_v23, %v6870_v59  ;;  %v9616_v5 = vrot.slane %v9614_v57, 3 }
 0x425   : > { %v16409_v35 = vpop.f32.mrf.mxu1  ;;  %v9619_v2 = vrot.slane %v9617_v47, 4  ;;  %v9622_v22 = vshrl.u32 %v9541_v45, 16  ;;  %v9625_v27 = vshll.u32 %v9541_v45, 16  ;;  %v11844_v59 = vcombine.low %v16370_v24, %v16370_v24  ;;  %v13860_v40 = vld [vmem:[#allocation2 + $0x3c] ss:$0 sps:$4 sm:$0x11]  }
 0x426   : > { %17608 = vst [vmem:[#allocation91_spill] sm:$0xff] %v16409_v35  ;;  %v9912_v28 = vor.u32 %v9911_v18, %v9908_v12  ;;  %v6883_v3 = vsel %vm870_vm1, %v6874_v25, %v6882_v10  ;;  %v9889_v23 = vshrl.u32 %v11843_v17, 16  ;;  %v16423_v18 = vcombine.low %v9188_v13, %v16413_v14 }
 0x427   : > { %v16415_v21 = vpop.f32.mrf.mxu1  ;;  %v16417_v62 = vpop.f32.mrf.mxu0  ;;  %8986 = vmatmul.mubr.bf16.gmra.mxu0 %v6883_v3  ;;  %v9620_v1 = vor.u32 %v9619_v2, %v9616_v5  ;;  %v9624_v32 = vrot.slane %v9622_v22, 3  ;;  %v9627_v12 = vrot.slane %v9625_v27, 4  ;;  %v9894_v57 = vrot.slane %v9892_v16, 4  ;;  %v13861_v5 = vld [vmem:[#allocation2 + $0x4c] ss:$0 sps:$4 sm:$0x11]  }
 0x428   : > { %17609 = vst [vmem:[#allocation93_spill] sm:$0xff] %v16415_v21  ;;  %10604 = vmatprep.mubr.bf16.mxu1 %v9912_v28  ;;  %v9891_v50 = vrot.slane %v9889_v23, 3  ;;  %v9897_v45 = vshrl.u32 %v11844_v59, 16  ;;  %v9900_v47 = vshll.u32 %v11844_v59, 16  ;;  %v9428_v10 = vshrl.u32 %v16423_v18, 16 }
 0x429   : > { %v16425_v28 = vpop.f32.mrf.mxu1  ;;  %v16427_v25 = vpop.f32.mrf.mxu0  ;;  %v9628_v24 = vor.u32 %v9627_v12, %v9624_v32  ;;  %v9431_v17 = vshll.u32 %v16423_v18, 16  ;;  %v9542_v59 = vrot.slane %v16179_v15, 5  ;;  %v9545_v35 = vrot.slane %v16212_v58, 5 }
 0x42a   : > { %17610 = vst [vmem:[#allocation95_spill] sm:$0xff] %v16425_v28  ;;  %v9899_v2 = vrot.slane %v9897_v45, 3  ;;  %v9902_v22 = vrot.slane %v9900_v47, 4  ;;  %v9430_v3 = vrot.slane %v9428_v10, 4  ;;  %v9895_v23 = vor.u32 %v9894_v57, %v9891_v50  ;;  %v9187_v45 = vld [vmem:[#allocation2 + $0xa0] sm:$0x8] }
 0x42b   : > { %v9629_v27 = vsel %vm870_vm1, %v9620_v1, %v9628_v24  ;;  %v9433_v21 = vrot.slane %v9431_v17, 5  ;;  %v9543_v28 = vrot.slane %v13860_v40, 5  ;;  %v16435_v32 = vpop.f32.mrf.mxu0  ;;  %v9546_v55 = vrot.slane %v13861_v5, 5 }
 0x42c   : > { %13268 = vmatprep.mubr.bf16.mxu0 %v9629_v27  ;;  %v9903_v16 = vor.u32 %v9902_v22, %v9899_v2  ;;  %v9657_v24 = vshrl.u32 %v9542_v59, 16  ;;  %v9660_v10 = vshll.u32 %v9542_v59, 16  ;;  %v11845_v58 = vcombine.low %v9187_v45, %v9188_v13  ;;  %v13865_v13 = vld [vmem:[#allocation2 + $0x5c] ss:$0 sps:$4 sm:$0x11]  }
 0x42d   : > { %v9434_v12 = vor.u32 %v9433_v21, %v9430_v3  ;;  %v9544_v1 = vsel %vm821_vm0, %v9542_v59, %v9543_v28  ;;  %v9547_v21 = vsel %vm821_vm0, %v9545_v35, %v9546_v55  ;;  %v16443_v5 = vpop.f32.mrf.mxu0  ;;  %v9700_v59 = vshrl.u32 %v9545_v35, 16  ;;  %v16449_v55 = vld [vmem:[#allocation2 + $0xb8] sm:$0xf] }
 0x42e   : > { %v9904_v47 = vsel %vm870_vm1, %v9895_v23, %v9903_v16  ;;  %v9665_v57 = vshrl.u32 %v9544_v1, 16  ;;  %v9668_v17 = vshll.u32 %v9544_v1, 16  ;;  %v9659_v2 = vrot.slane %v9657_v24, 3 }
 0x42f   : > { %10605 = vmatmul.mubr.bf16.gmra.mxu1 %v9904_v47  ;;  %v9949_v15 = vshrl.u32 %v9434_v12, 16  ;;  %v9952_v40 = vshll.u32 %v9434_v12, 16  ;;  %v9662_v22 = vrot.slane %v9660_v10, 4  ;;  %v9703_v39 = vshll.u32 %v9545_v35, 16 }
 0x430   : > { %v16433_v34 = vpop.f32.mrf.mxu1  ;;  %v9667_v23 = vrot.slane %v9665_v57, 3  ;;  %v9670_v28 = vrot.slane %v9668_v17, 4  ;;  %v9708_v49 = vshrl.u32 %v9547_v21, 16  ;;  %v9711_v1 = vshll.u32 %v9547_v21, 16 }
 0x431   : > { %17611 = vst [vmem:[#allocation96_spill] sm:$0xff] %v16433_v34  ;;  %v9951_v27 = vrot.slane %v9949_v15, 3  ;;  %v9954_v3 = vrot.slane %v9952_v40, 4  ;;  %v9663_v16 = vor.u32 %v9662_v22, %v9659_v2  ;;  %v11846_v24 = vcombine.low %v16413_v14, %v16413_v14 }
 0x432   : > { %v16440_v50 = vpop.f32.mrf.mxu1  ;;  %v9671_v61 = vor.u32 %v9670_v28, %v9667_v23  ;;  %v9702_v45 = vrot.slane %v9700_v59, 3  ;;  %v9705_v10 = vrot.slane %v9703_v39, 4  ;;  %v9710_v15 = vrot.slane %v9708_v49, 3 }
 0x433   : > { %17612 = vst [vmem:[#allocation61_spill] sm:$0xff] %v16440_v50  ;;  %v9955_v12 = vor.u32 %v9954_v3, %v9951_v27  ;;  %v9932_v40 = vshrl.u32 %v11845_v58, 16  ;;  %v9713_v17 = vrot.slane %v9711_v1, 4  ;;  %v9935_v2 = vshll.u32 %v11845_v58, 16  ;;  %v9192_v27 = vld [vmem:[#allocation2 + $0xb4] sm:$0xf] }
 0x434   : > { %v16445_v47 = vpop.f32.mrf.mxu1  ;;  %v9672_v35 = vsel %vm870_vm1, %v9663_v16, %v9671_v61  ;;  %v9940_v22 = vshrl.u32 %v11846_v24, 16  ;;  %v9706_v21 = vor.u32 %v9705_v10, %v9702_v45  ;;  %v9943_v14 = vshll.u32 %v11846_v24, 16 }
 0x435   : > { %17613 = vst [vmem:[#allocation121_spill] sm:$0xff] %v16445_v47  ;;  %10612 = vmatprep.mubr.bf16.mxu1 %v9955_v12  ;;  %13269 = vmatmul.mubr.bf16.vlgmr.msra.gmra.mxu0 %v9672_v35  ;;  %v9934_v3 = vrot.slane %v9932_v40, 3  ;;  %v16455_v23 = vcombine.low %v9192_v27, %v16449_v55  ;;  %v9714_v49 = vor.u32 %v9713_v17, %v9710_v15  ;;  %v9937_v59 = vrot.slane %v9935_v2, 4  ;;  %v9215_v47 = vld [vmem:[#allocation2 + $0x110] sm:$0x8] }
 0x436   : > { %v16457_v28 = vpop.f32.mrf.mxu1  ;;  %v9942_v12 = vrot.slane %v9940_v22, 3  ;;  %v9945_v61 = vrot.slane %v9943_v14, 4  ;;  %v9548_v1 = vrot.slane %v16244_v36, 5  ;;  %v9549_v40 = vrot.slane %v13865_v13, 5 }
 0x437   : > { %17614 = vst [vmem:[#allocation97_spill] sm:$0xff] %v16457_v28  ;;  %v9436_v58 = vshrl.u32 %v16455_v23, 16  ;;  %v9439_v16 = vshll.u32 %v16455_v23, 16  ;;  %v9715_v24 = vsel %vm870_vm1, %v9706_v21, %v9714_v49  ;;  %v9938_v10 = vor.u32 %v9937_v59, %v9934_v3 }
 0x438   : > { %v16451_v57 = vpop.f32.mrf.mxu0  ;;  %13272 = vmatprep.mubr.bf16.mxu0 %v9715_v24  ;;  %v9946_v35 = vor.u32 %v9945_v61, %v9942_v12  ;;  %v9743_v17 = vshrl.u32 %v9548_v1, 16  ;;  %v9550_v22 = vsel %vm821_vm0, %v9548_v1, %v9549_v40  ;;  %v9746_v14 = vshll.u32 %v9548_v1, 16 }
 0x439   : > { %v9438_v42 = vrot.slane %v9436_v58, 4  ;;  %v9441_v15 = vrot.slane %v9439_v16, 5  ;;  %v9751_v21 = vshrl.u32 %v9550_v22, 16  ;;  %v9754_v59 = vshll.u32 %v9550_v22, 16 }
 0x43a   : > { %v16459_v39 = vpop.f32.mrf.mxu0  ;;  %v9947_v36 = vsel %vm870_vm1, %v9938_v10, %v9946_v35  ;;  %v9745_v7 = vrot.slane %v9743_v17, 3  ;;  %v9748_v49 = vrot.slane %v9746_v14, 4  ;;  %v9553_v12 = vsel %vm821_vm0, %v9551_v20, %v9552_v37  ;;  %v16479_v14 = vld [vmem:[#allocation2 + $0xc8] sm:$0xf] }
 0x43b   : > { %v9442_v26 = vor.u32 %v9441_v15, %v9438_v42  ;;  %10613 = vmatmul.mubr.bf16.gmra.mxu1 %v9947_v36  ;;  %v9786_v61 = vshrl.u32 %v9551_v20, 16  ;;  %v9753_v1 = vrot.slane %v9751_v21, 3  ;;  %v9756_v10 = vrot.slane %v9754_v59, 4 }
 0x43c   : > { %v16464_v45 = vpop.f32.mrf.mxu0  ;;  %v9749_v24 = vor.u32 %v9748_v49, %v9745_v7  ;;  %v9794_v40 = vshrl.u32 %v9553_v12, 16  ;;  %v9797_v36 = vshll.u32 %v9553_v12, 16  ;;  %v11848_v7 = vcombine.low %v16449_v55, %v16449_v55  ;;  %v9196_v49 = vld [vmem:[#allocation2 + $0xc4] sm:$0xf] }
 0x43d   : > { %v9992_v58 = vshrl.u32 %v9442_v26, 16  ;;  %v9995_v16 = vshll.u32 %v9442_v26, 16  ;;  %v9788_v42 = vrot.slane %v9786_v61, 3  ;;  %v9757_v37 = vor.u32 %v9756_v10, %v9753_v1  ;;  %v13871_v10 = vld [vmem:[#allocation2 + $0x8c] ss:$0 sps:$4 sm:$0x11]  }
 0x43e   : > { %v16467_v2 = vpop.f32.mrf.mxu1  ;;  %v16474_v13 = vpop.f32.mrf.mxu0  ;;  %v9796_v6 = vrot.slane %v9794_v40, 3  ;;  %v11847_v26 = vcombine.low %v9191_v46, %v9192_v27  ;;  %v9799_v48 = vrot.slane %v9797_v36, 4  ;;  %v9983_v27 = vshrl.u32 %v11848_v7, 16 }
 0x43f   : > { %17615 = vst [vmem:[#allocation98_spill] sm:$0xff] %v16467_v2  ;;  %v9994_v15 = vrot.slane %v9992_v58, 3  ;;  %v9997_v17 = vrot.slane %v9995_v16, 4  ;;  %v9792_v20 = vor.u32 %v9791_v8, %v9788_v42  ;;  %v9758_v61 = vsel %vm870_vm1, %v9749_v24, %v9757_v37 }
 0x440   : > { %v16472_v3 = vpop.f32.mrf.mxu1  ;;  %v9975_v58 = vshrl.u32 %v11847_v26, 16  ;;  %v9978_v12 = vshll.u32 %v11847_v26, 16  ;;  %v16489_v16 = vcombine.low %v9196_v49, %v16479_v14  ;;  %13273 = vmatmul.mubr.bf16.gmra.mxu0 %v9758_v61  ;;  %v9800_v8 = vor.u32 %v9799_v48, %v9796_v6 }
 0x441   : > { %17616 = vst [vmem:[#allocation99_spill] sm:$0xff] %v16472_v3  ;;  %v9998_v21 = vor.u32 %v9997_v17, %v9994_v15  ;;  %v9986_v46 = vshll.u32 %v11848_v7, 16  ;;  %v9985_v17 = vrot.slane %v9983_v27, 3  ;;  %v9554_v7 = vrot.slane %v16315_v4, 5 }
 0x442   : > { %v16477_v35 = vpop.f32.mrf.mxu1  ;;  %v9977_v55 = vrot.slane %v9975_v58, 3  ;;  %v9980_v42 = vrot.slane %v9978_v12, 4  ;;  %v9444_v40 = vshrl.u32 %v16489_v16, 16  ;;  %v9447_v24 = vshll.u32 %v16489_v16, 16 }
 0x443   : > { %17617 = vst [vmem:[#allocation100_spill] sm:$0xff] %v16477_v35  ;;  %10620 = vmatprep.mubr.bf16.mxu1 %v9998_v21  ;;  %v9801_v15 = vsel %vm870_vm1, %v9792_v20, %v9800_v8  ;;  %v9988_v36 = vrot.slane %v9986_v46, 4  ;;  %v9555_v58 = vrot.slane %v13870_v52, 5  ;;  %v9195_v35 = vld [vmem:[#allocation2 + $0xc0] sm:$0x8]  ;;  %v9829_v46 = vshrl.u32 %v9554_v7, 16 }
 0x444   : > { %v16481_v22 = vpop.f32.mrf.mxu0  ;;  %v16491_v1 = vpop.f32.mrf.mxu1  ;;  %13276 = vmatprep.mubr.bf16.mxu0 %v9801_v15  ;;  %v9446_v26 = vrot.slane %v9444_v40, 4  ;;  %v9449_v21 = vrot.slane %v9447_v24, 5  ;;  %v9981_v48 = vor.u32 %v9980_v42, %v9977_v55  ;;  %v9832_v40 = vshll.u32 %v9554_v7, 16 }
 0x445   : > { %17618 = vst [vmem:[#allocation103_spill] sm:$0xff] %v16481_v22  ;;  %17620 = vst [vmem:[#allocation106_spill] sm:$0xff] %v16491_v1  ;;  %v9989_v6 = vor.u32 %v9988_v36, %v9985_v17  ;;  %v9558_v1 = vrot.slane %v13871_v10, 5  ;;  %v9556_v27 = vsel %vm821_vm0, %v9554_v7, %v9555_v58  ;;  %v9831_v15 = vrot.slane %v9829_v46, 3 }
 0x446   : > { %v16485_v59 = vpop.f32.mrf.mxu0  ;;  %v9450_v12 = vor.u32 %v9449_v21, %v9446_v26  ;;  %v9837_v4 = vshrl.u32 %v9556_v27, 16  ;;  %v9840_v52 = vshll.u32 %v9556_v27, 16  ;;  %v9834_v17 = vrot.slane %v9832_v40, 4 }
 0x447   : > { %17619 = vst [vmem:[#allocation104_spill] sm:$0xff] %v16485_v59  ;;  %v9990_v8 = vsel %vm870_vm1, %v9981_v48, %v9989_v6  ;;  %v9559_v53 = vsel %vm821_vm0, %v9557_v30, %v9558_v1  ;;  %v11849_v10 = vcombine.low %v9195_v35, %v9196_v49  ;;  %v9872_v7 = vshrl.u32 %v9557_v30, 16  ;;  %v16515_v1 = vld [vmem:[#allocation2 + $0xd8] sm:$0xf] }
 0x448   : > { %v16496_v37 = vpop.f32.mrf.mxu0  ;;  %10621 = vmatmul.mubr.bf16.gmra.mxu1 %v9990_v8  ;;  %v10035_v55 = vshrl.u32 %v9450_v12, 16  ;;  %v10038_v42 = vshll.u32 %v9450_v12, 16  ;;  %v9839_v48 = vrot.slane %v9837_v4, 3  ;;  %v9842_v6 = vrot.slane %v9840_v52, 4 }
 0x449   : > { %17621 = vst [vmem:[#allocation108_spill] sm:$0xff] %v16496_v37  ;;  %v9835_v58 = vor.u32 %v9834_v17, %v9831_v15  ;;  %v9883_v27 = vshll.u32 %v9559_v53, 16  ;;  %v11850_v46 = vcombine.low %v16479_v14, %v16479_v14  ;;  %v9874_v35 = vrot.slane %v9872_v7, 3 }
 0x44a   : > { %v16506_v24 = vpop.f32.mrf.mxu0  ;;  %v10037_v26 = vrot.slane %v10035_v55, 3  ;;  %v10040_v21 = vrot.slane %v10038_v42, 4  ;;  %v9843_v3 = vor.u32 %v9842_v6, %v9839_v48  ;;  %v10018_v55 = vshrl.u32 %v11849_v10, 16  ;;  %v16517_v42 = vld [vmem:[#allocation2 + $0xd4] sm:$0xf] }
 0x44b   : > { %v16498_v61 = vpop.f32.mrf.mxu1  ;;  %17624 = vst [vmem:[#allocation112_spill] sm:$0xff] %v16506_v24  ;;  %v9885_v15 = vrot.slane %v9883_v27, 4  ;;  %v10021_v17 = vshll.u32 %v11849_v10, 16  ;;  %v10029_v48 = vshll.u32 %v11850_v46, 16  ;;  %v9563_v2 = vrot.slane %v16423_v18, 5 }
 0x44c   : > { %17622 = vst [vmem:[#allocation69_spill] sm:$0xff] %v16498_v61  ;;  %v9880_v61 = vshrl.u32 %v9559_v53, 16  ;;  %v10041_v12 = vor.u32 %v10040_v21, %v10037_v26  ;;  %v9844_v52 = vsel %vm870_vm1, %v9835_v58, %v9843_v3  ;;  %v10026_v53 = vshrl.u32 %v11850_v46, 16  ;;  %v13875_v26 = vld [vmem:[#allocation2 + $0x9c] ss:$0 sps:$4 sm:$0x11]  }
 0x44d   : > { %v16502_v20 = vpop.f32.mrf.mxu1  ;;  %13277 = vmatmul.mubr.bf16.gmra.mxu0 %v9844_v52  ;;  %v10020_v21 = vrot.slane %v10018_v55, 3  ;;  %v10023_v6 = vrot.slane %v10021_v17, 4  ;;  %v9560_v58 = vrot.slane %v16383_v51, 5  ;;  %v9961_v18 = vshll.u32 %v9563_v2, 16 }
 0x44e   : > { %17623 = vst [vmem:[#allocation110_spill] sm:$0xff] %v16502_v20  ;;  %v9875_v20 = vshll.u32 %v9557_v30, 16  ;;  %v9882_v40 = vrot.slane %v9880_v61, 3  ;;  %10628 = vmatprep.mubr.bf16.mxu1 %v10041_v12  ;;  %v16526_v61 = vcombine.low %v16517_v42, %v16515_v1  ;;  %v10028_v7 = vrot.slane %v10026_v53, 3 }
 0x44f   : > { %v16509_v36 = vpop.f32.mrf.mxu1  ;;  %v10031_v12 = vrot.slane %v10029_v48, 4  ;;  %v9918_v48 = vshll.u32 %v9560_v58, 16  ;;  %v9569_v31 = vrot.slane %v16489_v16, 5 }
 0x450   : > { %17625 = vst [vmem:[#allocation113_spill] sm:$0xff] %v16509_v36  ;;  %v9877_v49 = vrot.slane %v9875_v20, 4  ;;  %v9886_v20 = vor.u32 %v9885_v15, %v9882_v40  ;;  %v9452_v3 = vshrl.u32 %v16526_v61, 16  ;;  %v9455_v10 = vshll.u32 %v16526_v61, 16 }
 0x451   : > { %v16511_v8 = vpop.f32.mrf.mxu0  ;;  %v16519_v4 = vpop.f32.mrf.mxu1  ;;  %v10032_v40 = vor.u32 %v10031_v12, %v10028_v7  ;;  %v9915_v15 = vshrl.u32 %v9560_v58, 16  ;;  %v9958_v12 = vshrl.u32 %v9563_v2, 16 }
 0x452   : > { %17626 = vst [vmem:[#allocation115_spill] sm:$0xff] %v16511_v8  ;;  %17627 = vst [vmem:[#allocation116_spill] sm:$0xff] %v16519_v4  ;;  %v9878_v14 = vor.u32 %v9877_v49, %v9874_v35  ;;  %v13876_v4 = vld [vmem:[#allocation2 + $0xac] ss:$0 sps:$4 sm:$0x11]   ;;  %v10024_v35 = vor.u32 %v10023_v6, %v10020_v21  ;;  %v9561_v49 = vrot.slane %v13875_v26, 5 }
 0x453   : > { %v16521_v30 = vpop.f32.mrf.mxu0  ;;  %v9454_v55 = vrot.slane %v9452_v3, 4  ;;  %v9457_v52 = vrot.slane %v9455_v10, 5  ;;  %v9564_v29 = vrot.slane %v13876_v4, 5  ;;  %v9917_v21 = vrot.slane %v9915_v15, 3  ;;  %v9199_v4 = vld [vmem:[#allocation2 + $0xd0] sm:$0x8] }
 0x454   : > { %17628 = vst [vmem:[#allocation118_spill] sm:$0xff] %v16521_v30  ;;  %v9887_v46 = vsel %vm870_vm1, %v9878_v14, %v9886_v20  ;;  %v9562_v53 = vsel %vm821_vm0, %v9560_v58, %v9561_v49  ;;  %v9920_v20 = vrot.slane %v9918_v48, 4  ;;  %v9960_v24 = vrot.slane %v9958_v12, 3  ;;  %v9204_v12 = vld [vmem:[#allocation2 + $0xe4] sm:$0xf] }
 0x455   : > { %v16528_v36 = vpop.f32.mrf.mxu0  ;;  %13280 = vmatprep.mubr.bf16.mxu0 %v9887_v46  ;;  %v9458_v14 = vor.u32 %v9457_v52, %v9454_v55  ;;  %v9923_v26 = vshrl.u32 %v9562_v53, 16  ;;  %v9926_v6 = vshll.u32 %v9562_v53, 16  ;;  %v9565_v7 = vsel %vm821_vm0, %v9563_v2, %v9564_v29  ;;  %v16548_v53 = vld [vmem:[#allocation2 + $0xe8] sm:$0xf]  ;;  %v9211_v8 = vld [vmem:[#allocation2 + $0x100] sm:$0x8] }
 0x456   : > { %17629 = vst [vmem:[#allocation124_spill] sm:$0xff] %v16528_v36  ;;  %v9921_v49 = vor.u32 %v9920_v20, %v9917_v21  ;;  %v9963_v52 = vrot.slane %v9961_v18, 4  ;;  %v9969_v15 = vshll.u32 %v9565_v7, 16 }
 0x457   : > { %v16540_v51 = vpop.f32.mrf.mxu0  ;;  %v10078_v10 = vshrl.u32 %v9458_v14, 16  ;;  %v10081_v58 = vshll.u32 %v9458_v14, 16  ;;  %v9925_v46 = vrot.slane %v9923_v26, 3 }
 0x458   : > { %v16533_v27 = vpop.f32.mrf.mxu1  ;;  %17632 = vst [vmem:[#allocation123_spill] sm:$0xff] %v16540_v51  ;;  %v9964_v26 = vor.u32 %v9963_v52, %v9960_v24  ;;  %v9971_v20 = vrot.slane %v9969_v15, 4  ;;  %v9203_v51 = vld [vmem:[#allocation2 + $0xe0] sm:$0x8] }
 0x459   : > { %17630 = vst [vmem:[#allocation119_spill] sm:$0xff] %v16533_v27  ;;  %v10033_v27 = vsel %vm870_vm1, %v10024_v35, %v10032_v40  ;;  %v9966_v35 = vshrl.u32 %v9565_v7, 16  ;;  %v10080_v55 = vrot.slane %v10078_v10, 3  ;;  %v11853_v16 = vcombine.low %v9203_v51, %v9204_v12 }
 0x45a   : > { %v16536_v17 = vpop.f32.mrf.mxu1  ;;  %10629 = vmatmul.mubr.bf16.gmra.mxu1 %v10033_v27  ;;  %v10083_v27 = vrot.slane %v10081_v58, 4 }
 0x45b   : > { %17631 = vst [vmem:[#allocation120_spill] sm:$0xff] %v16536_v17  ;;  %v9928_v17 = vrot.slane %v9926_v6, 4  ;;  %v9968_v48 = vrot.slane %v9966_v35, 3  ;;  %v11852_v6 = vcombine.low %v16515_v1, %v16515_v1  ;;  %v13881_v35 = vld [vmem:[#allocation2 + $0xcc] ss:$0 sps:$4 sm:$0x11]  }
 0x45c   : > { %v16544_v3 = vpop.f32.mrf.mxu1  ;;  %v10084_v21 = vor.u32 %v10083_v27, %v10080_v55 }
 0x45d   : > { %17633 = vst [vmem:[#allocation122_spill] sm:$0xff] %v16544_v3  ;;  %v9929_v29 = vor.u32 %v9928_v17, %v9925_v46  ;;  %v11851_v3 = vcombine.low %v9199_v4, %v16517_v42  ;;  %v16559_v17 = vcombine.low %v9204_v12, %v16548_v53  ;;  %v13880_v46 = vld [vmem:[#allocation2 + $0xbc] ss:$0 sps:$4 sm:$0x11]   ;;  %v9972_v42 = vor.u32 %v9971_v20, %v9968_v48 }
 0x45e   : > { %v16551_v14 = vpop.f32.mrf.mxu1  ;;  %10636 = vmatprep.mubr.bf16.mxu1 %v10084_v21  ;;  %v10069_v18 = vshrl.u32 %v11852_v6, 16  ;;  %v10072_v4 = vshll.u32 %v11852_v6, 16 }
 0x45f   : > { %v16546_v40 = vpop.f32.mrf.mxu0  ;;  %17634 = vst [vmem:[#allocation125_spill] sm:$0xff] %v16551_v14  ;;  %v9930_v10 = vsel %vm870_vm1, %v9921_v49, %v9929_v29  ;;  %v10061_v7 = vshrl.u32 %v11851_v3, 16  ;;  %v10064_v58 = vshll.u32 %v11851_v3, 16  ;;  %v9460_v1 = vshrl.u32 %v16559_v17, 16 }
 0x460   : > { %13281 = vmatmul.mubr.bf16.gmra.mxu0 %v9930_v10  ;;  %v9463_v49 = vshll.u32 %v16559_v17, 16  ;;  %v9973_v3 = vsel %vm870_vm1, %v9964_v26, %v9972_v42  ;;  %v10071_v15 = vrot.slane %v10069_v18, 3  ;;  %v10074_v29 = vrot.slane %v10072_v4, 4 }
 0x461   : > { %v16553_v2 = vpop.f32.mrf.mxu0  ;;  %v10063_v55 = vrot.slane %v10061_v7, 3  ;;  %v10066_v27 = vrot.slane %v10064_v58, 4  ;;  %13284 = vmatprep.mubr.bf16.mxu0 %v9973_v3  ;;  %v9462_v21 = vrot.slane %v9460_v1, 4  ;;  %v9566_v7 = vrot.slane %v16455_v23, 5 }
 0x462   : > { %v9465_v48 = vrot.slane %v9463_v49, 5  ;;  %v10075_v10 = vor.u32 %v10074_v29, %v10071_v15  ;;  %v9567_v58 = vrot.slane %v13880_v46, 5  ;;  %v9575_v36 = vrot.slane %v16559_v17, 5 }
 0x463   : > { %v16561_v24 = vpop.f32.mrf.mxu0  ;;  %v10067_v6 = vor.u32 %v10066_v27, %v10063_v55  ;;  %v10001_v18 = vshrl.u32 %v9566_v7, 16  ;;  %v10004_v4 = vshll.u32 %v9566_v7, 16 }
 0x464   : > { %v9466_v37 = vor.u32 %v9465_v48, %v9462_v21  ;;  %v9568_v42 = vsel %vm821_vm0, %v9566_v7, %v9567_v58  ;;  %v10044_v7 = vshrl.u32 %v9569_v31, 16  ;;  %v10047_v58 = vshll.u32 %v9569_v31, 16 }
 0x465   : > { %v16565_v52 = vpop.f32.mrf.mxu1  ;;  %v16571_v14 = vpop.f32.mrf.mxu0  ;;  %v10076_v26 = vsel %vm870_vm1, %v10067_v6, %v10075_v10  ;;  %v10009_v27 = vshrl.u32 %v9568_v42, 16  ;;  %v10012_v49 = vshll.u32 %v9568_v42, 16  ;;  %v10003_v46 = vrot.slane %v10001_v18, 3 }
 0x466   : > { %17635 = vst [vmem:[#allocation126_spill] sm:$0xff] %v16565_v52  ;;  %v9570_v52 = vrot.slane %v13881_v35, 5  ;;  %10637 = vmatmul.mubr.bf16.gmra.mxu1 %v10076_v26  ;;  %v10121_v1 = vshrl.u32 %v9466_v37, 16  ;;  %v10124_v55 = vshll.u32 %v9466_v37, 16  ;;  %v10006_v3 = vrot.slane %v10004_v4, 4 }
 0x467   : > { %v16568_v20 = vpop.f32.mrf.mxu1  ;;  %v10011_v48 = vrot.slane %v10009_v27, 3  ;;  %v10014_v6 = vrot.slane %v10012_v49, 4  ;;  %v11854_v18 = vcombine.low %v16548_v53, %v16548_v53  ;;  %v10046_v12 = vrot.slane %v10044_v7, 3  ;;  %v16589_v27 = vld [vmem:[#allocation2 + $0xf4] sm:$0xf] }
 0x468   : > { %17636 = vst [vmem:[#allocation127_spill] sm:$0xff] %v16568_v20  ;;  %v9571_v15 = vsel %vm821_vm0, %v9569_v31, %v9570_v52  ;;  %v10123_v29 = vrot.slane %v10121_v1, 3  ;;  %v10126_v21 = vrot.slane %v10124_v55, 4  ;;  %v10007_v10 = vor.u32 %v10006_v3, %v10003_v46  ;;  %v16585_v52 = vld [vmem:[#allocation2 + $0xf8] sm:$0xf] }
 0x469   : > { %v16576_v23 = vpop.f32.mrf.mxu1  ;;  %v10052_v26 = vshrl.u32 %v9571_v15, 16  ;;  %v10015_v20 = vor.u32 %v10014_v6, %v10011_v48  ;;  %v10049_v4 = vrot.slane %v10047_v58, 4  ;;  %v10104_v55 = vshrl.u32 %v11853_v16, 16 }
 0x46a   : > { %17637 = vst [vmem:[#allocation128_spill] sm:$0xff] %v16576_v23  ;;  %v10127_v42 = vor.u32 %v10126_v21, %v10123_v29  ;;  %v10055_v23 = vshll.u32 %v9571_v15, 16  ;;  %v10107_v46 = vshll.u32 %v11853_v16, 16  ;;  %v10112_v3 = vshrl.u32 %v11854_v18, 16 }
 0x46b   : > { %v16587_v51 = vpop.f32.mrf.mxu1  ;;  %v10054_v1 = vrot.slane %v10052_v26, 3  ;;  %v10016_v31 = vsel %vm870_vm1, %v10007_v10, %v10015_v20  ;;  %v13885_v15 = vld [vmem:[#allocation2 + $0xdc] ss:$0 sps:$4 sm:$0x11]   ;;  %v10050_v29 = vor.u32 %v10049_v4, %v10046_v12  ;;  %v10106_v53 = vrot.slane %v10104_v55, 3 }
 0x46c   : > { %v16579_v35 = vpop.f32.mrf.mxu0  ;;  %17638 = vst [vmem:[#allocation130_spill] sm:$0xff] %v16587_v51  ;;  %10644 = vmatprep.mubr.bf16.mxu1 %v10127_v42  ;;  %v10057_v49 = vrot.slane %v10055_v23, 4  ;;  %13285 = vmatmul.mubr.bf16.gmra.mxu0 %v10016_v31  ;;  %v10115_v21 = vshll.u32 %v11854_v18, 16  ;;  %v16594_v48 = vcombine.low %v16589_v27, %v16585_v52  ;;  %v10109_v58 = vrot.slane %v10107_v46, 4 }
 0x46d   : > { %v10114_v26 = vrot.slane %v10112_v3, 3  ;;  %v13886_v42 = vld [vmem:[#allocation2 + $0xec] ss:$0 sps:$4 sm:$0x11]   ;;  %v9572_v10 = vrot.slane %v16526_v61, 5  ;;  %v9573_v4 = vrot.slane %v13885_v15, 5 }
 0x46e   : > { %v16581_v37 = vpop.f32.mrf.mxu0  ;;  %v10058_v7 = vor.u32 %v10057_v49, %v10054_v1  ;;  %v10117_v20 = vrot.slane %v10115_v21, 4  ;;  %v9468_v23 = vshrl.u32 %v16594_v48, 16  ;;  %v9471_v16 = vshll.u32 %v16594_v48, 16 }
 0x46f   : > { %v10110_v12 = vor.u32 %v10109_v58, %v10106_v53  ;;  %v10087_v46 = vshrl.u32 %v9572_v10, 16  ;;  %v9574_v21 = vsel %vm821_vm0, %v9572_v10, %v9573_v4  ;;  %v9576_v60 = vrot.slane %v13886_v42, 5 }
 0x470   : > { %v16596_v6 = vpop.f32.mrf.mxu0  ;;  %v10059_v18 = vsel %vm870_vm1, %v10050_v29, %v10058_v7  ;;  %v10118_v1 = vor.u32 %v10117_v20, %v10114_v26  ;;  %v9470_v31 = vrot.slane %v9468_v23, 4  ;;  %v9473_v49 = vrot.slane %v9471_v16, 5 }
 0x471   : > { %13288 = vmatprep.mubr.bf16.mxu0 %v10059_v18  ;;  %v10089_v53 = vrot.slane %v10087_v46, 3  ;;  %v10095_v15 = vshrl.u32 %v9574_v21, 16  ;;  %v10098_v26 = vshll.u32 %v9574_v21, 16  ;;  %v9577_v20 = vsel %vm821_vm0, %v9575_v36, %v9576_v60 }
 0x472   : > { %v16606_v3 = vpop.f32.mrf.mxu0  ;;  %v10119_v61 = vsel %vm870_vm1, %v10110_v12, %v10118_v1  ;;  %v9474_v29 = vor.u32 %v9473_v49, %v9470_v31  ;;  %v10130_v23 = vshrl.u32 %v9575_v36, 16  ;;  %v10138_v31 = vshrl.u32 %v9577_v20, 16 }
 0x473   : > { %v16598_v51 = vpop.f32.mrf.mxu1  ;;  %10645 = vmatmul.mubr.bf16.gmra.mxu1 %v10119_v61  ;;  %v10097_v4 = vrot.slane %v10095_v15, 3  ;;  %v10100_v12 = vrot.slane %v10098_v26, 4  ;;  %v10141_v61 = vshll.u32 %v9577_v20, 16  ;;  %v9212_v26 = vld [vmem:[#allocation2 + $0x104] sm:$0xf] }
 0x474   : > { %17639 = vst [vmem:[#allocation133_spill] sm:$0xff] %v16598_v51  ;;  %v10090_v51 = vshll.u32 %v9572_v10, 16  ;;  %v10164_v16 = vshrl.u32 %v9474_v29, 16  ;;  %v10167_v18 = vshll.u32 %v9474_v29, 16  ;;  %v10133_v10 = vshll.u32 %v9575_v36, 16 }
 0x475   : > { %v16604_v55 = vpop.f32.mrf.mxu1  ;;  %v10132_v1 = vrot.slane %v10130_v23, 3  ;;  %v10101_v29 = vor.u32 %v10100_v12, %v10097_v4  ;;  %v10140_v15 = vrot.slane %v10138_v31, 3 }
 0x476   : > { %17640 = vst [vmem:[#allocation129_spill] sm:$0xff] %v16604_v55  ;;  %v10092_v58 = vrot.slane %v10090_v51, 4  ;;  %v9207_v55 = vld [vmem:[#allocation2 + $0xf0] sm:$0x8]  ;;  %v10166_v49 = vrot.slane %v10164_v16, 3  ;;  %v10169_v46 = vrot.slane %v10167_v18, 4 }
 0x477   : > { %v16611_v7 = vpop.f32.mrf.mxu1  ;;  %v16616_v51 = vld [vmem:[#allocation2 + $0x108] sm:$0xf]  ;;  %v11855_v36 = vcombine.low %v9207_v55, %v16589_v27 }
 0x478   : > { %17641 = vst [vmem:[#allocation131_spill] sm:$0xff] %v16611_v7  ;;  %v10093_v42 = vor.u32 %v10092_v58, %v10089_v53  ;;  %v10135_v7 = vrot.slane %v10133_v10, 4  ;;  %v10170_v59 = vor.u32 %v10169_v46, %v10166_v49  ;;  %v10143_v53 = vrot.slane %v10141_v61, 4  ;;  %v13890_v10 = vld [vmem:[#allocation2 + $0xfc] ss:$0 sps:$4 sm:$0x11]  }
 0x479   : > { %v16618_v21 = vpop.f32.mrf.mxu1  ;;  %v11856_v58 = vcombine.low %v16585_v52, %v16585_v52  ;;  %v10147_v20 = vshrl.u32 %v11855_v36, 16  ;;  %v10150_v16 = vshll.u32 %v11855_v36, 16  ;;  %v11875_v18 = vcombine.low %v9212_v26, %v16616_v51 }
 0x47a   : > { %v16614_v17 = vpop.f32.mrf.mxu0  ;;  %17642 = vst [vmem:[#allocation132_spill] sm:$0xff] %v16618_v21  ;;  %v10136_v22 = vor.u32 %v10135_v7, %v10132_v1  ;;  %v10102_v23 = vsel %vm870_vm1, %v10093_v42, %v10101_v29  ;;  %10652 = vmatprep.mubr.bf16.mxu1 %v10170_v59  ;;  %v10144_v4 = vor.u32 %v10143_v53, %v10140_v15  ;;  %v13891_v7 = vld [vmem:[#allocation2 + $0x10c] ss:$0 sps:$4 sm:$0x11]  }
 0x47b   : > { %13289 = vmatmul.mubr.bf16.gmra.mxu0 %v10102_v23  ;;  %v10155_v27 = vshrl.u32 %v11856_v58, 16  ;;  %v10158_v55 = vshll.u32 %v11856_v58, 16  ;;  %v10149_v1 = vrot.slane %v10147_v20, 3  ;;  %v10152_v52 = vrot.slane %v10150_v16, 4 }
 0x47c   : > { %v16620_v60 = vpop.f32.mrf.mxu0  ;;  %v9476_v31 = vshrl.u32 %v11875_v18, 16  ;;  %v9479_v49 = vshll.u32 %v11875_v18, 16  ;;  %v10145_v42 = vsel %vm870_vm1, %v10136_v22, %v10144_v4  ;;  %v9578_v58 = vrot.slane %v16594_v48, 5 }
 0x47d   : > { %v10157_v46 = vrot.slane %v10155_v27, 3  ;;  %v10160_v61 = vrot.slane %v10158_v55, 4  ;;  %13292 = vmatprep.mubr.bf16.mxu0 %v10145_v42  ;;  %v10153_v15 = vor.u32 %v10152_v52, %v10149_v1  ;;  %v9581_v16 = vrot.slane %v11875_v18, 5 }
 0x47e   : > { %v16627_v21 = vpop.f32.mrf.mxu0  ;;  %v9478_v36 = vrot.slane %v9476_v31, 4  ;;  %v9481_v59 = vrot.slane %v9479_v49, 5  ;;  %v9582_v30 = vrot.slane %v13891_v7, 5  ;;  %v10173_v27 = vshrl.u32 %v9578_v58, 16 }
 0x47f   : > { %v10161_v53 = vor.u32 %v10160_v61, %v10157_v46  ;;  %v10176_v55 = vshll.u32 %v9578_v58, 16  ;;  %v11857_v7 = vcombine.low %v9211_v8, %v9212_v26  ;;  %v13895_v8 = vld [vmem:[#allocation2 + $0x11c] ss:$0 sps:$4 sm:$0x11]  }
 0x480   : > { %v16629_v12 = vpop.f32.mrf.mxu1  ;;  %v16634_v23 = vpop.f32.mrf.mxu0  ;;  %v9482_v20 = vor.u32 %v9481_v59, %v9478_v36  ;;  %v10175_v48 = vrot.slane %v10173_v27, 3  ;;  %v9583_v18 = vsel %vm821_vm0, %v9581_v16, %v9582_v30  ;;  %v11858_v27 = vcombine.low %v16616_v51, %v16616_v51  ;;  %v9216_v30 = vld [vmem:[#allocation2 + $0x114] sm:$0xf] }
 0x481   : > { %17643 = vst [vmem:[#allocation134_spill] sm:$0xff] %v16629_v12  ;;  %v9579_v12 = vrot.slane %v13890_v10, 5  ;;  %v10162_v22 = vsel %vm870_vm1, %v10153_v15, %v10161_v53  ;;  %v10178_v10 = vrot.slane %v10176_v55, 4 }
 0x482   : > { %v16632_v29 = vpop.f32.mrf.mxu1  ;;  %10653 = vmatmul.mubr.bf16.gmra.mxu1 %v10162_v22  ;;  %v10207_v31 = vshrl.u32 %v9482_v20, 16  ;;  %v10210_v49 = vshll.u32 %v9482_v20, 16  ;;  %v10219_v20 = vshll.u32 %v9581_v16, 16  ;;  %v10224_v22 = vshrl.u32 %v9583_v18, 16 }
 0x483   : > { %17644 = vst [vmem:[#allocation135_spill] sm:$0xff] %v16632_v29  ;;  %v9580_v4 = vsel %vm821_vm0, %v9578_v58, %v9579_v12  ;;  %v10179_v53 = vor.u32 %v10178_v10, %v10175_v48  ;;  %v10216_v58 = vshrl.u32 %v9581_v16, 16  ;;  %v10227_v29 = vshll.u32 %v9583_v18, 16 }
 0x484   : > { %v16637_v28 = vpop.f32.mrf.mxu1  ;;  %v10181_v1 = vshrl.u32 %v9580_v4, 16  ;;  %v10184_v52 = vshll.u32 %v9580_v4, 16  ;;  %v10209_v46 = vrot.slane %v10207_v31, 3  ;;  %v10212_v61 = vrot.slane %v10210_v49, 4 }
 0x485   : > { %17645 = vst [vmem:[#allocation136_spill] sm:$0xff] %v16637_v28  ;;  %v10218_v55 = vrot.slane %v10216_v58, 3  ;;  %v10221_v31 = vrot.slane %v10219_v20, 4  ;;  %v10226_v49 = vrot.slane %v10224_v22, 3  ;;  %v10229_v16 = vrot.slane %v10227_v29, 4 }
 0x486   : > { %v10183_v36 = vrot.slane %v10181_v1, 3  ;;  %v10186_v59 = vrot.slane %v10184_v52, 4  ;;  %v16644_v15 = vpop.f32.mrf.mxu1  ;;  %v10213_v4 = vor.u32 %v10212_v61, %v10209_v46  ;;  %v10190_v1 = vshrl.u32 %v11857_v7, 16  ;;  %v9217_v52 = vld [vmem:[#allocation2 + $0x118] sm:$0xf] }
 0x487   : > { %v16641_v42 = vpop.f32.mrf.mxu0  ;;  %17646 = vst [vmem:[#allocation137_spill] sm:$0xff] %v16644_v15  ;;  %v10193_v10 = vshll.u32 %v11857_v7, 16  ;;  %v10198_v46 = vshrl.u32 %v11858_v27, 16  ;;  %v10222_v18 = vor.u32 %v10221_v31, %v10218_v55  ;;  %v10230_v15 = vor.u32 %v10229_v16, %v10226_v49 }
 0x488   : > { %v10187_v28 = vor.u32 %v10186_v59, %v10183_v36  ;;  %10660 = vmatprep.mubr.bf16.mxu1 %v10213_v4  ;;  %v10192_v51 = vrot.slane %v10190_v1, 3  ;;  %v10201_v36 = vshll.u32 %v11858_v27, 16  ;;  %v11876_v22 = vcombine.low %v9216_v30, %v9217_v52 }
 0x489   : > { %v16646_v12 = vpop.f32.mrf.mxu0  ;;  %v10195_v58 = vrot.slane %v10193_v10, 4  ;;  %v10200_v20 = vrot.slane %v10198_v46, 3  ;;  %v10231_v29 = vsel %vm870_vm1, %v10222_v18, %v10230_v15  ;;  %v11859_v31 = vcombine.low %v9215_v47, %v9216_v30 }
 0x48a   : > { %v10188_v48 = vsel %vm870_vm1, %v10179_v53, %v10187_v28  ;;  %v10203_v4 = vrot.slane %v10201_v36, 4  ;;  %v9585_v28 = vrot.slane %v13895_v8, 5  ;;  %v9584_v53 = vrot.slane %v11876_v22, 5 }
 0x48b   : > { %v16650_v26 = vpop.f32.mrf.mxu0  ;;  %13293 = vmatmul.mubr.bf16.gmra.mxu0 %v10188_v48  ;;  %v10196_v7 = vor.u32 %v10195_v58, %v10192_v51  ;;  %v9487_v55 = vshll.u32 %v11876_v22, 16  ;;  %v11860_v49 = vcombine.low %v9217_v52, %v9217_v52  ;;  %v10236_v47 = vshll.u32 %v11859_v31, 16 }
 0x48c   : > { %13296 = vmatprep.mubr.bf16.mxu0 %v10231_v29  ;;  %v10204_v27 = vor.u32 %v10203_v4, %v10200_v20  ;;  %v9586_v16 = vsel %vm821_vm0, %v9584_v53, %v9585_v28  ;;  %v10259_v10 = vshrl.u32 %v9584_v53, 16  ;;  %v10262_v46 = vshll.u32 %v9584_v53, 16 }
 0x48d   : > { %v16653_v61 = vpop.f32.mrf.mxu1  ;;  %v16655_v59 = vpop.f32.mrf.mxu0  ;;  %v10267_v8 = vshrl.u32 %v9586_v16, 16  ;;  %v10270_v18 = vshll.u32 %v9586_v16, 16  ;;  %v9489_v51 = vrot.slane %v9487_v55, 5  ;;  %v10241_v28 = vshrl.u32 %v11860_v49, 16 }
 0x48e   : > { %17647 = vst [vmem:[#allocation139_spill] sm:$0xff] %v16653_v61  ;;  %v9484_v61 = vshrl.u32 %v11876_v22, 16  ;;  %v10205_v15 = vsel %vm870_vm1, %v10196_v7, %v10204_v27  ;;  %v10261_v29 = vrot.slane %v10259_v10, 3  ;;  %v10264_v20 = vrot.slane %v10262_v46, 4 }
 0x48f   : > { %v16657_v50 = vpop.f32.mrf.mxu1  ;;  %10661 = vmatmul.mubr.bf16.gmra.mxu1 %v10205_v15  ;;  %v10233_v22 = vshrl.u32 %v11859_v31, 16  ;;  %v10269_v30 = vrot.slane %v10267_v8, 3  ;;  %v10272_v52 = vrot.slane %v10270_v18, 4  ;;  %v10238_v34 = vrot.slane %v10236_v47, 4 }
 0x490   : > { %17648 = vst [vmem:[#allocation140_spill] sm:$0xff] %v16657_v50  ;;  %v9486_v50 = vrot.slane %v9484_v61, 4  ;;  %v10265_v53 = vor.u32 %v10264_v20, %v10261_v29  ;;  %v10243_v16 = vrot.slane %v10241_v28, 3 }
 0x491   : > { %v16660_v48 = vpop.f32.mrf.mxu1  ;;  %v10235_v61 = vrot.slane %v10233_v22, 3  ;;  %v10273_v7 = vor.u32 %v10272_v52, %v10269_v30  ;;  %v16684_v30 = vadd.f32 %v16581_v37, %v16579_v35  ;;  %v16688_v52 = vadd.f32 %v16606_v3, %v16596_v6 }
 0x492   : > { %17649 = vst [vmem:[#allocation141_spill] sm:$0xff] %v16660_v48  ;;  %v12804_v1 = vpop.f32.mrf.mxu0  ;;  %v9490_v4 = vor.u32 %v9489_v51, %v9486_v50 }
 0x493   : > { %v16663_v36 = vpop.f32.mrf.mxu1  ;;  %v10239_v15 = vor.u32 %v10238_v34, %v10235_v61  ;;  %v10274_v31 = vsel %vm870_vm1, %v10265_v53, %v10273_v7  ;;  %v16676_v34 = vadd.f32 %v16553_v2, %v16546_v40  ;;  %v16698_v40 = vadd.f32 %v16634_v23, %v16627_v21 }
 0x494   : > { %17650 = vst [vmem:[#allocation102_spill] sm:$0xff] %v16663_v36  ;;  %v12805_v58 = vpop.f32.mrf.mxu0  ;;  %v10244_v36 = vshll.u32 %v11860_v49, 16  ;;  %v10250_v27 = vshrl.u32 %v9490_v4, 16  ;;  %v10253_v55 = vshll.u32 %v9490_v4, 16  ;;  %13297 = vmatmul.mubr.bf16.gmra.mxu0 %v10274_v31  ;;  %v16692_v4 = vadd.f32 %v16620_v60, %v16614_v17 }
 0x495   : > { %17651 = vst [vmem:[#allocation138_spill] sm:$0xff] %v16698_v40  ;;  %v16708_v35 = vadd.f32 %v12805_v58, %v12804_v1 }
 0x496   : > { %v12807_v48 = vpop.f32.mrf.mxu0  ;;  %v10246_v10 = vrot.slane %v10244_v36, 4  ;;  %v10252_v8 = vrot.slane %v10250_v27, 3  ;;  %v10255_v50 = vrot.slane %v10253_v55, 4  ;;  %v16680_v36 = vadd.f32 %v16571_v14, %v16561_v24 }
 0x497   : > { %v16666_v44 = vpop.f32.mrf.mxu1  ;;  %v16702_v14 = vadd.f32 %v16646_v12, %v16641_v42  ;;  %v16706_v24 = vadd.f32 %v16655_v59, %v16650_v26  ;;  %17652 = vst [vmem:[#allocation142_spill] sm:$0xff] %v16708_v35 }
 0x498   : > { %v12808_v18 = vpop.f32.mrf.mxu0  ;;  %v10247_v51 = vor.u32 %v10246_v10, %v10243_v16  ;;  %v10256_v29 = vor.u32 %v10255_v50, %v10252_v8 }
 0x499   : > { %v16668_v46 = vpop.f32.mrf.mxu1  ;;  %v16710_v6 = vadd.f32 %v12808_v18, %v12807_v48 }
 0x49a   : > { %v10248_v49 = vsel %vm870_vm1, %v10239_v15, %v10247_v51  ;;  %10668 = vmatprep.mubr.bf16.mxu1 %v10256_v29 }
 0x49b   : > { %v16672_v20 = vpop.f32.mrf.mxu1  ;;  %10669 = vmatmul.mubr.bf16.gmra.mxu1 %v10248_v49  ;;  %17653 = vst [vmem:[#allocation143_spill] sm:$0xff] %v16710_v6 }
 0x49d   : > { %v16694_v28 = vpop.f32.mrf.mxu1 }
 0x49e   : > { %v12810_v22 = vpop.f32.mrf.mxu0 }
 0x4a0   : > { %v12811_v47 = vpop.f32.mrf.mxu0 }
 0x4a1   : > { %v16712_v3 = vadd.f32 %v12811_v47, %v12810_v22 }
 0x4a2   : > { %v12813_v2 = vpop.f32.mrf.mxu0 }
 0x4a3   : > { %17654 = vst [vmem:[#allocation145_spill] sm:$0xff] %v16712_v3 }
 0x4a4   : > { %v12814_v37 = vpop.f32.mrf.mxu0  ;;  %v16714_v17 = vpop.f32.mrf.mxu1 }
 0x4a5   : > { %v16716_v21 = vadd.f32 %v12814_v37, %v12813_v2 }
 0x4a6   : > { %v16718_v60 = vpop.f32.mrf.mxu1 }
 0x4a7   : > { %17655 = vst [vmem:[#allocation144_spill] sm:$0xff] %v16716_v21 }
 0x4a8   : > { %v16720_v23 = vpop.f32.mrf.mxu1 }
 0x4aa   : > { %v12816_v42 = vpop.f32.mrf.mxu0  ;;  %v16722_v12 = vpop.f32.mrf.mxu1 }
 0x4ac   : > { %v12817_v26 = vpop.f32.mrf.mxu0 }
 0x4ad   : > { %v16724_v59 = vadd.f32 %v12817_v26, %v12816_v42 }
 0x4ae   : > { %v12819_v1 = vpop.f32.mrf.mxu0 }
 0x4af   : > { %17656 = vst [vmem:[#allocation146_spill] sm:$0xff] %v16724_v59 }
 0x4b0   : > { %v16726_v58 = vpop.f32.mrf.mxu1  ;;  %v12820_v48 = vpop.f32.mrf.mxu0 }
 0x4b1   : > { %v16728_v53 = vadd.f32 %v12820_v48, %v12819_v1 }
 0x4b2   : > { %v16730_v61 = vpop.f32.mrf.mxu1 }
 0x4b3   : > { %17657 = vst [vmem:[#allocation148_spill] sm:$0xff] %v16728_v53 }
 0x4b4   : > { %v16732_v7 = vpop.f32.mrf.mxu1 }
 0x4b6   : > { %v12822_v27 = vpop.f32.mrf.mxu0  ;;  %v16734_v55 = vpop.f32.mrf.mxu1 }
 0x4b8   : > { %v12823_v16 = vpop.f32.mrf.mxu0 }
 0x4b9   : > { %v16736_v15 = vadd.f32 %v12823_v16, %v12822_v27 }
 0x4ba   : > { %v12825_v10 = vpop.f32.mrf.mxu0 }
 0x4bb   : > { %17658 = vst [vmem:[#allocation147_spill] sm:$0xff] %v16736_v15  ;;  %v16738_v31 = vpop.f32.mrf.mxu1 }
 0x4bc   : > { %v12826_v8 = vpop.f32.mrf.mxu0 }
 0x4bd   : > { %v16740_v50 = vpop.f32.mrf.mxu1  ;;  %v16742_v18 = vadd.f32 %v12826_v8, %v12825_v10 }
 0x4bf   : > { %17659 = vst [vmem:[#allocation149_spill] sm:$0xff] %v16742_v18  ;;  %v16744_v51 = vpop.f32.mrf.mxu1 }
 0x4c1   : > { %v16746_v49 = vpop.f32.mrf.mxu1 }
 0x4c3   : > { %v12828_v29 = vpop.f32.mrf.mxu0 }
 0x4c5   : > { %v12829_v22 = vpop.f32.mrf.mxu0 }
 0x4c6   : > { %v16748_v47 = vadd.f32 %v12829_v22, %v12828_v29 }
 0x4c7   : > { %v12831_v2 = vpop.f32.mrf.mxu0 }
 0x4c8   : > { %17660 = vst [vmem:[#allocation111_spill] sm:$0xff] %v16748_v47  ;;  %v16750_v37 = vpop.f32.mrf.mxu1 }
 0x4c9   : > { %v12832_v42 = vpop.f32.mrf.mxu0 }
 0x4ca   : > { %v16752_v26 = vpop.f32.mrf.mxu1  ;;  %v16754_v1 = vadd.f32 %v12832_v42, %v12831_v2 }
 0x4cc   : > { %17661 = vst [vmem:[#allocation109_spill] sm:$0xff] %v16754_v1  ;;  %v16756_v48 = vpop.f32.mrf.mxu1 }
 0x4ce   : > { %v12834_v27 = vpop.f32.mrf.mxu0  ;;  %v16758_v16 = vpop.f32.mrf.mxu1 }
 0x4d0   : > { %v12835_v10 = vpop.f32.mrf.mxu0 }
 0x4d1   : > { %v16760_v8 = vadd.f32 %v12835_v10, %v12834_v27 }
 0x4d2   : > { %v12837_v53 = vpop.f32.mrf.mxu0 }
 0x4d3   : > { %17662 = vst [vmem:[#allocation101_spill] sm:$0xff] %v16760_v8 }
 0x4d4   : > { %v16762_v18 = vpop.f32.mrf.mxu1  ;;  %v12838_v29 = vpop.f32.mrf.mxu0 }
 0x4d5   : > { %v16764_v22 = vadd.f32 %v12838_v29, %v12837_v53 }
 0x4d6   : > { %v16766_v47 = vpop.f32.mrf.mxu1 }
 0x4d7   : > { %17663 = vst [vmem:[#allocation150_spill] sm:$0xff] %v16764_v22 }
 0x4d8   : > { %v16768_v59 = vpop.f32.mrf.mxu1 }
 0x4da   : > { %v12840_v2 = vpop.f32.mrf.mxu0  ;;  %v16770_v42 = vpop.f32.mrf.mxu1 }
 0x4dc   : > { %v12841_v1 = vpop.f32.mrf.mxu0 }
 0x4dd   : > { %v16772_v15 = vadd.f32 %v12841_v1, %v12840_v2  ;;  %v12628_v1 = vadd.f32 %v15931_v11, %v15926_v63 }
 0x4de   : > { %v12843_v6 = vpop.f32.mrf.mxu0 }
 0x4df   : > { %17664 = vst [vmem:[#allocation151_spill] sm:$0xff] %v16772_v15 }
 0x4e0   : > { %v16774_v21 = vpop.f32.mrf.mxu1  ;;  %v12844_v27 = vpop.f32.mrf.mxu0 }
 0x4e1   : > { %v16776_v10 = vadd.f32 %v12844_v27, %v12843_v6  ;;  %v12764_v6 = vadd.f32 %v16459_v39, %v16451_v57  ;;  %v12767_v57 = vadd.f32 %v16474_v13, %v16464_v45  ;;  %v12625_v39 = vadd.f32 %v15904_v0, %v15897_v56  ;;  %v17671_v56 = vld [vmem:[#allocation96_spill] sm:$0xff] }
 0x4e2   : > { %v16778_v8 = vpop.f32.mrf.mxu1  ;;  %v12894_v45 = vadd.f32 %v16668_v46, %v16666_v44  ;;  %v17673_v46 = vld [vmem:[#allocation14_spill] sm:$0xff] }
 0x4e3   : > { %17665 = vst [vmem:[#allocation152_spill] sm:$0xff] %v16776_v10  ;;  %v12622_v10 = vadd.f32 %v15892_v54, %v15889_v43  ;;  %v12761_v43 = vadd.f32 %v16443_v5, %v16435_v32 }
 0x4e4   : > { %v16780_v53 = vpop.f32.mrf.mxu1 }
 0x4e5   : > { %17666 = vst [vmem:[#allocation153_spill] sm:$0xff] %v16780_v53  ;;  %v8563_v11 = vadd.f32 %v12622_v10, %v16123_v41  ;;  %v17670_v41 = vld [vmem:[#allocation35_spill] sm:$0xff] }
 0x4e6   : > { %v16784_v3 = vpop.f32.mrf.mxu1 }
 0x4e7   : > { %v12846_v29 = vpop.f32.mrf.mxu0  ;;  %17668 = vst [vmem:[#allocation155_spill] sm:$0xff] %v16784_v3 }
 0x4e9   : > { %v12847_v22 = vpop.f32.mrf.mxu0 }
 0x4ea   : > { %v16782_v35 = vadd.f32 %v12847_v22, %v12846_v29  ;;  %v8571_v22 = vadd.f32 %v16117_v38, %v12628_v1  ;;  %v12631_v29 = vadd.f32 %v15955_v9, %v15939_v19  ;;  %v12900_v9 = vadd.f32 %v16718_v60, %v16714_v17 }
 0x4eb   : > { %v12849_v40 = vpop.f32.mrf.mxu0  ;;  %v12903_v60 = vadd.f32 %v16722_v12, %v16720_v23  ;;  %v12023_v12 = vld [vmem:[%s14246_s10] sm:$0xff]  }
 0x4ec   : > { %17667 = vst [vmem:[#allocation154_spill] sm:$0xff] %v16782_v35  ;;  %v12758_v35 = vadd.f32 %v16427_v25, %v16417_v62  ;;  %v8574_v54 = vadd.f32 %v16138_v33, %v12631_v29  ;;  %v8566_v62 = vadd.f32 %v12625_v39, %v17670_v41  ;;  %v16822_v33 = vld [vmem:[%s17218_s5] ss:$0 sm:$0xff]  ;;  %v17677_v41 = vld [vmem:[#allocation114_spill] sm:$0xff] }
 0x4ed   : > { %v12850_v2 = vpop.f32.mrf.mxu0 }
 0x4ee   : > { %v16788_v15 = vadd.f32 %v12850_v2, %v12849_v40  ;;  %v8876_v40 = vadd.f32 %v12764_v6, %v8571_v22  ;;  %v8868_v19 = vadd.f32 %v12758_v35, %v8563_v11  ;;  %v8879_v10 = vadd.f32 %v12767_v57, %v8574_v54  ;;  %v17672_v35 = vld [vmem:[#allocation61_spill] sm:$0xff]  ;;  %v12166_v2 = vld [vmem:[%s14246_s10 + $0x8] sm:$0xff]   ;;  %v17674_v22 = vld [vmem:[#allocation16_spill] sm:$0xff] }
 0x4ef   : > { %v16792_v27 = vpop.f32.mrf.mxu1  ;;  %v8871_v32 = vadd.f32 %v12761_v43, %v8566_v62  ;;  %v12640_v29 = vadd.f32 %v17674_v22, %v17673_v46  ;;  %v12897_v11 = vadd.f32 %v16694_v28, %v16672_v20  ;;  %v17675_v43 = vld [vmem:[#allocation121_spill] sm:$0xff]  ;;  %v17680_v20 = vld [vmem:[#allocation118_spill] sm:$0xff] }
 0x4f0   : > { %17669 = vst [vmem:[#allocation156_spill] sm:$0xff] %v16788_v15  ;;  %v9037_v0 = vadd.f32 %v17671_v56, %v8876_v40  ;;  %v9029_v17 = vadd.f32 %v17672_v35, %v8868_v19  ;;  %v16837_v40 = vld [vmem:[%s17219_s6] ss:$0 sm:$0xff]  ;;  %v9040_v54 = vadd.f32 %v17675_v43, %v8879_v10  ;;  %v17679_v56 = vld [vmem:[#allocation115_spill] sm:$0xff]  ;;  %v17682_v10 = vld [vmem:[#allocation38_spill] sm:$0xff] }
 0x4f1   : > { %v16801_v63 = vpop.f32.mrf.mxu1  ;;  %v12776_v28 = vadd.f32 %v17680_v20, %v17679_v56  ;;  %v17683_v46 = vld [vmem:[#allocation18_spill] sm:$0xff]  ;;  %v17685_v43 = vld [vmem:[#allocation103_spill] sm:$0xff]  ;;  %v17688_v15 = vld [vmem:[#allocation117_spill] sm:$0xff] }
 0x4f2   : > { %v17684_v22 = vld [vmem:[#allocation66_spill] sm:$0xff] }
 0x4f3   : > { %v16813_v38 = vpop.f32.mrf.mxu1 }
 0x4f5   : > { %v13270_v25 = vpop.f32.mrf.mxu0  ;;  %v16828_v6 = vpop.f32.mrf.mxu1 }
 0x4f6   : > { %v10720_v13 = vadd.f32 %v13270_v25, %v12900_v9  ;;  %v17676_v9 = vld [vmem:[#allocation64_spill] sm:$0xff]  ;;  %v17678_v25 = vld [vmem:[#allocation97_spill] sm:$0xff] }
 0x4f7   : > { %v10711_v5 = vpop.f32.mrf.mxu0  ;;  %v12634_v62 = vadd.f32 %v17677_v41, %v17676_v9  ;;  %v12024_v41 = vunpack.c.l.bf16 %v12023_v12 }
 0x4f8   : > { %v10840_v1 = vadd.f32 %v10720_v13, %v9037_v0  ;;  %v10712_v44 = vadd.f32 %v12894_v45, %v10711_v5  ;;  %v9032_v45 = vadd.f32 %v17678_v25, %v8871_v32  ;;  %v12028_v0 = vunpack.c.l.bf16 %v12166_v2  ;;  %v17686_v32 = vld [vmem:[#allocation104_spill] sm:$0xff] }
 0x4f9   : > { %v13271_v57 = vpop.f32.mrf.mxu0  ;;  %v12770_v9 = vadd.f32 %v17686_v32, %v17685_v43  ;;  %v12025_v32 = vunpack.c.h.bf16 %v12023_v12  ;;  %v12906_v12 = vadd.f32 %v16730_v61, %v16726_v58  ;;  %v12168_v61 = vld [vmem:[%s14246_s10 + $0x18] sm:$0xff]  }
 0x4fa   : > { %v10879_v39 = vmul.f32 %v16822_v33, %v10840_v1  ;;  %v10838_v23 = vadd.f32 %v10712_v44, %v9029_v17  ;;  %v10723_v19 = vadd.f32 %v13271_v57, %v12903_v60  ;;  %v8587_v60 = vadd.f32 %v17682_v10, %v12640_v29  ;;  %v17691_v10 = vld [vmem:[#allocation124_spill] sm:$0xff] }
 0x4fb   : > { %v10714_v13 = vpop.f32.mrf.mxu0  ;;  %v16849_v1 = vpop.f32.mrf.mxu1  ;;  %v12643_v57 = vadd.f32 %v17684_v22, %v17683_v46  ;;  %v17692_v46 = vld [vmem:[#allocation123_spill] sm:$0xff] }
 0x4fc   : > { %v10918_v5 = vadd.f32 %v16837_v40, %v10879_v39  ;;  %v10877_v35 = vmul.f32 %v16822_v33, %v10838_v23  ;;  %17681 = vst [vmem:[#allocation35_spill] sm:$0xff] %v16849_v1  ;;  %v10841_v17 = vadd.f32 %v10723_v19, %v9040_v54  ;;  %v10715_v44 = vadd.f32 %v12897_v11, %v10714_v13  ;;  %v17689_v54 = vld [vmem:[#allocation13_spill] sm:$0xff]  ;;  %v17690_v19 = vld [vmem:[#allocation42_spill] sm:$0xff] }
 0x4fd   : > { %v12029_v39 = vunpack.c.h.bf16 %v12166_v2  ;;  %v16858_v20 = vpop.f32.mrf.mxu1  ;;  %v12637_v11 = vadd.f32 %v17689_v54, %v17688_v15  ;;  %v8579_v29 = vadd.f32 %v12634_v62, %v17690_v19  ;;  %v8892_v13 = vadd.f32 %v12776_v28, %v8587_v60  ;;  %v17698_v19 = vld [vmem:[#allocation99_spill] sm:$0xff] }
 0x4fe   : > { %v10916_v25 = vadd.f32 %v16837_v40, %v10877_v35  ;;  %v10880_v56 = vmul.f32 %v16822_v33, %v10841_v17  ;;  %17687 = vst [vmem:[#allocation96_spill] sm:$0xff] %v16858_v20  ;;  %v10839_v23 = vadd.f32 %v10715_v44, %v9032_v45  ;;  %v12779_v22 = vadd.f32 %v17692_v46, %v17691_v10  ;;  %v17693_v17 = vld [vmem:[#allocation47_spill] sm:$0xff]  ;;  %v17694_v20 = vld [vmem:[#allocation108_spill] sm:$0xff] }
 0x4ff   : > { %v11014_v1 = vadd.f32 %v12028_v0, %v10918_v5  ;;  %v8590_v2 = vadd.f32 %v17693_v17, %v12643_v57  ;;  %v8884_v3 = vadd.f32 %v12770_v9, %v8579_v29  ;;  %v17695_v45 = vld [vmem:[#allocation112_spill] sm:$0xff]  ;;  %v12912_v15 = vadd.f32 %v16740_v50, %v16738_v31  ;;  %v16873_v60 = vpop.f32.mrf.mxu1  ;;  %v17696_v0 = vld [vmem:[#allocation19_spill] sm:$0xff]  ;;  %v17697_v57 = vld [vmem:[#allocation98_spill] sm:$0xff] }
 0x500   : > { %v10919_v43 = vadd.f32 %v16837_v40, %v10880_v56  ;;  %v10878_v35 = vmul.f32 %v16822_v33, %v10839_v23  ;;  %v12773_v44 = vadd.f32 %v17695_v45, %v17694_v20  ;;  %v11012_v53 = vadd.f32 %v12024_v41, %v10916_v25  ;;  %v13274_v23 = vpop.f32.mrf.mxu0  ;;  %v17701_v17 = vld [vmem:[#allocation100_spill] sm:$0xff]  ;;  %v12167_v45 = vld [vmem:[%s14246_s10 + $0x10] sm:$0xff]  }
 0x501   : > { %v8582_v5 = vadd.f32 %v12637_v11, %v17696_v0  ;;  %v8895_v56 = vadd.f32 %v12779_v22, %v8590_v2  ;;  %v9053_v9 = vadd.f32 %v17697_v57, %v8892_v13  ;;  %v11046_v20 = vmax.f32 %v11014_v1, 0.0  ;;  %v16883_v13 = vpop.f32.mrf.mxu1  ;;  %v17699_v22 = vld [vmem:[#allocation67_spill] sm:$0xff]  ;;  %v17703_v57 = vld [vmem:[#allocation20_spill] sm:$0xff] }
 0x502   : > { %v11015_v62 = vadd.f32 %v12029_v39, %v10919_v43  ;;  %v10917_v28 = vadd.f32 %v16837_v40, %v10878_v35  ;;  %v10736_v54 = vadd.f32 %v13274_v23, %v12912_v15  ;;  %v12915_v50 = vadd.f32 %v16746_v49, %v16744_v51  ;;  %v10727_v29 = vpop.f32.mrf.mxu0  ;;  %v17700_v43 = vld [vmem:[#allocation17_spill] sm:$0xff] }
 0x503   : > { %v8887_v31 = vadd.f32 %v12773_v44, %v8582_v5  ;;  %v11044_v39 = vmax.f32 %v11012_v53, 0.0  ;;  %v9045_v11 = vadd.f32 %v17698_v19, %v8884_v3  ;;  %v10728_v1 = vadd.f32 %v12906_v12, %v10727_v29 }
 0x504   : > { %v11047_v41 = vmax.f32 %v11015_v62, 0.0  ;;  %v11013_v25 = vadd.f32 %v12025_v32, %v10917_v28  ;;  %v10844_v58 = vadd.f32 %v10736_v54, %v9053_v9  ;;  %v12652_v35 = vadd.f32 %v17700_v43, %v17699_v22  ;;  %v13275_v49 = vpop.f32.mrf.mxu0  ;;  %v17702_v62 = vld [vmem:[#allocation106_spill] sm:$0xff]  ;;  %v17707_v54 = vld [vmem:[#allocation15_spill] sm:$0xff] }
 0x505   : > { %v12909_v32 = vadd.f32 %v16734_v55, %v16732_v7  ;;  %v9056_v51 = vadd.f32 %v17701_v17, %v8895_v56  ;;  %v10842_v2 = vadd.f32 %v10728_v1, %v9045_v11  ;;  %v10739_v44 = vadd.f32 %v13275_v49, %v12915_v50  ;;  %v17704_v9 = vld [vmem:[#allocation22_spill] sm:$0xff]  ;;  %v17709_v17 = vld [vmem:[#allocation24_spill] sm:$0xff] }
 0x506   : > { %v12094_v10 = vpack.c.bf16 %v11047_v41, %v11046_v20  ;;  %v11045_v46 = vmax.f32 %v11013_v25, 0.0  ;;  %v10883_v53 = vmul.f32 %v16822_v33, %v10844_v58  ;;  %v12036_v15 = vunpack.c.l.bf16 %v12168_v61  ;;  %v10730_v0 = vpop.f32.mrf.mxu0  ;;  %v17705_v20 = vld [vmem:[#allocation52_spill] sm:$0xff]  ;;  %v17706_v25 = vld [vmem:[#allocation21_spill] sm:$0xff] }
 0x507   : > { %v9048_v28 = vadd.f32 %v17702_v62, %v8887_v31  ;;  %v10881_v55 = vmul.f32 %v16822_v33, %v10842_v2  ;;  %v10845_v56 = vadd.f32 %v10739_v44, %v9056_v51  ;;  %v10731_v12 = vadd.f32 %v12909_v32, %v10730_v0  ;;  %v17710_v51 = vld [vmem:[#allocation27_spill] sm:$0xff] }
 0x508   : > { %12181 = vst [vmem:[%s16892_s30 + $0x8] sm:$0xff] %v12094_v10   ;;  %v12089_v3 = vpack.c.bf16 %v11045_v46, %v11044_v39  ;;  %v10922_v7 = vadd.f32 %v16837_v40, %v10883_v53  ;;  %v16901_v5 = vpop.f32.mrf.mxu1  ;;  %v12646_v23 = vadd.f32 %v17704_v9, %v17703_v57  ;;  %v8603_v41 = vadd.f32 %v17705_v20, %v12652_v35  ;;  %v17708_v46 = vld [vmem:[#allocation54_spill] sm:$0xff] }
 0x509   : > { %v12655_v50 = vadd.f32 %v17707_v54, %v17706_v25  ;;  %v12032_v39 = vunpack.c.l.bf16 %v12167_v45  ;;  %v10920_v31 = vadd.f32 %v16837_v40, %v10881_v55  ;;  %v10884_v19 = vmul.f32 %v16822_v33, %v10845_v56  ;;  %v17713_v55 = vld [vmem:[#allocation69_spill] sm:$0xff] }
 0x50a   : > { %12090 = vst [vmem:[%s16892_s30] sm:$0xff] %v12089_v3   ;;  %v12037_v11 = vunpack.c.h.bf16 %v12168_v61  ;;  %v16910_v29 = vpop.f32.mrf.mxu1  ;;  %v10843_v10 = vadd.f32 %v10731_v12, %v9048_v28  ;;  %v8595_v58 = vadd.f32 %v12646_v23, %v17708_v46  ;;  %v8908_v1 = vadd.f32 %v16684_v30, %v8603_v41  ;;  %v17711_v3 = vld [vmem:[#allocation57_spill] sm:$0xff]  ;;  %v17712_v28 = vld [vmem:[#allocation59_spill] sm:$0xff]  ;;  %v17714_v41 = vld [vmem:[#allocation110_spill] sm:$0xff] }
 0x50b   : > { %v11018_v22 = vadd.f32 %v12036_v15, %v10922_v7  ;;  %v10923_v43 = vadd.f32 %v16837_v40, %v10884_v19  ;;  %v12033_v32 = vunpack.c.h.bf16 %v12167_v45  ;;  %v12649_v49 = vadd.f32 %v17710_v51, %v17709_v17  ;;  %v17715_v19 = vld [vmem:[#allocation40_spill] sm:$0xff] }
 0x50c   : > { %v10882_v35 = vmul.f32 %v16822_v33, %v10843_v10  ;;  %v8606_v53 = vadd.f32 %v17711_v3, %v12655_v50  ;;  %v8900_v61 = vadd.f32 %v16676_v34, %v8595_v58  ;;  %v11016_v2 = vadd.f32 %v12032_v39, %v10920_v31  ;;  %v16923_v15 = vpop.f32.mrf.mxu1  ;;  %v12170_v50 = vld [vmem:[%s14246_s10 + $0x28] sm:$0xff]   ;;  %v17718_v17 = vld [vmem:[#allocation116_spill] sm:$0xff] }
 0x50d   : > { %v12924_v44 = vadd.f32 %v16766_v47, %v16762_v18  ;;  %v11019_v62 = vadd.f32 %v12037_v11, %v10923_v43  ;;  %v8598_v0 = vadd.f32 %v12649_v49, %v17712_v28  ;;  %v12918_v7 = vadd.f32 %v16752_v26, %v16750_v37  ;;  %v13278_v34 = vpop.f32.mrf.mxu0  ;;  %v17716_v11 = vld [vmem:[#allocation44_spill] sm:$0xff]  ;;  %v12169_v43 = vld [vmem:[%s14246_s10 + $0x20] sm:$0xff]  }
 0x50e   : > { %v10921_v30 = vadd.f32 %v16837_v40, %v10882_v35  ;;  %v8911_v45 = vadd.f32 %v16688_v52, %v8606_v53  ;;  %v9069_v56 = vadd.f32 %v17713_v55, %v8908_v1  ;;  %v11050_v12 = vmax.f32 %v11018_v22, 0.0  ;;  %v16935_v39 = vpop.f32.mrf.mxu1 }
 0x50f   : > { %v11051_v57 = vmax.f32 %v11019_v62, 0.0  ;;  %v10752_v18 = vadd.f32 %v13278_v34, %v12924_v44  ;;  %v8903_v47 = vadd.f32 %v16680_v36, %v8598_v0  ;;  %v12927_v23 = vadd.f32 %v16770_v42, %v16768_v59  ;;  %v10743_v25 = vpop.f32.mrf.mxu0  ;;  %v17717_v59 = vld [vmem:[#allocation113_spill] sm:$0xff]  ;;  %v17720_v44 = vld [vmem:[#allocation30_spill] sm:$0xff] }
 0x510   : > { %v11017_v9 = vadd.f32 %v12033_v32, %v10921_v30  ;;  %v11048_v20 = vmax.f32 %v11016_v2, 0.0  ;;  %v9061_v52 = vadd.f32 %v17714_v41, %v8900_v61  ;;  %v10744_v31 = vadd.f32 %v12918_v7, %v10743_v25  ;;  %v17719_v2 = vld [vmem:[#allocation29_spill] sm:$0xff]  ;;  %v17721_v30 = vld [vmem:[#allocation62_spill] sm:$0xff] }
 0x511   : > { %v12104_v54 = vpack.c.bf16 %v11051_v57, %v11050_v12  ;;  %v10848_v26 = vadd.f32 %v10752_v18, %v9069_v56  ;;  %v12664_v10 = vadd.f32 %v17716_v11, %v17715_v19  ;;  %v12921_v36 = vadd.f32 %v16758_v16, %v16756_v48  ;;  %v13279_v46 = vpop.f32.mrf.mxu0  ;;  %v17722_v0 = vld [vmem:[#allocation46_spill] sm:$0xff]  ;;  %v17724_v18 = vld [vmem:[#allocation65_spill] sm:$0xff] }
 0x512   : > { %v11049_v37 = vmax.f32 %v11017_v9, 0.0  ;;  %v9072_v42 = vadd.f32 %v17717_v59, %v8911_v45  ;;  %v10846_v22 = vadd.f32 %v10744_v31, %v9061_v52  ;;  %v10755_v35 = vadd.f32 %v13279_v46, %v12927_v23  ;;  %v17723_v45 = vld [vmem:[#allocation49_spill] sm:$0xff]  ;;  %v17727_v31 = vld [vmem:[#allocation28_spill] sm:$0xff] }
 0x513   : > { %12183 = vst [vmem:[%s16892_s30 + $0x18] sm:$0xff] %v12104_v54   ;;  %v10887_v1 = vmul.f32 %v16822_v33, %v10848_v26  ;;  %v12044_v32 = vunpack.c.l.bf16 %v12170_v50  ;;  %v9064_v51 = vadd.f32 %v17718_v17, %v8903_v47  ;;  %v10746_v49 = vpop.f32.mrf.mxu0  ;;  %v12658_v62 = vadd.f32 %v17720_v44, %v17719_v2  ;;  %v17725_v54 = vld [vmem:[#allocation33_spill] sm:$0xff]  ;;  %v12172_v2 = vld [vmem:[%s14246_s10 + $0x38] sm:$0xff]  }
 0x514   : > { %v12099_v58 = vpack.c.bf16 %v11049_v37, %v11048_v20  ;;  %v10885_v53 = vmul.f32 %v16822_v33, %v10846_v22  ;;  %v10849_v16 = vadd.f32 %v10755_v35, %v9072_v42  ;;  %v10747_v61 = vadd.f32 %v12921_v36, %v10746_v49  ;;  %v17726_v37 = vld [vmem:[#allocation37_spill] sm:$0xff]  ;;  %v17728_v42 = vld [vmem:[#allocation70_spill] sm:$0xff]  ;;  %v17729_v22 = vld [vmem:[#allocation119_spill] sm:$0xff] }
 0x515   : > { %v10926_v3 = vadd.f32 %v16837_v40, %v10887_v1  ;;  %v8619_v28 = vadd.f32 %v17721_v30, %v12664_v10  ;;  %v12667_v7 = vadd.f32 %v17723_v45, %v17722_v0  ;;  %v12040_v55 = vunpack.c.l.bf16 %v12169_v43  ;;  %v17732_v30 = vld [vmem:[#allocation60_spill] sm:$0xff]  ;;  %v17734_v45 = vld [vmem:[#allocation153_spill] sm:$0xff] }
 0x516   : > { %12182 = vst [vmem:[%s16892_s30 + $0x10] sm:$0xff] %v12099_v58   ;;  %v10924_v56 = vadd.f32 %v16837_v40, %v10885_v53  ;;  %v10888_v34 = vmul.f32 %v16822_v33, %v10849_v16  ;;  %v12045_v12 = vunpack.c.h.bf16 %v12170_v50  ;;  %v10847_v9 = vadd.f32 %v10747_v61, %v9064_v51  ;;  %v17731_v53 = vld [vmem:[#allocation120_spill] sm:$0xff] }
 0x517   : > { %v8611_v47 = vadd.f32 %v12658_v62, %v17724_v18  ;;  %v8924_v23 = vadd.f32 %v16702_v14, %v8619_v28  ;;  %v11022_v20 = vadd.f32 %v12044_v32, %v10926_v3  ;;  %v12041_v25 = vunpack.c.h.bf16 %v12169_v43  ;;  %v17733_v28 = vld [vmem:[#allocation63_spill] sm:$0xff] }
 0x518   : > { %v10927_v41 = vadd.f32 %v16837_v40, %v10888_v34  ;;  %v10886_v52 = vmul.f32 %v16822_v33, %v10847_v9  ;;  %v12661_v26 = vadd.f32 %v17726_v37, %v17725_v54  ;;  %v8622_v19 = vadd.f32 %v17727_v31, %v12667_v7  ;;  %v17735_v7 = vld [vmem:[#allocation155_spill] sm:$0xff] }
 0x519   : > { %v8916_v50 = vadd.f32 %v16692_v4, %v8611_v47  ;;  %v11020_v11 = vadd.f32 %v12040_v55, %v10924_v56  ;;  %v12936_v10 = vadd.f32 %v16801_v63, %v16792_v27  ;;  %v12930_v1 = vadd.f32 %v16778_v8, %v16774_v21  ;;  %v17730_v63 = vld [vmem:[#allocation138_spill] sm:$0xff]  ;;  %v12171_v18 = vld [vmem:[%s14246_s10 + $0x30] sm:$0xff]  }
 0x51a   : > { %v16949_v48 = vpop.f32.mrf.mxu1  ;;  %v11023_v36 = vadd.f32 %v12045_v12, %v10927_v41  ;;  %v10925_v14 = vadd.f32 %v16837_v40, %v10886_v52  ;;  %v8614_v46 = vadd.f32 %v12661_v26, %v17728_v42  ;;  %v8927_v58 = vadd.f32 %v16706_v24, %v8622_v19  ;;  %v17738_v19 = vld [vmem:[#allocation50_spill] sm:$0xff]  ;;  %v17742_v42 = vld [vmem:[#allocation68_spill] sm:$0xff] }
 0x51b   : > { %v9085_v43 = vadd.f32 %v17729_v22, %v8924_v23  ;;  %v11054_v35 = vmax.f32 %v11022_v20, 0.0  ;;  %v12939_v49 = vadd.f32 %v16828_v6, %v16813_v38  ;;  %v11052_v3 = vmax.f32 %v11020_v11, 0.0  ;;  %v17736_v38 = vld [vmem:[#allocation122_spill] sm:$0xff]  ;;  %v17737_v20 = vld [vmem:[#allocation125_spill] sm:$0xff] }
 0x51c   : > { %v16958_v57 = vpop.f32.mrf.mxu1  ;;  %v11055_v32 = vmax.f32 %v11023_v36, 0.0  ;;  %v11021_v17 = vadd.f32 %v12041_v25, %v10925_v14  ;;  %v8919_v51 = vadd.f32 %v17730_v63, %v8614_v46  ;;  %v9077_v24 = vadd.f32 %v17731_v53, %v8916_v50  ;;  %v17739_v50 = vld [vmem:[#allocation53_spill] sm:$0xff] }
 0x51d   : > { %v12676_v0 = vadd.f32 %v17733_v28, %v17732_v30  ;;  %v12933_v55 = vadd.f32 %v17735_v7, %v17734_v45  ;;  %v9088_v6 = vadd.f32 %v17736_v38, %v8927_v58  ;;  %v12052_v23 = vunpack.c.l.bf16 %v12172_v2  ;;  %v17741_v14 = vld [vmem:[#allocation25_spill] sm:$0xff] }
 0x51e   : > { %v16971_v59 = vpop.f32.mrf.mxu1  ;;  %v12114_v61 = vpack.c.bf16 %v11055_v32, %v11054_v35  ;;  %v11053_v21 = vmax.f32 %v11021_v17, 0.0  ;;  %v9080_v41 = vadd.f32 %v17737_v20, %v8919_v51  ;;  %v12670_v11 = vadd.f32 %v17739_v50, %v17738_v19  ;;  %v17743_v32 = vld [vmem:[#allocation32_spill] sm:$0xff] }
 0x51f   : > { %v12679_v46 = vadd.f32 %v17742_v42, %v17741_v14  ;;  %v12048_v58 = vunpack.c.l.bf16 %v12171_v18  ;;  %v12049_v53 = vunpack.c.h.bf16 %v12171_v18  ;;  %v12948_v28 = vadd.f32 %v16910_v29, %v16901_v5  ;;  %v17753_v18 = vld [vmem:[#allocation126_spill] sm:$0xff]  ;;  %v17754_v29 = vld [vmem:[#allocation143_spill] sm:$0xff] }
 0x520   : > { %v13282_v4 = vpop.f32.mrf.mxu0  ;;  %v16983_v44 = vpop.f32.mrf.mxu1  ;;  %12185 = vst [vmem:[%s16892_s30 + $0x28] sm:$0xff] %v12114_v61   ;;  %v12109_v34 = vpack.c.bf16 %v11053_v21, %v11052_v3  ;;  %v8627_v17 = vadd.f32 %v12670_v11, %v17743_v32  ;;  %v17747_v21 = vld [vmem:[#allocation31_spill] sm:$0xff]  ;;  %v12174_v14 = vld [vmem:[%s14246_s10 + $0x48] sm:$0xff]  }
 0x521   : > { %v10768_v27 = vadd.f32 %v13282_v4, %v12936_v10  ;;  %v17740_v10 = vld [vmem:[#allocation74_spill] sm:$0xff] }
 0x522   : > { %v10759_v16 = vpop.f32.mrf.mxu0  ;;  %12184 = vst [vmem:[%s16892_s30 + $0x20] sm:$0xff] %v12109_v34   ;;  %v8635_v36 = vadd.f32 %v17740_v10, %v12676_v0  ;;  %v17751_v34 = vld [vmem:[#allocation35_spill] sm:$0xff] }
 0x523   : > { %v10852_v8 = vadd.f32 %v10768_v27, %v9085_v43  ;;  %v10760_v62 = vadd.f32 %v12930_v1, %v10759_v16  ;;  %v12053_v43 = vunpack.c.h.bf16 %v12172_v2  ;;  %v17744_v27 = vld [vmem:[#allocation145_spill] sm:$0xff]  ;;  %v17746_v16 = vld [vmem:[#allocation58_spill] sm:$0xff] }
 0x524   : > { %v13283_v56 = vpop.f32.mrf.mxu0  ;;  %v8940_v63 = vadd.f32 %v17744_v27, %v8635_v36 }
 0x525   : > { %v10891_v12 = vmul.f32 %v16822_v33, %v10852_v8  ;;  %v10850_v9 = vadd.f32 %v10760_v62, %v9077_v24  ;;  %v10771_v47 = vadd.f32 %v13283_v56, %v12939_v49  ;;  %v17745_v24 = vld [vmem:[#allocation55_spill] sm:$0xff]  ;;  %v8638_v8 = vadd.f32 %v17747_v21, %v12679_v46  ;;  %v17748_v62 = vld [vmem:[#allocation142_spill] sm:$0xff] }
 0x526   : > { %v10762_v52 = vpop.f32.mrf.mxu0  ;;  %v16997_v37 = vpop.f32.mrf.mxu1  ;;  %v12673_v61 = vadd.f32 %v17746_v16, %v17745_v24  ;;  %v8932_v2 = vadd.f32 %v17748_v62, %v8627_v17  ;;  %v17761_v62 = vld [vmem:[#allocation23_spill] sm:$0xff] }
 0x527   : > { %v10930_v25 = vadd.f32 %v16837_v40, %v10891_v12  ;;  %v10889_v54 = vmul.f32 %v16822_v33, %v10850_v9  ;;  %v10853_v26 = vadd.f32 %v10771_v47, %v9088_v6  ;;  %v10763_v31 = vadd.f32 %v12933_v55, %v10762_v52  ;;  %v17749_v55 = vld [vmem:[#allocation72_spill] sm:$0xff] }
 0x528   : > { %v17006_v4 = vpop.f32.mrf.mxu1  ;;  %v8630_v38 = vadd.f32 %v12673_v61, %v17749_v55  ;;  %v17750_v6 = vld [vmem:[#allocation144_spill] sm:$0xff]  ;;  %v9101_v47 = vadd.f32 %v17753_v18, %v8940_v63  ;;  %v12173_v63 = vld [vmem:[%s14246_s10 + $0x40] sm:$0xff]  }
 0x529   : > { %v10928_v1 = vadd.f32 %v16837_v40, %v10889_v54  ;;  %v10892_v22 = vmul.f32 %v16822_v33, %v10853_v26  ;;  %v10851_v35 = vadd.f32 %v10763_v31, %v9080_v41  ;;  %v11026_v51 = vadd.f32 %v12052_v23, %v10930_v25  ;;  %v17752_v12 = vld [vmem:[#allocation96_spill] sm:$0xff]  ;;  %v17755_v31 = vld [vmem:[#allocation127_spill] sm:$0xff]  ;;  %v17765_v18 = vld [vmem:[#allocation45_spill] sm:$0xff] }
 0x52a   : > { %v17019_v7 = vpop.f32.mrf.mxu1  ;;  %v8943_v56 = vadd.f32 %v17750_v6, %v8638_v8  ;;  %v12942_v9 = vadd.f32 %v17752_v12, %v17751_v34  ;;  %v8935_v25 = vadd.f32 %v17754_v29, %v8630_v38  ;;  %v12951_v54 = vadd.f32 %v16935_v39, %v16923_v15  ;;  %v17760_v8 = vld [vmem:[#allocation71_spill] sm:$0xff] }
 0x52b   : > { %v10931_v49 = vadd.f32 %v16837_v40, %v10892_v22  ;;  %v10890_v3 = vmul.f32 %v16822_v33, %v10851_v35  ;;  %v11024_v30 = vadd.f32 %v12048_v58, %v10928_v1  ;;  %v11058_v20 = vmax.f32 %v11026_v51, 0.0  ;;  %v17756_v58 = vld [vmem:[#allocation34_spill] sm:$0xff]  ;;  %v17757_v1 = vld [vmem:[#allocation73_spill] sm:$0xff]  ;;  %v17758_v35 = vld [vmem:[#allocation128_spill] sm:$0xff] }
 0x52c   : > { %v13286_v23 = vpop.f32.mrf.mxu0  ;;  %v9093_v19 = vadd.f32 %v17755_v31, %v8932_v2  ;;  %v12962_v42 = vpop.f32.mrf.mxu1  ;;  %v12688_v22 = vadd.f32 %v17757_v1, %v17756_v58  ;;  %v9104_v15 = vadd.f32 %v17758_v35, %v8943_v56  ;;  %v12682_v2 = vadd.f32 %v17761_v62, %v17760_v8  ;;  %v17769_v31 = vld [vmem:[#allocation48_spill] sm:$0xff] }
 0x52d   : > { %v11027_v0 = vadd.f32 %v12053_v43, %v10931_v49  ;;  %v10929_v45 = vadd.f32 %v16837_v40, %v10890_v3  ;;  %v10784_v5 = vadd.f32 %v13286_v23, %v12948_v28  ;;  %v11056_v26 = vmax.f32 %v11024_v30, 0.0  ;;  %v17759_v3 = vld [vmem:[#allocation130_spill] sm:$0xff]  ;;  %v17766_v23 = vld [vmem:[#allocation147_spill] sm:$0xff]  ;;  %v17771_v1 = vld [vmem:[#allocation92_spill] sm:$0xff] }
 0x52e   : > { %v10775_v50 = vpop.f32.mrf.mxu0  ;;  %v12945_v43 = vadd.f32 %v16883_v13, %v16873_v60  ;;  %v12060_v49 = vunpack.c.l.bf16 %v12174_v14  ;;  %v17762_v30 = vld [vmem:[#allocation82_spill] sm:$0xff]  ;;  %v12056_v38 = vunpack.c.l.bf16 %v12173_v63  ;;  %v12061_v34 = vunpack.c.h.bf16 %v12174_v14 }
 0x52f   : > { %v11059_v41 = vmax.f32 %v11027_v0, 0.0  ;;  %v11025_v52 = vadd.f32 %v12049_v53, %v10929_v45  ;;  %v10856_v36 = vadd.f32 %v10784_v5, %v9101_v47  ;;  %v10776_v46 = vadd.f32 %v12942_v9, %v10775_v50  ;;  %v17763_v0 = vld [vmem:[#allocation85_spill] sm:$0xff]  ;;  %v17770_v50 = vld [vmem:[#allocation146_spill] sm:$0xff] }
 0x530   : > { %v13287_v39 = vpop.f32.mrf.mxu0  ;;  %v9096_v53 = vadd.f32 %v17759_v3, %v8935_v25  ;;  %v8651_v28 = vadd.f32 %v17762_v30, %v12688_v22  ;;  %v17764_v45 = vld [vmem:[#allocation41_spill] sm:$0xff]  ;;  %v8643_v47 = vadd.f32 %v12682_v2, %v17765_v18  ;;  %v12057_v29 = vunpack.c.h.bf16 %v12173_v63  ;;  %v17767_v25 = vld [vmem:[#allocation26_spill] sm:$0xff]  ;;  %v17776_v2 = vld [vmem:[#allocation76_spill] sm:$0xff] }
 0x531   : > { %v12124_v11 = vpack.c.bf16 %v11059_v41, %v11058_v20  ;;  %v11057_v10 = vmax.f32 %v11025_v52, 0.0  ;;  %v10895_v17 = vmul.f32 %v16822_v33, %v10856_v36  ;;  %v10854_v27 = vadd.f32 %v10776_v46, %v9093_v19  ;;  %v17777_v30 = vld [vmem:[#allocation78_spill] sm:$0xff]  ;;  %v17779_v18 = vld [vmem:[#allocation132_spill] sm:$0xff] }
 0x532   : > { %v10787_v51 = vadd.f32 %v13287_v39, %v12951_v54  ;;  %v10778_v24 = vpop.f32.mrf.mxu0  ;;  %v12691_v55 = vadd.f32 %v17764_v45, %v17763_v0  ;;  %v8956_v20 = vadd.f32 %v17766_v23, %v8651_v28  ;;  %v17768_v54 = vld [vmem:[#allocation36_spill] sm:$0xff]  ;;  %v12960_v36 = vadd.f32 %v17006_v4, %v16997_v37  ;;  %v17773_v39 = vld [vmem:[#allocation133_spill] sm:$0xff] }
 0x533   : > { %12187 = vst [vmem:[%s16892_s30 + $0x38] sm:$0xff] %v12124_v11   ;;  %v12119_v32 = vpack.c.bf16 %v11057_v10, %v11056_v26  ;;  %v10934_v16 = vadd.f32 %v16837_v40, %v10895_v17  ;;  %v10893_v61 = vmul.f32 %v16822_v33, %v10854_v27  ;;  %v17043_v60 = vpop.f32.mrf.mxu1  ;;  %v10779_v21 = vadd.f32 %v12945_v43, %v10778_v24  ;;  %v17772_v43 = vld [vmem:[#allocation149_spill] sm:$0xff]  ;;  %v17774_v4 = vld [vmem:[#allocation148_spill] sm:$0xff] }
 0x534   : > { %v10857_v13 = vadd.f32 %v10787_v51, %v9104_v15  ;;  %v12685_v26 = vadd.f32 %v17768_v54, %v17767_v25  ;;  %v8654_v19 = vadd.f32 %v17769_v31, %v12691_v55  ;;  %v8948_v11 = vadd.f32 %v17770_v50, %v8643_v47  ;;  %v17775_v24 = vld [vmem:[#allocation129_spill] sm:$0xff]  ;;  %v17782_v54 = vld [vmem:[#allocation75_spill] sm:$0xff] }
 0x535   : > { %12186 = vst [vmem:[%s16892_s30 + $0x30] sm:$0xff] %v12119_v32   ;;  %v10932_v6 = vadd.f32 %v16837_v40, %v10893_v61  ;;  %v17052_v12 = vpop.f32.mrf.mxu1  ;;  %v10855_v9 = vadd.f32 %v10779_v21, %v9096_v53  ;;  %v11030_v41 = vadd.f32 %v12060_v49, %v10934_v16  ;;  %v12954_v15 = vadd.f32 %v16958_v57, %v16949_v48  ;;  %v12176_v57 = vld [vmem:[%s14246_s10 + $0x58] sm:$0xff]   ;;  %v17783_v31 = vld [vmem:[#allocation79_spill] sm:$0xff] }
 0x536   : > { %v10896_v56 = vmul.f32 %v16822_v33, %v10857_v13  ;;  %v8646_v22 = vadd.f32 %v12685_v26, %v17771_v1  ;;  %v8959_v35 = vadd.f32 %v17772_v43, %v8654_v19  ;;  %v9117_v32 = vadd.f32 %v17773_v39, %v8956_v20  ;;  %v17784_v19 = vld [vmem:[#allocation81_spill] sm:$0xff]  ;;  %v17786_v43 = vld [vmem:[#allocation94_spill] sm:$0xff] }
 0x537   : > { %v10894_v5 = vmul.f32 %v16822_v33, %v10855_v9  ;;  %v11028_v10 = vadd.f32 %v12056_v38, %v10932_v6  ;;  %v17065_v58 = vpop.f32.mrf.mxu1  ;;  %v11062_v27 = vmax.f32 %v11030_v41, 0.0  ;;  %v12963_v3 = vadd.f32 %v12962_v42, %v17019_v7  ;;  %v17778_v7 = vld [vmem:[#allocation131_spill] sm:$0xff] }
 0x538   : > { %v10935_v52 = vadd.f32 %v16837_v40, %v10896_v56  ;;  %v8951_v49 = vadd.f32 %v17774_v4, %v8646_v22  ;;  %v9109_v16 = vadd.f32 %v17775_v24, %v8948_v11  ;;  %v12700_v28 = vadd.f32 %v17777_v30, %v17776_v2  ;;  %v12175_v56 = vld [vmem:[%s14246_s10 + $0x50] sm:$0xff]   ;;  %v17792_v2 = vld [vmem:[#allocation150_spill] sm:$0xff] }
 0x539   : > { %v10933_v46 = vadd.f32 %v16837_v40, %v10894_v5  ;;  %v11060_v53 = vmax.f32 %v11028_v10, 0.0  ;;  %v17076_v8 = vpop.f32.mrf.mxu1  ;;  %v12957_v0 = vadd.f32 %v16983_v44, %v16971_v59  ;;  %v9120_v42 = vadd.f32 %v17778_v7, %v8959_v35  ;;  %v17780_v5 = vld [vmem:[#allocation39_spill] sm:$0xff]  ;;  %v17793_v7 = vld [vmem:[#allocation134_spill] sm:$0xff] }
 0x53a   : > { %v11031_v14 = vadd.f32 %v12061_v34, %v10935_v52  ;;  %v12068_v9 = vunpack.c.l.bf16 %v12176_v57  ;;  %v9112_v47 = vadd.f32 %v17779_v18, %v8951_v49  ;;  %v8667_v26 = vadd.f32 %v17782_v54, %v12700_v28  ;;  %v17785_v22 = vld [vmem:[#allocation51_spill] sm:$0xff] }
 0x53b   : > { %v13290_v17 = vpop.f32.mrf.mxu0  ;;  %v11029_v51 = vadd.f32 %v12057_v29, %v10933_v46  ;;  %v17781_v29 = vld [vmem:[#allocation43_spill] sm:$0xff]  ;;  %v12703_v50 = vadd.f32 %v17784_v19, %v17783_v31  ;;  %v12064_v11 = vunpack.c.l.bf16 %v12175_v56  ;;  %v12697_v35 = vadd.f32 %v17786_v43, %v17785_v22  ;;  %v12177_v19 = vld [vmem:[%s14246_s10 + $0x60] sm:$0xff]   ;;  %v17798_v43 = vld [vmem:[#allocation56_spill] sm:$0xff] }
 0x53c   : > { %v11063_v63 = vmax.f32 %v11031_v14, 0.0  ;;  %v10800_v37 = vadd.f32 %v13290_v17, %v12960_v36  ;;  %v12694_v25 = vadd.f32 %v17781_v29, %v17780_v5  ;;  %v12069_v14 = vunpack.c.h.bf16 %v12176_v57  ;;  %v17790_v24 = vld [vmem:[#allocation111_spill] sm:$0xff]  ;;  %v17796_v5 = vld [vmem:[#allocation136_spill] sm:$0xff] }
 0x53d   : > { %v10791_v61 = vpop.f32.mrf.mxu0  ;;  %v11061_v21 = vmax.f32 %v11029_v51, 0.0  ;;  %v12065_v4 = vunpack.c.h.bf16 %v12175_v56  ;;  %v12966_v28 = vadd.f32 %v17052_v12, %v17043_v60  ;;  %v12178_v12 = vld [vmem:[%s14246_s10 + $0x68] sm:$0xff]  }
 0x53e   : > { %v12134_v13 = vpack.c.bf16 %v11063_v63, %v11062_v27  ;;  %v10860_v48 = vadd.f32 %v10800_v37, %v9117_v32  ;;  %v10792_v62 = vadd.f32 %v12954_v15, %v10791_v61  ;;  %v17787_v15 = vld [vmem:[#allocation77_spill] sm:$0xff] }
 0x53f   : > { %v13291_v45 = vpop.f32.mrf.mxu0  ;;  %v12129_v55 = vpack.c.bf16 %v11061_v21, %v11060_v53  ;;  %v8659_v39 = vadd.f32 %v12694_v25, %v17787_v15  ;;  %v17788_v32 = vld [vmem:[#allocation101_spill] sm:$0xff] }
 0x540   : > { %12189 = vst [vmem:[%s16892_s30 + $0x48] sm:$0xff] %v12134_v13   ;;  %v10899_v38 = vmul.f32 %v16822_v33, %v10860_v48  ;;  %v10858_v6 = vadd.f32 %v10792_v62, %v9109_v16  ;;  %v10803_v34 = vadd.f32 %v13291_v45, %v12963_v3  ;;  %v8972_v17 = vadd.f32 %v17788_v32, %v8667_v26  ;;  %v17789_v3 = vld [vmem:[#allocation80_spill] sm:$0xff]  ;;  %v17791_v13 = vld [vmem:[#allocation83_spill] sm:$0xff] }
 0x541   : > { %v10794_v23 = vpop.f32.mrf.mxu0  ;;  %12188 = vst [vmem:[%s16892_s30 + $0x40] sm:$0xff] %v12129_v55   ;;  %v8670_v53 = vadd.f32 %v17789_v3, %v12703_v50  ;;  %v8964_v16 = vadd.f32 %v17790_v24, %v8659_v39  ;;  %v8662_v21 = vadd.f32 %v12697_v35, %v17791_v13  ;;  %v17799_v35 = vld [vmem:[#allocation84_spill] sm:$0xff]  ;;  %v12072_v39 = vunpack.c.l.bf16 %v12177_v19  ;;  %v17802_v13 = vld [vmem:[#allocation87_spill] sm:$0xff] }
 0x542   : > { %v10938_v20 = vadd.f32 %v16837_v40, %v10899_v38  ;;  %v10897_v41 = vmul.f32 %v16822_v33, %v10858_v6  ;;  %v12970_v59 = vpop.f32.mrf.mxu1  ;;  %v10861_v44 = vadd.f32 %v10803_v34, %v9120_v42  ;;  %v10795_v52 = vadd.f32 %v12957_v0, %v10794_v23  ;;  %v17794_v34 = vld [vmem:[#allocation109_spill] sm:$0xff] }
 0x543   : > { %v8975_v30 = vadd.f32 %v17792_v2, %v8670_v53  ;;  %v9133_v42 = vadd.f32 %v17793_v7, %v8972_v17  ;;  %v12706_v15 = vadd.f32 %v17799_v35, %v17798_v43  ;;  %v12073_v24 = vunpack.c.h.bf16 %v12177_v19  ;;  %v17805_v2 = vld [vmem:[#allocation151_spill] sm:$0xff]  ;;  %v17812_v19 = vld [vmem:[#allocation154_spill] sm:$0xff] }
 0x544   : > { %v10936_v10 = vadd.f32 %v16837_v40, %v10897_v41  ;;  %v10900_v36 = vmul.f32 %v16822_v33, %v10861_v44  ;;  %v12971_v46 = vpop.f32.mrf.mxu1  ;;  %v10859_v1 = vadd.f32 %v10795_v52, %v9112_v47  ;;  %v11034_v27 = vadd.f32 %v12068_v9, %v10938_v20  ;;  %v17795_v47 = vld [vmem:[#allocation135_spill] sm:$0xff]  ;;  %v17814_v35 = vld [vmem:[#allocation102_spill] sm:$0xff] }
 0x545   : > { %v12972_v51 = vadd.f32 %v12971_v46, %v12970_v59  ;;  %v8967_v9 = vadd.f32 %v17794_v34, %v8662_v21  ;;  %v9125_v23 = vadd.f32 %v17795_v47, %v8964_v16  ;;  %v12969_v52 = vadd.f32 %v17076_v8, %v17065_v58  ;;  %v17808_v34 = vld [vmem:[#allocation95_spill] sm:$0xff] }
 0x546   : > { %v10939_v63 = vadd.f32 %v16837_v40, %v10900_v36  ;;  %v10898_v37 = vmul.f32 %v16822_v33, %v10859_v1  ;;  %v12973_v49 = vpop.f32.mrf.mxu1  ;;  %v11032_v61 = vadd.f32 %v12064_v11, %v10936_v10  ;;  %v11066_v0 = vmax.f32 %v11034_v27, 0.0  ;;  %v17797_v10 = vld [vmem:[#allocation137_spill] sm:$0xff] }
 0x547   : > { %v9136_v29 = vadd.f32 %v17796_v5, %v8975_v30  ;;  %v12076_v11 = vunpack.c.l.bf16 %v12178_v12  ;;  %v9128_v36 = vadd.f32 %v17797_v10, %v8967_v9  ;;  %v12077_v27 = vunpack.c.h.bf16 %v12178_v12 }
 0x548   : > { %v11035_v48 = vadd.f32 %v12069_v14, %v10939_v63  ;;  %v10937_v57 = vadd.f32 %v16837_v40, %v10898_v37  ;;  %v12974_v62 = vpop.f32.mrf.mxu1  ;;  %v11064_v18 = vmax.f32 %v11032_v61, 0.0  ;;  %v17800_v37 = vld [vmem:[#allocation107_spill] sm:$0xff]  ;;  %v17801_v61 = vld [vmem:[#allocation105_spill] sm:$0xff] }
 0x549   : > { %v12975_v56 = vadd.f32 %v12974_v62, %v12973_v49  ;;  %v12709_v21 = vadd.f32 %v17802_v13, %v17801_v61 }
 0x54a   : > { %v11067_v55 = vmax.f32 %v11035_v48, 0.0  ;;  %v11033_v38 = vadd.f32 %v12065_v4, %v10937_v57  ;;  %v8675_v4 = vadd.f32 %v12706_v15, %v17800_v37  ;;  %v17803_v48 = vld [vmem:[#allocation89_spill] sm:$0xff]  ;;  %v17804_v57 = vld [vmem:[#allocation91_spill] sm:$0xff] }
 0x54b   : > { %v13294_v45 = vpop.f32.mrf.mxu0  ;;  %v12712_v62 = vadd.f32 %v17804_v57, %v17803_v48  ;;  %v12180_v57 = vld [vmem:[%s14246_s10 + $0x78] sm:$0xff]  }
 0x54c   : > { %v10816_v6 = vadd.f32 %v13294_v45, %v12972_v51  ;;  %v12144_v41 = vpack.c.bf16 %v11067_v55, %v11066_v0  ;;  %v11065_v59 = vmax.f32 %v11033_v38, 0.0  ;;  %v8980_v30 = vadd.f32 %v17805_v2, %v8675_v4  ;;  %v17806_v55 = vld [vmem:[#allocation90_spill] sm:$0xff] }
 0x54d   : > { %v10807_v20 = vpop.f32.mrf.mxu0  ;;  %v8678_v38 = vadd.f32 %v12709_v21, %v17806_v55  ;;  %v17817_v21 = vld [vmem:[#allocation141_spill] sm:$0xff] }
 0x54e   : > { %v10864_v60 = vadd.f32 %v10816_v6, %v9133_v42  ;;  %v10808_v44 = vadd.f32 %v12966_v28, %v10807_v20  ;;  %12191 = vst [vmem:[%s16892_s30 + $0x58] sm:$0xff] %v12144_v41   ;;  %v12139_v54 = vpack.c.bf16 %v11065_v59, %v11064_v18  ;;  %v17809_v41 = vld [vmem:[#allocation86_spill] sm:$0xff] }
 0x54f   : > { %v13295_v25 = vpop.f32.mrf.mxu0  ;;  %v12976_v58 = vpop.f32.mrf.mxu1  ;;  %v8683_v59 = vadd.f32 %v17809_v41, %v12712_v62 }
 0x550   : > { %v10903_v26 = vmul.f32 %v16822_v33, %v10864_v60  ;;  %v10862_v31 = vadd.f32 %v10808_v44, %v9125_v23  ;;  %v10819_v50 = vadd.f32 %v13295_v25, %v12975_v56  ;;  %12190 = vst [vmem:[%s16892_s30 + $0x50] sm:$0xff] %v12139_v54   ;;  %v17807_v56 = vld [vmem:[#allocation93_spill] sm:$0xff]  ;;  %v17810_v60 = vld [vmem:[#allocation152_spill] sm:$0xff] }
 0x551   : > { %v10810_v14 = vpop.f32.mrf.mxu0  ;;  %v12977_v63 = vpop.f32.mrf.mxu1  ;;  %v12715_v9 = vadd.f32 %v17808_v34, %v17807_v56  ;;  %v8983_v12 = vadd.f32 %v17810_v60, %v8678_v38  ;;  %v17811_v44 = vld [vmem:[#allocation140_spill] sm:$0xff]  ;;  %v12085_v56 = vunpack.c.h.bf16 %v12180_v57 }
 0x552   : > { %v10942_v46 = vadd.f32 %v16837_v40, %v10903_v26  ;;  %v10901_v1 = vmul.f32 %v16822_v33, %v10862_v31  ;;  %v10865_v8 = vadd.f32 %v10819_v50, %v9136_v29  ;;  %v10811_v22 = vadd.f32 %v12969_v52, %v10810_v14  ;;  %v17813_v14 = vld [vmem:[#allocation88_spill] sm:$0xff] }
 0x553   : > { %v12979_v16 = vpop.f32.mrf.mxu1  ;;  %v12978_v6 = vadd.f32 %v12977_v63, %v12976_v58  ;;  %v9141_v52 = vadd.f32 %v17811_v44, %v8980_v30  ;;  %v8988_v50 = vadd.f32 %v17812_v19, %v8683_v59  ;;  %v9144_v15 = vadd.f32 %v17814_v35, %v8983_v12 }
 0x554   : > { %v10940_v32 = vadd.f32 %v16837_v40, %v10901_v1  ;;  %v10904_v17 = vmul.f32 %v16822_v33, %v10865_v8  ;;  %v10863_v51 = vadd.f32 %v10811_v22, %v9128_v36  ;;  %v11038_v49 = vadd.f32 %v12076_v11, %v10942_v46  ;;  %v13298_v42 = vpop.f32.mrf.mxu0  ;;  %v12179_v36 = vld [vmem:[%s14246_s10 + $0x70] sm:$0xff]   ;;  %s11250_s10 = sshll.u32 %s16892_s30, 4  ;;  %s17169_s10 = int_to_ptr.vmem [resolvable:$true] %s11250_s10 }
 0x555   : > { %v12980_v45 = vpop.f32.mrf.mxu1  ;;  %v8686_v46 = vadd.f32 %v17813_v14, %v12715_v9  ;;  %v12081_v61 = vunpack.c.h.bf16 %v12179_v36  ;;  %s13985_s19 = scalar_lea.vmem %s17169_s10, 2048  ;;  %p13992_p13 = scmp.lt.s32.totalorder %s17169_s10, %s13990_s21 }
 0x556   : > { %v10943_v3 = vadd.f32 %v16837_v40, %v10904_v17  ;;  %v10902_v53 = vmul.f32 %v16822_v33, %v10863_v51  ;;  %v11036_v28 = vadd.f32 %v12072_v39, %v10940_v32  ;;  %v11070_v18 = vmax.f32 %v11038_v49, 0.0  ;;  %v10823_v20 = vpop.f32.mrf.mxu0  ;;  %v17815_v32 = vld [vmem:[#allocation156_spill] sm:$0xff]  ;;  %v17816_v51 = vld [vmem:[#allocation139_spill] sm:$0xff]  ;;  %p13986_p5 = scmp.ne.s32.totalorder %s17169_s10, %s13985_s19  ;;  %p13993_p0 = scmp.lt.s32.totalorder %s13991_s13, %s13985_s19 }
 0x557   : > { %v10824_v5 = vadd.f32 %v12978_v6, %v10823_v20  ;;  %v12981_v11 = vadd.f32 %v12980_v45, %v12979_v16  ;;  %v8991_v17 = vadd.f32 %v17815_v32, %v8686_v46  ;;  %v9149_v37 = vadd.f32 %v17816_v51, %v8988_v50 }
 0x558   : > { %v11039_v0 = vadd.f32 %v12077_v27, %v10943_v3  ;;  %v10941_v7 = vadd.f32 %v16837_v40, %v10902_v53  ;;  %v11068_v29 = vmax.f32 %v11036_v28, 0.0  ;;  %v13299_v31 = vpop.f32.mrf.mxu0  ;;  %v12080_v27 = vunpack.c.l.bf16 %v12179_v36  ;;  %p13987_p7 = pnand %p13986_p5, %p17818_p2  ;;  %p13994_p10 = por %p13993_p0, %p13992_p13 }
 0x559   : > { %v10866_v10 = vadd.f32 %v10824_v5, %v9141_v52  ;;  %v9152_v48 = vadd.f32 %v17817_v21, %v8991_v17 }
 0x55a   : > { %v11071_v47 = vmax.f32 %v11039_v0, 0.0  ;;  %v11037_v23 = vadd.f32 %v12073_v24, %v10941_v7  ;;  %v10826_v8 = vpop.f32.mrf.mxu0  ;;  %v12084_v7 = vunpack.c.l.bf16 %v12180_v57  ;;  %p13988_p12 = pneg %p13987_p7 }
 0x55b   : > { %v12982_v26 = vpop.f32.mrf.mxu1  ;;  %v10905_v22 = vmul.f32 %v16822_v33, %v10866_v10  ;;  %v10827_v39 = vadd.f32 %v12981_v11, %v10826_v8 }
 0x55c   : > { %v12154_v25 = vpack.c.bf16 %v11071_v47, %v11070_v18  ;;  %v11069_v54 = vmax.f32 %v11037_v23, 0.0  ;;  %p13995_p3 = pnand %p13994_p10, %p13988_p12 }
 0x55d   : > { %v12983_v58 = vpop.f32.mrf.mxu1  ;;  %v10944_v4 = vadd.f32 %v16837_v40, %v10905_v22  ;;  %v10867_v3 = vadd.f32 %v10827_v39, %v9144_v15 }
 0x55e   : > { %12193 = vst [vmem:[%s16892_s30 + $0x68] sm:$0xff] %v12154_v25   ;;  %v12149_v1 = vpack.c.bf16 %v11069_v54, %v11068_v29  ;;  %v12984_v43 = vadd.f32 %v12983_v58, %v12982_v26 }
 0x55f   : > { %v12985_v63 = vpop.f32.mrf.mxu1  ;;  %v10906_v16 = vmul.f32 %v16822_v33, %v10867_v3  ;;  %v11040_v62 = vadd.f32 %v12080_v27, %v10944_v4 }
 0x560   : > { %12192 = vst [vmem:[%s16892_s30 + $0x60] sm:$0xff] %v12149_v1   ;;  %v10832_v49 = vadd.f32 %v13298_v42, %v12984_v43 }
 0x561   : > { %v12986_v53 = vpop.f32.mrf.mxu1  ;;  %v10945_v30 = vadd.f32 %v16837_v40, %v10906_v16  ;;  %v11072_v55 = vmax.f32 %v11040_v62, 0.0 }
 0x562   : > { %v10868_v24 = vadd.f32 %v10832_v49, %v9149_v37  ;;  %v12987_v13 = vadd.f32 %v12986_v53, %v12985_v63 }
 0x563   : > { %v11041_v42 = vadd.f32 %v12081_v61, %v10945_v30 }
 0x564   : > { %v10907_v2 = vmul.f32 %v16822_v33, %v10868_v24  ;;  %v10835_v28 = vadd.f32 %v13299_v31, %v12987_v13 }
 0x565   : > { %v11073_v38 = vmax.f32 %v11041_v42, 0.0 }
 0x566   : > { %v10946_v0 = vadd.f32 %v16837_v40, %v10907_v2  ;;  %v10869_v45 = vadd.f32 %v10835_v28, %v9152_v48 }
 0x567   : > { %v12159_v9 = vpack.c.bf16 %v11073_v38, %v11072_v55 }
 0x568   : > { %v10908_v6 = vmul.f32 %v16822_v33, %v10869_v45  ;;  %v11042_v34 = vadd.f32 %v12084_v7, %v10946_v0 }
 0x569   : > { %12194 = vst [vmem:[%s16892_s30 + $0x70] sm:$0xff] %v12159_v9  }
 0x56a   : > { %v10947_v18 = vadd.f32 %v16837_v40, %v10908_v6  ;;  %v11074_v23 = vmax.f32 %v11042_v34, 0.0 }
 0x56c   : > { %v11043_v47 = vadd.f32 %v12085_v56, %v10947_v18 }
 0x56e   : > { %v11075_v20 = vmax.f32 %v11043_v47, 0.0 }
 0x570   : > { %v12164_v33 = vpack.c.bf16 %v11075_v20, %v11074_v23 }
 0x572   : > { %12195 = vst [vmem:[%s16892_s30 + $0x78] sm:$0xff] %v12164_v33  }
 0x573   : > { %13998 = shalt.err (!%p13995_p3)
}
 0x574   : > { %s13999_s14 = scalar_lea.hbm %s17167_s22, 2048  ;;  %s14003_s15 = scalar_lea.hbm %s17220_s7, 4096 }
 0x575   : > { %p14000_p11 = scmp.ne.s32.totalorder %s17167_s22, %s13999_s14  ;;  %p14004_p4 = scmp.lt.s32.totalorder %s17167_s22, %s17220_s7 }
 0x576   : > { %p14005_p6 = scmp.lt.s32.totalorder %s14003_s15, %s13999_s14 }
 0x577   : > { %p14001_p9 = pnand %p14000_p11, %p17818_p2 }
 0x578   : > { %p14006_p8 = por %p14005_p6, %p14004_p4 }
 0x579   : > { %p14002_p1 = pneg %p14001_p9 }
 0x57b   : > { %p14007_p5 = pnand %p14006_p8, %p14002_p1 }
 0x57d   : > { %14010 = shalt.err (!%p14007_p5)
}
 0x57e   : > { %s14062_s9 = smov 64   ;;  %s14063_s20 = smov 4  }
 0x57f   : > { %13310 = dma.vmem_to_hbm [thread:$0]  (%p17818_p2), %s17169_s10, 2048, %s17167_s22, %s11237_s29, %s14062_s9, %s14062_s9, %s14063_s20  }
 0x580 PF: > { %s11265_s19 = sand.u32 1, %s14041_s24   ;;  %p17819_p7 = scmp.ne.s32.totalorder %s17230_s8, 0 }
 0x581   : > { %p17820_p12 = scmp.ge.s32.totalorder %s14053_s27, 2  ;;  %s11266_s28 = scalar_lea.sflag [#allocation5], %s11265_s19 }
 0x583   : > { %p13324_p13 = pnand %p17820_p12, %p17819_p7 }
 0x585   : > { %p13325_p0 = pneg %p13324_p13 }
 0x587   : > { %14036 = dma.done.wait (%p13325_p0), %s11266_s28, 2048  }
 0x588   : > { %14038 = vsyncadd (%p13325_p0), %s11266_s28, 4294965248  ;;  %p21_p10 = scmp.ge.s32.totalorder %s14182_s23, 4   ;;  %s17821_s24 = smov %s14045_s25 }
 0x589   : > { %s17822_s25 = smov %s14049_s26  ;;  %s17823_s26 = smov %s14198_s12 }
 0x58a   : > { %s17824_s27 = smov %s14182_s23  ;;  %23 = sbr.rel (!%p21_p10) target bundleno = 8 (0x8), region = 108 }
 0x58f   :  { %11271 = vsyncpa [#allocation4], 1 }
 0x590   :  { %11273 = vsyncpa [#allocation4 + $0x1], 1 }
 0x591   :  { %11274 = vsyncpa [#allocation7], 1 }
 0x592   :  { %11275 = vsyncpa [#allocation5], 1 }
 0x593   :  { %11277 = vsyncpa [#allocation5 + $0x1], 1 }

</bundles_post_ra>
